<compile_context>
chip_gen: v7x
topology: tpu7x:2x2x1
jax: 0.10.0
libtpu: 0.0.40
codegen_flags: <defaults>
</compile_context>

<pallas_src>
import functools

import jax
import jax.numpy as jnp
from jax import lax
from jax.experimental import pallas as pl
from jax.experimental.pallas import tpu as pltpu


# ----------------------------------------------------------------------------
# Small helpers.
# ----------------------------------------------------------------------------
def _leaky(v, ns):
    return jnp.where(v >= 0, v, ns * v)


def _round_up(x, m):
    return (x + m - 1) // m * m


def _pack3x3_taps(w_hwio):
    """HWIO (3,3,Cin,Cout) -> (9, Cout, Cin); tap k = (kh+1)*3 + (kw+1)."""
    return jnp.transpose(w_hwio, (0, 1, 3, 2)).reshape(
        9, w_hwio.shape[3], w_hwio.shape[2])


def _acc_conv3x3(srcs, dil, WP, Lc, Omax):
    """3x3 conv (dilation `dil`) as 9 accumulated (Cout,Cin)x(Cin,Lc) matmuls.

    srcs: list of (w_taps value of shape (9, Cout, Cin), src ref (Cin, LIN)).
    Each tap is a *static* lane-axis slice of the flat extended buffer; no
    (9*Cin, Lc) im2col matrix is ever materialized.
    """
    acc = None
    k = 0
    for kh in (-1, 0, 1):
        for kw in (-1, 0, 1):
            o = Omax + dil * (kh * WP + kw)
            for w_taps, src in srcs:
                t = jnp.dot(w_taps[k], src[:, o:o + Lc],
                            preferred_element_type=jnp.float32)
                acc = t if acc is None else acc + t
            k += 1
    return acc


def _mdcu_core(src_ref, mask, w1, b1, wd, bd, w2, b2, out1_ext, *,
               factor, WP, Lc, Omax, ns):
    """conv1 + `factor` dilated convs + per-branch 1x1 accumulation + residual.

    src_ref: (C, LIN) ref holding x (or `off`) embedded with a zero ring/halo.
    out1_ext: (C, LIN) VMEM scratch (halos already zeroed by the caller).
    Returns (C, Lc) f32 = src + LeakyReLU(conv2(cat(branches))).
    """
    # conv1 (3x3, dilation 1) + bias + LeakyReLU; zero outside the valid HxW
    # interior (== PyTorch's zero padding of out1 for the dilated convs).
    y1 = _acc_conv3x3([(w1, src_ref)], 1, WP, Lc, Omax)
    y1 = _leaky(y1 + b1, ns) * mask
    out1_ext[:, Omax:Omax + Lc] = y1.astype(out1_ext.dtype)

    # `factor` dilated 3x3 convs; the 1x1 conv is folded in per branch so
    # `combine` never exists and only one branch result is live at a time.
    y2 = None
    for i in range(factor):
        yi = _acc_conv3x3([(wd[i], out1_ext)], i + 1, WP, Lc, Omax)
        yi = _leaky(yi + bd[i], ns)
        t = jnp.dot(w2[i], yi, preferred_element_type=jnp.float32)
        y2 = t if y2 is None else y2 + t
    out2 = _leaky(y2 + b2, ns)

    # Residual add (f32 source; garbage lanes outside the interior are cropped
    # by the wrapper and never aliased).
    return src_ref[:, Omax:Omax + Lc].astype(jnp.float32) + out2


# ----------------------------------------------------------------------------
# Kernel bodies.
# ----------------------------------------------------------------------------
def _mdcu_kernel(x_ref, mask_ref, w1_ref, b1_ref, wd_ref, bd_ref, w2_ref,
                 b2_ref, o_ref, out1_ext, *, factor, WP, Lc, Omax, ns):
    C = o_ref.shape[0]
    hz = jnp.zeros((C, Omax), out1_ext.dtype)
    out1_ext[:, :Omax] = hz                       # zero only the flat halos
    out1_ext[:, Omax + Lc:] = hz
    out = _mdcu_core(x_ref, mask_ref[...],
                     w1_ref[...], b1_ref[...], wd_ref[...], bd_ref[...],
                     w2_ref[...], b2_ref[...], out1_ext,
                     factor=factor, WP=WP, Lc=Lc, Omax=Omax, ns=ns)
    o_ref[...] = out.astype(o_ref.dtype)          # (C, Lc), Lc % 128 == 0


def _cd_branch_kernel(nbr_ref, ref_ref, mask_ref, wocn_ref, wocr_ref, boc_ref,
                      w1_ref, b1_ref, wd_ref, bd_ref, w2_ref, b2_ref,
                      o_ref, off_ext, out1_ext, *, factor, WP, Lc, Omax, ns):
    C = o_ref.shape[0]
    mask = mask_ref[...]

    hz32 = jnp.zeros((C, Omax), jnp.float32)
    off_ext[:, :Omax] = hz32
    off_ext[:, Omax + Lc:] = hz32
    hz = jnp.zeros((C, Omax), out1_ext.dtype)
    out1_ext[:, :Omax] = hz
    out1_ext[:, Omax + Lc:] = hz

    # offset_conv1 over channel-concat(nbr, ref): the concat never happens —
    # each tap accumulates two matmuls (nbr half + ref half of the weight).
    y = _acc_conv3x3([(wocn_ref[...], nbr_ref), (wocr_ref[...], ref_ref)],
                     1, WP, Lc, Omax)
    y = _leaky(y + boc_ref[...], ns) * mask       # `off`, zeroed outside HxW
    off_ext[:, Omax:Omax + Lc] = y                # f32; MDCU input + residual

    out = _mdcu_core(off_ext, mask,
                     w1_ref[...], b1_ref[...], wd_ref[...], bd_ref[...],
                     w2_ref[...], b2_ref[...], out1_ext,
                     factor=factor, WP=WP, Lc=Lc, Omax=Omax, ns=ns)
    o_ref[...] = out.astype(o_ref.dtype)


# ----------------------------------------------------------------------------
# Host-side layout planning / packing.
# ----------------------------------------------------------------------------
def _plan(N, H, W, factor):
    d_max = factor
    P = d_max                            # big-domain spatial zero pad
    HP, WP = H + 2 * P, W + 2 * P
    LP = HP * WP
    HR = -(-(d_max * (WP + 1)) // WP)    # halo rows: Omax = HR*WP >= d*(WP+1)
    Omax = HR * WP
    LE = LP + 2 * Omax                   # per-image extended flat length
    Lacc = N * LE - 2 * Omax             # lanes holding real per-image data
    Lc = _round_up(Lacc, 128)            # lane-dense compute/output width
    LIN = Lc + 2 * Omax                  # input / scratch flat length
    # Invariants the flat-tap trick relies on (see review correctness notes).
    assert P >= d_max and Omax >= d_max * (WP + 1), "halo too small"
    assert Lc % 128 == 0 and LIN >= N * LE
    return dict(P=P, HP=HP, WP=WP, LP=LP, HR=HR, Omax=Omax, LE=LE,
                Lacc=Lacc, Lc=Lc, LIN=LIN)


def _flatten_ext(x_nchw, plan, dtype):
    """(N,C,H,W) -> (C, LIN): per-image zero-padded big domain, flattened on
    the lane axis with whole-row zero halos, batch concatenated along lanes.
    Single pad + transpose + reshape (+ tail pad) — XLA fuses into one copy."""
    N, C, H, W = x_nchw.shape
    P, HR, LIN, LE = plan["P"], plan["HR"], plan["LIN"], plan["LE"]
    xe = jnp.pad(x_nchw, ((0, 0), (0, 0), (P + HR, P + HR), (P, P)))
    xf = jnp.transpose(xe, (1, 0, 2, 3)).reshape(C, N * LE)
    return jnp.pad(xf, ((0, 0), (0, LIN - N * LE))).astype(dtype)


def _interior_mask(N, H, W, plan):
    """(1, Lc) f32: 1 on each image's valid HxW interior, 0 on the big-domain
    ring, the inter-image slop lanes and the 128-alignment tail."""
    P, HP, WP, LP, LE, Lc = (plan[k] for k in ("P", "HP", "WP", "LP", "LE", "Lc"))
    m2 = jnp.zeros((HP, WP), jnp.float32).at[P:P + H, P:P + W].set(1.0)
    m_img = jnp.pad(m2.reshape(LP), (0, LE - LP))
    m = jnp.tile(m_img, N)
    m = jnp.pad(m, (0, max(0, Lc - N * LE)))[:Lc]
    return m.reshape(1, Lc)


def _extract(out_flat, N, C, H, W, plan):
    """(C, Lc) kernel output -> (N, C, H, W) valid interior."""
    P, HP, WP, LP, LE, Lacc = (plan[k] for k in
                               ("P", "HP", "WP", "LP", "LE", "Lacc"))
    o = jnp.pad(out_flat[:, :Lacc], ((0, 0), (0, N * LE - Lacc)))
    o = o.reshape(C, N, LE)[:, :, :LP].reshape(C, N, HP, WP)
    return jnp.transpose(o[:, :, P:P + H, P:P + W], (1, 0, 2, 3))


def pack_mdcu_params(params, factor, compute_dtype=jnp.float32):
    """One-time weight packing (hoisted out of the per-call path)."""
    C = params["w1"].shape[2]
    Ch = C // 2
    w1 = _pack3x3_taps(params["w1"]).astype(compute_dtype)              # (9,C,C)
    b1 = params["b1"].reshape(C, 1).astype(jnp.float32)
    wd = jnp.stack([_pack3x3_taps(params["wd"][i]) for i in range(factor)]
                   ).astype(compute_dtype)                              # (f,9,Ch,C)
    bd = jnp.stack([params["bd"][i].reshape(Ch, 1) for i in range(factor)]
                   ).astype(jnp.float32)                                # (f,Ch,1)
    w2 = jnp.stack([params["w2"][i * Ch:(i + 1) * Ch, :].T
                    for i in range(factor)]).astype(compute_dtype)      # (f,C,Ch)
    b2 = params["b2"].reshape(C, 1).astype(jnp.float32)
    return dict(w1=w1, b1=b1, wd=wd, bd=bd, w2=w2, b2=b2)


def pack_offset_conv1(w_hwio, bias, n_feat, compute_dtype=jnp.float32):
    wt = _pack3x3_taps(w_hwio)                                          # (9,C,2C)
    return dict(wn=wt[:, :, :n_feat].astype(compute_dtype),
                wr=wt[:, :, n_feat:].astype(compute_dtype),
                b=bias.reshape(n_feat, 1).astype(jnp.float32))


# ----------------------------------------------------------------------------
# Forward wrappers (one pallas_call each).
# ----------------------------------------------------------------------------
@functools.partial(jax.jit,
                   static_argnames=("factor", "negative_slope", "compute_dtype"))
def mdcu_forward_pallas(x_nchw, packed, *, factor, negative_slope=0.1,
                        compute_dtype=jnp.float32):
    """MDCU forward.  x_nchw: (N, n_feat, H, W), packed = pack_mdcu_params."""
    N, C, H, W = x_nchw.shape
    assert C % 2 == 0
    plan = _plan(N, H, W, factor)
    Lc, LIN, WP, Omax = plan["Lc"], plan["LIN"], plan["WP"], plan["Omax"]
    Ch = C // 2

    x_ext = _flatten_ext(x_nchw, plan, compute_dtype)
    mask = _interior_mask(N, H, W, plan)

    kernel = functools.partial(_mdcu_kernel, factor=factor, WP=WP, Lc=Lc,
                               Omax=Omax, ns=negative_slope)
    out_flat = pl.pallas_call(
        kernel,
        out_shape=jax.ShapeDtypeStruct((C, Lc), x_nchw.dtype),
        grid_spec=pltpu.PrefetchScalarGridSpec(
            num_scalar_prefetch=0,
            grid=(1,),
            in_specs=[
                pl.BlockSpec((C, LIN), lambda n: (0, 0)),            # x
                pl.BlockSpec((1, Lc), lambda n: (0, 0)),             # mask
                pl.BlockSpec((9, C, C), lambda n: (0, 0, 0)),        # w1
                pl.BlockSpec((C, 1), lambda n: (0, 0)),              # b1
                pl.BlockSpec((factor, 9, Ch, C), lambda n: (0, 0, 0, 0)),
                pl.BlockSpec((factor, Ch, 1), lambda n: (0, 0, 0)),
                pl.BlockSpec((factor, C, Ch), lambda n: (0, 0, 0)),
                pl.BlockSpec((C, 1), lambda n: (0, 0)),              # b2
            ],
            out_specs=pl.BlockSpec((C, Lc), lambda n: (0, 0)),
            scratch_shapes=[pltpu.VMEM((C, LIN), compute_dtype)],    # out1
        ),
        compiler_params=pltpu.CompilerParams(
            dimension_semantics=("arbitrary",)),
    )(x_ext, mask, packed["w1"], packed["b1"], packed["wd"], packed["bd"],
      packed["w2"], packed["b2"])

    return _extract(out_flat, N, C, H, W, plan)


@functools.partial(jax.jit,
                   static_argnames=("factor", "negative_slope", "compute_dtype"))
def cd_align_offset_branch_pallas(nbr, ref_fea, packed_oc, packed_mdcu, *,
                                  factor, negative_slope=0.1,
                                  compute_dtype=jnp.float32):
    """One CD_Align block's offset branch, fully fused in ONE pallas_call:
    cat(nbr, ref) -> offset_conv1 -> LeakyReLU -> MDCU (+ residual)."""
    N, C, H, W = nbr.shape
    plan = _plan(N, H, W, factor)
    Lc, LIN, WP, Omax = plan["Lc"], plan["LIN"], plan["WP"], plan["Omax"]
    Ch = C // 2

    nbr_ext = _flatten_ext(nbr, plan, compute_dtype)
    ref_ext = _flatten_ext(ref_fea, plan, compute_dtype)
    mask = _interior_mask(N, H, W, plan)

    kernel = functools.partial(_cd_branch_kernel, factor=factor, WP=WP, Lc=Lc,
                               Omax=Omax, ns=negative_slope)
    out_flat = pl.pallas_call(
        kernel,
        out_shape=jax.ShapeDtypeStruct((C, Lc), nbr.dtype),
        grid_spec=pltpu.PrefetchScalarGridSpec(
            num_scalar_prefetch=0,
            grid=(1,),
            in_specs=[
                pl.BlockSpec((C, LIN), lambda n: (0, 0)),            # nbr
                pl.BlockSpec((C, LIN), lambda n: (0, 0)),            # ref
                pl.BlockSpec((1, Lc), lambda n: (0, 0)),             # mask
                pl.BlockSpec((9, C, C), lambda n: (0, 0, 0)),        # oc1 w (nbr)
                pl.BlockSpec((9, C, C), lambda n: (0, 0, 0)),        # oc1 w (ref)
                pl.BlockSpec((C, 1), lambda n: (0, 0)),              # oc1 b
                pl.BlockSpec((9, C, C), lambda n: (0, 0, 0)),        # w1
                pl.BlockSpec((C, 1), lambda n: (0, 0)),              # b1
                pl.BlockSpec((factor, 9, Ch, C), lambda n: (0, 0, 0, 0)),
                pl.BlockSpec((factor, Ch, 1), lambda n: (0, 0, 0)),
                pl.BlockSpec((factor, C, Ch), lambda n: (0, 0, 0)),
                pl.BlockSpec((C, 1), lambda n: (0, 0)),              # b2
            ],
            out_specs=pl.BlockSpec((C, Lc), lambda n: (0, 0)),
            scratch_shapes=[pltpu.VMEM((C, LIN), jnp.float32),       # off (f32)
                            pltpu.VMEM((C, LIN), compute_dtype)],    # out1
        ),
        compiler_params=pltpu.CompilerParams(
            dimension_semantics=("arbitrary",)),
    )(nbr_ext, ref_ext, mask, packed_oc["wn"], packed_oc["wr"], packed_oc["b"],
      packed_mdcu["w1"], packed_mdcu["b1"], packed_mdcu["wd"],
      packed_mdcu["bd"], packed_mdcu["w2"], packed_mdcu["b2"])

    return _extract(out_flat, N, C, H, W, plan)


# ----------------------------------------------------------------------------
# Deterministic parameter init (HWIO weights, matching the PyTorch shapes).
# ----------------------------------------------------------------------------
def init_mdcu_params(key, n_feat, factor, dtype=jnp.float32):
    keys = jax.random.split(key, 2 * (factor + 2))
    scale = 0.05
    params = {}
    params["w1"] = scale * jax.random.normal(keys[0], (3, 3, n_feat, n_feat), dtype)
    params["b1"] = scale * jax.random.normal(keys[1], (n_feat,), dtype)
    params["wd"], params["bd"] = [], []
    for i in range(factor):
        params["wd"].append(scale * jax.random.normal(
            keys[2 + 2 * i], (3, 3, n_feat, n_feat // 2), dtype))
        params["bd"].append(scale * jax.random.normal(
            keys[3 + 2 * i], (n_feat // 2,), dtype))
    cmid = n_feat * factor // 2
    params["w2"] = scale * jax.random.normal(keys[-2], (cmid, n_feat), dtype)
    params["b2"] = scale * jax.random.normal(keys[-1], (n_feat,), dtype)
    return params


# ----------------------------------------------------------------------------
# Pure-JAX references (lax convs) for correctness checks.
# ----------------------------------------------------------------------------
def _conv_ref(x, w_hwio, b, dilation, padding):
    dn = lax.conv_dimension_numbers(x.shape, w_hwio.shape, ("NCHW", "HWIO", "NCHW"))
    y = lax.conv_general_dilated(
        x, w_hwio, window_strides=(1, 1),
        padding=((padding, padding), (padding, padding)),
        rhs_dilation=(dilation, dilation), dimension_numbers=dn)
    return y + b.reshape(1, -1, 1, 1)


def mdcu_forward_ref(x, params, factor):
    out1 = _leaky(_conv_ref(x, params["w1"], params["b1"], 1, 1), 0.1)
    d_res = [_leaky(_conv_ref(out1, params["wd"][i], params["bd"][i], i + 1, i + 1), 0.1)
             for i in range(factor)]
    combine = jnp.concatenate(d_res, axis=1)
    w2 = params["w2"].reshape(1, 1, *params["w2"].shape)            # (1,1,Cmid,C)
    out2 = _leaky(_conv_ref(combine, w2, params["b2"], 1, 0), 0.1)  # 1x1, pad=0
    return x + out2


def cd_align_offset_branch_ref(nbr, ref_fea, oc1_w, oc1_b, params, factor):
    feat = jnp.concatenate([nbr, ref_fea], axis=1)
    off = _leaky(_conv_ref(feat, oc1_w, oc1_b, 1, 1), 0.1)
    return mdcu_forward_ref(off, params, factor)


# ----------------------------------------------------------------------------
if __name__ == "__main__":
    n_feat, factor = 8, 4            # MDCU inside a CD_Align block (bn=4, i=2)
    N, H, W = 2, 16, 16

    key = jax.random.PRNGKey(0)
    k_x, k_r, k_p, k_w, k_b = jax.random.split(key, 5)
    nbr = jax.random.normal(k_x, (N, n_feat, H, W), jnp.float32)      # NCHW
    ref_fea = jax.random.normal(k_r, (N, n_feat, H, W), jnp.float32)
    params = init_mdcu_params(k_p, n_feat, factor)
    oc1_w = 0.05 * jax.random.normal(k_w, (3, 3, 2 * n_feat, n_feat), jnp.float32)
    oc1_b = 0.05 * jax.random.normal(k_b, (n_feat,), jnp.float32)

    # One-time packing (hoisted out of the forward path).
    pk_f32 = pack_mdcu_params(params, factor, jnp.float32)
    po_f32 = pack_offset_conv1(oc1_w, oc1_b, n_feat, jnp.float32)
    pk_bf16 = pack_mdcu_params(params, factor, jnp.bfloat16)

    # 1) fused MDCU kernel (f32) vs. lax reference.
    out = jax.block_until_ready(mdcu_forward_pallas(nbr, pk_f32, factor=factor))
    ref = jax.block_until_ready(mdcu_forward_ref(nbr, params, factor))
    assert out.shape == nbr.shape and out.dtype == nbr.dtype
    assert jnp.allclose(out, ref, rtol=1e-3, atol=1e-3), "MDCU mismatch vs reference"

    # 2) bf16 activations / weights (v6e/v7x path), f32 accumulation.
    out_bf16 = jax.block_until_ready(
        mdcu_forward_pallas(nbr, pk_bf16, factor=factor,
                            compute_dtype=jnp.bfloat16))
    assert jnp.allclose(out_bf16, ref, rtol=1e-1, atol=1e-1), "MDCU bf16 mismatch"

    # 3) CD_Align block offset branch, fully fused in one pallas_call.
    branch = jax.block_until_ready(
        cd_align_offset_branch_pallas(nbr, ref_fea, po_f32, pk_f32, factor=factor))
    branch_ref = jax.block_until_ready(
        cd_align_offset_branch_ref(nbr, ref_fea, oc1_w, oc1_b, params, factor))
    assert jnp.allclose(branch, branch_ref, rtol=1e-3, atol=1e-3), \
        "CD_Align offset branch mismatch vs reference"

    print("KERNEL_OK")
</pallas_src>

<mosaic_0001>
module attributes {stable_mosaic.version = 11 : i64} {
  func.func @_mdcu_kernel(%arg0: i32, %arg1: memref<8x1648xf32, #tpu.memory_space<vmem>>, %arg2: memref<1x1408xf32, #tpu.memory_space<vmem>>, %arg3: memref<9x8x8xf32, #tpu.memory_space<vmem>>, %arg4: memref<8x1xf32, #tpu.memory_space<vmem>>, %arg5: memref<4x9x4x8xf32, #tpu.memory_space<vmem>>, %arg6: memref<4x4x1xf32, #tpu.memory_space<vmem>>, %arg7: memref<4x8x4xf32, #tpu.memory_space<vmem>>, %arg8: memref<8x1xf32, #tpu.memory_space<vmem>>, %arg9: memref<8x1408xf32, #tpu.memory_space<vmem>>, %arg10: memref<8x1648xf32, #tpu.memory_space<vmem>>) attributes {dimension_semantics = [#tpu.dimension_semantics<arbitrary>], iteration_bounds = array<i64: 1>, scalar_prefetch = 0 : i64, scratch_operands = 1 : i64, tpu.core_type = #tpu.core_type<tc>, window_params = [{pipeline_mode = #tpu.pipeline_mode<synchronous>, transform_indices = @transform_0, window_bounds = array<i64: 8, 1648>}, {pipeline_mode = #tpu.pipeline_mode<synchronous>, transform_indices = @transform_1, window_bounds = array<i64: 1, 1408>}, {pipeline_mode = #tpu.pipeline_mode<synchronous>, transform_indices = @transform_2, window_bounds = array<i64: 9, 8, 8>}, {pipeline_mode = #tpu.pipeline_mode<synchronous>, transform_indices = @transform_3, window_bounds = array<i64: 8, 1>}, {pipeline_mode = #tpu.pipeline_mode<synchronous>, transform_indices = @transform_4, window_bounds = array<i64: 4, 9, 4, 8>}, {pipeline_mode = #tpu.pipeline_mode<synchronous>, transform_indices = @transform_5, window_bounds = array<i64: 4, 4, 1>}, {pipeline_mode = #tpu.pipeline_mode<synchronous>, transform_indices = @transform_6, window_bounds = array<i64: 4, 8, 4>}, {pipeline_mode = #tpu.pipeline_mode<synchronous>, transform_indices = @transform_7, window_bounds = array<i64: 8, 1>}, {pipeline_mode = #tpu.pipeline_mode<synchronous>, transform_indices = @transform_8, window_bounds = array<i64: 8, 1408>}]} {
    %cst = arith.constant 0.000000e+00 : f32
    %0 = vector.broadcast %cst : f32 to vector<8x120xf32>
    %c0 = arith.constant 0 : index
    %c0_0 = arith.constant 0 : index
    %1 = vector.load %arg10[%c0, %c0_0] : memref<8x1648xf32, #tpu.memory_space<vmem>>, vector<8x120xf32>
    tpu.vector_store %arg10[%c0, %c0_0], %0 {strides = array<i32>} : memref<8x1648xf32, #tpu.memory_space<vmem>>, vector<8x120xf32>,
    %c0_1 = arith.constant 0 : index
    %c1528 = arith.constant 1528 : index
    %2 = vector.load %arg10[%c0_1, %c1528] : memref<8x1648xf32, #tpu.memory_space<vmem>>, vector<8x120xf32>
    tpu.vector_store %arg10[%c0_1, %c1528], %0 {strides = array<i32>} : memref<8x1648xf32, #tpu.memory_space<vmem>>, vector<8x120xf32>,
    %c0_2 = arith.constant 0 : index
    %c0_3 = arith.constant 0 : index
    %3 = vector.load %arg2[%c0_2, %c0_3] : memref<1x1408xf32, #tpu.memory_space<vmem>>, vector<1x1408xf32>
    %c0_4 = arith.constant 0 : index
    %c0_5 = arith.constant 0 : index
    %c0_6 = arith.constant 0 : index
    %4 = vector.load %arg3[%c0_4, %c0_5, %c0_6] : memref<9x8x8xf32, #tpu.memory_space<vmem>>, vector<9x8x8xf32>
    %c0_7 = arith.constant 0 : index
    %c0_8 = arith.constant 0 : index
    %5 = vector.load %arg4[%c0_7, %c0_8] : memref<8x1xf32, #tpu.memory_space<vmem>>, vector<8x1xf32>
    %c0_9 = arith.constant 0 : index
    %c0_10 = arith.constant 0 : index
    %c0_11 = arith.constant 0 : index
    %c0_12 = arith.constant 0 : index
    %6 = vector.load %arg5[%c0_9, %c0_10, %c0_11, %c0_12] : memref<4x9x4x8xf32, #tpu.memory_space<vmem>>, vector<4x9x4x8xf32>
    %c0_13 = arith.constant 0 : index
    %c0_14 = arith.constant 0 : index
    %c0_15 = arith.constant 0 : index
    %7 = vector.load %arg6[%c0_13, %c0_14, %c0_15] : memref<4x4x1xf32, #tpu.memory_space<vmem>>, vector<4x4x1xf32>
    %c0_16 = arith.constant 0 : index
    %c0_17 = arith.constant 0 : index
    %c0_18 = arith.constant 0 : index
    %8 = vector.load %arg7[%c0_16, %c0_17, %c0_18] : memref<4x8x4xf32, #tpu.memory_space<vmem>>, vector<4x8x4xf32>
    %c0_19 = arith.constant 0 : index
    %c0_20 = arith.constant 0 : index
    %9 = vector.load %arg8[%c0_19, %c0_20] : memref<8x1xf32, #tpu.memory_space<vmem>>, vector<8x1xf32>
    %10 = vector.extract_strided_slice %4 {offsets = [0, 0, 0], sizes = [1, 8, 8], strides = [1, 1, 1]} : vector<9x8x8xf32> to vector<1x8x8xf32>
    %11 = vector.shape_cast %10 : vector<1x8x8xf32> to vector<8x8xf32>
    %c0_21 = arith.constant 0 : index
    %c95 = arith.constant 95 : index
    %12 = vector.load %arg1[%c0_21, %c95] : memref<8x1648xf32, #tpu.memory_space<vmem>>, vector<8x1408xf32>
    %cst_22 = arith.constant dense<0.000000e+00> : vector<8x1408xf32>
    %13 = tpu.matmul %11, %12, %cst_22 {dimension_numbers = #tpu.dot_dimension_numbers<[1], [0], [0], [1], [0, 0, 1, 1], [], []>} : vector<8x8xf32>, vector<8x1408xf32>, vector<8x1408xf32> -> vector<8x1408xf32>
    %14 = vector.extract_strided_slice %4 {offsets = [1, 0, 0], sizes = [1, 8, 8], strides = [1, 1, 1]} : vector<9x8x8xf32> to vector<1x8x8xf32>
    %15 = vector.shape_cast %14 : vector<1x8x8xf32> to vector<8x8xf32>
    %c0_23 = arith.constant 0 : index
    %c96 = arith.constant 96 : index
    %16 = vector.load %arg1[%c0_23, %c96] : memref<8x1648xf32, #tpu.memory_space<vmem>>, vector<8x1408xf32>
    %cst_24 = arith.constant dense<0.000000e+00> : vector<8x1408xf32>
    %17 = tpu.matmul %15, %16, %cst_24 {dimension_numbers = #tpu.dot_dimension_numbers<[1], [0], [0], [1], [0, 0, 1, 1], [], []>} : vector<8x8xf32>, vector<8x1408xf32>, vector<8x1408xf32> -> vector<8x1408xf32>
    %18 = arith.addf %13, %17 : vector<8x1408xf32>
    %19 = vector.extract_strided_slice %4 {offsets = [2, 0, 0], sizes = [1, 8, 8], strides = [1, 1, 1]} : vector<9x8x8xf32> to vector<1x8x8xf32>
    %20 = vector.shape_cast %19 : vector<1x8x8xf32> to vector<8x8xf32>
    %c0_25 = arith.constant 0 : index
    %c97 = arith.constant 97 : index
    %21 = vector.load %arg1[%c0_25, %c97] : memref<8x1648xf32, #tpu.memory_space<vmem>>, vector<8x1408xf32>
    %cst_26 = arith.constant dense<0.000000e+00> : vector<8x1408xf32>
    %22 = tpu.matmul %20, %21, %cst_26 {dimension_numbers = #tpu.dot_dimension_numbers<[1], [0], [0], [1], [0, 0, 1, 1], [], []>} : vector<8x8xf32>, vector<8x1408xf32>, vector<8x1408xf32> -> vector<8x1408xf32>
    %23 = arith.addf %18, %22 : vector<8x1408xf32>
    %24 = vector.extract_strided_slice %4 {offsets = [3, 0, 0], sizes = [1, 8, 8], strides = [1, 1, 1]} : vector<9x8x8xf32> to vector<1x8x8xf32>
    %25 = vector.shape_cast %24 : vector<1x8x8xf32> to vector<8x8xf32>
    %c0_27 = arith.constant 0 : index
    %c119 = arith.constant 119 : index
    %26 = vector.load %arg1[%c0_27, %c119] : memref<8x1648xf32, #tpu.memory_space<vmem>>, vector<8x1408xf32>
    %cst_28 = arith.constant dense<0.000000e+00> : vector<8x1408xf32>
    %27 = tpu.matmul %25, %26, %cst_28 {dimension_numbers = #tpu.dot_dimension_numbers<[1], [0], [0], [1], [0, 0, 1, 1], [], []>} : vector<8x8xf32>, vector<8x1408xf32>, vector<8x1408xf32> -> vector<8x1408xf32>
    %28 = arith.addf %23, %27 : vector<8x1408xf32>
    %29 = vector.extract_strided_slice %4 {offsets = [4, 0, 0], sizes = [1, 8, 8], strides = [1, 1, 1]} : vector<9x8x8xf32> to vector<1x8x8xf32>
    %30 = vector.shape_cast %29 : vector<1x8x8xf32> to vector<8x8xf32>
    %c0_29 = arith.constant 0 : index
    %c120 = arith.constant 120 : index
    %31 = vector.load %arg1[%c0_29, %c120] : memref<8x1648xf32, #tpu.memory_space<vmem>>, vector<8x1408xf32>
    %cst_30 = arith.constant dense<0.000000e+00> : vector<8x1408xf32>
    %32 = tpu.matmul %30, %31, %cst_30 {dimension_numbers = #tpu.dot_dimension_numbers<[1], [0], [0], [1], [0, 0, 1, 1], [], []>} : vector<8x8xf32>, vector<8x1408xf32>, vector<8x1408xf32> -> vector<8x1408xf32>
    %33 = arith.addf %28, %32 : vector<8x1408xf32>
    %34 = vector.extract_strided_slice %4 {offsets = [5, 0, 0], sizes = [1, 8, 8], strides = [1, 1, 1]} : vector<9x8x8xf32> to vector<1x8x8xf32>
    %35 = vector.shape_cast %34 : vector<1x8x8xf32> to vector<8x8xf32>
    %c0_31 = arith.constant 0 : index
    %c121 = arith.constant 121 : index
    %36 = vector.load %arg1[%c0_31, %c121] : memref<8x1648xf32, #tpu.memory_space<vmem>>, vector<8x1408xf32>
    %cst_32 = arith.constant dense<0.000000e+00> : vector<8x1408xf32>
    %37 = tpu.matmul %35, %36, %cst_32 {dimension_numbers = #tpu.dot_dimension_numbers<[1], [0], [0], [1], [0, 0, 1, 1], [], []>} : vector<8x8xf32>, vector<8x1408xf32>, vector<8x1408xf32> -> vector<8x1408xf32>
    %38 = arith.addf %33, %37 : vector<8x1408xf32>
    %39 = vector.extract_strided_slice %4 {offsets = [6, 0, 0], sizes = [1, 8, 8], strides = [1, 1, 1]} : vector<9x8x8xf32> to vector<1x8x8xf32>
    %40 = vector.shape_cast %39 : vector<1x8x8xf32> to vector<8x8xf32>
    %c0_33 = arith.constant 0 : index
    %c143 = arith.constant 143 : index
    %41 = vector.load %arg1[%c0_33, %c143] : memref<8x1648xf32, #tpu.memory_space<vmem>>, vector<8x1408xf32>
    %cst_34 = arith.constant dense<0.000000e+00> : vector<8x1408xf32>
    %42 = tpu.matmul %40, %41, %cst_34 {dimension_numbers = #tpu.dot_dimension_numbers<[1], [0], [0], [1], [0, 0, 1, 1], [], []>} : vector<8x8xf32>, vector<8x1408xf32>, vector<8x1408xf32> -> vector<8x1408xf32>
    %43 = arith.addf %38, %42 : vector<8x1408xf32>
    %44 = vector.extract_strided_slice %4 {offsets = [7, 0, 0], sizes = [1, 8, 8], strides = [1, 1, 1]} : vector<9x8x8xf32> to vector<1x8x8xf32>
    %45 = vector.shape_cast %44 : vector<1x8x8xf32> to vector<8x8xf32>
    %c0_35 = arith.constant 0 : index
    %c144 = arith.constant 144 : index
    %46 = vector.load %arg1[%c0_35, %c144] : memref<8x1648xf32, #tpu.memory_space<vmem>>, vector<8x1408xf32>
    %cst_36 = arith.constant dense<0.000000e+00> : vector<8x1408xf32>
    %47 = tpu.matmul %45, %46, %cst_36 {dimension_numbers = #tpu.dot_dimension_numbers<[1], [0], [0], [1], [0, 0, 1, 1], [], []>} : vector<8x8xf32>, vector<8x1408xf32>, vector<8x1408xf32> -> vector<8x1408xf32>
    %48 = arith.addf %43, %47 : vector<8x1408xf32>
    %49 = vector.extract_strided_slice %4 {offsets = [8, 0, 0], sizes = [1, 8, 8], strides = [1, 1, 1]} : vector<9x8x8xf32> to vector<1x8x8xf32>
    %50 = vector.shape_cast %49 : vector<1x8x8xf32> to vector<8x8xf32>
    %c0_37 = arith.constant 0 : index
    %c145 = arith.constant 145 : index
    %51 = vector.load %arg1[%c0_37, %c145] : memref<8x1648xf32, #tpu.memory_space<vmem>>, vector<8x1408xf32>
    %cst_38 = arith.constant dense<0.000000e+00> : vector<8x1408xf32>
    %52 = tpu.matmul %50, %51, %cst_38 {dimension_numbers = #tpu.dot_dimension_numbers<[1], [0], [0], [1], [0, 0, 1, 1], [], []>} : vector<8x8xf32>, vector<8x1408xf32>, vector<8x1408xf32> -> vector<8x1408xf32>
    %53 = arith.addf %48, %52 : vector<8x1408xf32>
    %54 = vector.broadcast %5 : vector<8x1xf32> to vector<8x1408xf32>
    %55 = arith.addf %53, %54 : vector<8x1408xf32>
    %cst_39 = arith.constant 0.000000e+00 : f32
    %56 = vector.broadcast %cst_39 : f32 to vector<8x1408xf32>
    %57 = arith.cmpf oge, %55, %56 : vector<8x1408xf32>
    %cst_40 = arith.constant 1.000000e-01 : f32
    %58 = vector.broadcast %cst_40 : f32 to vector<8x1408xf32>
    %59 = arith.mulf %58, %55 : vector<8x1408xf32>
    %60 = arith.select %57, %55, %59 : vector<8x1408xi1>, vector<8x1408xf32>
    %61 = vector.broadcast %3 : vector<1x1408xf32> to vector<8x1408xf32>
    %62 = arith.mulf %60, %61 : vector<8x1408xf32>
    %c0_41 = arith.constant 0 : index
    %c120_42 = arith.constant 120 : index
    %63 = vector.load %arg10[%c0_41, %c120_42] : memref<8x1648xf32, #tpu.memory_space<vmem>>, vector<8x1408xf32>
    tpu.vector_store %arg10[%c0_41, %c120_42], %62 {strides = array<i32>} : memref<8x1648xf32, #tpu.memory_space<vmem>>, vector<8x1408xf32>,
    %64 = vector.extract_strided_slice %6 {offsets = [0, 0, 0, 0], sizes = [1, 9, 4, 8], strides = [1, 1, 1, 1]} : vector<4x9x4x8xf32> to vector<1x9x4x8xf32>
    %65 = vector.shape_cast %64 : vector<1x9x4x8xf32> to vector<9x4x8xf32>
    %66 = vector.extract_strided_slice %65 {offsets = [0, 0, 0], sizes = [1, 4, 8], strides = [1, 1, 1]} : vector<9x4x8xf32> to vector<1x4x8xf32>
    %67 = vector.shape_cast %66 : vector<1x4x8xf32> to vector<4x8xf32>
    %c0_43 = arith.constant 0 : index
    %c95_44 = arith.constant 95 : index
    %68 = vector.load %arg10[%c0_43, %c95_44] : memref<8x1648xf32, #tpu.memory_space<vmem>>, vector<8x1408xf32>
    %cst_45 = arith.constant dense<0.000000e+00> : vector<4x1408xf32>
    %69 = tpu.matmul %67, %68, %cst_45 {dimension_numbers = #tpu.dot_dimension_numbers<[1], [0], [0], [1], [0, 0, 1, 1], [], []>} : vector<4x8xf32>, vector<8x1408xf32>, vector<4x1408xf32> -> vector<4x1408xf32>
    %70 = vector.extract_strided_slice %65 {offsets = [1, 0, 0], sizes = [1, 4, 8], strides = [1, 1, 1]} : vector<9x4x8xf32> to vector<1x4x8xf32>
    %71 = vector.shape_cast %70 : vector<1x4x8xf32> to vector<4x8xf32>
    %c0_46 = arith.constant 0 : index
    %c96_47 = arith.constant 96 : index
    %72 = vector.load %arg10[%c0_46, %c96_47] : memref<8x1648xf32, #tpu.memory_space<vmem>>, vector<8x1408xf32>
    %cst_48 = arith.constant dense<0.000000e+00> : vector<4x1408xf32>
    %73 = tpu.matmul %71, %72, %cst_48 {dimension_numbers = #tpu.dot_dimension_numbers<[1], [0], [0], [1], [0, 0, 1, 1], [], []>} : vector<4x8xf32>, vector<8x1408xf32>, vector<4x1408xf32> -> vector<4x1408xf32>
    %74 = arith.addf %69, %73 : vector<4x1408xf32>
    %75 = vector.extract_strided_slice %65 {offsets = [2, 0, 0], sizes = [1, 4, 8], strides = [1, 1, 1]} : vector<9x4x8xf32> to vector<1x4x8xf32>
    %76 = vector.shape_cast %75 : vector<1x4x8xf32> to vector<4x8xf32>
    %c0_49 = arith.constant 0 : index
    %c97_50 = arith.constant 97 : index
    %77 = vector.load %arg10[%c0_49, %c97_50] : memref<8x1648xf32, #tpu.memory_space<vmem>>, vector<8x1408xf32>
    %cst_51 = arith.constant dense<0.000000e+00> : vector<4x1408xf32>
    %78 = tpu.matmul %76, %77, %cst_51 {dimension_numbers = #tpu.dot_dimension_numbers<[1], [0], [0], [1], [0, 0, 1, 1], [], []>} : vector<4x8xf32>, vector<8x1408xf32>, vector<4x1408xf32> -> vector<4x1408xf32>
    %79 = arith.addf %74, %78 : vector<4x1408xf32>
    %80 = vector.extract_strided_slice %65 {offsets = [3, 0, 0], sizes = [1, 4, 8], strides = [1, 1, 1]} : vector<9x4x8xf32> to vector<1x4x8xf32>
    %81 = vector.shape_cast %80 : vector<1x4x8xf32> to vector<4x8xf32>
    %c0_52 = arith.constant 0 : index
    %c119_53 = arith.constant 119 : index
    %82 = vector.load %arg10[%c0_52, %c119_53] : memref<8x1648xf32, #tpu.memory_space<vmem>>, vector<8x1408xf32>
    %cst_54 = arith.constant dense<0.000000e+00> : vector<4x1408xf32>
    %83 = tpu.matmul %81, %82, %cst_54 {dimension_numbers = #tpu.dot_dimension_numbers<[1], [0], [0], [1], [0, 0, 1, 1], [], []>} : vector<4x8xf32>, vector<8x1408xf32>, vector<4x1408xf32> -> vector<4x1408xf32>
    %84 = arith.addf %79, %83 : vector<4x1408xf32>
    %85 = vector.extract_strided_slice %65 {offsets = [4, 0, 0], sizes = [1, 4, 8], strides = [1, 1, 1]} : vector<9x4x8xf32> to vector<1x4x8xf32>
    %86 = vector.shape_cast %85 : vector<1x4x8xf32> to vector<4x8xf32>
    %c0_55 = arith.constant 0 : index
    %c120_56 = arith.constant 120 : index
    %87 = vector.load %arg10[%c0_55, %c120_56] : memref<8x1648xf32, #tpu.memory_space<vmem>>, vector<8x1408xf32>
    %cst_57 = arith.constant dense<0.000000e+00> : vector<4x1408xf32>
    %88 = tpu.matmul %86, %87, %cst_57 {dimension_numbers = #tpu.dot_dimension_numbers<[1], [0], [0], [1], [0, 0, 1, 1], [], []>} : vector<4x8xf32>, vector<8x1408xf32>, vector<4x1408xf32> -> vector<4x1408xf32>
    %89 = arith.addf %84, %88 : vector<4x1408xf32>
    %90 = vector.extract_strided_slice %65 {offsets = [5, 0, 0], sizes = [1, 4, 8], strides = [1, 1, 1]} : vector<9x4x8xf32> to vector<1x4x8xf32>
    %91 = vector.shape_cast %90 : vector<1x4x8xf32> to vector<4x8xf32>
    %c0_58 = arith.constant 0 : index
    %c121_59 = arith.constant 121 : index
    %92 = vector.load %arg10[%c0_58, %c121_59] : memref<8x1648xf32, #tpu.memory_space<vmem>>, vector<8x1408xf32>
    %cst_60 = arith.constant dense<0.000000e+00> : vector<4x1408xf32>
    %93 = tpu.matmul %91, %92, %cst_60 {dimension_numbers = #tpu.dot_dimension_numbers<[1], [0], [0], [1], [0, 0, 1, 1], [], []>} : vector<4x8xf32>, vector<8x1408xf32>, vector<4x1408xf32> -> vector<4x1408xf32>
    %94 = arith.addf %89, %93 : vector<4x1408xf32>
    %95 = vector.extract_strided_slice %65 {offsets = [6, 0, 0], sizes = [1, 4, 8], strides = [1, 1, 1]} : vector<9x4x8xf32> to vector<1x4x8xf32>
    %96 = vector.shape_cast %95 : vector<1x4x8xf32> to vector<4x8xf32>
    %c0_61 = arith.constant 0 : index
    %c143_62 = arith.constant 143 : index
    %97 = vector.load %arg10[%c0_61, %c143_62] : memref<8x1648xf32, #tpu.memory_space<vmem>>, vector<8x1408xf32>
    %cst_63 = arith.constant dense<0.000000e+00> : vector<4x1408xf32>
    %98 = tpu.matmul %96, %97, %cst_63 {dimension_numbers = #tpu.dot_dimension_numbers<[1], [0], [0], [1], [0, 0, 1, 1], [], []>} : vector<4x8xf32>, vector<8x1408xf32>, vector<4x1408xf32> -> vector<4x1408xf32>
    %99 = arith.addf %94, %98 : vector<4x1408xf32>
    %100 = vector.extract_strided_slice %65 {offsets = [7, 0, 0], sizes = [1, 4, 8], strides = [1, 1, 1]} : vector<9x4x8xf32> to vector<1x4x8xf32>
    %101 = vector.shape_cast %100 : vector<1x4x8xf32> to vector<4x8xf32>
    %c0_64 = arith.constant 0 : index
    %c144_65 = arith.constant 144 : index
    %102 = vector.load %arg10[%c0_64, %c144_65] : memref<8x1648xf32, #tpu.memory_space<vmem>>, vector<8x1408xf32>
    %cst_66 = arith.constant dense<0.000000e+00> : vector<4x1408xf32>
    %103 = tpu.matmul %101, %102, %cst_66 {dimension_numbers = #tpu.dot_dimension_numbers<[1], [0], [0], [1], [0, 0, 1, 1], [], []>} : vector<4x8xf32>, vector<8x1408xf32>, vector<4x1408xf32> -> vector<4x1408xf32>
    %104 = arith.addf %99, %103 : vector<4x1408xf32>
    %105 = vector.extract_strided_slice %65 {offsets = [8, 0, 0], sizes = [1, 4, 8], strides = [1, 1, 1]} : vector<9x4x8xf32> to vector<1x4x8xf32>
    %106 = vector.shape_cast %105 : vector<1x4x8xf32> to vector<4x8xf32>
    %c0_67 = arith.constant 0 : index
    %c145_68 = arith.constant 145 : index
    %107 = vector.load %arg10[%c0_67, %c145_68] : memref<8x1648xf32, #tpu.memory_space<vmem>>, vector<8x1408xf32>
    %cst_69 = arith.constant dense<0.000000e+00> : vector<4x1408xf32>
    %108 = tpu.matmul %106, %107, %cst_69 {dimension_numbers = #tpu.dot_dimension_numbers<[1], [0], [0], [1], [0, 0, 1, 1], [], []>} : vector<4x8xf32>, vector<8x1408xf32>, vector<4x1408xf32> -> vector<4x1408xf32>
    %109 = arith.addf %104, %108 : vector<4x1408xf32>
    %110 = vector.extract_strided_slice %7 {offsets = [0, 0, 0], sizes = [1, 4, 1], strides = [1, 1, 1]} : vector<4x4x1xf32> to vector<1x4x1xf32>
    %111 = vector.shape_cast %110 : vector<1x4x1xf32> to vector<4x1xf32>
    %112 = vector.broadcast %111 : vector<4x1xf32> to vector<4x1408xf32>
    %113 = arith.addf %109, %112 : vector<4x1408xf32>
    %cst_70 = arith.constant 0.000000e+00 : f32
    %114 = vector.broadcast %cst_70 : f32 to vector<4x1408xf32>
    %115 = arith.cmpf oge, %113, %114 : vector<4x1408xf32>
    %cst_71 = arith.constant 1.000000e-01 : f32
    %116 = vector.broadcast %cst_71 : f32 to vector<4x1408xf32>
    %117 = arith.mulf %116, %113 : vector<4x1408xf32>
    %118 = arith.select %115, %113, %117 : vector<4x1408xi1>, vector<4x1408xf32>
    %119 = vector.extract_strided_slice %8 {offsets = [0, 0, 0], sizes = [1, 8, 4], strides = [1, 1, 1]} : vector<4x8x4xf32> to vector<1x8x4xf32>
    %120 = vector.shape_cast %119 : vector<1x8x4xf32> to vector<8x4xf32>
    %cst_72 = arith.constant dense<0.000000e+00> : vector<8x1408xf32>
    %121 = tpu.matmul %120, %118, %cst_72 {dimension_numbers = #tpu.dot_dimension_numbers<[1], [0], [0], [1], [0, 0, 1, 1], [], []>} : vector<8x4xf32>, vector<4x1408xf32>, vector<8x1408xf32> -> vector<8x1408xf32>
    %122 = vector.extract_strided_slice %6 {offsets = [1, 0, 0, 0], sizes = [1, 9, 4, 8], strides = [1, 1, 1, 1]} : vector<4x9x4x8xf32> to vector<1x9x4x8xf32>
    %123 = vector.shape_cast %122 : vector<1x9x4x8xf32> to vector<9x4x8xf32>
    %124 = vector.extract_strided_slice %123 {offsets = [0, 0, 0], sizes = [1, 4, 8], strides = [1, 1, 1]} : vector<9x4x8xf32> to vector<1x4x8xf32>
    %125 = vector.shape_cast %124 : vector<1x4x8xf32> to vector<4x8xf32>
    %c0_73 = arith.constant 0 : index
    %c70 = arith.constant 70 : index
    %126 = vector.load %arg10[%c0_73, %c70] : memref<8x1648xf32, #tpu.memory_space<vmem>>, vector<8x1408xf32>
    %cst_74 = arith.constant dense<0.000000e+00> : vector<4x1408xf32>
    %127 = tpu.matmul %125, %126, %cst_74 {dimension_numbers = #tpu.dot_dimension_numbers<[1], [0], [0], [1], [0, 0, 1, 1], [], []>} : vector<4x8xf32>, vector<8x1408xf32>, vector<4x1408xf32> -> vector<4x1408xf32>
    %128 = vector.extract_strided_slice %123 {offsets = [1, 0, 0], sizes = [1, 4, 8], strides = [1, 1, 1]} : vector<9x4x8xf32> to vector<1x4x8xf32>
    %129 = vector.shape_cast %128 : vector<1x4x8xf32> to vector<4x8xf32>
    %c0_75 = arith.constant 0 : index
    %c72 = arith.constant 72 : index
    %130 = vector.load %arg10[%c0_75, %c72] : memref<8x1648xf32, #tpu.memory_space<vmem>>, vector<8x1408xf32>
    %cst_76 = arith.constant dense<0.000000e+00> : vector<4x1408xf32>
    %131 = tpu.matmul %129, %130, %cst_76 {dimension_numbers = #tpu.dot_dimension_numbers<[1], [0], [0], [1], [0, 0, 1, 1], [], []>} : vector<4x8xf32>, vector<8x1408xf32>, vector<4x1408xf32> -> vector<4x1408xf32>
    %132 = arith.addf %127, %131 : vector<4x1408xf32>
    %133 = vector.extract_strided_slice %123 {offsets = [2, 0, 0], sizes = [1, 4, 8], strides = [1, 1, 1]} : vector<9x4x8xf32> to vector<1x4x8xf32>
    %134 = vector.shape_cast %133 : vector<1x4x8xf32> to vector<4x8xf32>
    %c0_77 = arith.constant 0 : index
    %c74 = arith.constant 74 : index
    %135 = vector.load %arg10[%c0_77, %c74] : memref<8x1648xf32, #tpu.memory_space<vmem>>, vector<8x1408xf32>
    %cst_78 = arith.constant dense<0.000000e+00> : vector<4x1408xf32>
    %136 = tpu.matmul %134, %135, %cst_78 {dimension_numbers = #tpu.dot_dimension_numbers<[1], [0], [0], [1], [0, 0, 1, 1], [], []>} : vector<4x8xf32>, vector<8x1408xf32>, vector<4x1408xf32> -> vector<4x1408xf32>
    %137 = arith.addf %132, %136 : vector<4x1408xf32>
    %138 = vector.extract_strided_slice %123 {offsets = [3, 0, 0], sizes = [1, 4, 8], strides = [1, 1, 1]} : vector<9x4x8xf32> to vector<1x4x8xf32>
    %139 = vector.shape_cast %138 : vector<1x4x8xf32> to vector<4x8xf32>
    %c0_79 = arith.constant 0 : index
    %c118 = arith.constant 118 : index
    %140 = vector.load %arg10[%c0_79, %c118] : memref<8x1648xf32, #tpu.memory_space<vmem>>, vector<8x1408xf32>
    %cst_80 = arith.constant dense<0.000000e+00> : vector<4x1408xf32>
    %141 = tpu.matmul %139, %140, %cst_80 {dimension_numbers = #tpu.dot_dimension_numbers<[1], [0], [0], [1], [0, 0, 1, 1], [], []>} : vector<4x8xf32>, vector<8x1408xf32>, vector<4x1408xf32> -> vector<4x1408xf32>
    %142 = arith.addf %137, %141 : vector<4x1408xf32>
    %143 = vector.extract_strided_slice %123 {offsets = [4, 0, 0], sizes = [1, 4, 8], strides = [1, 1, 1]} : vector<9x4x8xf32> to vector<1x4x8xf32>
    %144 = vector.shape_cast %143 : vector<1x4x8xf32> to vector<4x8xf32>
    %c0_81 = arith.constant 0 : index
    %c120_82 = arith.constant 120 : index
    %145 = vector.load %arg10[%c0_81, %c120_82] : memref<8x1648xf32, #tpu.memory_space<vmem>>, vector<8x1408xf32>
    %cst_83 = arith.constant dense<0.000000e+00> : vector<4x1408xf32>
    %146 = tpu.matmul %144, %145, %cst_83 {dimension_numbers = #tpu.dot_dimension_numbers<[1], [0], [0], [1], [0, 0, 1, 1], [], []>} : vector<4x8xf32>, vector<8x1408xf32>, vector<4x1408xf32> -> vector<4x1408xf32>
    %147 = arith.addf %142, %146 : vector<4x1408xf32>
    %148 = vector.extract_strided_slice %123 {offsets = [5, 0, 0], sizes = [1, 4, 8], strides = [1, 1, 1]} : vector<9x4x8xf32> to vector<1x4x8xf32>
    %149 = vector.shape_cast %148 : vector<1x4x8xf32> to vector<4x8xf32>
    %c0_84 = arith.constant 0 : index
    %c122 = arith.constant 122 : index
    %150 = vector.load %arg10[%c0_84, %c122] : memref<8x1648xf32, #tpu.memory_space<vmem>>, vector<8x1408xf32>
    %cst_85 = arith.constant dense<0.000000e+00> : vector<4x1408xf32>
    %151 = tpu.matmul %149, %150, %cst_85 {dimension_numbers = #tpu.dot_dimension_numbers<[1], [0], [0], [1], [0, 0, 1, 1], [], []>} : vector<4x8xf32>, vector<8x1408xf32>, vector<4x1408xf32> -> vector<4x1408xf32>
    %152 = arith.addf %147, %151 : vector<4x1408xf32>
    %153 = vector.extract_strided_slice %123 {offsets = [6, 0, 0], sizes = [1, 4, 8], strides = [1, 1, 1]} : vector<9x4x8xf32> to vector<1x4x8xf32>
    %154 = vector.shape_cast %153 : vector<1x4x8xf32> to vector<4x8xf32>
    %c0_86 = arith.constant 0 : index
    %c166 = arith.constant 166 : index
    %155 = vector.load %arg10[%c0_86, %c166] : memref<8x1648xf32, #tpu.memory_space<vmem>>, vector<8x1408xf32>
    %cst_87 = arith.constant dense<0.000000e+00> : vector<4x1408xf32>
    %156 = tpu.matmul %154, %155, %cst_87 {dimension_numbers = #tpu.dot_dimension_numbers<[1], [0], [0], [1], [0, 0, 1, 1], [], []>} : vector<4x8xf32>, vector<8x1408xf32>, vector<4x1408xf32> -> vector<4x1408xf32>
    %157 = arith.addf %152, %156 : vector<4x1408xf32>
    %158 = vector.extract_strided_slice %123 {offsets = [7, 0, 0], sizes = [1, 4, 8], strides = [1, 1, 1]} : vector<9x4x8xf32> to vector<1x4x8xf32>
    %159 = vector.shape_cast %158 : vector<1x4x8xf32> to vector<4x8xf32>
    %c0_88 = arith.constant 0 : index
    %c168 = arith.constant 168 : index
    %160 = vector.load %arg10[%c0_88, %c168] : memref<8x1648xf32, #tpu.memory_space<vmem>>, vector<8x1408xf32>
    %cst_89 = arith.constant dense<0.000000e+00> : vector<4x1408xf32>
    %161 = tpu.matmul %159, %160, %cst_89 {dimension_numbers = #tpu.dot_dimension_numbers<[1], [0], [0], [1], [0, 0, 1, 1], [], []>} : vector<4x8xf32>, vector<8x1408xf32>, vector<4x1408xf32> -> vector<4x1408xf32>
    %162 = arith.addf %157, %161 : vector<4x1408xf32>
    %163 = vector.extract_strided_slice %123 {offsets = [8, 0, 0], sizes = [1, 4, 8], strides = [1, 1, 1]} : vector<9x4x8xf32> to vector<1x4x8xf32>
    %164 = vector.shape_cast %163 : vector<1x4x8xf32> to vector<4x8xf32>
    %c0_90 = arith.constant 0 : index
    %c170 = arith.constant 170 : index
    %165 = vector.load %arg10[%c0_90, %c170] : memref<8x1648xf32, #tpu.memory_space<vmem>>, vector<8x1408xf32>
    %cst_91 = arith.constant dense<0.000000e+00> : vector<4x1408xf32>
    %166 = tpu.matmul %164, %165, %cst_91 {dimension_numbers = #tpu.dot_dimension_numbers<[1], [0], [0], [1], [0, 0, 1, 1], [], []>} : vector<4x8xf32>, vector<8x1408xf32>, vector<4x1408xf32> -> vector<4x1408xf32>
    %167 = arith.addf %162, %166 : vector<4x1408xf32>
    %168 = vector.extract_strided_slice %7 {offsets = [1, 0, 0], sizes = [1, 4, 1], strides = [1, 1, 1]} : vector<4x4x1xf32> to vector<1x4x1xf32>
    %169 = vector.shape_cast %168 : vector<1x4x1xf32> to vector<4x1xf32>
    %170 = vector.broadcast %169 : vector<4x1xf32> to vector<4x1408xf32>
    %171 = arith.addf %167, %170 : vector<4x1408xf32>
    %cst_92 = arith.constant 0.000000e+00 : f32
    %172 = vector.broadcast %cst_92 : f32 to vector<4x1408xf32>
    %173 = arith.cmpf oge, %171, %172 : vector<4x1408xf32>
    %cst_93 = arith.constant 1.000000e-01 : f32
    %174 = vector.broadcast %cst_93 : f32 to vector<4x1408xf32>
    %175 = arith.mulf %174, %171 : vector<4x1408xf32>
    %176 = arith.select %173, %171, %175 : vector<4x1408xi1>, vector<4x1408xf32>
    %177 = vector.extract_strided_slice %8 {offsets = [1, 0, 0], sizes = [1, 8, 4], strides = [1, 1, 1]} : vector<4x8x4xf32> to vector<1x8x4xf32>
    %178 = vector.shape_cast %177 : vector<1x8x4xf32> to vector<8x4xf32>
    %cst_94 = arith.constant dense<0.000000e+00> : vector<8x1408xf32>
    %179 = tpu.matmul %178, %176, %cst_94 {dimension_numbers = #tpu.dot_dimension_numbers<[1], [0], [0], [1], [0, 0, 1, 1], [], []>} : vector<8x4xf32>, vector<4x1408xf32>, vector<8x1408xf32> -> vector<8x1408xf32>
    %180 = arith.addf %121, %179 : vector<8x1408xf32>
    %181 = vector.extract_strided_slice %6 {offsets = [2, 0, 0, 0], sizes = [1, 9, 4, 8], strides = [1, 1, 1, 1]} : vector<4x9x4x8xf32> to vector<1x9x4x8xf32>
    %182 = vector.shape_cast %181 : vector<1x9x4x8xf32> to vector<9x4x8xf32>
    %183 = vector.extract_strided_slice %182 {offsets = [0, 0, 0], sizes = [1, 4, 8], strides = [1, 1, 1]} : vector<9x4x8xf32> to vector<1x4x8xf32>
    %184 = vector.shape_cast %183 : vector<1x4x8xf32> to vector<4x8xf32>
    %c0_95 = arith.constant 0 : index
    %c45 = arith.constant 45 : index
    %185 = vector.load %arg10[%c0_95, %c45] : memref<8x1648xf32, #tpu.memory_space<vmem>>, vector<8x1408xf32>
    %cst_96 = arith.constant dense<0.000000e+00> : vector<4x1408xf32>
    %186 = tpu.matmul %184, %185, %cst_96 {dimension_numbers = #tpu.dot_dimension_numbers<[1], [0], [0], [1], [0, 0, 1, 1], [], []>} : vector<4x8xf32>, vector<8x1408xf32>, vector<4x1408xf32> -> vector<4x1408xf32>
    %187 = vector.extract_strided_slice %182 {offsets = [1, 0, 0], sizes = [1, 4, 8], strides = [1, 1, 1]} : vector<9x4x8xf32> to vector<1x4x8xf32>
    %188 = vector.shape_cast %187 : vector<1x4x8xf32> to vector<4x8xf32>
    %c0_97 = arith.constant 0 : index
    %c48 = arith.constant 48 : index
    %189 = vector.load %arg10[%c0_97, %c48] : memref<8x1648xf32, #tpu.memory_space<vmem>>, vector<8x1408xf32>
    %cst_98 = arith.constant dense<0.000000e+00> : vector<4x1408xf32>
    %190 = tpu.matmul %188, %189, %cst_98 {dimension_numbers = #tpu.dot_dimension_numbers<[1], [0], [0], [1], [0, 0, 1, 1], [], []>} : vector<4x8xf32>, vector<8x1408xf32>, vector<4x1408xf32> -> vector<4x1408xf32>
    %191 = arith.addf %186, %190 : vector<4x1408xf32>
    %192 = vector.extract_strided_slice %182 {offsets = [2, 0, 0], sizes = [1, 4, 8], strides = [1, 1, 1]} : vector<9x4x8xf32> to vector<1x4x8xf32>
    %193 = vector.shape_cast %192 : vector<1x4x8xf32> to vector<4x8xf32>
    %c0_99 = arith.constant 0 : index
    %c51 = arith.constant 51 : index
    %194 = vector.load %arg10[%c0_99, %c51] : memref<8x1648xf32, #tpu.memory_space<vmem>>, vector<8x1408xf32>
    %cst_100 = arith.constant dense<0.000000e+00> : vector<4x1408xf32>
    %195 = tpu.matmul %193, %194, %cst_100 {dimension_numbers = #tpu.dot_dimension_numbers<[1], [0], [0], [1], [0, 0, 1, 1], [], []>} : vector<4x8xf32>, vector<8x1408xf32>, vector<4x1408xf32> -> vector<4x1408xf32>
    %196 = arith.addf %191, %195 : vector<4x1408xf32>
    %197 = vector.extract_strided_slice %182 {offsets = [3, 0, 0], sizes = [1, 4, 8], strides = [1, 1, 1]} : vector<9x4x8xf32> to vector<1x4x8xf32>
    %198 = vector.shape_cast %197 : vector<1x4x8xf32> to vector<4x8xf32>
    %c0_101 = arith.constant 0 : index
    %c117 = arith.constant 117 : index
    %199 = vector.load %arg10[%c0_101, %c117] : memref<8x1648xf32, #tpu.memory_space<vmem>>, vector<8x1408xf32>
    %cst_102 = arith.constant dense<0.000000e+00> : vector<4x1408xf32>
    %200 = tpu.matmul %198, %199, %cst_102 {dimension_numbers = #tpu.dot_dimension_numbers<[1], [0], [0], [1], [0, 0, 1, 1], [], []>} : vector<4x8xf32>, vector<8x1408xf32>, vector<4x1408xf32> -> vector<4x1408xf32>
    %201 = arith.addf %196, %200 : vector<4x1408xf32>
    %202 = vector.extract_strided_slice %182 {offsets = [4, 0, 0], sizes = [1, 4, 8], strides = [1, 1, 1]} : vector<9x4x8xf32> to vector<1x4x8xf32>
    %203 = vector.shape_cast %202 : vector<1x4x8xf32> to vector<4x8xf32>
    %c0_103 = arith.constant 0 : index
    %c120_104 = arith.constant 120 : index
    %204 = vector.load %arg10[%c0_103, %c120_104] : memref<8x1648xf32, #tpu.memory_space<vmem>>, vector<8x1408xf32>
    %cst_105 = arith.constant dense<0.000000e+00> : vector<4x1408xf32>
    %205 = tpu.matmul %203, %204, %cst_105 {dimension_numbers = #tpu.dot_dimension_numbers<[1], [0], [0], [1], [0, 0, 1, 1], [], []>} : vector<4x8xf32>, vector<8x1408xf32>, vector<4x1408xf32> -> vector<4x1408xf32>
    %206 = arith.addf %201, %205 : vector<4x1408xf32>
    %207 = vector.extract_strided_slice %182 {offsets = [5, 0, 0], sizes = [1, 4, 8], strides = [1, 1, 1]} : vector<9x4x8xf32> to vector<1x4x8xf32>
    %208 = vector.shape_cast %207 : vector<1x4x8xf32> to vector<4x8xf32>
    %c0_106 = arith.constant 0 : index
    %c123 = arith.constant 123 : index
    %209 = vector.load %arg10[%c0_106, %c123] : memref<8x1648xf32, #tpu.memory_space<vmem>>, vector<8x1408xf32>
    %cst_107 = arith.constant dense<0.000000e+00> : vector<4x1408xf32>
    %210 = tpu.matmul %208, %209, %cst_107 {dimension_numbers = #tpu.dot_dimension_numbers<[1], [0], [0], [1], [0, 0, 1, 1], [], []>} : vector<4x8xf32>, vector<8x1408xf32>, vector<4x1408xf32> -> vector<4x1408xf32>
    %211 = arith.addf %206, %210 : vector<4x1408xf32>
    %212 = vector.extract_strided_slice %182 {offsets = [6, 0, 0], sizes = [1, 4, 8], strides = [1, 1, 1]} : vector<9x4x8xf32> to vector<1x4x8xf32>
    %213 = vector.shape_cast %212 : vector<1x4x8xf32> to vector<4x8xf32>
    %c0_108 = arith.constant 0 : index
    %c189 = arith.constant 189 : index
    %214 = vector.load %arg10[%c0_108, %c189] : memref<8x1648xf32, #tpu.memory_space<vmem>>, vector<8x1408xf32>
    %cst_109 = arith.constant dense<0.000000e+00> : vector<4x1408xf32>
    %215 = tpu.matmul %213, %214, %cst_109 {dimension_numbers = #tpu.dot_dimension_numbers<[1], [0], [0], [1], [0, 0, 1, 1], [], []>} : vector<4x8xf32>, vector<8x1408xf32>, vector<4x1408xf32> -> vector<4x1408xf32>
    %216 = arith.addf %211, %215 : vector<4x1408xf32>
    %217 = vector.extract_strided_slice %182 {offsets = [7, 0, 0], sizes = [1, 4, 8], strides = [1, 1, 1]} : vector<9x4x8xf32> to vector<1x4x8xf32>
    %218 = vector.shape_cast %217 : vector<1x4x8xf32> to vector<4x8xf32>
    %c0_110 = arith.constant 0 : index
    %c192 = arith.constant 192 : index
    %219 = vector.load %arg10[%c0_110, %c192] : memref<8x1648xf32, #tpu.memory_space<vmem>>, vector<8x1408xf32>
    %cst_111 = arith.constant dense<0.000000e+00> : vector<4x1408xf32>
    %220 = tpu.matmul %218, %219, %cst_111 {dimension_numbers = #tpu.dot_dimension_numbers<[1], [0], [0], [1], [0, 0, 1, 1], [], []>} : vector<4x8xf32>, vector<8x1408xf32>, vector<4x1408xf32> -> vector<4x1408xf32>
    %221 = arith.addf %216, %220 : vector<4x1408xf32>
    %222 = vector.extract_strided_slice %182 {offsets = [8, 0, 0], sizes = [1, 4, 8], strides = [1, 1, 1]} : vector<9x4x8xf32> to vector<1x4x8xf32>
    %223 = vector.shape_cast %222 : vector<1x4x8xf32> to vector<4x8xf32>
    %c0_112 = arith.constant 0 : index
    %c195 = arith.constant 195 : index
    %224 = vector.load %arg10[%c0_112, %c195] : memref<8x1648xf32, #tpu.memory_space<vmem>>, vector<8x1408xf32>
    %cst_113 = arith.constant dense<0.000000e+00> : vector<4x1408xf32>
    %225 = tpu.matmul %223, %224, %cst_113 {dimension_numbers = #tpu.dot_dimension_numbers<[1], [0], [0], [1], [0, 0, 1, 1], [], []>} : vector<4x8xf32>, vector<8x1408xf32>, vector<4x1408xf32> -> vector<4x1408xf32>
    %226 = arith.addf %221, %225 : vector<4x1408xf32>
    %227 = vector.extract_strided_slice %7 {offsets = [2, 0, 0], sizes = [1, 4, 1], strides = [1, 1, 1]} : vector<4x4x1xf32> to vector<1x4x1xf32>
    %228 = vector.shape_cast %227 : vector<1x4x1xf32> to vector<4x1xf32>
    %229 = vector.broadcast %228 : vector<4x1xf32> to vector<4x1408xf32>
    %230 = arith.addf %226, %229 : vector<4x1408xf32>
    %cst_114 = arith.constant 0.000000e+00 : f32
    %231 = vector.broadcast %cst_114 : f32 to vector<4x1408xf32>
    %232 = arith.cmpf oge, %230, %231 : vector<4x1408xf32>
    %cst_115 = arith.constant 1.000000e-01 : f32
    %233 = vector.broadcast %cst_115 : f32 to vector<4x1408xf32>
    %234 = arith.mulf %233, %230 : vector<4x1408xf32>
    %235 = arith.select %232, %230, %234 : vector<4x1408xi1>, vector<4x1408xf32>
    %236 = vector.extract_strided_slice %8 {offsets = [2, 0, 0], sizes = [1, 8, 4], strides = [1, 1, 1]} : vector<4x8x4xf32> to vector<1x8x4xf32>
    %237 = vector.shape_cast %236 : vector<1x8x4xf32> to vector<8x4xf32>
    %cst_116 = arith.constant dense<0.000000e+00> : vector<8x1408xf32>
    %238 = tpu.matmul %237, %235, %cst_116 {dimension_numbers = #tpu.dot_dimension_numbers<[1], [0], [0], [1], [0, 0, 1, 1], [], []>} : vector<8x4xf32>, vector<4x1408xf32>, vector<8x1408xf32> -> vector<8x1408xf32>
    %239 = arith.addf %180, %238 : vector<8x1408xf32>
    %240 = vector.extract_strided_slice %6 {offsets = [3, 0, 0, 0], sizes = [1, 9, 4, 8], strides = [1, 1, 1, 1]} : vector<4x9x4x8xf32> to vector<1x9x4x8xf32>
    %241 = vector.shape_cast %240 : vector<1x9x4x8xf32> to vector<9x4x8xf32>
    %242 = vector.extract_strided_slice %241 {offsets = [0, 0, 0], sizes = [1, 4, 8], strides = [1, 1, 1]} : vector<9x4x8xf32> to vector<1x4x8xf32>
    %243 = vector.shape_cast %242 : vector<1x4x8xf32> to vector<4x8xf32>
    %c0_117 = arith.constant 0 : index
    %c20 = arith.constant 20 : index
    %244 = vector.load %arg10[%c0_117, %c20] : memref<8x1648xf32, #tpu.memory_space<vmem>>, vector<8x1408xf32>
    %cst_118 = arith.constant dense<0.000000e+00> : vector<4x1408xf32>
    %245 = tpu.matmul %243, %244, %cst_118 {dimension_numbers = #tpu.dot_dimension_numbers<[1], [0], [0], [1], [0, 0, 1, 1], [], []>} : vector<4x8xf32>, vector<8x1408xf32>, vector<4x1408xf32> -> vector<4x1408xf32>
    %246 = vector.extract_strided_slice %241 {offsets = [1, 0, 0], sizes = [1, 4, 8], strides = [1, 1, 1]} : vector<9x4x8xf32> to vector<1x4x8xf32>
    %247 = vector.shape_cast %246 : vector<1x4x8xf32> to vector<4x8xf32>
    %c0_119 = arith.constant 0 : index
    %c24 = arith.constant 24 : index
    %248 = vector.load %arg10[%c0_119, %c24] : memref<8x1648xf32, #tpu.memory_space<vmem>>, vector<8x1408xf32>
    %cst_120 = arith.constant dense<0.000000e+00> : vector<4x1408xf32>
    %249 = tpu.matmul %247, %248, %cst_120 {dimension_numbers = #tpu.dot_dimension_numbers<[1], [0], [0], [1], [0, 0, 1, 1], [], []>} : vector<4x8xf32>, vector<8x1408xf32>, vector<4x1408xf32> -> vector<4x1408xf32>
    %250 = arith.addf %245, %249 : vector<4x1408xf32>
    %251 = vector.extract_strided_slice %241 {offsets = [2, 0, 0], sizes = [1, 4, 8], strides = [1, 1, 1]} : vector<9x4x8xf32> to vector<1x4x8xf32>
    %252 = vector.shape_cast %251 : vector<1x4x8xf32> to vector<4x8xf32>
    %c0_121 = arith.constant 0 : index
    %c28 = arith.constant 28 : index
    %253 = vector.load %arg10[%c0_121, %c28] : memref<8x1648xf32, #tpu.memory_space<vmem>>, vector<8x1408xf32>
    %cst_122 = arith.constant dense<0.000000e+00> : vector<4x1408xf32>
    %254 = tpu.matmul %252, %253, %cst_122 {dimension_numbers = #tpu.dot_dimension_numbers<[1], [0], [0], [1], [0, 0, 1, 1], [], []>} : vector<4x8xf32>, vector<8x1408xf32>, vector<4x1408xf32> -> vector<4x1408xf32>
    %255 = arith.addf %250, %254 : vector<4x1408xf32>
    %256 = vector.extract_strided_slice %241 {offsets = [3, 0, 0], sizes = [1, 4, 8], strides = [1, 1, 1]} : vector<9x4x8xf32> to vector<1x4x8xf32>
    %257 = vector.shape_cast %256 : vector<1x4x8xf32> to vector<4x8xf32>
    %c0_123 = arith.constant 0 : index
    %c116 = arith.constant 116 : index
    %258 = vector.load %arg10[%c0_123, %c116] : memref<8x1648xf32, #tpu.memory_space<vmem>>, vector<8x1408xf32>
    %cst_124 = arith.constant dense<0.000000e+00> : vector<4x1408xf32>
    %259 = tpu.matmul %257, %258, %cst_124 {dimension_numbers = #tpu.dot_dimension_numbers<[1], [0], [0], [1], [0, 0, 1, 1], [], []>} : vector<4x8xf32>, vector<8x1408xf32>, vector<4x1408xf32> -> vector<4x1408xf32>
    %260 = arith.addf %255, %259 : vector<4x1408xf32>
    %261 = vector.extract_strided_slice %241 {offsets = [4, 0, 0], sizes = [1, 4, 8], strides = [1, 1, 1]} : vector<9x4x8xf32> to vector<1x4x8xf32>
    %262 = vector.shape_cast %261 : vector<1x4x8xf32> to vector<4x8xf32>
    %c0_125 = arith.constant 0 : index
    %c120_126 = arith.constant 120 : index
    %263 = vector.load %arg10[%c0_125, %c120_126] : memref<8x1648xf32, #tpu.memory_space<vmem>>, vector<8x1408xf32>
    %cst_127 = arith.constant dense<0.000000e+00> : vector<4x1408xf32>
    %264 = tpu.matmul %262, %263, %cst_127 {dimension_numbers = #tpu.dot_dimension_numbers<[1], [0], [0], [1], [0, 0, 1, 1], [], []>} : vector<4x8xf32>, vector<8x1408xf32>, vector<4x1408xf32> -> vector<4x1408xf32>
    %265 = arith.addf %260, %264 : vector<4x1408xf32>
    %266 = vector.extract_strided_slice %241 {offsets = [5, 0, 0], sizes = [1, 4, 8], strides = [1, 1, 1]} : vector<9x4x8xf32> to vector<1x4x8xf32>
    %267 = vector.shape_cast %266 : vector<1x4x8xf32> to vector<4x8xf32>
    %c0_128 = arith.constant 0 : index
    %c124 = arith.constant 124 : index
    %268 = vector.load %arg10[%c0_128, %c124] : memref<8x1648xf32, #tpu.memory_space<vmem>>, vector<8x1408xf32>
    %cst_129 = arith.constant dense<0.000000e+00> : vector<4x1408xf32>
    %269 = tpu.matmul %267, %268, %cst_129 {dimension_numbers = #tpu.dot_dimension_numbers<[1], [0], [0], [1], [0, 0, 1, 1], [], []>} : vector<4x8xf32>, vector<8x1408xf32>, vector<4x1408xf32> -> vector<4x1408xf32>
    %270 = arith.addf %265, %269 : vector<4x1408xf32>
    %271 = vector.extract_strided_slice %241 {offsets = [6, 0, 0], sizes = [1, 4, 8], strides = [1, 1, 1]} : vector<9x4x8xf32> to vector<1x4x8xf32>
    %272 = vector.shape_cast %271 : vector<1x4x8xf32> to vector<4x8xf32>
    %c0_130 = arith.constant 0 : index
    %c212 = arith.constant 212 : index
    %273 = vector.load %arg10[%c0_130, %c212] : memref<8x1648xf32, #tpu.memory_space<vmem>>, vector<8x1408xf32>
    %cst_131 = arith.constant dense<0.000000e+00> : vector<4x1408xf32>
    %274 = tpu.matmul %272, %273, %cst_131 {dimension_numbers = #tpu.dot_dimension_numbers<[1], [0], [0], [1], [0, 0, 1, 1], [], []>} : vector<4x8xf32>, vector<8x1408xf32>, vector<4x1408xf32> -> vector<4x1408xf32>
    %275 = arith.addf %270, %274 : vector<4x1408xf32>
    %276 = vector.extract_strided_slice %241 {offsets = [7, 0, 0], sizes = [1, 4, 8], strides = [1, 1, 1]} : vector<9x4x8xf32> to vector<1x4x8xf32>
    %277 = vector.shape_cast %276 : vector<1x4x8xf32> to vector<4x8xf32>
    %c0_132 = arith.constant 0 : index
    %c216 = arith.constant 216 : index
    %278 = vector.load %arg10[%c0_132, %c216] : memref<8x1648xf32, #tpu.memory_space<vmem>>, vector<8x1408xf32>
    %cst_133 = arith.constant dense<0.000000e+00> : vector<4x1408xf32>
    %279 = tpu.matmul %277, %278, %cst_133 {dimension_numbers = #tpu.dot_dimension_numbers<[1], [0], [0], [1], [0, 0, 1, 1], [], []>} : vector<4x8xf32>, vector<8x1408xf32>, vector<4x1408xf32> -> vector<4x1408xf32>
    %280 = arith.addf %275, %279 : vector<4x1408xf32>
    %281 = vector.extract_strided_slice %241 {offsets = [8, 0, 0], sizes = [1, 4, 8], strides = [1, 1, 1]} : vector<9x4x8xf32> to vector<1x4x8xf32>
    %282 = vector.shape_cast %281 : vector<1x4x8xf32> to vector<4x8xf32>
    %c0_134 = arith.constant 0 : index
    %c220 = arith.constant 220 : index
    %283 = vector.load %arg10[%c0_134, %c220] : memref<8x1648xf32, #tpu.memory_space<vmem>>, vector<8x1408xf32>
    %cst_135 = arith.constant dense<0.000000e+00> : vector<4x1408xf32>
    %284 = tpu.matmul %282, %283, %cst_135 {dimension_numbers = #tpu.dot_dimension_numbers<[1], [0], [0], [1], [0, 0, 1, 1], [], []>} : vector<4x8xf32>, vector<8x1408xf32>, vector<4x1408xf32> -> vector<4x1408xf32>
    %285 = arith.addf %280, %284 : vector<4x1408xf32>
    %286 = vector.extract_strided_slice %7 {offsets = [3, 0, 0], sizes = [1, 4, 1], strides = [1, 1, 1]} : vector<4x4x1xf32> to vector<1x4x1xf32>
    %287 = vector.shape_cast %286 : vector<1x4x1xf32> to vector<4x1xf32>
    %288 = vector.broadcast %287 : vector<4x1xf32> to vector<4x1408xf32>
    %289 = arith.addf %285, %288 : vector<4x1408xf32>
    %cst_136 = arith.constant 0.000000e+00 : f32
    %290 = vector.broadcast %cst_136 : f32 to vector<4x1408xf32>
    %291 = arith.cmpf oge, %289, %290 : vector<4x1408xf32>
    %cst_137 = arith.constant 1.000000e-01 : f32
    %292 = vector.broadcast %cst_137 : f32 to vector<4x1408xf32>
    %293 = arith.mulf %292, %289 : vector<4x1408xf32>
    %294 = arith.select %291, %289, %293 : vector<4x1408xi1>, vector<4x1408xf32>
    %295 = vector.extract_strided_slice %8 {offsets = [3, 0, 0], sizes = [1, 8, 4], strides = [1, 1, 1]} : vector<4x8x4xf32> to vector<1x8x4xf32>
    %296 = vector.shape_cast %295 : vector<1x8x4xf32> to vector<8x4xf32>
    %cst_138 = arith.constant dense<0.000000e+00> : vector<8x1408xf32>
    %297 = tpu.matmul %296, %294, %cst_138 {dimension_numbers = #tpu.dot_dimension_numbers<[1], [0], [0], [1], [0, 0, 1, 1], [], []>} : vector<8x4xf32>, vector<4x1408xf32>, vector<8x1408xf32> -> vector<8x1408xf32>
    %298 = arith.addf %239, %297 : vector<8x1408xf32>
    %299 = vector.broadcast %9 : vector<8x1xf32> to vector<8x1408xf32>
    %300 = arith.addf %298, %299 : vector<8x1408xf32>
    %cst_139 = arith.constant 0.000000e+00 : f32
    %301 = vector.broadcast %cst_139 : f32 to vector<8x1408xf32>
    %302 = arith.cmpf oge, %300, %301 : vector<8x1408xf32>
    %cst_140 = arith.constant 1.000000e-01 : f32
    %303 = vector.broadcast %cst_140 : f32 to vector<8x1408xf32>
    %304 = arith.mulf %303, %300 : vector<8x1408xf32>
    %305 = arith.select %302, %300, %304 : vector<8x1408xi1>, vector<8x1408xf32>
    %c0_141 = arith.constant 0 : index
    %c120_142 = arith.constant 120 : index
    %306 = vector.load %arg1[%c0_141, %c120_142] : memref<8x1648xf32, #tpu.memory_space<vmem>>, vector<8x1408xf32>
    %307 = arith.addf %306, %305 : vector<8x1408xf32>
    %c0_143 = arith.constant 0 : index
    %c0_144 = arith.constant 0 : index
    %308 = vector.load %arg9[%c0_143, %c0_144] : memref<8x1408xf32, #tpu.memory_space<vmem>>, vector<8x1408xf32>
    tpu.vector_store %arg9[%c0_143, %c0_144], %307 {strides = array<i32>} : memref<8x1408xf32, #tpu.memory_space<vmem>>, vector<8x1408xf32>,
    return
  }
  func.func @transform_0(%arg0: i32) -> (i32, i32) {
    %c0_i32 = arith.constant 0 : i32
    %c0_i32_0 = arith.constant 0 : i32
    %c0_i32_1 = arith.constant 0 : i32
    return %c0_i32, %c0_i32_0 : i32, i32
  }
  func.func @transform_1(%arg0: i32) -> (i32, i32) {
    %c0_i32 = arith.constant 0 : i32
    %c0_i32_0 = arith.constant 0 : i32
    %c0_i32_1 = arith.constant 0 : i32
    return %c0_i32, %c0_i32_0 : i32, i32
  }
  func.func @transform_2(%arg0: i32) -> (i32, i32, i32) {
    %c0_i32 = arith.constant 0 : i32
    %c0_i32_0 = arith.constant 0 : i32
    %c0_i32_1 = arith.constant 0 : i32
    %c0_i32_2 = arith.constant 0 : i32
    return %c0_i32, %c0_i32_0, %c0_i32_1 : i32, i32, i32
  }
  func.func @transform_3(%arg0: i32) -> (i32, i32) {
    %c0_i32 = arith.constant 0 : i32
    %c0_i32_0 = arith.constant 0 : i32
    %c0_i32_1 = arith.constant 0 : i32
    return %c0_i32, %c0_i32_0 : i32, i32
  }
  func.func @transform_4(%arg0: i32) -> (i32, i32, i32, i32) {
    %c0_i32 = arith.constant 0 : i32
    %c0_i32_0 = arith.constant 0 : i32
    %c0_i32_1 = arith.constant 0 : i32
    %c0_i32_2 = arith.constant 0 : i32
    %c0_i32_3 = arith.constant 0 : i32
    return %c0_i32, %c0_i32_0, %c0_i32_1, %c0_i32_2 : i32, i32, i32, i32
  }
  func.func @transform_5(%arg0: i32) -> (i32, i32, i32) {
    %c0_i32 = arith.constant 0 : i32
    %c0_i32_0 = arith.constant 0 : i32
    %c0_i32_1 = arith.constant 0 : i32
    %c0_i32_2 = arith.constant 0 : i32
    return %c0_i32, %c0_i32_0, %c0_i32_1 : i32, i32, i32
  }
  func.func @transform_6(%arg0: i32) -> (i32, i32, i32) {
    %c0_i32 = arith.constant 0 : i32
    %c0_i32_0 = arith.constant 0 : i32
    %c0_i32_1 = arith.constant 0 : i32
    %c0_i32_2 = arith.constant 0 : i32
    return %c0_i32, %c0_i32_0, %c0_i32_1 : i32, i32, i32
  }
  func.func @transform_7(%arg0: i32) -> (i32, i32) {
    %c0_i32 = arith.constant 0 : i32
    %c0_i32_0 = arith.constant 0 : i32
    %c0_i32_1 = arith.constant 0 : i32
    return %c0_i32, %c0_i32_0 : i32, i32
  }
  func.func @transform_8(%arg0: i32) -> (i32, i32) {
    %c0_i32 = arith.constant 0 : i32
    %c0_i32_0 = arith.constant 0 : i32
    %c0_i32_1 = arith.constant 0 : i32
    return %c0_i32, %c0_i32_0 : i32, i32
  }
}

</mosaic_0001>

<bundles_post_ra>
// kernel: tile.8
= control target key start
LH: loop header
LB: loop body
LE: loop exit
PB: predicated region body
PF: predicated region fallthrough
CT: control target
= control target key end

     0   :  { %s94_s0 = inlined_call_operand.vmem [shape: f32[816], index: 0, kind: input, shape index: {}]   ;;  %s95_s1 = inlined_call_operand.vmem [shape: f32[2,816], index: 1, kind: output, shape index: {}]  }
   0x1   :  { %v4_v0 = vld [vmem:[%s94_s0] ss:$0 sm:$0xff]  ;;  %v30_v1 = vld [vmem:[%s94_s0 + $0x1] ss:$0 sm:$0xff]  ;;  %v32_v2 = vld [vmem:[%s94_s0 + $0x2] ss:$0 sm:$0xff] }
   0x2   :  { %5 = vst [vmem:[%s95_s1] sm:$0x3] %v4_v0  ;;  %31 = vst [vmem:[%s95_s1 + $0x2] sm:$0x3] %v30_v1  ;;  %v34_v3 = vld [vmem:[%s94_s0 + $0x3] ss:$0 sm:$0xff] }
   0x3   :  { %33 = vst [vmem:[%s95_s1 + $0x4] sm:$0x3] %v32_v2  ;;  %v36_v4 = vld [vmem:[%s94_s0 + $0x4] ss:$0 sm:$0xff]  ;;  %v38_v5 = vld [vmem:[%s94_s0 + $0x5] ss:$0 sm:$0xff] }
   0x4   :  { %35 = vst [vmem:[%s95_s1 + $0x6] sm:$0x3] %v34_v3  ;;  %37 = vst [vmem:[%s95_s1 + $0x8] sm:$0x3] %v36_v4  ;;  %v40_v6 = vld [vmem:[%s94_s0 + $0x6] ss:$0 sm:$0xff] }
   0x5   :  { %39 = vst [vmem:[%s95_s1 + $0xa] sm:$0x3] %v38_v5  ;;  %41 = vst [vmem:[%s95_s1 + $0xc] sm:$0x3] %v40_v6 }

// kernel: tile.9
= control target key start
LH: loop header
LB: loop body
LE: loop exit
PB: predicated region body
PF: predicated region fallthrough
CT: control target
= control target key end

     0   :  { %vm43_vm0 = vcmask 1045508   ;;  %vm37_vm1 = vcmask 392192   ;;  %vm55_vm2 = vcmask 654336   ;;  %s41_s20 = smov 48  ;;  %s68_s21 = smov 48  ;;  %vm62_vm3 = vcmask 785792   ;;  %s145_s0 = inlined_call_operand.vmem [shape: f32[2,816], index: 0, kind: input, shape index: {}]   ;;  %s146_s1 = inlined_call_operand.vmem [shape: f32[1632], index: 1, kind: output, shape index: {}]  }
   0x1   :  { %v82_v0 = vld [vmem:[%s145_s0 + $0xc] sm:$0x3]  ;;  %v83_v1 = vld [vmem:[%s145_s0 + $0xa] sm:$0x3]  ;;  %v84_v2 = vld [vmem:[%s145_s0 + $0x8] sm:$0x3] }
   0x2   :  { %8 = vst [vmem:[#allocation0 + $0x30] sm:$0x3] %v82_v0  ;;  %13 = vst [vmem:[#allocation0 + $0x28] sm:$0x3] %v83_v1  ;;  %v85_v3 = vld [vmem:[%s145_s0 + $0x6] sm:$0x3] }
   0x3   :  { %18 = vst [vmem:[#allocation0 + $0x20] sm:$0x3] %v84_v2  ;;  %v86_v4 = vld [vmem:[%s145_s0 + $0x4] sm:$0x3]  ;;  %v87_v5 = vld [vmem:[%s145_s0 + $0x2] sm:$0x3] }
   0x4   :  { %23 = vst [vmem:[#allocation0 + $0x18] sm:$0x3] %v85_v3  ;;  %28 = vst [vmem:[#allocation0 + $0x10] sm:$0x3] %v86_v4  ;;  %v33_v6 = vld [vmem:[%s145_s0] sm:$0x3] }
   0x5   :  { %32 = vst [vmem:[#allocation0 + $0x8] sm:$0x3] %v87_v5  ;;  %34 = vst [vmem:[#allocation0] sm:$0x3] %v33_v6  ;;  %s49_s0 = smov 48  ;;  %s93_s24 = smov 48  }
   0x6   :  { %vm74_vm4 = vcmask 1047936  }
   0x9   :  { %v36_v7 = vld [vmem:[#allocation0 + $0x30] sm:$0x1]   ;;  %v54_v8 = vld [vmem:[#allocation0 + $0x31] sm:$0x1]  }
   0xa   :  { %88 = vst.msk [vmem:[%s146_s1 + $0x6] sm:$0x1] %vm37_vm1, %v36_v7  }
   0xc   :  { %v47_v9 = vld [vmem:[#allocation0 + $0x1] ss:$8 sm:$0xf]   ;;  %v40_v12 = vld [vmem:[#allocation0] ss:$8 sm:$0xf]  }
   0xd   :  { %v50_v10 = vld [vmem:[#allocation0 + $0x1] ss:$8 sm:%s49_s0]   ;;  %v42_v16 = vld [vmem:[#allocation0] ss:$8 sm:%s41_s20]  }
   0xe   :  { %v52_v11 = vsel %vm43_vm0, %v50_v10, %v47_v9  ;;  %v66_v13 = vld [vmem:[#allocation0 + $0x1] ss:$8 sm:$0xf]   ;;  %v44_v17 = vsel %vm43_vm0, %v42_v16, %v40_v12 }
   0xf   :  { %v56_v14 = vsel %vm55_vm2, %v54_v8, %v52_v11  ;;  %v69_v15 = vld [vmem:[#allocation0 + $0x1] ss:$8 sm:%s68_s21]   ;;  %45 = vst [vmem:[%s146_s1] sm:$0x3f] %v44_v17  }
  0x10   :  { %57 = vrot.lane.b32.xlu0 %v56_v14, %s93_s24  ;;  %v71_v18 = vsel %vm43_vm0, %v69_v15, %v66_v13 }
  0x14   :  { %72 = vrot.lane.b32.xlu0 %v71_v18, %s93_s24 }
  0x82   :  { %v58_v19 = vpop.permute.xlu0 %57  }
  0x83   :  { %89 = vst.msk [vmem:[%s146_s1 + $0x7] sm:$0x3f] %vm37_vm1, %v58_v19  }
  0x84   :  { %90 = vst.msk [vmem:[%s146_s1 + $0xc] sm:$0x1] %vm62_vm3, %v58_v19  }
  0x86   :  { %v73_v20 = vpop.permute.xlu0 %72  }
  0x87   :  { %91 = vst.msk [vmem:[%s146_s1 + $0x6] sm:$0x3f] %vm74_vm4, %v73_v20  }

// kernel: mdcu_forward_pallas.1
= control target key start
LH: loop header
LB: loop body
LE: loop exit
PB: predicated region body
PF: predicated region fallthrough
CT: control target
= control target key end

     0   :  { %v29860_v2 = vmov 0.0   ;;  %s25430_s9 = smov 32   ;;  %s25431_s30 = smov 33   ;;  %vm140_vm0 = vcmask 261120   ;;  %vm163_vm1 = vcmask 64512   ;;  %vm25436_vm2 = vmmov 0   ;;  %s29850_s0 = inlined_call_operand.vmem [shape: f32[8,1648], index: 0, kind: input, shape index: {}]   ;;  %s29851_s2 = inlined_call_operand.vmem [shape: f32[9,8,8], index: 2, kind: input, shape index: {}]   ;;  %s29852_s3 = inlined_call_operand.vmem [shape: f32[8,1], index: 3, kind: input, shape index: {}]   ;;  %s29853_s1 = inlined_call_operand.vmem [shape: f32[1,1408], index: 1, kind: input, shape index: {}]   ;;  %s29854_s4 = inlined_call_operand.vmem [shape: f32[4,9,4,8], index: 4, kind: input, shape index: {}]   ;;  %s29855_s5 = inlined_call_operand.vmem [shape: f32[4,4,1], index: 5, kind: input, shape index: {}]   ;;  %s29856_s6 = inlined_call_operand.vmem [shape: f32[4,8,4], index: 6, kind: input, shape index: {}]   ;;  %s29857_s7 = inlined_call_operand.vmem [shape: f32[8,1], index: 7, kind: input, shape index: {}]   ;;  %s29858_s8 = inlined_call_operand.vmem [shape: f32[8,1408], index: 8, kind: output, shape index: {}]  }
   0x1   :  { %v25514_v0 = vld [vmem:[%s29850_s0 + $0x8] sm:$0xff]  ;;  %v25519_v1 = vld [vmem:[%s29850_s0] sm:$0xff]  ;;  %231 = vmatprep.mubr.f32.mxu0 %v29860_v2  ;;  %302 = vmatprep.mubr.f32.mxu1 %v29860_v2  ;;  %v25530_v3 = vld [vmem:[%s29850_s0 + $0x10] sm:$0xff]  ;;  %s25432_s10 = smov 31   ;;  %s25433_s11 = smov 9   ;;  %vm616_vm3 = vcmask 269312  }
   0x2   :  { %118 = vrot.lane.b32.xlu0 %v25514_v0, %s25430_s9  ;;  %116 = vrot.lane.b32.xlu1 %v25519_v1, %s25430_s9  ;;  %v25535_v4 = vld [vmem:[%s29850_s0 + $0x18] sm:$0xff]  ;;  %v25544_v5 = vld [vmem:[%s29850_s0 + $0x20] sm:$0xff]  ;;  %s25434_s12 = smov 8   ;;  %s25435_s15 = smov 7   ;;  %vm33_vm4 = vcmask 916480   ;;  %vm1091_vm5 = vcmask 252928  }
   0x3   :  { %v25549_v6 = vld [vmem:[%s29850_s0 + $0x28] sm:$0xff]  ;;  %v25558_v7 = vld [vmem:[%s29850_s0 + $0x30] sm:$0xff]  ;;  %v25563_v8 = vld [vmem:[%s29850_s0 + $0x38] sm:$0xff]  ;;  %s25437_s18 = smov 113   ;;  %34 = vst.msk [vmem:[#allocation2 + $0x60] sm:$0xff] %vm33_vm4, %v29860_v2  ;;  %s25438_s23 = smov 112  }
   0x4   :  { %v25572_v9 = vld [vmem:[%s29850_s0 + $0x40] sm:$0xff]  ;;  %v25577_v10 = vld [vmem:[%s29850_s0 + $0x48] sm:$0xff]  ;;  %v25586_v11 = vld [vmem:[%s29850_s0 + $0x50] sm:$0xff]  ;;  %vm1577_vm6 = vcmask 72704   ;;  %s25439_s26 = smov 111   ;;  %vm2548_vm7 = vcmask 56320  }
   0x5   :  { %v25591_v12 = vld [vmem:[%s29850_s0 + $0x58] sm:$0xff]  ;;  %v38_v18 = vld [vmem:[%s29851_s2 + $0x8] sm:$0xff]  ;;  %v37_v42 = vld [vmem:[%s29851_s2] sm:$0xff]  ;;  %vm3058_vm8 = vcmask 924672   ;;  %vm29859_vm9 = vcmask 908288   ;;  %vm29_vm10 = vcmask 982016  }
   0x6   :  { %120 = vrot.lane.b32.xlu0 %v25530_v3, %s25430_s9  ;;  %122 = vrot.lane.b32.xlu1 %v25535_v4, %s25430_s9  ;;  %v25794_v63 = vld [vmem:[%s29850_s0 + $0x60] sm:$0xff]  ;;  %30 = vst.msk [vmem:[#allocation2] sm:$0xff] %vm29_vm10, %v29860_v2  ;;  %vm31_vm11 = vcmask 1048512   ;;  %s25441_s25 = smov 120   ;;  %s25448_s17 = smov 88  }
   0x7   :  { %32 = vst.msk [vmem:[#allocation2 + $0x58] sm:$0xff] %vm31_vm11, %v29860_v2  ;;  %s25452_s19 = smov 77   ;;  %s25453_s24 = smov 11  }
   0x8   :  { %s25454_s13 = smov 5   ;;  %s25459_s16 = smov 108  }
   0x9   :  { %s25462_s20 = smov 4   ;;  %s25463_s21 = smov 44  }
   0xa   :  { %124 = vrot.lane.b32.xlu0 %v25544_v5, %s25430_s9  ;;  %126 = vrot.lane.b32.xlu1 %v25549_v6, %s25430_s9 }
   0xe   :  { %128 = vrot.lane.b32.xlu0 %v25558_v7, %s25430_s9  ;;  %130 = vrot.lane.b32.xlu1 %v25563_v8, %s25430_s9 }
  0x12   :  { %132 = vrot.lane.b32.xlu0 %v25572_v9, %s25430_s9  ;;  %134 = vrot.lane.b32.xlu1 %v25577_v10, %s25430_s9 }
  0x16   :  { %136 = vrot.lane.b32.xlu0 %v25586_v11, %s25430_s9  ;;  %138 = vrot.lane.b32.xlu1 %v25591_v12, %s25430_s9 }
  0x1a   :  { %594 = vrot.lane.b32.xlu0 %v25514_v0, %s25431_s30  ;;  %596 = vrot.lane.b32.xlu1 %v25530_v3, %s25431_s30 }
  0x1e   :  { %592 = vrot.lane.b32.xlu0 %v25519_v1, %s25431_s30  ;;  %598 = vrot.lane.b32.xlu1 %v25535_v4, %s25431_s30 }
  0x22   :  { %600 = vrot.lane.b32.xlu0 %v25544_v5, %s25431_s30  ;;  %602 = vrot.lane.b32.xlu1 %v25549_v6, %s25431_s30 }
  0x26   :  { %604 = vrot.lane.b32.xlu0 %v25558_v7, %s25431_s30  ;;  %606 = vrot.lane.b32.xlu1 %v25563_v8, %s25431_s30 }
  0x2a   :  { %608 = vrot.lane.b32.xlu0 %v25572_v9, %s25431_s30  ;;  %610 = vrot.lane.b32.xlu1 %v25577_v10, %s25431_s30 }
  0x2e   :  { %612 = vrot.lane.b32.xlu0 %v25586_v11, %s25431_s30  ;;  %614 = vrot.lane.b32.xlu1 %v25591_v12, %s25431_s30 }
  0x32   :  { %1069 = vrot.lane.b32.xlu0 %v25514_v0, %s25432_s10  ;;  %1071 = vrot.lane.b32.xlu1 %v25530_v3, %s25432_s10 }
  0x36   :  { %1067 = vrot.lane.b32.xlu0 %v25519_v1, %s25432_s10  ;;  %1073 = vrot.lane.b32.xlu1 %v25535_v4, %s25432_s10 }
  0x3a   :  { %1075 = vrot.lane.b32.xlu0 %v25544_v5, %s25432_s10  ;;  %1077 = vrot.lane.b32.xlu1 %v25549_v6, %s25432_s10 }
  0x3e   :  { %1079 = vrot.lane.b32.xlu0 %v25558_v7, %s25432_s10  ;;  %1081 = vrot.lane.b32.xlu1 %v25563_v8, %s25432_s10 }
  0x42   :  { %1083 = vrot.lane.b32.xlu0 %v25572_v9, %s25432_s10  ;;  %1085 = vrot.lane.b32.xlu1 %v25577_v10, %s25432_s10 }
  0x46   :  { %1087 = vrot.lane.b32.xlu0 %v25586_v11, %s25432_s10  ;;  %1089 = vrot.lane.b32.xlu1 %v25591_v12, %s25432_s10 }
  0x4a   :  { %1555 = vrot.lane.b32.xlu0 %v25514_v0, %s25433_s11  ;;  %1557 = vrot.lane.b32.xlu1 %v25530_v3, %s25433_s11 }
  0x4e   :  { %1553 = vrot.lane.b32.xlu0 %v25519_v1, %s25433_s11  ;;  %1559 = vrot.lane.b32.xlu1 %v25535_v4, %s25433_s11 }
  0x52   :  { %1561 = vrot.lane.b32.xlu0 %v25544_v5, %s25433_s11  ;;  %1563 = vrot.lane.b32.xlu1 %v25549_v6, %s25433_s11 }
  0x56   :  { %1565 = vrot.lane.b32.xlu0 %v25558_v7, %s25433_s11  ;;  %1567 = vrot.lane.b32.xlu1 %v25563_v8, %s25433_s11 }
  0x5a   :  { %1569 = vrot.lane.b32.xlu0 %v25572_v9, %s25433_s11  ;;  %1571 = vrot.lane.b32.xlu1 %v25577_v10, %s25433_s11 }
  0x5e   :  { %1573 = vrot.lane.b32.xlu0 %v25586_v11, %s25433_s11  ;;  %1575 = vrot.lane.b32.xlu1 %v25591_v12, %s25433_s11 }
  0x62   :  { %2041 = vrot.lane.b32.xlu0 %v25514_v0, %s25434_s12  ;;  %2043 = vrot.lane.b32.xlu1 %v25530_v3, %s25434_s12 }
  0x66   :  { %2039 = vrot.lane.b32.xlu0 %v25519_v1, %s25434_s12  ;;  %2045 = vrot.lane.b32.xlu1 %v25535_v4, %s25434_s12 }
  0x6a   :  { %2047 = vrot.lane.b32.xlu0 %v25544_v5, %s25434_s12  ;;  %2049 = vrot.lane.b32.xlu1 %v25549_v6, %s25434_s12 }
  0x6e   :  { %2051 = vrot.lane.b32.xlu0 %v25558_v7, %s25434_s12  ;;  %2053 = vrot.lane.b32.xlu1 %v25563_v8, %s25434_s12 }
  0x72   :  { %2055 = vrot.lane.b32.xlu0 %v25572_v9, %s25434_s12  ;;  %2057 = vrot.lane.b32.xlu1 %v25577_v10, %s25434_s12 }
  0x74   :  { %v119_v13 = vpop.permute.xlu0 %118  ;;  %v117_v14 = vpop.permute.xlu1 %116 }
  0x75   :  { %v141_v19 = vsel %vm140_vm0, %v117_v14, %v119_v13 }
  0x76   :  { %2059 = vrot.lane.b32.xlu0 %v25586_v11, %s25434_s12  ;;  %2061 = vrot.lane.b32.xlu1 %v25591_v12, %s25434_s12 }
  0x78   :  { %v121_v15 = vpop.permute.xlu0 %120  ;;  %v123_v16 = vpop.permute.xlu1 %122 }
  0x79   :  { %v142_v17 = vsel %vm140_vm0, %v119_v13, %v121_v15  ;;  %v143_v23 = vsel %vm140_vm0, %v121_v15, %v123_v16  ;;  %v39_v15 = vld [vmem:[%s29851_s2 + $0x10] sm:$0xff] }
  0x7a   :  { %167 = vmatprep.subr.mxu0 %v142_v17  ;;  %2526 = vrot.lane.b32.xlu0 %v25514_v0, %s25435_s15 }
  0x7b   :  { %2528 = vrot.lane.b32.xlu1 %v25530_v3, %s25435_s15  ;;  %168 = vmatpush1.msra.mxu0 %v141_v19 }
  0x7c   :  { %v125_v20 = vpop.permute.xlu0 %124  ;;  %v127_v21 = vpop.permute.xlu1 %126  ;;  %24245 = vmatmul.mubr.msk.f32.vlgmr.msra.gmra.mrb[0].mxu0 %vm163_vm1, %v38_v18 }
  0x7d   :  { %v144_v22 = vsel %vm140_vm0, %v123_v16, %v125_v20  ;;  %373 = vmatprep.mubr.f32.mxu0 %v29860_v2  ;;  %v145_v27 = vsel %vm140_vm0, %v125_v20, %v127_v21 }
  0x7e   :  { %2524 = vrot.lane.b32.xlu0 %v25519_v1, %s25435_s15  ;;  %238 = vmatprep.subr.mxu1 %v144_v22 }
  0x7f   :  { %2530 = vrot.lane.b32.xlu1 %v25535_v4, %s25435_s15  ;;  %239 = vmatpush1.msra.mxu1 %v143_v23 }
  0x80   :  { %v129_v24 = vpop.permute.xlu0 %128  ;;  %v131_v25 = vpop.permute.xlu1 %130  ;;  %24246 = vmatmul.mubr.msk.f32.vlgmr.msra.gmra.mrb[0].mxu1 %vm163_vm1, %v38_v18 }
  0x81   :  { %v146_v26 = vsel %vm140_vm0, %v127_v21, %v129_v24  ;;  %444 = vmatprep.mubr.f32.mxu1 %v29860_v2  ;;  %v147_v31 = vsel %vm140_vm0, %v129_v24, %v131_v25 }
  0x82   :  { %2532 = vrot.lane.b32.xlu0 %v25544_v5, %s25435_s15  ;;  %309 = vmatprep.subr.mxu0 %v146_v26 }
  0x83   :  { %2534 = vrot.lane.b32.xlu1 %v25549_v6, %s25435_s15  ;;  %310 = vmatpush1.msra.mxu0 %v145_v27 }
  0x84   :  { %v133_v28 = vpop.permute.xlu0 %132  ;;  %v135_v29 = vpop.permute.xlu1 %134  ;;  %24247 = vmatmul.mubr.msk.f32.vlgmr.msra.gmra.mrb[2].mxu0 %vm163_vm1, %v38_v18 }
  0x85   :  { %v148_v30 = vsel %vm140_vm0, %v131_v25, %v133_v28  ;;  %515 = vmatprep.mubr.f32.mxu0 %v29860_v2  ;;  %v149_v36 = vsel %vm140_vm0, %v133_v28, %v135_v29 }
  0x86   :  { %2536 = vrot.lane.b32.xlu0 %v25558_v7, %s25435_s15  ;;  %380 = vmatprep.subr.mxu1 %v148_v30 }
  0x87   :  { %2538 = vrot.lane.b32.xlu1 %v25563_v8, %s25435_s15  ;;  %381 = vmatpush1.msra.mxu1 %v147_v31 }
  0x88   :  { %v137_v32 = vpop.permute.xlu0 %136  ;;  %v139_v33 = vpop.permute.xlu1 %138  ;;  %24681 = vmatprep.subr.mxu1 %v29860_v2  ;;  %24248 = vmatmul.mubr.msk.f32.vlgmr.msra.gmra.mrb[2].mxu1 %vm163_vm1, %v38_v18 }
  0x89   :  { %v151_v34 = vsel %vm140_vm0, %v137_v32, %v139_v33  ;;  %v150_v35 = vsel %vm140_vm0, %v135_v29, %v137_v32  ;;  %24683 = vmatprep.mubr.msk.f32.mxu1 %vm25436_vm2, %v29860_v2 }
  0x8a   :  { %2540 = vrot.lane.b32.xlu0 %v25572_v9, %s25435_s15  ;;  %451 = vmatprep.subr.mxu0 %v150_v35 }
  0x8b   :  { %2542 = vrot.lane.b32.xlu1 %v25577_v10, %s25435_s15  ;;  %24682 = vmatpush3.msra.mxu1 %v151_v34 }
  0x8c   :  { %452 = vmatpush1.msra.mxu0 %v149_v36  ;;  %v595_v37 = vpop.permute.xlu0 %594  ;;  %v597_v38 = vpop.permute.xlu1 %596  ;;  %24684 = vmatmul.mubr.msk.f32.vlgmr.msra.gmra.mrb[4].mxu1 %vm163_vm1, %v38_v18 }
  0x8d   :  { %v618_v39 = vsel %vm616_vm3, %v595_v37, %v597_v38  ;;  %24249 = vmatmul.mubr.msk.f32.vlgmr.msra.gmra.mrb[4].mxu0 %vm163_vm1, %v38_v18  ;;  %777 = vmatprep.mubr.f32.mxu1 %v29860_v2 }
  0x8e   :  { %2544 = vrot.lane.b32.xlu0 %v25586_v11, %s25435_s15  ;;  %642 = vmatprep.subr.mxu0 %v618_v39  ;;  %v40_v39 = vld [vmem:[%s29851_s2 + $0x18] sm:$0xff] }
  0x8f   :  { %2546 = vrot.lane.b32.xlu1 %v25591_v12, %s25435_s15  ;;  %706 = vmatprep.mubr.f32.mxu0 %v29860_v2 }
  0x90   :  { %v593_v40 = vpop.permute.xlu0 %592  ;;  %v599_v41 = vpop.permute.xlu1 %598 }
  0x91   :  { %v617_v43 = vsel %vm616_vm3, %v593_v40, %v595_v37  ;;  %v619_v47 = vsel %vm616_vm3, %v597_v38, %v599_v41 }
  0x92   :  { %3036 = vrot.lane.b32.xlu0 %v25530_v3, %s25437_s18  ;;  %643 = vmatpush1.msra.mxu0 %v617_v43 }
  0x93   :  { %3038 = vrot.lane.b32.xlu1 %v25535_v4, %s25437_s18  ;;  %24251 = vmatmul.mubr.msk.f32.vlgmr.msra.gmra.mrb[0].mxu0 %vm163_vm1, %v37_v42 }
  0x94   :  { %v601_v44 = vpop.permute.xlu0 %600  ;;  %v603_v45 = vpop.permute.xlu1 %602  ;;  %848 = vmatprep.mubr.f32.mxu0 %v29860_v2 }
  0x95   :  { %v620_v46 = vsel %vm616_vm3, %v599_v41, %v601_v44  ;;  %v621_v51 = vsel %vm616_vm3, %v601_v44, %v603_v45 }
  0x96   :  { %3034 = vrot.lane.b32.xlu0 %v25514_v0, %s25437_s18  ;;  %713 = vmatprep.subr.mxu1 %v620_v46 }
  0x97   :  { %3040 = vrot.lane.b32.xlu1 %v25544_v5, %s25437_s18  ;;  %714 = vmatpush1.msra.mxu1 %v619_v47 }
  0x98   :  { %v605_v48 = vpop.permute.xlu0 %604  ;;  %v607_v49 = vpop.permute.xlu1 %606  ;;  %24252 = vmatmul.mubr.msk.f32.vlgmr.msra.gmra.mrb[0].mxu1 %vm163_vm1, %v37_v42 }
  0x99   :  { %v622_v50 = vsel %vm616_vm3, %v603_v45, %v605_v48  ;;  %919 = vmatprep.mubr.f32.mxu1 %v29860_v2  ;;  %v623_v55 = vsel %vm616_vm3, %v605_v48, %v607_v49  ;;  %v25440_v48 = vmov 0  }
  0x9a   :  { %3042 = vrot.lane.b32.xlu0 %v25549_v6, %s25437_s18  ;;  %784 = vmatprep.subr.mxu0 %v622_v50 }
  0x9b   :  { %3044 = vrot.lane.b32.xlu1 %v25558_v7, %s25437_s18  ;;  %785 = vmatpush1.msra.mxu0 %v621_v51 }
  0x9c   :  { %v609_v52 = vpop.permute.xlu0 %608  ;;  %v611_v53 = vpop.permute.xlu1 %610  ;;  %24253 = vmatmul.mubr.msk.f32.vlgmr.msra.gmra.mrb[2].mxu0 %vm163_vm1, %v37_v42  ;;  %25393 = vset.pattern.permute.xlu0 %v25440_v48 }
  0x9d   :  { %v624_v54 = vsel %vm616_vm3, %v607_v49, %v609_v52  ;;  %990 = vmatprep.mubr.f32.mxu0 %v29860_v2  ;;  %v625_v60 = vsel %vm616_vm3, %v609_v52, %v611_v53  ;;  %25394 = vset.pattern.permute.xlu1 %v25440_v48 }
  0x9e   :  { %3046 = vrot.lane.b32.xlu0 %v25563_v8, %s25437_s18  ;;  %855 = vmatprep.subr.mxu1 %v624_v54 }
  0x9f   :  { %3048 = vrot.lane.b32.xlu1 %v25572_v9, %s25437_s18  ;;  %856 = vmatpush1.msra.mxu1 %v623_v55  ;;  %v41_v55 = vld [vmem:[%s29851_s2 + $0x20] sm:$0xff] }
  0xa0   :  { %v613_v56 = vpop.permute.xlu0 %612  ;;  %v615_v57 = vpop.permute.xlu1 %614  ;;  %24686 = vmatprep.subr.mxu1 %v29860_v2  ;;  %24254 = vmatmul.mubr.msk.f32.vlgmr.msra.gmra.mrb[2].mxu1 %vm163_vm1, %v37_v42 }
  0xa1   :  { %v627_v58 = vsel %vm616_vm3, %v613_v56, %v615_v57  ;;  %v626_v59 = vsel %vm616_vm3, %v611_v53, %v613_v56  ;;  %24688 = vmatprep.mubr.msk.f32.mxu1 %vm25436_vm2, %v29860_v2 }
  0xa2   :  { %3050 = vrot.lane.b32.xlu0 %v25577_v10, %s25437_s18  ;;  %926 = vmatprep.subr.mxu0 %v626_v59 }
  0xa3   :  { %3052 = vrot.lane.b32.xlu1 %v25586_v11, %s25437_s18  ;;  %24687 = vmatpush3.msra.mxu1 %v627_v58 }
  0xa4   :  { %927 = vmatpush1.msra.mxu0 %v625_v60  ;;  %v1070_v61 = vpop.permute.xlu0 %1069  ;;  %v1072_v62 = vpop.permute.xlu1 %1071  ;;  %24689 = vmatmul.mubr.msk.f32.vlgmr.msra.gmra.mrb[6].mxu1 %vm163_vm1, %v37_v42 }
  0xa5   :  { %v1093_v1 = vsel %vm1091_vm5, %v1070_v61, %v1072_v62  ;;  %24255 = vmatmul.mubr.msk.f32.vlgmr.msra.gmra.mrb[4].mxu0 %vm163_vm1, %v37_v42  ;;  %1252 = vmatprep.mubr.f32.mxu1 %v29860_v2 }
  0xa6   :  { %3054 = vrot.lane.b32.xlu0 %v25591_v12, %s25437_s18  ;;  %1117 = vmatprep.subr.mxu0 %v1093_v1 }
  0xa7   :  { %3056 = vrot.lane.b32.xlu1 %v25794_v63, %s25437_s18  ;;  %1181 = vmatprep.mubr.f32.mxu0 %v29860_v2 }
  0xa8   :  { %v1068_v13 = vpop.permute.xlu0 %1067  ;;  %v1074_v14 = vpop.permute.xlu1 %1073 }
  0xa9   :  { %v1092_v16 = vsel %vm1091_vm5, %v1068_v13, %v1070_v61  ;;  %v1094_v20 = vsel %vm1091_vm5, %v1072_v62, %v1074_v14 }
  0xaa   :  { %3522 = vrot.lane.b32.xlu0 %v25530_v3, %s25438_s23  ;;  %1118 = vmatpush1.msra.mxu0 %v1092_v16 }
  0xab   :  { %3524 = vrot.lane.b32.xlu1 %v25535_v4, %s25438_s23  ;;  %24257 = vmatmul.mubr.msk.f32.vlgmr.msra.gmra.mrb[0].mxu0 %vm163_vm1, %v39_v15 }
  0xac   :  { %v1076_v17 = vpop.permute.xlu0 %1075  ;;  %v1078_v18 = vpop.permute.xlu1 %1077  ;;  %1323 = vmatprep.mubr.f32.mxu0 %v29860_v2 }
  0xad   :  { %v1095_v19 = vsel %vm1091_vm5, %v1074_v14, %v1076_v17  ;;  %v1096_v24 = vsel %vm1091_vm5, %v1076_v17, %v1078_v18 }
  0xae   :  { %3520 = vrot.lane.b32.xlu0 %v25514_v0, %s25438_s23  ;;  %1188 = vmatprep.subr.mxu1 %v1095_v19 }
  0xaf   :  { %3526 = vrot.lane.b32.xlu1 %v25544_v5, %s25438_s23  ;;  %1189 = vmatpush1.msra.mxu1 %v1094_v20 }
  0xb0   :  { %v1080_v21 = vpop.permute.xlu0 %1079  ;;  %v1082_v22 = vpop.permute.xlu1 %1081  ;;  %24258 = vmatmul.mubr.msk.f32.vlgmr.msra.gmra.mrb[0].mxu1 %vm163_vm1, %v39_v15 }
  0xb1   :  { %v1097_v23 = vsel %vm1091_vm5, %v1078_v18, %v1080_v21  ;;  %1394 = vmatprep.mubr.f32.mxu1 %v29860_v2  ;;  %v1098_v28 = vsel %vm1091_vm5, %v1080_v21, %v1082_v22 }
  0xb2   :  { %3528 = vrot.lane.b32.xlu0 %v25549_v6, %s25438_s23  ;;  %1259 = vmatprep.subr.mxu0 %v1097_v23 }
  0xb3   :  { %3530 = vrot.lane.b32.xlu1 %v25558_v7, %s25438_s23  ;;  %1260 = vmatpush1.msra.mxu0 %v1096_v24 }
  0xb4   :  { %v1084_v25 = vpop.permute.xlu0 %1083  ;;  %v1086_v26 = vpop.permute.xlu1 %1085  ;;  %24259 = vmatmul.mubr.msk.f32.vlgmr.msra.gmra.mrb[2].mxu0 %vm163_vm1, %v39_v15 }
  0xb5   :  { %v1099_v27 = vsel %vm1091_vm5, %v1082_v22, %v1084_v25  ;;  %1465 = vmatprep.mubr.f32.mxu0 %v29860_v2  ;;  %v1100_v33 = vsel %vm1091_vm5, %v1084_v25, %v1086_v26  ;;  %v42_v25 = vld [vmem:[%s29851_s2 + $0x28] sm:$0xff] }
  0xb6   :  { %3532 = vrot.lane.b32.xlu0 %v25563_v8, %s25438_s23  ;;  %1330 = vmatprep.subr.mxu1 %v1099_v27 }
  0xb7   :  { %3534 = vrot.lane.b32.xlu1 %v25572_v9, %s25438_s23  ;;  %1331 = vmatpush1.msra.mxu1 %v1098_v28 }
  0xb8   :  { %v1088_v29 = vpop.permute.xlu0 %1087  ;;  %v1090_v30 = vpop.permute.xlu1 %1089  ;;  %24691 = vmatprep.subr.mxu1 %v29860_v2  ;;  %24260 = vmatmul.mubr.msk.f32.vlgmr.msra.gmra.mrb[2].mxu1 %vm163_vm1, %v39_v15 }
  0xb9   :  { %v1102_v31 = vsel %vm1091_vm5, %v1088_v29, %v1090_v30  ;;  %v1101_v32 = vsel %vm1091_vm5, %v1086_v26, %v1088_v29  ;;  %24693 = vmatprep.mubr.msk.f32.mxu1 %vm25436_vm2, %v29860_v2 }
  0xba   :  { %3536 = vrot.lane.b32.xlu0 %v25577_v10, %s25438_s23  ;;  %1401 = vmatprep.subr.mxu0 %v1101_v32 }
  0xbb   :  { %3538 = vrot.lane.b32.xlu1 %v25586_v11, %s25438_s23  ;;  %24692 = vmatpush3.msra.mxu1 %v1102_v31 }
  0xbc   :  { %1402 = vmatpush1.msra.mxu0 %v1100_v33  ;;  %v1556_v34 = vpop.permute.xlu0 %1555  ;;  %v1558_v35 = vpop.permute.xlu1 %1557  ;;  %24694 = vmatmul.mubr.msk.f32.vlgmr.msra.gmra.mrb[8].mxu1 %vm163_vm1, %v39_v15 }
  0xbd   :  { %v1579_v36 = vsel %vm1577_vm6, %v1556_v34, %v1558_v35  ;;  %24261 = vmatmul.mubr.msk.f32.vlgmr.msra.gmra.mrb[4].mxu0 %vm163_vm1, %v39_v15  ;;  %1738 = vmatprep.mubr.f32.mxu1 %v29860_v2 }
  0xbe   :  { %3540 = vrot.lane.b32.xlu0 %v25591_v12, %s25438_s23  ;;  %1603 = vmatprep.subr.mxu0 %v1579_v36 }
  0xbf   :  { %3542 = vrot.lane.b32.xlu1 %v25794_v63, %s25438_s23  ;;  %1667 = vmatprep.mubr.f32.mxu0 %v29860_v2 }
  0xc0   :  { %v1554_v37 = vpop.permute.xlu0 %1553  ;;  %v1560_v38 = vpop.permute.xlu1 %1559 }
  0xc1   :  { %v1578_v40 = vsel %vm1577_vm6, %v1554_v37, %v1556_v34  ;;  %v1580_v44 = vsel %vm1577_vm6, %v1558_v35, %v1560_v38 }
  0xc2   :  { %4007 = vrot.lane.b32.xlu0 %v25530_v3, %s25439_s26  ;;  %1604 = vmatpush1.msra.mxu0 %v1578_v40 }
  0xc3   :  { %4009 = vrot.lane.b32.xlu1 %v25535_v4, %s25439_s26  ;;  %24263 = vmatmul.mubr.msk.f32.vlgmr.msra.gmra.mrb[0].mxu0 %vm163_vm1, %v40_v39 }
  0xc4   :  { %v1562_v41 = vpop.permute.xlu0 %1561  ;;  %v1564_v42 = vpop.permute.xlu1 %1563  ;;  %1809 = vmatprep.mubr.f32.mxu0 %v29860_v2 }
  0xc5   :  { %v1581_v43 = vsel %vm1577_vm6, %v1560_v38, %v1562_v41 }
  0xc6   :  { %4005 = vrot.lane.b32.xlu0 %v25514_v0, %s25439_s26  ;;  %1674 = vmatprep.subr.mxu1 %v1581_v43  ;;  %v1582_v0 = vsel %vm1577_vm6, %v1562_v41, %v1564_v42 }
  0xc7   :  { %4011 = vrot.lane.b32.xlu1 %v25544_v5, %s25439_s26  ;;  %1675 = vmatpush1.msra.mxu1 %v1580_v44 }
  0xc8   :  { %v1566_v3 = vpop.permute.xlu0 %1565  ;;  %v1568_v4 = vpop.permute.xlu1 %1567  ;;  %24264 = vmatmul.mubr.msk.f32.vlgmr.msra.gmra.mrb[0].mxu1 %vm163_vm1, %v40_v39 }
  0xc9   :  { %v1583_v45 = vsel %vm1577_vm6, %v1564_v42, %v1566_v3  ;;  %1880 = vmatprep.mubr.f32.mxu1 %v29860_v2 }
  0xca   :  { %4013 = vrot.lane.b32.xlu0 %v25549_v6, %s25439_s26  ;;  %1745 = vmatprep.subr.mxu0 %v1583_v45  ;;  %v1584_v6 = vsel %vm1577_vm6, %v1566_v3, %v1568_v4 }
  0xcb   :  { %4015 = vrot.lane.b32.xlu1 %v25558_v7, %s25439_s26  ;;  %1746 = vmatpush1.msra.mxu0 %v1582_v0 }
  0xcc   :  { %v1570_v5 = vpop.permute.xlu0 %1569  ;;  %v1572_v46 = vpop.permute.xlu1 %1571  ;;  %24265 = vmatmul.mubr.msk.f32.vlgmr.msra.gmra.mrb[2].mxu0 %vm163_vm1, %v40_v39 }
  0xcd   :  { %v1585_v47 = vsel %vm1577_vm6, %v1568_v4, %v1570_v5  ;;  %1951 = vmatprep.mubr.f32.mxu0 %v29860_v2 }
  0xce   :  { %4017 = vrot.lane.b32.xlu0 %v25563_v8, %s25439_s26  ;;  %1816 = vmatprep.subr.mxu1 %v1585_v47  ;;  %v1586_v8 = vsel %vm1577_vm6, %v1570_v5, %v1572_v46  ;;  %v43_v5 = vld [vmem:[%s29851_s2 + $0x30] sm:$0xff] }
  0xcf   :  { %4019 = vrot.lane.b32.xlu1 %v25572_v9, %s25439_s26  ;;  %1817 = vmatpush1.msra.mxu1 %v1584_v6 }
  0xd0   :  { %v1574_v7 = vpop.permute.xlu0 %1573  ;;  %v1576_v49 = vpop.permute.xlu1 %1575  ;;  %24696 = vmatprep.subr.mxu1 %v29860_v2  ;;  %24266 = vmatmul.mubr.msk.f32.vlgmr.msra.gmra.mrb[2].mxu1 %vm163_vm1, %v40_v39 }
  0xd1   :  { %v1588_v50 = vsel %vm1577_vm6, %v1574_v7, %v1576_v49  ;;  %v1587_v51 = vsel %vm1577_vm6, %v1572_v46, %v1574_v7  ;;  %24698 = vmatprep.mubr.msk.f32.mxu1 %vm25436_vm2, %v29860_v2 }
  0xd2   :  { %4021 = vrot.lane.b32.xlu0 %v25577_v10, %s25439_s26  ;;  %1887 = vmatprep.subr.mxu0 %v1587_v51  ;;  %v46_v10 = vld [vmem:[%s29852_s3] sm:$0xff]  ;;  %s25443_s3 = smov 58  }
  0xd3   :  { %24697 = vmatpush3.msra.mxu1 %v1588_v50  ;;  %4023 = vrot.lane.b32.xlu1 %v25586_v11, %s25439_s26 }
  0xd4   :  { %1888 = vmatpush1.msra.mxu0 %v1586_v8  ;;  %v2042_v9 = vpop.permute.xlu0 %2041  ;;  %v2044_v52 = vpop.permute.xlu1 %2043  ;;  %24699 = vmatmul.mubr.msk.f32.vlgmr.msra.gmra.mrb[10].mxu1 %vm163_vm1, %v40_v39 }
  0xd5   :  { %v2064_v53 = vsel %vm163_vm1, %v2042_v9, %v2044_v52  ;;  %24267 = vmatmul.mubr.msk.f32.vlgmr.msra.gmra.mrb[4].mxu0 %vm163_vm1, %v40_v39  ;;  %2223 = vmatprep.mubr.f32.mxu1 %v29860_v2 }
  0xd6   :  { %4025 = vrot.lane.b32.xlu0 %v25591_v12, %s25439_s26  ;;  %2088 = vmatprep.subr.mxu0 %v2064_v53 }
  0xd7   :  { %4027 = vrot.lane.b32.xlu1 %v25794_v63, %s25439_s26  ;;  %2152 = vmatprep.mubr.f32.mxu0 %v29860_v2 }
  0xd8   :  { %v2040_v11 = vpop.permute.xlu0 %2039  ;;  %v2046_v54 = vpop.permute.xlu1 %2045 }
  0xd9   :  { %v2063_v56 = vsel %vm163_vm1, %v2040_v11, %v2042_v9  ;;  %v2065_v59 = vsel %vm163_vm1, %v2044_v52, %v2046_v54 }
  0xda   :  { %2089 = vmatpush1.msra.mxu0 %v2063_v56  ;;  %4493 = vperm.xlu0 %25393, %v46_v10  }
  0xdb   :  { %24269 = vmatmul.mubr.msk.f32.vlgmr.msra.gmra.mrb[0].mxu0 %vm163_vm1, %v41_v55 }
  0xdc   :  { %v2048_v12 = vpop.permute.xlu0 %2047  ;;  %v2050_v57 = vpop.permute.xlu1 %2049  ;;  %2294 = vmatprep.mubr.f32.mxu0 %v29860_v2 }
  0xdd   :  { %v2066_v58 = vsel %vm163_vm1, %v2046_v54, %v2048_v12  ;;  %v2067_v63 = vsel %vm163_vm1, %v2048_v12, %v2050_v57 }
  0xde   :  { %2159 = vmatprep.subr.mxu1 %v2066_v58 }
  0xdf   :  { %2160 = vmatpush1.msra.mxu1 %v2065_v59 }
  0xe0   :  { %v2052_v60 = vpop.permute.xlu0 %2051  ;;  %v2054_v61 = vpop.permute.xlu1 %2053  ;;  %24270 = vmatmul.mubr.msk.f32.vlgmr.msra.gmra.mrb[0].mxu1 %vm163_vm1, %v41_v55 }
  0xe1   :  { %v2068_v62 = vsel %vm163_vm1, %v2050_v57, %v2052_v60  ;;  %2365 = vmatprep.mubr.f32.mxu1 %v29860_v2  ;;  %v2069_v15 = vsel %vm163_vm1, %v2052_v60, %v2054_v61 }
  0xe2   :  { %2230 = vmatprep.subr.mxu0 %v2068_v62  ;;  %v44_v62 = vld [vmem:[%s29851_s2 + $0x38] sm:$0xff] }
  0xe3   :  { %2231 = vmatpush1.msra.mxu0 %v2067_v63 }
  0xe4   :  { %v2056_v1 = vpop.permute.xlu0 %2055  ;;  %v2058_v13 = vpop.permute.xlu1 %2057  ;;  %24271 = vmatmul.mubr.msk.f32.vlgmr.msra.gmra.mrb[2].mxu0 %vm163_vm1, %v41_v55 }
  0xe5   :  { %v2070_v14 = vsel %vm163_vm1, %v2054_v61, %v2056_v1  ;;  %2436 = vmatprep.mubr.f32.mxu0 %v29860_v2  ;;  %v2071_v20 = vsel %vm163_vm1, %v2056_v1, %v2058_v13 }
  0xe6   :  { %2301 = vmatprep.subr.mxu1 %v2070_v14 }
  0xe7   :  { %2302 = vmatpush1.msra.mxu1 %v2069_v15 }
  0xe8   :  { %v2060_v16 = vpop.permute.xlu0 %2059  ;;  %v2062_v17 = vpop.permute.xlu1 %2061  ;;  %24701 = vmatprep.subr.mxu1 %v29860_v2  ;;  %24272 = vmatmul.mubr.msk.f32.vlgmr.msra.gmra.mrb[2].mxu1 %vm163_vm1, %v41_v55 }
  0xe9   :  { %v2073_v18 = vsel %vm163_vm1, %v2060_v16, %v2062_v17  ;;  %v2072_v19 = vsel %vm163_vm1, %v2058_v13, %v2060_v16  ;;  %24703 = vmatprep.mubr.msk.f32.mxu1 %vm25436_vm2, %v29860_v2 }
  0xea   :  { %2372 = vmatprep.subr.mxu0 %v2072_v19  ;;  %24702 = vmatpush3.msra.mxu1 %v2073_v18 }
  0xeb   :  { %2373 = vmatpush1.msra.mxu0 %v2071_v20 }
  0xec   :  { %v2527_v21 = vpop.permute.xlu0 %2526  ;;  %24704 = vmatmul.mubr.msk.f32.vlgmr.msra.gmra.mrb[12].mxu1 %vm163_vm1, %v41_v55  ;;  %24273 = vmatmul.mubr.msk.f32.vlgmr.msra.gmra.mrb[4].mxu0 %vm163_vm1, %v41_v55 }
  0xed   :  { %v2529_v22 = vpop.permute.xlu1 %2528  ;;  %2638 = vmatprep.mubr.f32.mxu0 %v29860_v2  ;;  %2709 = vmatprep.mubr.f32.mxu1 %v29860_v2 }
  0xee   :  { %v2550_v23 = vsel %vm2548_vm7, %v2527_v21, %v2529_v22 }
  0xef   :  { %2574 = vmatprep.subr.mxu0 %v2550_v23 }
  0xf0   :  { %v2525_v24 = vpop.permute.xlu0 %2524 }
  0xf1   :  { %v2549_v26 = vsel %vm2548_vm7, %v2525_v24, %v2527_v21  ;;  %v2531_v27 = vpop.permute.xlu1 %2530 }
  0xf2   :  { %2575 = vmatpush1.msra.mxu0 %v2549_v26  ;;  %v2551_v31 = vsel %vm2548_vm7, %v2529_v22, %v2531_v27 }
  0xf3   :  { %24275 = vmatmul.mubr.msk.f32.vlgmr.msra.gmra.mrb[0].mxu0 %vm163_vm1, %v42_v25 }
  0xf4   :  { %v2533_v28 = vpop.permute.xlu0 %2532  ;;  %2780 = vmatprep.mubr.f32.mxu0 %v29860_v2 }
  0xf5   :  { %v2535_v29 = vpop.permute.xlu1 %2534  ;;  %v2552_v30 = vsel %vm2548_vm7, %v2531_v27, %v2533_v28 }
  0xf6   :  { %2645 = vmatprep.subr.mxu1 %v2552_v30  ;;  %v2553_v35 = vsel %vm2548_vm7, %v2533_v28, %v2535_v29 }
  0xf7   :  { %2646 = vmatpush1.msra.mxu1 %v2551_v31 }
  0xf8   :  { %v2537_v32 = vpop.permute.xlu0 %2536  ;;  %24276 = vmatmul.mubr.msk.f32.vlgmr.msra.gmra.mrb[0].mxu1 %vm163_vm1, %v42_v25 }
  0xf9   :  { %v2539_v33 = vpop.permute.xlu1 %2538  ;;  %v2554_v34 = vsel %vm2548_vm7, %v2535_v29, %v2537_v32  ;;  %2851 = vmatprep.mubr.f32.mxu1 %v29860_v2 }
  0xfa   :  { %2716 = vmatprep.subr.mxu0 %v2554_v34  ;;  %v2555_v39 = vsel %vm2548_vm7, %v2537_v32, %v2539_v33  ;;  %v45_v34 = vld [vmem:[%s29851_s2 + $0x40] sm:$0xff]  ;;  %s25449_s2 = smov 86  }
  0xfb   :  { %2717 = vmatpush1.msra.mxu0 %v2553_v35 }
  0xfc   :  { %v2541_v36 = vpop.permute.xlu0 %2540  ;;  %24277 = vmatmul.mubr.msk.f32.vlgmr.msra.gmra.mrb[2].mxu0 %vm163_vm1, %v42_v25 }
  0xfd   :  { %v2543_v37 = vpop.permute.xlu1 %2542  ;;  %v2556_v38 = vsel %vm2548_vm7, %v2539_v33, %v2541_v36  ;;  %2922 = vmatprep.mubr.f32.mxu0 %v29860_v2 }
  0xfe   :  { %2787 = vmatprep.subr.mxu1 %v2556_v38  ;;  %v2557_v44 = vsel %vm2548_vm7, %v2541_v36, %v2543_v37 }
  0xff   :  { %2788 = vmatpush1.msra.mxu1 %v2555_v39 }
 0x100   :  { %v2545_v40 = vpop.permute.xlu0 %2544  ;;  %24278 = vmatmul.mubr.msk.f32.vlgmr.msra.gmra.mrb[2].mxu1 %vm163_vm1, %v42_v25  ;;  %24706 = vmatprep.subr.mxu1 %v29860_v2 }
 0x101   :  { %v2547_v41 = vpop.permute.xlu1 %2546  ;;  %v2558_v42 = vsel %vm2548_vm7, %v2543_v37, %v2545_v40  ;;  %24708 = vmatprep.mubr.msk.f32.mxu1 %vm25436_vm2, %v29860_v2 }
 0x102   :  { %v2559_v43 = vsel %vm2548_vm7, %v2545_v40, %v2547_v41  ;;  %2858 = vmatprep.subr.mxu0 %v2558_v42 }
 0x103   :  { %24707 = vmatpush3.msra.mxu1 %v2559_v43  ;;  %2859 = vmatpush1.msra.mxu0 %v2557_v44 }
 0x104   :  { %v3037_v3 = vpop.permute.xlu0 %3036  ;;  %24709 = vmatmul.mubr.msk.f32.vlgmr.msra.gmra.mrb[14].mxu1 %vm163_vm1, %v42_v25  ;;  %24279 = vmatmul.mubr.msk.f32.vlgmr.msra.gmra.mrb[4].mxu0 %vm163_vm1, %v42_v25 }
 0x105   :  { %v3039_v4 = vpop.permute.xlu1 %3038  ;;  %3148 = vmatprep.mubr.f32.mxu0 %v29860_v2  ;;  %3219 = vmatprep.mubr.f32.mxu1 %v29860_v2 }
 0x106   :  { %v3060_v45 = vsel %vm3058_vm8, %v3037_v3, %v3039_v4 }
 0x107   :  { %3084 = vmatprep.subr.mxu0 %v3060_v45 }
 0x108   :  { %v3035_v0 = vpop.permute.xlu0 %3034 }
 0x109   :  { %v3059_v46 = vsel %vm3058_vm8, %v3035_v0, %v3037_v3  ;;  %v3041_v47 = vpop.permute.xlu1 %3040 }
 0x10a   :  { %3085 = vmatpush1.msra.mxu0 %v3059_v46  ;;  %v3061_v49 = vsel %vm3058_vm8, %v3039_v4, %v3041_v47 }
 0x10b   :  { %24281 = vmatmul.mubr.msk.f32.vlgmr.msra.gmra.mrb[0].mxu0 %vm163_vm1, %v43_v5 }
 0x10c   :  { %v3043_v48 = vpop.permute.xlu0 %3042  ;;  %3290 = vmatprep.mubr.f32.mxu0 %v29860_v2 }
 0x10d   :  { %v3045_v6 = vpop.permute.xlu1 %3044  ;;  %v3062_v7 = vsel %vm3058_vm8, %v3041_v47, %v3043_v48 }
 0x10e   :  { %3155 = vmatprep.subr.mxu1 %v3062_v7  ;;  %v3063_v9 = vsel %vm3058_vm8, %v3043_v48, %v3045_v6 }
 0x10f   :  { %3156 = vmatpush1.msra.mxu1 %v3061_v49 }
 0x110   :  { %v3047_v50 = vpop.permute.xlu0 %3046  ;;  %24282 = vmatmul.mubr.msk.f32.vlgmr.msra.gmra.mrb[0].mxu1 %vm163_vm1, %v43_v5 }
 0x111   :  { %v3049_v51 = vpop.permute.xlu1 %3048  ;;  %v3064_v8 = vsel %vm3058_vm8, %v3045_v6, %v3047_v50  ;;  %3361 = vmatprep.mubr.f32.mxu1 %v29860_v2 }
 0x112   :  { %3226 = vmatprep.subr.mxu0 %v3064_v8  ;;  %v3065_v11 = vsel %vm3058_vm8, %v3047_v50, %v3049_v51 }
 0x113   :  { %3227 = vmatpush1.msra.mxu0 %v3063_v9  ;;  %v7598_v9 = vld [vmem:[#allocation2 + $0x60] sm:$0xff] }
 0x114   :  { %v3051_v52 = vpop.permute.xlu0 %3050  ;;  %24283 = vmatmul.mubr.msk.f32.vlgmr.msra.gmra.mrb[2].mxu0 %vm163_vm1, %v43_v5  ;;  %7633 = vrot.lane.b32.xlu0 %v7598_v9, %s25437_s18 }
 0x115   :  { %v3053_v53 = vpop.permute.xlu1 %3052  ;;  %v3066_v10 = vsel %vm3058_vm8, %v3049_v51, %v3051_v52  ;;  %3432 = vmatprep.mubr.f32.mxu0 %v29860_v2 }
 0x116   :  { %3297 = vmatprep.subr.mxu1 %v3066_v10  ;;  %v3067_v57 = vsel %vm3058_vm8, %v3051_v52, %v3053_v53 }
 0x117   :  { %3298 = vmatpush1.msra.mxu1 %v3065_v11 }
 0x118   :  { %v3055_v54 = vpop.permute.xlu0 %3054  ;;  %24284 = vmatmul.mubr.msk.f32.vlgmr.msra.gmra.mrb[2].mxu1 %vm163_vm1, %v43_v5  ;;  %24711 = vmatprep.subr.mxu1 %v29860_v2 }
 0x119   :  { %v3057_v55 = vpop.permute.xlu1 %3056  ;;  %v3068_v56 = vsel %vm3058_vm8, %v3053_v53, %v3055_v54  ;;  %24713 = vmatprep.mubr.msk.f32.mxu1 %vm25436_vm2, %v29860_v2  ;;  %8118 = vrot.lane.b32.xlu0 %v7598_v9, %s25438_s23 }
 0x11a   :  { %v3069_v12 = vsel %vm3058_vm8, %v3055_v54, %v3057_v55  ;;  %3368 = vmatprep.subr.mxu0 %v3068_v56 }
 0x11b   :  { %24712 = vmatpush3.msra.mxu1 %v3069_v12  ;;  %3369 = vmatpush1.msra.mxu0 %v3067_v57 }
 0x11c   :  { %v3523_v58 = vpop.permute.xlu0 %3522  ;;  %24714 = vmatmul.mubr.msk.f32.vlgmr.msra.gmra.mrb[16].mxu1 %vm163_vm1, %v43_v5  ;;  %24285 = vmatmul.mubr.msk.f32.vlgmr.msra.gmra.mrb[4].mxu0 %vm163_vm1, %v43_v5 }
 0x11d   :  { %v3525_v59 = vpop.permute.xlu1 %3524  ;;  %3633 = vmatprep.mubr.f32.mxu0 %v29860_v2  ;;  %3704 = vmatprep.mubr.f32.mxu1 %v29860_v2 }
 0x11e   :  { %v3545_v60 = vsel %vm33_vm4, %v3523_v58, %v3525_v59  ;;  %8603 = vrot.lane.b32.xlu0 %v7598_v9, %s25439_s26 }
 0x11f   :  { %3569 = vmatprep.subr.mxu0 %v3545_v60 }
 0x120   :  { %v3521_v61 = vpop.permute.xlu0 %3520 }
 0x121   :  { %v3544_v63 = vsel %vm33_vm4, %v3521_v61, %v3523_v58  ;;  %v3527_v1 = vpop.permute.xlu1 %3526 }
 0x122   :  { %3570 = vmatpush1.msra.mxu0 %v3544_v63  ;;  %v3546_v16 = vsel %vm33_vm4, %v3525_v59, %v3527_v1 }
 0x123   :  { %24287 = vmatmul.mubr.msk.f32.vlgmr.msra.gmra.mrb[0].mxu0 %vm163_vm1, %v44_v62 }
 0x124   :  { %v3529_v13 = vpop.permute.xlu0 %3528  ;;  %3775 = vmatprep.mubr.f32.mxu0 %v29860_v2 }
 0x125   :  { %v3531_v14 = vpop.permute.xlu1 %3530  ;;  %v3547_v15 = vsel %vm33_vm4, %v3527_v1, %v3529_v13  ;;  %v4542_v1 = vlaneseq }
 0x126   :  { %3640 = vmatprep.subr.mxu1 %v3547_v15  ;;  %v3548_v20 = vsel %vm33_vm4, %v3529_v13, %v3531_v14 }
 0x127   :  { %3641 = vmatpush1.msra.mxu1 %v3546_v16  ;;  %v26056_v16 = vshrl.u32 %v4542_v1, 7 }
 0x128   :  { %v3533_v17 = vpop.permute.xlu0 %3532  ;;  %24288 = vmatmul.mubr.msk.f32.vlgmr.msra.gmra.mrb[0].mxu1 %vm163_vm1, %v44_v62 }
 0x129   :  { %v3535_v18 = vpop.permute.xlu1 %3534  ;;  %v3549_v19 = vsel %vm33_vm4, %v3531_v14, %v3533_v17  ;;  %3846 = vmatprep.mubr.f32.mxu1 %v29860_v2 }
 0x12a   :  { %3711 = vmatprep.subr.mxu0 %v3549_v19  ;;  %v3550_v24 = vsel %vm33_vm4, %v3533_v17, %v3535_v18  ;;  %v26066_v19 = vld [vmem:[%s29853_s1] sm:$0xff] }
 0x12b   :  { %3712 = vmatpush1.msra.mxu0 %v3548_v20 }
 0x12c   :  { %v3537_v21 = vpop.permute.xlu0 %3536  ;;  %24289 = vmatmul.mubr.msk.f32.vlgmr.msra.gmra.mrb[2].mxu0 %vm163_vm1, %v44_v62 }
 0x12d   :  { %v3539_v22 = vpop.permute.xlu1 %3538  ;;  %v3551_v23 = vsel %vm33_vm4, %v3535_v18, %v3537_v21  ;;  %3917 = vmatprep.mubr.f32.mxu0 %v29860_v2  ;;  %v4548_v18 = vsub.s32 1, %v26056_v16 }
 0x12e   :  { %3782 = vmatprep.subr.mxu1 %v3551_v23  ;;  %v3552_v29 = vsel %vm33_vm4, %v3537_v21, %v3539_v22 }
 0x12f   :  { %3783 = vmatpush1.msra.mxu1 %v3550_v24  ;;  %v4549_v24 = vrot.slane %v26066_v19, %v4548_v18 }
 0x130   :  { %v3541_v25 = vpop.permute.xlu0 %3540  ;;  %24290 = vmatmul.mubr.msk.f32.vlgmr.msra.gmra.mrb[2].mxu1 %vm163_vm1, %v44_v62  ;;  %24716 = vmatprep.subr.mxu1 %v29860_v2 }
 0x131   :  { %v3543_v26 = vpop.permute.xlu1 %3542  ;;  %v3553_v27 = vsel %vm33_vm4, %v3539_v22, %v3541_v25  ;;  %24718 = vmatprep.mubr.msk.f32.mxu1 %vm25436_vm2, %v29860_v2 }
 0x132   :  { %v3554_v28 = vsel %vm33_vm4, %v3541_v25, %v3543_v26  ;;  %3853 = vmatprep.subr.mxu0 %v3553_v27  ;;  %v4552_v25 = vsub.s32 2, %v26056_v16 }
 0x133   :  { %24717 = vmatpush3.msra.mxu1 %v3554_v28  ;;  %3854 = vmatpush1.msra.mxu0 %v3552_v29  ;;  %v4544_v28 = vsub.s32 0, %v26056_v16 }
 0x134   :  { %v4008_v30 = vpop.permute.xlu0 %4007  ;;  %24719 = vmatmul.mubr.msk.f32.vlgmr.msra.gmra.mrb[18].mxu1 %vm163_vm1, %v44_v62  ;;  %24291 = vmatmul.mubr.msk.f32.vlgmr.msra.gmra.mrb[4].mxu0 %vm163_vm1, %v44_v62 }
 0x135   :  { %v4010_v31 = vpop.permute.xlu1 %4009  ;;  %4119 = vmatprep.mubr.f32.mxu0 %v29860_v2  ;;  %4190 = vmatprep.mubr.f32.mxu1 %v29860_v2 }
 0x136   :  { %v4031_v32 = vsel %vm29859_vm9, %v4008_v30, %v4010_v31 }
 0x137   :  { %4055 = vmatprep.subr.mxu0 %v4031_v32 }
 0x138   :  { %v4006_v33 = vpop.permute.xlu0 %4005 }
 0x139   :  { %v4030_v35 = vsel %vm29859_vm9, %v4006_v33, %v4008_v30  ;;  %v4012_v36 = vpop.permute.xlu1 %4011 }
 0x13a   :  { %4056 = vmatpush1.msra.mxu0 %v4030_v35  ;;  %v4032_v40 = vsel %vm29859_vm9, %v4010_v31, %v4012_v36  ;;  %v4560_v35 = vsub.s32 4, %v26056_v16 }
 0x13b   :  { %24293 = vmatmul.mubr.msk.f32.vlgmr.msra.gmra.mrb[0].mxu0 %vm163_vm1, %v45_v34 }
 0x13c   :  { %v4014_v37 = vpop.permute.xlu0 %4013  ;;  %4261 = vmatprep.mubr.f32.mxu0 %v29860_v2 }
 0x13d   :  { %v4016_v38 = vpop.permute.xlu1 %4015  ;;  %v4033_v39 = vsel %vm29859_vm9, %v4012_v36, %v4014_v37 }
 0x13e   :  { %4126 = vmatprep.subr.mxu1 %v4033_v39  ;;  %v4034_v44 = vsel %vm29859_vm9, %v4014_v37, %v4016_v38 }
 0x13f   :  { %4127 = vmatpush1.msra.mxu1 %v4032_v40  ;;  %v4545_v40 = vrot.slane %v26066_v19, %v4544_v28 }
 0x140   :  { %v4018_v41 = vpop.permute.xlu0 %4017  ;;  %24294 = vmatmul.mubr.msk.f32.vlgmr.msra.gmra.mrb[0].mxu1 %vm163_vm1, %v45_v34 }
 0x141   :  { %v4020_v42 = vpop.permute.xlu1 %4019  ;;  %v4035_v43 = vsel %vm29859_vm9, %v4016_v38, %v4018_v41  ;;  %4332 = vmatprep.mubr.f32.mxu1 %v29860_v2  ;;  %v4556_v38 = vsub.s32 3, %v26056_v16 }
 0x142   :  { %4197 = vmatprep.subr.mxu0 %v4035_v43  ;;  %v4036_v4 = vsel %vm29859_vm9, %v4018_v41, %v4020_v42 }
 0x143   :  { %4198 = vmatpush1.msra.mxu0 %v4034_v44 }
 0x144   :  { %v4022_v3 = vpop.permute.xlu0 %4021  ;;  %24295 = vmatmul.mubr.msk.f32.vlgmr.msra.gmra.mrb[2].mxu0 %vm163_vm1, %v45_v34 }
 0x145   :  { %v4024_v45 = vpop.permute.xlu1 %4023  ;;  %v4037_v0 = vsel %vm29859_vm9, %v4020_v42, %v4022_v3  ;;  %4403 = vmatprep.mubr.f32.mxu0 %v29860_v2 }
 0x146   :  { %4268 = vmatprep.subr.mxu1 %v4037_v0  ;;  %v4038_v46 = vsel %vm29859_vm9, %v4022_v3, %v4024_v45 }
 0x147   :  { %4269 = vmatpush1.msra.mxu1 %v4036_v4  ;;  %v4561_v4 = vrot.slane %v26066_v19, %v4560_v35 }
 0x148   :  { %v4026_v5 = vpop.permute.xlu0 %4025  ;;  %24296 = vmatmul.mubr.msk.f32.vlgmr.msra.gmra.mrb[2].mxu1 %vm163_vm1, %v45_v34  ;;  %24721 = vmatprep.subr.mxu1 %v29860_v2 }
 0x149   :  { %v4028_v47 = vpop.permute.xlu1 %4027  ;;  %v4039_v48 = vsel %vm29859_vm9, %v4024_v45, %v4026_v5  ;;  %24723 = vmatprep.mubr.msk.f32.mxu1 %vm25436_vm2, %v29860_v2  ;;  %v4572_v45 = vsub.s32 7, %v26056_v16 }
 0x14a   :  { %v4040_v6 = vsel %vm29859_vm9, %v4026_v5, %v4028_v47  ;;  %4339 = vmatprep.subr.mxu0 %v4039_v48  ;;  %v4557_v47 = vrot.slane %v26066_v19, %v4556_v38 }
 0x14b   :  { %4340 = vmatpush1.msra.mxu0 %v4038_v46  ;;  %24722 = vmatpush3.msra.mxu1 %v4040_v6 }
 0x14c   :  { %24297 = vmatmul.mubr.msk.f32.vlgmr.msra.gmra.mrb[4].mxu0 %vm163_vm1, %v45_v34  ;;  %24724 = vmatmul.mubr.msk.f32.vlgmr.msra.gmra.mrb[20].mxu1 %vm163_vm1, %v45_v34  ;;  %v4553_v34 = vrot.slane %v26066_v19, %v4552_v25 }
 0x14d   :  { %4812 = vmatprep.mubr.f32.mxu0 %v29860_v2  ;;  %4883 = vmatprep.mubr.f32.mxu1 %v29860_v2 }
 0x159   :  { %v26060_v17 = vpop.permute.xlu0 %4493 }
 0x15f   :  { %v588_v7 = vpop.f32.mrb[4].mxu1 }
 0x160   :  { %v24685_v49 = vpop.f32.mrb[5].mxu1 }
 0x177   :  { %v1063_v50 = vpop.f32.mrb[6].mxu1 }
 0x178   :  { %v1064_v51 = vadd.f32 %v1063_v50, %v588_v7  ;;  %v24690_v8 = vpop.f32.mrb[7].mxu1  ;;  %v4564_v7 = vsub.s32 5, %v26056_v16  ;;  %v4568_v50 = vsub.s32 6, %v26056_v16 }
 0x17a   :  { %v4569_v1 = vrot.slane %v26066_v19, %v4568_v50 }
 0x18f   :  { %v1538_v52 = vpop.f32.mrb[8].mxu1 }
 0x190   :  { %v1552_v53 = vadd.f32 %v1538_v52, %v1064_v51  ;;  %v24695_v10 = vpop.f32.mrb[9].mxu1 }
 0x1a7   :  { %v2024_v11 = vpop.f32.mrb[10].mxu1 }
 0x1a8   :  { %v2038_v54 = vadd.f32 %v2024_v11, %v1552_v53  ;;  %v24700_v55 = vpop.f32.mrb[11].mxu1  ;;  %v4573_v53 = vrot.slane %v26066_v19, %v4572_v45 }
 0x1bf   :  { %v2509_v56 = vpop.f32.mrb[12].mxu1 }
 0x1c0   :  { %v2523_v12 = vadd.f32 %v2509_v56, %v2038_v54  ;;  %v24705_v57 = vpop.f32.mrb[13].mxu1 }
 0x1c1   :  { %v4565_v57 = vrot.slane %v26066_v19, %v4564_v7 }
 0x1d7   :  { %v2995_v58 = vpop.f32.mrb[14].mxu1 }
 0x1d8   :  { %v3009_v59 = vadd.f32 %v2995_v58, %v2523_v12  ;;  %v24710_v60 = vpop.f32.mrb[15].mxu1 }
 0x1ef   :  { %v3505_v61 = vpop.f32.mrb[16].mxu1 }
 0x1f0   :  { %v3519_v62 = vadd.f32 %v3505_v61, %v3009_v59  ;;  %v24715_v63 = vpop.f32.mrb[17].mxu1 }
 0x207   :  { %v3990_v13 = vpop.f32.mrb[18].mxu1 }
 0x208   :  { %v26054_v14 = vadd.f32 %v3990_v13, %v3519_v62  ;;  %v24720_v15 = vpop.f32.mrb[19].mxu1 }
 0x20e   :  { %v4121_v20 = vpop.f32.mrb[0].mxu0 }
 0x20f   :  { %v4123_v21 = vpop.f32.mrb[1].mxu0  ;;  %v4496_v23 = vadd.f32 %v26060_v17, %v4121_v20  ;;  %v36_v20 = vld [vmem:[%s29853_s1 + $0x8] sm:$0x7]  ;;  %s25442_s1 = smov 56  }
 0x210   :  { %v4497_v22 = vadd.f32 %v26060_v17, %v4123_v21 }
 0x211   :  { %v4518_v32 = vmul.f32 0.1, %v4496_v23  ;;  %vm4507_vm13 = vcmp.ge.f32.partialorder %v4496_v23, 0.0 }
 0x212   :  { %vm4508_vm12 = vcmp.ge.f32.partialorder %v4497_v22, 0.0  ;;  %v4519_v26 = vmul.f32 0.1, %v4497_v22 }
 0x213   :  { %v4192_v27 = vpop.f32.mrb[0].mxu1  ;;  %v4529_v44 = vsel %vm4507_vm13, %v4496_v23, %v4518_v32 }
 0x214   :  { %v4530_v29 = vsel %vm4508_vm12, %v4497_v22, %v4519_v26  ;;  %v4498_v30 = vadd.f32 %v26060_v17, %v4192_v27  ;;  %v4194_v31 = vpop.f32.mrb[1].mxu1  ;;  %v4597_v8 = vmul.f32 %v4545_v40, %v4529_v44  ;;  %v4577_v26 = vrot.slane %v36_v20, %v4544_v28 }
 0x215   :  { %v4598_v33 = vmul.f32 %v4549_v24, %v4530_v29  ;;  %v4499_v37 = vadd.f32 %v26060_v17, %v4194_v31  ;;  %v4585_v31 = vrot.slane %v36_v20, %v4552_v25  ;;  %v26123_v25 = vpop.permute.xlu0 %7633 }
 0x216   :  { %vm4509_vm14 = vcmp.ge.f32.partialorder %v4498_v30, 0.0  ;;  %v4520_v36 = vmul.f32 0.1, %v4498_v30  ;;  %29997 = vst [vmem:[#allocation3_spill] sm:$0xff] %v26123_v25 }
 0x217   :  { %4621 = vrot.lane.b32.xlu0 %v4598_v33, %s25441_s25  ;;  %v4263_v39 = vpop.f32.mrb[2].mxu0  ;;  %v4521_v0 = vmul.f32 0.1, %v4499_v37  ;;  %vm4510_vm12 = vcmp.ge.f32.partialorder %v4499_v37, 0.0  ;;  %v4581_v33 = vrot.slane %v36_v20, %v4548_v18 }
 0x218   :  { %v4531_v41 = vsel %vm4509_vm14, %v4498_v30, %v4520_v36  ;;  %v4500_v42 = vadd.f32 %v26060_v17, %v4263_v39  ;;  %v4265_v43 = vpop.f32.mrb[3].mxu0 }
 0x219   :  { %v4599_v3 = vmul.f32 %v4553_v34, %v4531_v41  ;;  %v4501_v46 = vadd.f32 %v26060_v17, %v4265_v43  ;;  %v4532_v10 = vsel %vm4510_vm12, %v4499_v37, %v4521_v0  ;;  %v26125_v36 = vpop.permute.xlu0 %8118 }
 0x21a   :  { %vm4511_vm15 = vcmp.ge.f32.partialorder %v4500_v42, 0.0  ;;  %v4522_v5 = vmul.f32 0.1, %v4500_v42  ;;  %v4600_v62 = vmul.f32 %v4557_v47, %v4532_v10  ;;  %29998 = vst [vmem:[#allocation4_spill] sm:$0xff] %v26125_v36 }
 0x21b   :  { %4623 = vrot.lane.b32.xlu1 %v4599_v3, %s25441_s25  ;;  %v4334_v48 = vpop.f32.mrb[2].mxu1  ;;  %v4523_v11 = vmul.f32 0.1, %v4501_v46 }
 0x21c   :  { %v4533_v6 = vsel %vm4511_vm15, %v4500_v42, %v4522_v5  ;;  %v4502_v49 = vadd.f32 %v26060_v17, %v4334_v48  ;;  %v4336_v51 = vpop.f32.mrb[3].mxu1  ;;  %vm4512_vm15 = vcmp.ge.f32.partialorder %v4501_v46, 0.0 }
 0x21d   :  { %v4601_v9 = vmul.f32 %v4561_v4, %v4533_v6  ;;  %v4503_v52 = vadd.f32 %v26060_v17, %v4336_v51  ;;  %v4534_v24 = vsel %vm4512_vm15, %v4501_v46, %v4523_v11  ;;  %v26127_v37 = vpop.permute.xlu0 %8603 }
 0x21e   :  { %vm4513_vm13 = vcmp.ge.f32.partialorder %v4502_v49, 0.0  ;;  %v4524_v54 = vmul.f32 0.1, %v4502_v49  ;;  %v4602_v27 = vmul.f32 %v4565_v57, %v4534_v24  ;;  %29999 = vst [vmem:[#allocation5_spill] sm:$0xff] %v26127_v37 }
 0x21f   :  { %vm4514_vm14 = vcmp.ge.f32.partialorder %v4503_v52, 0.0  ;;  %v4525_v55 = vmul.f32 0.1, %v4503_v52  ;;  %4619 = vrot.lane.b32.xlu1 %v4597_v8, %s25441_s25  ;;  %4627 = vrot.lane.b32.xlu0 %v4601_v9, %s25441_s25  ;;  %v4405_v56 = vpop.f32.mrb[4].mxu0  ;;  %v4476_v12 = vpop.f32.mrb[20].mxu1 }
 0x220   :  { %v4504_v58 = vadd.f32 %v26060_v17, %v4405_v56  ;;  %v4490_v59 = vadd.f32 %v4476_v12, %v26054_v14  ;;  %v4407_v60 = vpop.f32.mrb[5].mxu0  ;;  %v24725_v61 = vpop.f32.mrb[21].mxu1  ;;  %v4535_v63 = vsel %vm4513_vm13, %v4502_v49, %v4524_v54 }
 0x221   :  { %v4536_v13 = vsel %vm4514_vm14, %v4503_v52, %v4525_v55  ;;  %v4505_v23 = vadd.f32 %v26060_v17, %v4407_v60  ;;  %v4603_v19 = vmul.f32 %v4569_v1, %v4535_v63  ;;  %vm9139_vm14 = vcmask 457728  }
 0x222   :  { %v4604_v15 = vmul.f32 %v4573_v53, %v4536_v13  ;;  %v4526_v21 = vmul.f32 0.1, %v4504_v58  ;;  %v4506_v22 = vadd.f32 %v26060_v17, %v4490_v59  ;;  %vm4515_vm12 = vcmp.ge.f32.partialorder %v4504_v58, 0.0 }
 0x223   :  { %4625 = vrot.lane.b32.xlu1 %v4600_v62, %s25441_s25  ;;  %v4527_v30 = vmul.f32 0.1, %v4505_v23  ;;  %vm4516_vm13 = vcmp.ge.f32.partialorder %v4505_v23, 0.0 }
 0x224   :  { %vm4517_vm9 = vcmp.ge.f32.partialorder %v4506_v22, 0.0  ;;  %v4528_v14 = vmul.f32 0.1, %v4506_v22  ;;  %4633 = vrot.lane.b32.xlu0 %v4604_v15, %s25441_s25  ;;  %v4537_v29 = vsel %vm4515_vm12, %v4504_v58, %v4526_v21  ;;  %v26358_v21 = vld [vmem:[%s29854_s4 + $0x4] sm:$0xf] }
 0x225   :  { %v4605_v17 = vmul.f32 %v4577_v26, %v4537_v29  ;;  %v4538_v34 = vsel %vm4516_vm13, %v4505_v23, %v4527_v30  ;;  %vm9614_vm13 = vcmask 474112  }
 0x226   :  { %v4539_v32 = vsel %vm4517_vm9, %v4506_v22, %v4528_v14  ;;  %v4606_v28 = vmul.f32 %v4581_v33, %v4538_v34 }
 0x227   :  { %4631 = vrot.lane.b32.xlu1 %v4603_v19, %s25441_s25  ;;  %v4607_v35 = vmul.f32 %v4585_v31, %v4539_v32 }
 0x228   :  { %4629 = vrot.lane.b32.xlu0 %v4602_v27, %s25441_s25 }
 0x22b   :  { %4635 = vrot.lane.b32.xlu1 %v4605_v17, %s25441_s25 }
 0x22c   :  { %4639 = vrot.lane.b32.xlu0 %v4607_v35, %s25441_s25 }
 0x22f   :  { %4637 = vrot.lane.b32.xlu1 %v4606_v28, %s25441_s25 }
 0x289   :  { %v4622_v38 = vpop.permute.xlu0 %4621 }
 0x28d   :  { %v4624_v39 = vpop.permute.xlu1 %4623 }
 0x28e   :  { %v26130_v16 = vsel %vm29_vm10, %v4622_v38, %v4624_v39 }
 0x28f   :  { %4665 = vst [vmem:[#allocation2 + $0x10] sm:$0xff] %v26130_v16  ;;  %4703 = vrot.lane.b32.xlu0 %v26130_v16, %s25430_s9 }
 0x291   :  { %v4628_v18 = vpop.permute.xlu0 %4627  ;;  %v4620_v40 = vpop.permute.xlu1 %4619 }
 0x292   :  { %v26136_v41 = vsel %vm29_vm10, %v4620_v40, %v4622_v38  ;;  %4663 = vst.msk [vmem:[#allocation2] sm:$0xff] %vm31_vm11, %v4620_v40 }
 0x293   :  { %4664 = vst [vmem:[#allocation2 + $0x8] sm:$0xff] %v26136_v41  ;;  %5177 = vrot.lane.b32.xlu0 %v26130_v16, %s25431_s30 }
 0x295   :  { %v4626_v42 = vpop.permute.xlu1 %4625 }
 0x296   :  { %v26143_v43 = vsel %vm29_vm10, %v4624_v39, %v4626_v42  ;;  %v26146_v44 = vsel %vm29_vm10, %v4626_v42, %v4628_v18  ;;  %v4634_v3 = vpop.permute.xlu0 %4633 }
 0x297   :  { %4666 = vst [vmem:[#allocation2 + $0x18] sm:$0xff] %v26143_v43  ;;  %4667 = vst [vmem:[#allocation2 + $0x20] sm:$0xff] %v26146_v44  ;;  %5651 = vrot.lane.b32.xlu0 %v26130_v16, %s25432_s10 }
 0x299   :  { %v26152_v4 = vld [vmem:[#allocation2] sm:$0xff]  ;;  %v4632_v45 = vpop.permute.xlu1 %4631 }
 0x29a   :  { %v26155_v0 = vsel %vm29_vm10, %v4632_v45, %v4634_v3  ;;  %v4630_v5 = vpop.permute.xlu0 %4629  ;;  %4699 = vrot.lane.b32.xlu1 %v26152_v4, %s25430_s9 }
 0x29b   :  { %4670 = vst [vmem:[#allocation2 + $0x38] sm:$0xff] %v26155_v0  ;;  %v26161_v46 = vsel %vm29_vm10, %v4628_v18, %v4630_v5  ;;  %v26164_v47 = vsel %vm29_vm10, %v4630_v5, %v4632_v45  ;;  %6136 = vrot.lane.b32.xlu0 %v26130_v16, %s25433_s11 }
 0x29c   :  { %4668 = vst [vmem:[#allocation2 + $0x28] sm:$0xff] %v26161_v46  ;;  %4669 = vst [vmem:[#allocation2 + $0x30] sm:$0xff] %v26164_v47 }
 0x29d   :  { %v4636_v48 = vpop.permute.xlu1 %4635 }
 0x29e   :  { %v26171_v6 = vsel %vm29_vm10, %v4634_v3, %v4636_v48  ;;  %v4640_v7 = vpop.permute.xlu0 %4639  ;;  %5173 = vrot.lane.b32.xlu1 %v26152_v4, %s25431_s30 }
 0x29f   :  { %4671 = vst [vmem:[#allocation2 + $0x40] sm:$0xff] %v26171_v6  ;;  %4674 = vst.msk [vmem:[#allocation2 + $0x58] sm:$0xff] %vm29_vm10, %v4640_v7  ;;  %6621 = vrot.lane.b32.xlu0 %v26130_v16, %s25434_s12 }
 0x2a1   :  { %v4638_v49 = vpop.permute.xlu1 %4637 }
 0x2a2   :  { %v26180_v50 = vsel %vm29_vm10, %v4636_v48, %v4638_v49  ;;  %v26183_v51 = vsel %vm29_vm10, %v4638_v49, %v4640_v7  ;;  %5647 = vrot.lane.b32.xlu1 %v26152_v4, %s25432_s10 }
 0x2a3   :  { %4672 = vst [vmem:[#allocation2 + $0x48] sm:$0xff] %v26180_v50  ;;  %4673 = vst [vmem:[#allocation2 + $0x50] sm:$0xff] %v26183_v51  ;;  %7106 = vrot.lane.b32.xlu0 %v26130_v16, %s25435_s15 }
 0x2a6   :  { %6132 = vrot.lane.b32.xlu1 %v26152_v4, %s25433_s11  ;;  %v26360_v22 = vld [vmem:[#allocation2 + $0x58] sm:$0xff] }
 0x2a7   :  { %7615 = vrot.lane.b32.xlu0 %v26143_v43, %s25437_s18 }
 0x2aa   :  { %6617 = vrot.lane.b32.xlu1 %v26152_v4, %s25434_s12 }
 0x2ab   :  { %8100 = vrot.lane.b32.xlu0 %v26143_v43, %s25438_s23 }
 0x2ae   :  { %7102 = vrot.lane.b32.xlu1 %v26152_v4, %s25435_s15 }
 0x2af   :  { %8585 = vrot.lane.b32.xlu0 %v26143_v43, %s25439_s26 }
 0x2b2   :  { %4705 = vrot.lane.b32.xlu1 %v26143_v43, %s25430_s9 }
 0x2b3   :  { %9119 = vrot.lane.b32.xlu0 %v26130_v16, %s25442_s1 }
 0x2b6   :  { %4701 = vrot.lane.b32.xlu1 %v26136_v41, %s25430_s9 }
 0x2b7   :  { %4707 = vrot.lane.b32.xlu0 %v26146_v44, %s25430_s9 }
 0x2ba   :  { %5179 = vrot.lane.b32.xlu1 %v26143_v43, %s25431_s30 }
 0x2bb   :  { %5181 = vrot.lane.b32.xlu0 %v26146_v44, %s25431_s30 }
 0x2be   :  { %5175 = vrot.lane.b32.xlu1 %v26136_v41, %s25431_s30 }
 0x2bf   :  { %5655 = vrot.lane.b32.xlu0 %v26146_v44, %s25432_s10 }
 0x2c2   :  { %5653 = vrot.lane.b32.xlu1 %v26143_v43, %s25432_s10 }
 0x2c3   :  { %6140 = vrot.lane.b32.xlu0 %v26146_v44, %s25433_s11 }
 0x2c6   :  { %5649 = vrot.lane.b32.xlu1 %v26136_v41, %s25432_s10 }
 0x2c7   :  { %6625 = vrot.lane.b32.xlu0 %v26146_v44, %s25434_s12 }
 0x2ca   :  { %6138 = vrot.lane.b32.xlu1 %v26143_v43, %s25433_s11 }
 0x2cb   :  { %7110 = vrot.lane.b32.xlu0 %v26146_v44, %s25435_s15 }
 0x2ce   :  { %6134 = vrot.lane.b32.xlu1 %v26136_v41, %s25433_s11 }
 0x2cf   :  { %9123 = vrot.lane.b32.xlu0 %v26146_v44, %s25442_s1 }
 0x2d2   :  { %6623 = vrot.lane.b32.xlu1 %v26143_v43, %s25434_s12 }
 0x2d3   :  { %4713 = vrot.lane.b32.xlu0 %v26155_v0, %s25430_s9 }
 0x2d6   :  { %6619 = vrot.lane.b32.xlu1 %v26136_v41, %s25434_s12 }
 0x2d7   :  { %4709 = vrot.lane.b32.xlu0 %v26161_v46, %s25430_s9 }
 0x2da   :  { %7108 = vrot.lane.b32.xlu1 %v26143_v43, %s25435_s15 }
 0x2db   :  { %5187 = vrot.lane.b32.xlu0 %v26155_v0, %s25431_s30 }
 0x2de   :  { %7104 = vrot.lane.b32.xlu1 %v26136_v41, %s25435_s15 }
 0x2df   :  { %5183 = vrot.lane.b32.xlu0 %v26161_v46, %s25431_s30 }
 0x2e2   :  { %7613 = vrot.lane.b32.xlu1 %v26130_v16, %s25437_s18 }
 0x2e3   :  { %5661 = vrot.lane.b32.xlu0 %v26155_v0, %s25432_s10 }
 0x2e6   :  { %7611 = vrot.lane.b32.xlu1 %v26136_v41, %s25437_s18 }
 0x2e7   :  { %5657 = vrot.lane.b32.xlu0 %v26161_v46, %s25432_s10 }
 0x2ea   :  { %8098 = vrot.lane.b32.xlu1 %v26130_v16, %s25438_s23 }
 0x2eb   :  { %6146 = vrot.lane.b32.xlu0 %v26155_v0, %s25433_s11 }
 0x2ee   :  { %8096 = vrot.lane.b32.xlu1 %v26136_v41, %s25438_s23 }
 0x2ef   :  { %6142 = vrot.lane.b32.xlu0 %v26161_v46, %s25433_s11 }
 0x2f2   :  { %8583 = vrot.lane.b32.xlu1 %v26130_v16, %s25439_s26 }
 0x2f3   :  { %6631 = vrot.lane.b32.xlu0 %v26155_v0, %s25434_s12 }
 0x2f6   :  { %8581 = vrot.lane.b32.xlu1 %v26136_v41, %s25439_s26 }
 0x2f7   :  { %6627 = vrot.lane.b32.xlu0 %v26161_v46, %s25434_s12 }
 0x2fa   :  { %9121 = vrot.lane.b32.xlu1 %v26143_v43, %s25442_s1 }
 0x2fb   :  { %7116 = vrot.lane.b32.xlu0 %v26155_v0, %s25435_s15 }
 0x2fe   :  { %9117 = vrot.lane.b32.xlu1 %v26136_v41, %s25442_s1 }
 0x2ff   :  { %7112 = vrot.lane.b32.xlu0 %v26161_v46, %s25435_s15 }
 0x301   :  { %v4704_v8 = vpop.permute.xlu0 %4703 }
 0x302   :  { %7617 = vrot.lane.b32.xlu1 %v26146_v44, %s25437_s18 }
 0x303   :  { %7619 = vrot.lane.b32.xlu0 %v26161_v46, %s25437_s18 }
 0x305   :  { %v26287_v9 = vpop.permute.xlu0 %5177 }
 0x306   :  { %8102 = vrot.lane.b32.xlu1 %v26146_v44, %s25438_s23 }
 0x307   :  { %7621 = vrot.lane.b32.xlu0 %v26164_v47, %s25437_s18 }
 0x309   :  { %v26293_v52 = vpop.permute.xlu0 %5651 }
 0x30a   :  { %8587 = vrot.lane.b32.xlu1 %v26146_v44, %s25439_s26 }
 0x30b   :  { %8104 = vrot.lane.b32.xlu0 %v26161_v46, %s25438_s23 }
 0x30c   :  { %v4700_v53 = vpop.permute.xlu1 %4699 }
 0x30d   :  { %v26299_v10 = vpop.permute.xlu0 %6136 }
 0x30e   :  { %4711 = vrot.lane.b32.xlu1 %v26164_v47, %s25430_s9 }
 0x30f   :  { %8106 = vrot.lane.b32.xlu0 %v26164_v47, %s25438_s23 }
 0x310   :  { %v26305_v11 = vpop.permute.xlu1 %5173 }
 0x311   :  { %v26307_v54 = vpop.permute.xlu0 %6621 }
 0x312   :  { %5185 = vrot.lane.b32.xlu1 %v26164_v47, %s25431_s30 }
 0x313   :  { %8589 = vrot.lane.b32.xlu0 %v26161_v46, %s25439_s26 }
 0x314   :  { %v26313_v55 = vpop.permute.xlu1 %5647 }
 0x315   :  { %v26315_v56 = vpop.permute.xlu0 %7106 }
 0x316   :  { %30000 = vst [vmem:[#allocation6_spill] sm:$0xff] %v26315_v56  ;;  %5659 = vrot.lane.b32.xlu1 %v26164_v47, %s25432_s10 }
 0x317   :  { %8591 = vrot.lane.b32.xlu0 %v26164_v47, %s25439_s26 }
 0x318   :  { %v26321_v12 = vpop.permute.xlu1 %6132 }
 0x319   :  { %v26323_v57 = vpop.permute.xlu0 %7615 }
 0x31a   :  { %30001 = vst [vmem:[#allocation7_spill] sm:$0xff] %v26323_v57  ;;  %6144 = vrot.lane.b32.xlu1 %v26164_v47, %s25433_s11 }
 0x31b   :  { %7625 = vrot.lane.b32.xlu0 %v26171_v6, %s25437_s18 }
 0x31c   :  { %v26329_v58 = vpop.permute.xlu1 %6617 }
 0x31d   :  { %v26331_v59 = vpop.permute.xlu0 %8100 }
 0x31e   :  { %30002 = vst [vmem:[#allocation8_spill] sm:$0xff] %v26331_v59  ;;  %6629 = vrot.lane.b32.xlu1 %v26164_v47, %s25434_s12 }
 0x31f   :  { %8110 = vrot.lane.b32.xlu0 %v26171_v6, %s25438_s23 }
 0x320   :  { %v26337_v60 = vpop.permute.xlu1 %7102 }
 0x321   :  { %30003 = vst [vmem:[#allocation9_spill] sm:$0xff] %v26337_v60  ;;  %v26339_v61 = vpop.permute.xlu0 %8585 }
 0x322   :  { %30004 = vst [vmem:[#allocation10_spill] sm:$0xff] %v26339_v61  ;;  %7114 = vrot.lane.b32.xlu1 %v26164_v47, %s25435_s15 }
 0x323   :  { %8595 = vrot.lane.b32.xlu0 %v26171_v6, %s25439_s26 }
 0x324   :  { %v4706_v62 = vpop.permute.xlu1 %4705 }
 0x325   :  { %v26345_v63 = vpop.permute.xlu0 %9119  ;;  %v4725_v14 = vsel %vm140_vm0, %v4704_v8, %v4706_v62 }
 0x326   :  { %30005 = vst [vmem:[#allocation11_spill] sm:$0xff] %v26345_v63  ;;  %7623 = vrot.lane.b32.xlu1 %v26155_v0, %s25437_s18 }
 0x327   :  { %4717 = vrot.lane.b32.xlu0 %v26180_v50, %s25430_s9 }
 0x328   :  { %v4702_v1 = vpop.permute.xlu1 %4701 }
 0x329   :  { %v4724_v13 = vsel %vm140_vm0, %v4702_v1, %v4704_v8  ;;  %v4723_v15 = vsel %vm140_vm0, %v4700_v53, %v4702_v1  ;;  %v26353_v20 = vpop.permute.xlu0 %4707 }
 0x32a   :  { %8108 = vrot.lane.b32.xlu1 %v26155_v0, %s25438_s23  ;;  %4748 = vmatprep.subr.mxu0 %v4724_v13  ;;  %v4726_v23 = vsel %vm140_vm0, %v4706_v62, %v26353_v20 }
 0x32b   :  { %4749 = vmatpush1.msra.mxu0 %v4723_v15  ;;  %4721 = vrot.lane.b32.xlu0 %v26360_v22, %s25430_s9 }
 0x32c   :  { %v26368_v24 = vpop.permute.xlu1 %5179  ;;  %4819 = vmatprep.subr.mxu1 %v4726_v23  ;;  %24299 = vmatmul.mubr.msk.f32.vlgmr.msra.gmra.mrb[6].mxu0 %vm163_vm1, %v26358_v21 }
 0x32d   :  { %4820 = vmatpush1.msra.mxu1 %v4725_v14  ;;  %v26373_v19 = vpop.permute.xlu0 %5181  ;;  %4954 = vmatprep.mubr.f32.mxu0 %v29860_v2 }
 0x32e   :  { %8593 = vrot.lane.b32.xlu1 %v26155_v0, %s25439_s26  ;;  %24300 = vmatmul.mubr.msk.f32.vlgmr.msra.gmra.mrb[22].mxu1 %vm163_vm1, %v26358_v21 }
 0x32f   :  { %5191 = vrot.lane.b32.xlu0 %v26180_v50, %s25431_s30  ;;  %5025 = vmatprep.mubr.f32.mxu1 %v29860_v2 }
 0x330   :  { %v26383_v26 = vpop.permute.xlu1 %5175 }
 0x331   :  { %v26385_v27 = vpop.permute.xlu0 %5655 }
 0x332   :  { %4715 = vrot.lane.b32.xlu1 %v26171_v6, %s25430_s9 }
 0x333   :  { %5195 = vrot.lane.b32.xlu0 %v26360_v22, %s25431_s30 }
 0x334   :  { %v26391_v29 = vpop.permute.xlu1 %5653 }
 0x335   :  { %v26393_v30 = vpop.permute.xlu0 %6140 }
 0x336   :  { %5189 = vrot.lane.b32.xlu1 %v26171_v6, %s25431_s30 }
 0x337   :  { %5665 = vrot.lane.b32.xlu0 %v26180_v50, %s25432_s10 }
 0x338   :  { %v26399_v31 = vpop.permute.xlu1 %5649 }
 0x339   :  { %v26401_v32 = vpop.permute.xlu0 %6625 }
 0x33a   :  { %5663 = vrot.lane.b32.xlu1 %v26171_v6, %s25432_s10 }
 0x33b   :  { %5669 = vrot.lane.b32.xlu0 %v26360_v22, %s25432_s10 }
 0x33c   :  { %v26407_v17 = vpop.permute.xlu1 %6138 }
 0x33d   :  { %v26409_v33 = vpop.permute.xlu0 %7110 }
 0x33e   :  { %30006 = vst [vmem:[#allocation12_spill] sm:$0xff] %v26409_v33  ;;  %6148 = vrot.lane.b32.xlu1 %v26171_v6, %s25433_s11 }
 0x33f   :  { %6150 = vrot.lane.b32.xlu0 %v26180_v50, %s25433_s11 }
 0x340   :  { %v26415_v34 = vpop.permute.xlu1 %6134 }
 0x341   :  { %v26417_v35 = vpop.permute.xlu0 %9123 }
 0x342   :  { %30007 = vst [vmem:[#allocation13_spill] sm:$0xff] %v26417_v35  ;;  %6633 = vrot.lane.b32.xlu1 %v26171_v6, %s25434_s12 }
 0x343   :  { %6154 = vrot.lane.b32.xlu0 %v26360_v22, %s25433_s11 }
 0x344   :  { %v26423_v28 = vpop.permute.xlu1 %6623 }
 0x345   :  { %v26425_v38 = vpop.permute.xlu0 %4713 }
 0x346   :  { %7118 = vrot.lane.b32.xlu1 %v26171_v6, %s25435_s15 }
 0x347   :  { %6635 = vrot.lane.b32.xlu0 %v26180_v50, %s25434_s12 }
 0x348   :  { %v26431_v39 = vpop.permute.xlu1 %6619 }
 0x349   :  { %v26433_v18 = vpop.permute.xlu0 %4709 }
 0x34a   :  { %7627 = vrot.lane.b32.xlu1 %v26180_v50, %s25437_s18 }
 0x34b   :  { %6639 = vrot.lane.b32.xlu0 %v26360_v22, %s25434_s12 }
 0x34c   :  { %v26439_v40 = vpop.permute.xlu1 %7108 }
 0x34d   :  { %30008 = vst [vmem:[#allocation14_spill] sm:$0xff] %v26439_v40  ;;  %v26441_v42 = vpop.permute.xlu0 %5187 }
 0x34e   :  { %7631 = vrot.lane.b32.xlu1 %v26360_v22, %s25437_s18 }
 0x34f   :  { %7120 = vrot.lane.b32.xlu0 %v26180_v50, %s25435_s15 }
 0x350   :  { %v26447_v3 = vpop.permute.xlu1 %7104 }
 0x351   :  { %30009 = vst [vmem:[#allocation15_spill] sm:$0xff] %v26447_v3  ;;  %v26449_v45 = vpop.permute.xlu0 %5183 }
 0x352   :  { %8112 = vrot.lane.b32.xlu1 %v26180_v50, %s25438_s23 }
 0x353   :  { %7124 = vrot.lane.b32.xlu0 %v26360_v22, %s25435_s15 }
 0x354   :  { %v26455_v5 = vpop.permute.xlu1 %7613 }
 0x355   :  { %30010 = vst [vmem:[#allocation16_spill] sm:$0xff] %v26455_v5  ;;  %v26457_v48 = vpop.permute.xlu0 %5661 }
 0x356   :  { %8116 = vrot.lane.b32.xlu1 %v26360_v22, %s25438_s23 }
 0x357   :  { %9129 = vrot.lane.b32.xlu0 %v26155_v0, %s25442_s1 }
 0x358   :  { %v26463_v7 = vpop.permute.xlu1 %7611 }
 0x359   :  { %30011 = vst [vmem:[#allocation17_spill] sm:$0xff] %v26463_v7  ;;  %v26465_v49 = vpop.permute.xlu0 %5657 }
 0x35a   :  { %8597 = vrot.lane.b32.xlu1 %v26180_v50, %s25439_s26 }
 0x35b   :  { %9125 = vrot.lane.b32.xlu0 %v26161_v46, %s25442_s1 }
 0x35c   :  { %v26471_v8 = vpop.permute.xlu1 %8098 }
 0x35d   :  { %30012 = vst [vmem:[#allocation18_spill] sm:$0xff] %v26471_v8  ;;  %v26473_v53 = vpop.permute.xlu0 %6146 }
 0x35e   :  { %8601 = vrot.lane.b32.xlu1 %v26360_v22, %s25439_s26 }
 0x35f   :  { %9133 = vrot.lane.b32.xlu0 %v26180_v50, %s25442_s1 }
 0x360   :  { %v26479_v62 = vpop.permute.xlu1 %8096 }
 0x361   :  { %30013 = vst [vmem:[#allocation19_spill] sm:$0xff] %v26479_v62  ;;  %v26481_v1 = vpop.permute.xlu0 %6142 }
 0x362   :  { %4719 = vrot.lane.b32.xlu1 %v26183_v51, %s25430_s9  ;;  %s25444_s9 = smov 54  }
 0x363   :  { %9137 = vrot.lane.b32.xlu0 %v26360_v22, %s25442_s1 }
 0x364   :  { %v26487_v13 = vpop.permute.xlu1 %8583 }
 0x365   :  { %30014 = vst [vmem:[#allocation20_spill] sm:$0xff] %v26487_v13  ;;  %v26489_v15 = vpop.permute.xlu0 %6631 }
 0x366   :  { %9115 = vrot.lane.b32.xlu1 %v26152_v4, %s25442_s1 }
 0x367   :  { %9598 = vrot.lane.b32.xlu0 %v26146_v44, %s25443_s3 }
 0x368   :  { %v26495_v23 = vpop.permute.xlu1 %8581 }
 0x369   :  { %30015 = vst [vmem:[#allocation21_spill] sm:$0xff] %v26495_v23  ;;  %v26497_v14 = vpop.permute.xlu0 %6627 }
 0x36a   :  { %9131 = vrot.lane.b32.xlu1 %v26171_v6, %s25442_s1 }
 0x36b   :  { %9594 = vrot.lane.b32.xlu0 %v26130_v16, %s25443_s3 }
 0x36c   :  { %v26503_v2 = vpop.permute.xlu1 %9121 }
 0x36d   :  { %30016 = vst [vmem:[#allocation22_spill] sm:$0xff] %v26503_v2  ;;  %v26505_v63 = vpop.permute.xlu0 %7116 }
 0x36e   :  { %30017 = vst [vmem:[#allocation23_spill] sm:$0xff] %v26505_v63  ;;  %5193 = vrot.lane.b32.xlu1 %v26183_v51, %s25431_s30  ;;  %s25445_s30 = smov 10  }
 0x36f   :  { %9604 = vrot.lane.b32.xlu0 %v26155_v0, %s25443_s3 }
 0x370   :  { %v26511_v35 = vpop.permute.xlu1 %9117 }
 0x371   :  { %30018 = vst [vmem:[#allocation24_spill] sm:$0xff] %v26511_v35  ;;  %v26513_v37 = vpop.permute.xlu0 %7112 }
 0x372   :  { %30019 = vst [vmem:[#allocation25_spill] sm:$0xff] %v26513_v37  ;;  %9127 = vrot.lane.b32.xlu1 %v26164_v47, %s25442_s1 }
 0x373   :  { %9600 = vrot.lane.b32.xlu0 %v26161_v46, %s25443_s3 }
 0x374   :  { %v26519_v23 = vpop.permute.xlu1 %7617 }
 0x375   :  { %30020 = vst [vmem:[#allocation26_spill] sm:$0xff] %v26519_v23  ;;  %v26521_v2 = vpop.permute.xlu0 %7619 }
 0x376   :  { %30021 = vst [vmem:[#allocation27_spill] sm:$0xff] %v26521_v2  ;;  %9596 = vrot.lane.b32.xlu1 %v26143_v43, %s25443_s3 }
 0x377   :  { %9608 = vrot.lane.b32.xlu0 %v26180_v50, %s25443_s3 }
 0x378   :  { %v26527_v13 = vpop.permute.xlu1 %8102 }
 0x379   :  { %30022 = vst [vmem:[#allocation28_spill] sm:$0xff] %v26527_v13  ;;  %v26529_v35 = vpop.permute.xlu0 %7621 }
 0x37a   :  { %30023 = vst [vmem:[#allocation29_spill] sm:$0xff] %v26529_v35  ;;  %5667 = vrot.lane.b32.xlu1 %v26183_v51, %s25432_s10  ;;  %s25446_s10 = smov 6  }
 0x37b   :  { %9612 = vrot.lane.b32.xlu0 %v26360_v22, %s25443_s3 }
 0x37c   :  { %v26535_v61 = vpop.permute.xlu1 %8587 }
 0x37d   :  { %30024 = vst [vmem:[#allocation30_spill] sm:$0xff] %v26535_v61  ;;  %v26537_v36 = vpop.permute.xlu0 %8104  ;;  %v4727_v61 = vsel %vm140_vm0, %v26353_v20, %v26433_v18 }
 0x37e   :  { %30025 = vst [vmem:[#allocation31_spill] sm:$0xff] %v26537_v36  ;;  %9592 = vrot.lane.b32.xlu1 %v26136_v41, %s25443_s3 }
 0x37f   :  { %10073 = vrot.lane.b32.xlu0 %v26146_v44, %s25444_s9 }
 0x380   :  { %v4712_v62 = vpop.permute.xlu1 %4711 }
 0x381   :  { %v4728_v8 = vsel %vm140_vm0, %v26433_v18, %v4712_v62  ;;  %v26545_v59 = vpop.permute.xlu0 %8106 }
 0x382   :  { %30026 = vst [vmem:[#allocation32_spill] sm:$0xff] %v26545_v59  ;;  %9590 = vrot.lane.b32.xlu1 %v26152_v4, %s25443_s3  ;;  %4890 = vmatprep.subr.mxu0 %v4728_v8  ;;  %v30028_v59 = vmov 0.0  }
 0x383   :  { %4891 = vmatpush1.msra.mxu0 %v4727_v61  ;;  %10069 = vrot.lane.b32.xlu0 %v26130_v16, %s25444_s9 }
 0x384   :  { %v26554_v13 = vpop.permute.xlu1 %5185  ;;  %24301 = vmatmul.mubr.msk.f32.vlgmr.msra.gmra.mrb[8].mxu0 %vm163_vm1, %v26358_v21 }
 0x385   :  { %v26558_v36 = vpop.permute.xlu0 %8589  ;;  %5096 = vmatprep.mubr.f32.mxu0 %v30028_v59 }
 0x386   :  { %30027 = vst [vmem:[#allocation33_spill] sm:$0xff] %v26558_v36  ;;  %6152 = vrot.lane.b32.xlu1 %v26183_v51, %s25433_s11  ;;  %s25447_s11 = smov 90  }
 0x387   :  { %10079 = vrot.lane.b32.xlu0 %v26155_v0, %s25444_s9 }
 0x388   :  { %v26565_v20 = vpop.permute.xlu1 %5659 }
 0x389   :  { %v26567_v61 = vpop.permute.xlu0 %8591 }
 0x38a   :  { %30029 = vst [vmem:[#allocation34_spill] sm:$0xff] %v26567_v61  ;;  %9606 = vrot.lane.b32.xlu1 %v26171_v6, %s25443_s3 }
 0x38b   :  { %10075 = vrot.lane.b32.xlu0 %v26161_v46, %s25444_s9 }
 0x38c   :  { %v26573_v18 = vpop.permute.xlu1 %6144 }
 0x38d   :  { %v26575_v8 = vpop.permute.xlu0 %7625 }
 0x38e   :  { %30030 = vst [vmem:[#allocation35_spill] sm:$0xff] %v26575_v8  ;;  %9602 = vrot.lane.b32.xlu1 %v26164_v47, %s25443_s3 }
 0x38f   :  { %10083 = vrot.lane.b32.xlu0 %v26180_v50, %s25444_s9 }
 0x390   :  { %v26581_v36 = vpop.permute.xlu1 %6629 }
 0x391   :  { %v26583_v25 = vpop.permute.xlu0 %8110 }
 0x392   :  { %30031 = vst [vmem:[#allocation36_spill] sm:$0xff] %v26583_v25  ;;  %6637 = vrot.lane.b32.xlu1 %v26183_v51, %s25434_s12 }
 0x393   :  { %7629 = vrot.lane.b32.xlu0 %v26183_v51, %s25437_s18  ;;  %s25457_s18 = smov 61  }
 0x394   :  { %v26589_v61 = vpop.permute.xlu1 %7114 }
 0x395   :  { %30032 = vst [vmem:[#allocation37_spill] sm:$0xff] %v26589_v61  ;;  %v26591_v35 = vpop.permute.xlu0 %8595 }
 0x396   :  { %30033 = vst [vmem:[#allocation38_spill] sm:$0xff] %v26591_v35  ;;  %10071 = vrot.lane.b32.xlu1 %v26143_v43, %s25444_s9 }
 0x397   :  { %10087 = vrot.lane.b32.xlu0 %v26360_v22, %s25444_s9 }
 0x398   :  { %v26597_v8 = vpop.permute.xlu1 %7623 }
 0x399   :  { %30034 = vst [vmem:[#allocation39_spill] sm:$0xff] %v26597_v8  ;;  %v26599_v7 = vpop.permute.xlu0 %4717 }
 0x39a   :  { %10067 = vrot.lane.b32.xlu1 %v26136_v41, %s25444_s9 }
 0x39b   :  { %10559 = vrot.lane.b32.xlu0 %v26146_v44, %s25445_s30 }
 0x39c   :  { %v26605_v25 = vpop.permute.xlu1 %8108 }
 0x39d   :  { %30035 = vst [vmem:[#allocation40_spill] sm:$0xff] %v26605_v25  ;;  %v26607_v35 = vpop.permute.xlu0 %4721 }
 0x39e   :  { %7122 = vrot.lane.b32.xlu1 %v26183_v51, %s25435_s15  ;;  %s25456_s15 = smov 64  }
 0x39f   :  { %8114 = vrot.lane.b32.xlu0 %v26183_v51, %s25438_s23  ;;  %s25451_s23 = smov 83  }
 0x3a0   :  { %v26613_v8 = vpop.permute.xlu1 %8593 }
 0x3a1   :  { %30036 = vst [vmem:[#allocation41_spill] sm:$0xff] %v26613_v8  ;;  %v26615_v5 = vpop.permute.xlu0 %5191  ;;  %v4729_v8 = vsel %vm140_vm0, %v4712_v62, %v26425_v38 }
 0x3a2   :  { %10065 = vrot.lane.b32.xlu1 %v26152_v4, %s25444_s9 }
 0x3a3   :  { %10555 = vrot.lane.b32.xlu0 %v26130_v16, %s25445_s30 }
 0x3a4   :  { %v26621_v57 = vpop.permute.xlu1 %4715 }
 0x3a5   :  { %v4730_v25 = vsel %vm140_vm0, %v26425_v38, %v26621_v57  ;;  %v26626_v23 = vpop.permute.xlu0 %5195 }
 0x3a6   :  { %10081 = vrot.lane.b32.xlu1 %v26171_v6, %s25444_s9  ;;  %4961 = vmatprep.subr.mxu1 %v4730_v25 }
 0x3a7   :  { %4962 = vmatpush1.msra.mxu1 %v4729_v8  ;;  %10565 = vrot.lane.b32.xlu0 %v26155_v0, %s25445_s30 }
 0x3a8   :  { %v26634_v2 = vpop.permute.xlu1 %5189  ;;  %24302 = vmatmul.mubr.msk.f32.vlgmr.msra.gmra.mrb[24].mxu1 %vm163_vm1, %v26358_v21  ;;  %24726 = vmatprep.subr.mxu1 %v30028_v59 }
 0x3a9   :  { %v26639_v37 = vpop.permute.xlu0 %5665  ;;  %24728 = vmatprep.mubr.msk.f32.mxu1 %vm25436_vm2, %v30028_v59 }
 0x3aa   :  { %10077 = vrot.lane.b32.xlu1 %v26164_v47, %s25444_s9 }
 0x3ab   :  { %8599 = vrot.lane.b32.xlu0 %v26183_v51, %s25439_s26 }
 0x3ac   :  { %v26647_v25 = vpop.permute.xlu1 %5663 }
 0x3ad   :  { %v26649_v38 = vpop.permute.xlu0 %5669 }
 0x3ae   :  { %10557 = vrot.lane.b32.xlu1 %v26143_v43, %s25445_s30 }
 0x3af   :  { %10561 = vrot.lane.b32.xlu0 %v26161_v46, %s25445_s30 }
 0x3b0   :  { %v26655_v62 = vpop.permute.xlu1 %6148 }
 0x3b1   :  { %v26657_v8 = vpop.permute.xlu0 %6150 }
 0x3b2   :  { %10553 = vrot.lane.b32.xlu1 %v26136_v41, %s25445_s30 }
 0x3b3   :  { %10569 = vrot.lane.b32.xlu0 %v26180_v50, %s25445_s30 }
 0x3b4   :  { %v26663_v61 = vpop.permute.xlu1 %6633 }
 0x3b5   :  { %v26665_v63 = vpop.permute.xlu0 %6154 }
 0x3b6   :  { %10551 = vrot.lane.b32.xlu1 %v26152_v4, %s25445_s30 }
 0x3b7   :  { %10573 = vrot.lane.b32.xlu0 %v26360_v22, %s25445_s30 }
 0x3b8   :  { %v26671_v60 = vpop.permute.xlu1 %7118 }
 0x3b9   :  { %30037 = vst [vmem:[#allocation42_spill] sm:$0xff] %v26671_v60  ;;  %v26673_v3 = vpop.permute.xlu0 %6635 }
 0x3ba   :  { %30038 = vst [vmem:[#allocation43_spill] sm:$0xff] %v26673_v3  ;;  %10567 = vrot.lane.b32.xlu1 %v26171_v6, %s25445_s30 }
 0x3bb   :  { %11484 = vrot.lane.b32.xlu0 %v26146_v44, %s25446_s10 }
 0x3bc   :  { %v26679_v56 = vpop.permute.xlu1 %7627 }
 0x3bd   :  { %30039 = vst [vmem:[#allocation44_spill] sm:$0xff] %v26679_v56  ;;  %v26681_v40 = vpop.permute.xlu0 %6639 }
 0x3be   :  { %30040 = vst [vmem:[#allocation45_spill] sm:$0xff] %v26681_v40  ;;  %10563 = vrot.lane.b32.xlu1 %v26164_v47, %s25445_s30 }
 0x3bf   :  { %11480 = vrot.lane.b32.xlu0 %v26130_v16, %s25446_s10 }
 0x3c0   :  { %v26687_v60 = vpop.permute.xlu1 %7631 }
 0x3c1   :  { %30041 = vst [vmem:[#allocation46_spill] sm:$0xff] %v26687_v60  ;;  %v26689_v33 = vpop.permute.xlu0 %7120 }
 0x3c2   :  { %30042 = vst [vmem:[#allocation47_spill] sm:$0xff] %v26689_v33  ;;  %11482 = vrot.lane.b32.xlu1 %v26143_v43, %s25446_s10 }
 0x3c3   :  { %11490 = vrot.lane.b32.xlu0 %v26155_v0, %s25446_s10 }
 0x3c4   :  { %v26695_v3 = vpop.permute.xlu1 %8112 }
 0x3c5   :  { %30043 = vst [vmem:[#allocation48_spill] sm:$0xff] %v26695_v3  ;;  %v26697_v56 = vpop.permute.xlu0 %7124 }
 0x3c6   :  { %30044 = vst [vmem:[#allocation49_spill] sm:$0xff] %v26697_v56  ;;  %11478 = vrot.lane.b32.xlu1 %v26136_v41, %s25446_s10 }
 0x3c7   :  { %11486 = vrot.lane.b32.xlu0 %v26161_v46, %s25446_s10 }
 0x3c8   :  { %v26703_v40 = vpop.permute.xlu1 %8116 }
 0x3c9   :  { %30045 = vst [vmem:[#allocation50_spill] sm:$0xff] %v26703_v40  ;;  %v26705_v60 = vpop.permute.xlu0 %9129 }
 0x3ca   :  { %30046 = vst [vmem:[#allocation51_spill] sm:$0xff] %v26705_v60  ;;  %11476 = vrot.lane.b32.xlu1 %v26152_v4, %s25446_s10 }
 0x3cb   :  { %11494 = vrot.lane.b32.xlu0 %v26180_v50, %s25446_s10 }
 0x3cc   :  { %v26711_v33 = vpop.permute.xlu1 %8597 }
 0x3cd   :  { %30047 = vst [vmem:[#allocation52_spill] sm:$0xff] %v26711_v33  ;;  %v26713_v3 = vpop.permute.xlu0 %9125 }
 0x3ce   :  { %30048 = vst [vmem:[#allocation53_spill] sm:$0xff] %v26713_v3  ;;  %9135 = vrot.lane.b32.xlu1 %v26183_v51, %s25442_s1 }
 0x3cf   :  { %11498 = vrot.lane.b32.xlu0 %v26360_v22, %s25446_s10 }
 0x3d0   :  { %v26719_v56 = vpop.permute.xlu1 %8601 }
 0x3d1   :  { %30049 = vst [vmem:[#allocation54_spill] sm:$0xff] %v26719_v56  ;;  %v26721_v40 = vpop.permute.xlu0 %9133  ;;  %v5200_v56 = vsel %vm616_vm3, %v26368_v24, %v26373_v19 }
 0x3d2   :  { %30050 = vst [vmem:[#allocation55_spill] sm:$0xff] %v26721_v40  ;;  %11492 = vrot.lane.b32.xlu1 %v26171_v6, %s25446_s10  ;;  %v4731_v40 = vsel %vm140_vm0, %v26621_v57, %v26599_v7  ;;  %v5199_v57 = vsel %vm616_vm3, %v26287_v9, %v26368_v24  ;;  %v5203_v24 = vsel %vm616_vm3, %v26554_v13, %v26441_v42 }
 0x3d3   :  { %11970 = vrot.lane.b32.xlu0 %v26161_v46, %s25447_s11 }
 0x3d4   :  { %v4720_v4 = vpop.permute.xlu1 %4719 }
 0x3d5   :  { %v4732_v3 = vsel %vm140_vm0, %v26599_v7, %v4720_v4  ;;  %v4733_v60 = vsel %vm140_vm0, %v4720_v4, %v26607_v35  ;;  %v26731_v33 = vpop.permute.xlu0 %9137  ;;  %v5198_v35 = vsel %vm616_vm3, %v26383_v26, %v26287_v9  ;;  %v5202_v9 = vsel %vm616_vm3, %v26449_v45, %v26554_v13 }
 0x3d6   :  { %11488 = vrot.lane.b32.xlu1 %v26164_v47, %s25446_s10  ;;  %5032 = vmatprep.subr.mxu0 %v4732_v3  ;;  %v5201_v3 = vsel %vm616_vm3, %v26373_v19, %v26449_v45  ;;  %v5205_v13 = vsel %vm616_vm3, %v26634_v2, %v26615_v5  ;;  %vm30105_vm0 = vcmask 908288  }
 0x3d7   :  { %24727 = vmatpush3.msra.mxu1 %v4733_v60  ;;  %5033 = vmatpush1.msra.mxu0 %v4731_v40  ;;  %v5197_v60 = vsel %vm616_vm3, %v26305_v11, %v26383_v26  ;;  %vm30120_vm9 = vmmov %vm30105_vm0 }
 0x3d8   :  { %24729 = vmatmul.mubr.msk.f32.vlgmr.msra.gmra.mrb[26].mxu1 %vm163_vm1, %v26358_v21  ;;  %5293 = vmatprep.subr.mxu1 %v5200_v56  ;;  %v26746_v4 = vpop.permute.xlu1 %9115  ;;  %v5204_v56 = vsel %vm616_vm3, %v26441_v42, %v26634_v2  ;;  %v5672_v2 = vsel %vm1091_vm5, %v26399_v31, %v26293_v52  ;;  %vm30123_vm11 = vmmov %vm30105_vm0 }
 0x3d9   :  { %24303 = vmatmul.mubr.msk.f32.vlgmr.msra.gmra.mrb[10].mxu0 %vm163_vm1, %v26358_v21  ;;  %5222 = vmatprep.subr.mxu0 %v5198_v35  ;;  %v26756_v40 = vpop.permute.xlu0 %9598  ;;  %v47_v21 = vld [vmem:[%s29854_s4] sm:$0xf]  ;;  %vm30126_vm15 = vmmov %vm30105_vm0 }
 0x3da   :  { %5294 = vmatpush1.msra.mxu1 %v5199_v57  ;;  %5223 = vmatpush1.msra.mxu0 %v5197_v60  ;;  %v5674_v57 = vsel %vm1091_vm5, %v26391_v29, %v26385_v27  ;;  %v5671_v60 = vsel %vm1091_vm5, %v26313_v55, %v26399_v31  ;;  %v5677_v55 = vsel %vm1091_vm5, %v26565_v20, %v26457_v48  ;;  %vm30127_vm12 = vmmov %vm30105_vm0 }
 0x3db   :  { %5435 = vmatprep.subr.mxu1 %v5204_v56  ;;  %9610 = vrot.lane.b32.xlu1 %v26183_v51, %s25443_s3  ;;  %v5678_v56 = vsel %vm1091_vm5, %v26457_v48, %v26647_v25  ;;  %v5675_v31 = vsel %vm1091_vm5, %v26385_v27, %v26465_v49  ;;  %s25450_s3 = smov 80  }
 0x3dc   :  { %5357 = vmatprep.mubr.f32.mxu1 %v30028_v59  ;;  %5364 = vmatprep.subr.mxu0 %v5202_v9  ;;  %v26770_v11 = vpop.permute.xlu1 %9131 }
 0x3dd   :  { %5286 = vmatprep.mubr.f32.mxu0 %v30028_v59  ;;  %24306 = vmatmul.mubr.msk.f32.vlgmr.msra.gmra.mrb[22].mxu1 %vm163_vm1, %v47_v21  ;;  %v26777_v26 = vpop.permute.xlu0 %9594 }
 0x3de   :  { %5436 = vmatpush1.msra.mxu1 %v5203_v24  ;;  %24305 = vmatmul.mubr.msk.f32.vlgmr.msra.gmra.mrb[6].mxu0 %vm163_vm1, %v47_v21 }
 0x3df   :  { %5365 = vmatpush1.msra.mxu0 %v5201_v3  ;;  %10085 = vrot.lane.b32.xlu1 %v26183_v51, %s25444_s9 }
 0x3e0   :  { %5499 = vmatprep.mubr.f32.mxu1 %v30028_v59  ;;  %11966 = vrot.lane.b32.xlu0 %v26143_v43, %s25447_s11  ;;  %v5194_v7 = vpop.permute.xlu1 %5193 }
 0x3e1   :  { %5428 = vmatprep.mubr.f32.mxu0 %v30028_v59  ;;  %24308 = vmatmul.mubr.msk.f32.vlgmr.msra.gmra.mrb[24].mxu1 %vm163_vm1, %v47_v21  ;;  %v5206_v42 = vsel %vm616_vm3, %v26615_v5, %v5194_v7  ;;  %v5207_v19 = vsel %vm616_vm3, %v5194_v7, %v26626_v23  ;;  %v26794_v45 = vpop.permute.xlu0 %9604  ;;  %v5673_v5 = vsel %vm1091_vm5, %v26293_v52, %v26391_v29  ;;  %v26879_v7 = vld [vmem:[#allocation2 + $0x60] sm:$0xff]  ;;  %vm30108_vm3 = vmmov %vm30105_vm0 }
 0x3e2   :  { %24307 = vmatmul.mubr.msk.f32.vlgmr.msra.gmra.mrb[8].mxu0 %vm163_vm1, %v47_v21  ;;  %24731 = vmatprep.subr.mxu1 %v30028_v59  ;;  %v5676_v52 = vsel %vm1091_vm5, %v26465_v49, %v26565_v20 }
 0x3e3   :  { %10571 = vrot.lane.b32.xlu1 %v26183_v51, %s25445_s30  ;;  %5506 = vmatprep.subr.mxu0 %v5206_v42 }
 0x3e4   :  { %24732 = vmatpush3.msra.mxu1 %v5207_v19  ;;  %24733 = vmatprep.mubr.msk.f32.mxu1 %vm25436_vm2, %v30028_v59  ;;  %v26805_v35 = vpop.permute.xlu1 %9127 }
 0x3e5   :  { %11976 = vrot.lane.b32.xlu0 %v26171_v6, %s25447_s11  ;;  %5507 = vmatpush1.msra.mxu0 %v5205_v13  ;;  %v26809_v23 = vpop.permute.xlu0 %9600  ;;  %v6156_v13 = vsel %vm1577_vm6, %v26321_v12, %v26415_v34 }
 0x3e6   :  { %5570 = vmatprep.mubr.f32.mxu0 %v30028_v59  ;;  %24734 = vmatmul.mubr.msk.f32.vlgmr.msra.gmra.mrb[28].mxu1 %vm163_vm1, %v47_v21 }
 0x3e7   :  { %5767 = vmatprep.subr.mxu1 %v5674_v57  ;;  %24309 = vmatmul.mubr.msk.f32.vlgmr.msra.gmra.mrb[10].mxu0 %vm163_vm1, %v47_v21  ;;  %v49_v21 = vld [vmem:[%s29854_s4 + $0x8] sm:$0xf]  ;;  %v6163_v57 = vsel %vm1577_vm6, %v26473_v53, %v26655_v62 }
 0x3e8   :  { %5696 = vmatprep.subr.mxu0 %v5672_v2  ;;  %5768 = vmatpush1.msra.mxu1 %v5673_v5  ;;  %v26829_v9 = vpop.permute.xlu1 %9596  ;;  %v50_v2 = vld [vmem:[%s29854_s4 + $0xc] sm:$0xf] }
 0x3e9   :  { %5697 = vmatpush1.msra.mxu0 %v5671_v60  ;;  %5909 = vmatprep.subr.mxu1 %v5678_v56  ;;  %v26834_v24 = vpop.permute.xlu0 %9608  ;;  %v26988_v60 = vsel %vm163_vm1, %v26489_v15, %v26663_v61  ;;  %v27015_v56 = vsel %vm163_vm1, %v26581_v36, %v26489_v15 }
 0x3ea   :  { %11496 = vrot.lane.b32.xlu1 %v26183_v51, %s25446_s10  ;;  %5831 = vmatprep.mubr.f32.mxu1 %v30028_v59  ;;  %30055 = vst [vmem:[#allocation60_spill] sm:$0xff] %v26988_v60  ;;  %30057 = vst [vmem:[#allocation62_spill] sm:$0xff] %v27015_v56 }
 0x3eb   :  { %5838 = vmatprep.subr.mxu0 %v5676_v52  ;;  %11972 = vrot.lane.b32.xlu0 %v26164_v47, %s25447_s11 }
 0x3ec   :  { %5760 = vmatprep.mubr.f32.mxu0 %v30028_v59  ;;  %24312 = vmatmul.mubr.msk.f32.vlgmr.msra.gmra.mrb[22].mxu1 %vm163_vm1, %v49_v21  ;;  %v5668_v29 = vpop.permute.xlu1 %5667 }
 0x3ed   :  { %5910 = vmatpush1.msra.mxu1 %v5677_v55  ;;  %24311 = vmatmul.mubr.msk.f32.vlgmr.msra.gmra.mrb[6].mxu0 %vm163_vm1, %v49_v21  ;;  %v26853_v3 = vpop.permute.xlu0 %9612  ;;  %v5680_v48 = vsel %vm1091_vm5, %v26639_v37, %v5668_v29  ;;  %v5681_v27 = vsel %vm1091_vm5, %v5668_v29, %v26649_v38  ;;  %v5679_v38 = vsel %vm1091_vm5, %v26647_v25, %v26639_v37  ;;  %vm30112_vm5 = vmmov %vm30105_vm0 }
 0x3ee   :  { %5839 = vmatpush1.msra.mxu0 %v5675_v31  ;;  %11968 = vrot.lane.b32.xlu1 %v26146_v44, %s25447_s11  ;;  %v6157_v37 = vsel %vm1577_vm6, %v26415_v34, %v26299_v10  ;;  %v6158_v25 = vsel %vm1577_vm6, %v26299_v10, %v26407_v17  ;;  %v6161_v10 = vsel %vm1577_vm6, %v26481_v1, %v26573_v18  ;;  %v30064_v31 = vld [vmem:[#allocation12_spill] sm:$0xff] }
 0x3ef   :  { %5973 = vmatprep.mubr.f32.mxu1 %v30028_v59  ;;  %11980 = vrot.lane.b32.xlu0 %v26183_v51, %s25447_s11 }
 0x3f0   :  { %5902 = vmatprep.mubr.f32.mxu0 %v30028_v59  ;;  %24314 = vmatmul.mubr.msk.f32.vlgmr.msra.gmra.mrb[24].mxu1 %vm163_vm1, %v49_v21  ;;  %v26866_v49 = vpop.permute.xlu1 %9592 }
 0x3f1   :  { %24313 = vmatmul.mubr.msk.f32.vlgmr.msra.gmra.mrb[8].mxu0 %vm163_vm1, %v49_v21  ;;  %24736 = vmatprep.subr.mxu1 %v30028_v59  ;;  %v26870_v20 = vpop.permute.xlu0 %10073 }
 0x3f2   :  { %11964 = vrot.lane.b32.xlu1 %v26130_v16, %s25447_s11  ;;  %5980 = vmatprep.subr.mxu0 %v5680_v48  ;;  %v6159_v16 = vsel %vm1577_vm6, %v26407_v17, %v26393_v30  ;;  %v6160_v17 = vsel %vm1577_vm6, %v26393_v30, %v26481_v1  ;;  %v30065_v48 = vld [vmem:[#allocation14_spill] sm:$0xff] }
 0x3f3   :  { %24737 = vmatpush3.msra.mxu1 %v5681_v27  ;;  %24738 = vmatprep.mubr.msk.f32.mxu1 %vm25436_vm2, %v30028_v59  ;;  %v7129_v27 = vsel %vm2548_vm7, %v30065_v48, %v30064_v31 }
 0x3f4   :  { %11984 = vrot.lane.b32.xlu0 %v26879_v7, %s25447_s11  ;;  %5981 = vmatpush1.msra.mxu0 %v5679_v38  ;;  %v26883_v42 = vpop.permute.xlu1 %9590  ;;  %v30067_v38 = vld [vmem:[#allocation15_spill] sm:$0xff] }
 0x3f5   :  { %6044 = vmatprep.mubr.f32.mxu0 %v30028_v59  ;;  %24739 = vmatmul.mubr.msk.f32.vlgmr.msra.gmra.mrb[30].mxu1 %vm163_vm1, %v49_v21  ;;  %v26890_v19 = vpop.permute.xlu0 %10069 }
 0x3f6   :  { %6252 = vmatprep.subr.mxu1 %v6159_v16  ;;  %24315 = vmatmul.mubr.msk.f32.vlgmr.msra.gmra.mrb[10].mxu0 %vm163_vm1, %v49_v21  ;;  %v27022_v21 = vsel %vm163_vm1, %v26401_v32, %v26497_v14 }
 0x3f7   :  { %6181 = vmatprep.subr.mxu0 %v6157_v37  ;;  %6253 = vmatpush1.msra.mxu1 %v6158_v25  ;;  %30058 = vst [vmem:[#allocation63_spill] sm:$0xff] %v27022_v21 }
 0x3f8   :  { %6182 = vmatpush1.msra.mxu0 %v6156_v13  ;;  %6394 = vmatprep.subr.mxu1 %v6163_v57  ;;  %v6153_v5 = vpop.permute.xlu1 %6152  ;;  %v30068_v13 = vld [vmem:[#allocation9_spill] sm:$0xff] }
 0x3f9   :  { %11962 = vrot.lane.b32.xlu1 %v26136_v41, %s25447_s11  ;;  %6316 = vmatprep.mubr.f32.mxu1 %v30028_v59  ;;  %v26914_v12 = vpop.permute.xlu0 %10079  ;;  %v6162_v41 = vsel %vm1577_vm6, %v26573_v18, %v26473_v53  ;;  %v6165_v53 = vsel %vm1577_vm6, %v26657_v8, %v6153_v5  ;;  %v6166_v30 = vsel %vm1577_vm6, %v6153_v5, %v26665_v63  ;;  %v30070_v5 = vld [vmem:[#allocation23_spill] sm:$0xff] }
 0x3fa   :  { %6323 = vmatprep.subr.mxu0 %v6161_v10  ;;  %12456 = vrot.lane.b32.xlu0 %v26161_v46, %s25448_s17  ;;  %v6164_v63 = vsel %vm1577_vm6, %v26655_v62, %v26657_v8  ;;  %v26969_v18 = vsel %vm163_vm1, %v26431_v39, %v26307_v54  ;;  %v26983_v8 = vsel %vm163_vm1, %v26329_v58, %v26431_v39  ;;  %vm30115_vm6 = vmmov %vm30105_vm0 }
 0x3fb   :  { %6245 = vmatprep.mubr.f32.mxu0 %v30028_v59  ;;  %24318 = vmatmul.mubr.msk.f32.vlgmr.msra.gmra.mrb[22].mxu1 %vm163_vm1, %v50_v2  ;;  %30052 = vst [vmem:[#allocation57_spill] sm:$0xff] %v26969_v18  ;;  %30054 = vst [vmem:[#allocation59_spill] sm:$0xff] %v26983_v8  ;;  %v27001_v58 = vsel %vm163_vm1, %v26497_v14, %v26581_v36  ;;  %v30059_v36 = vld [vmem:[#allocation43_spill] sm:$0xff]  ;;  %v27046_v14 = vld [vmem:[#allocation2 + $0x10] sm:$0xff]  ;;  %v7126_v57 = vsel %vm2548_vm7, %v30068_v13, %v30067_v38 }
 0x3fc   :  { %6395 = vmatpush1.msra.mxu1 %v6162_v41  ;;  %24317 = vmatmul.mubr.msk.f32.vlgmr.msra.gmra.mrb[6].mxu0 %vm163_vm1, %v50_v2  ;;  %v26927_v34 = vpop.permute.xlu1 %9606  ;;  %30056 = vst [vmem:[#allocation61_spill] sm:$0xff] %v27001_v58  ;;  %v27057_v55 = vsel %vm163_vm1, %v26663_v61, %v30059_v36  ;;  %v30066_v61 = vld [vmem:[#allocation6_spill] sm:$0xff] }
 0x3fd   :  { %6324 = vmatpush1.msra.mxu0 %v6160_v17  ;;  %11978 = vrot.lane.b32.xlu1 %v26180_v50, %s25447_s11  ;;  %v26931_v46 = vpop.permute.xlu0 %10075  ;;  %30063 = vst [vmem:[#allocation64_spill] sm:$0xff] %v27057_v55  ;;  %v7127_v16 = vsel %vm2548_vm7, %v30067_v38, %v30066_v61  ;;  %v7128_v37 = vsel %vm2548_vm7, %v30066_v61, %v30065_v48  ;;  %v52_v17 = vld [vmem:[%s29854_s4 + $0x14] sm:$0xf]  ;;  %v27114_v61 = vld [vmem:[#allocation2 + $0x48] sm:$0xff]  ;;  %v27119_v38 = vld [vmem:[#allocation2 + $0x18] sm:$0xff] }
 0x3fe   :  { %6458 = vmatprep.mubr.f32.mxu1 %v30028_v59  ;;  %12452 = vrot.lane.b32.xlu0 %v26143_v43, %s25448_s17 }
 0x3ff   :  { %6387 = vmatprep.mubr.f32.mxu0 %v30028_v59  ;;  %24320 = vmatmul.mubr.msk.f32.vlgmr.msra.gmra.mrb[24].mxu1 %vm163_vm1, %v50_v2 }
 0x400   :  { %24319 = vmatmul.mubr.msk.f32.vlgmr.msra.gmra.mrb[8].mxu0 %vm163_vm1, %v50_v2  ;;  %24741 = vmatprep.subr.mxu1 %v30028_v59  ;;  %v26944_v50 = vpop.permute.xlu1 %9602 }
 0x401   :  { %11974 = vrot.lane.b32.xlu1 %v26155_v0, %s25447_s11  ;;  %6465 = vmatprep.subr.mxu0 %v6165_v53  ;;  %v26948_v43 = vpop.permute.xlu0 %10083  ;;  %v26962_v0 = vsel %vm163_vm1, %v26423_v28, %v26401_v32  ;;  %v30061_v32 = vld [vmem:[#allocation45_spill] sm:$0xff]  ;;  %v27089_v53 = vld [vmem:[#allocation2 + $0x8] sm:$0xff] }
 0x402   :  { %24742 = vmatpush3.msra.mxu1 %v6166_v30  ;;  %24743 = vmatprep.mubr.msk.f32.mxu1 %vm25436_vm2, %v30028_v59  ;;  %30051 = vst [vmem:[#allocation56_spill] sm:$0xff] %v26962_v0  ;;  %v30071_v30 = vld [vmem:[#allocation37_spill] sm:$0xff] }
 0x403   :  { %12462 = vrot.lane.b32.xlu0 %v26171_v6, %s25448_s17  ;;  %6466 = vmatpush1.msra.mxu0 %v6164_v63  ;;  %v26974_v6 = vsel %vm163_vm1, %v26307_v54, %v26423_v28  ;;  %v51_v54 = vld [vmem:[%s29854_s4 + $0x10] sm:$0xf]  ;;  %v30072_v63 = vld [vmem:[#allocation25_spill] sm:$0xff] }
 0x404   :  { %6529 = vmatprep.mubr.f32.mxu0 %v30028_v59  ;;  %24744 = vmatmul.mubr.msk.f32.vlgmr.msra.gmra.mrb[32].mxu1 %vm163_vm1, %v50_v2  ;;  %v6638_v1 = vpop.permute.xlu1 %6637  ;;  %30053 = vst [vmem:[#allocation58_spill] sm:$0xff] %v26974_v6 }
 0x405   :  { %6737 = vmatprep.subr.mxu1 %v26962_v0  ;;  %24321 = vmatmul.mubr.msk.f32.vlgmr.msra.gmra.mrb[10].mxu0 %vm163_vm1, %v50_v2  ;;  %v26976_v62 = vpop.permute.xlu0 %7629  ;;  %v27034_v15 = vsel %vm163_vm1, %v30059_v36, %v6638_v1  ;;  %v30069_v2 = vld [vmem:[#allocation42_spill] sm:$0xff]  ;;  %v30095_v0 = vld [vmem:[#allocation32_spill] sm:$0xff] }
 0x406   :  { %6666 = vmatprep.subr.mxu0 %v26969_v18  ;;  %6738 = vmatpush1.msra.mxu1 %v26974_v6  ;;  %30060 = vst [vmem:[#allocation43_spill] sm:$0xff] %v27034_v15  ;;  %v7133_v10 = vsel %vm2548_vm7, %v30070_v5, %v30069_v2 }
 0x407   :  { %6667 = vmatpush1.msra.mxu0 %v26983_v8  ;;  %6879 = vmatprep.subr.mxu1 %v26988_v60  ;;  %v30088_v60 = vld [vmem:[#allocation8_spill] sm:$0xff]  ;;  %v30089_v8 = vld [vmem:[#allocation18_spill] sm:$0xff] }
 0x408   :  { %11982 = vrot.lane.b32.xlu1 %v26360_v22, %s25447_s11  ;;  %6801 = vmatprep.mubr.f32.mxu1 %v30028_v59  ;;  %v27003_v28 = vpop.permute.xlu1 %10071  ;;  %v8121_v6 = vsel %vm33_vm4, %v30089_v8, %v30088_v60  ;;  %s25455_s11 = smov 67  }
 0x409   :  { %6808 = vmatprep.subr.mxu0 %v27001_v58  ;;  %12458 = vrot.lane.b32.xlu0 %v26164_v47, %s25448_s17  ;;  %v27008_v39 = vpop.permute.xlu0 %10087 }
 0x40a   :  { %6730 = vmatprep.mubr.f32.mxu0 %v30028_v59  ;;  %24324 = vmatmul.mubr.msk.f32.vlgmr.msra.gmra.mrb[22].mxu1 %vm163_vm1, %v51_v54 }
 0x40b   :  { %6880 = vmatpush1.msra.mxu1 %v27015_v56  ;;  %24323 = vmatmul.mubr.msk.f32.vlgmr.msra.gmra.mrb[6].mxu0 %vm163_vm1, %v51_v54  ;;  %v27201_v56 = vld [vmem:[#allocation2 + $0x20] sm:$0xff] }
 0x40c   :  { %6809 = vmatpush1.msra.mxu0 %v27022_v21  ;;  %12454 = vrot.lane.b32.xlu1 %v26146_v44, %s25448_s17  ;;  %v27027_v47 = vpop.permute.xlu1 %10067  ;;  %v27042_v44 = vsel %vm163_vm1, %v6638_v1, %v30061_v32  ;;  %v7131_v1 = vsel %vm2548_vm7, %v30072_v63, %v30071_v30  ;;  %v7132_v32 = vsel %vm2548_vm7, %v30071_v30, %v30070_v5 }
 0x40d   :  { %6943 = vmatprep.mubr.f32.mxu1 %v30028_v59  ;;  %12466 = vrot.lane.b32.xlu0 %v26183_v51, %s25448_s17  ;;  %v27036_v52 = vpop.permute.xlu0 %10559  ;;  %30062 = vst [vmem:[#allocation45_spill] sm:$0xff] %v27042_v44 }
 0x40e   :  { %6872 = vmatprep.mubr.f32.mxu0 %v30028_v59  ;;  %24326 = vmatmul.mubr.msk.f32.vlgmr.msra.gmra.mrb[24].mxu1 %vm163_vm1, %v51_v54 }
 0x40f   :  { %24325 = vmatmul.mubr.msk.f32.vlgmr.msra.gmra.mrb[8].mxu0 %vm163_vm1, %v51_v54  ;;  %24746 = vmatprep.subr.mxu1 %v30028_v59 }
 0x410   :  { %12450 = vrot.lane.b32.xlu1 %v27046_v14, %s25448_s17  ;;  %6950 = vmatprep.subr.mxu0 %v27034_v15  ;;  %v7123_v51 = vpop.permute.xlu1 %7122 }
 0x411   :  { %24747 = vmatpush3.msra.mxu1 %v27042_v44  ;;  %24748 = vmatprep.mubr.msk.f32.mxu1 %vm25436_vm2, %v30028_v59  ;;  %v27059_v29 = vpop.permute.xlu0 %8114  ;;  %v30080_v44 = vld [vmem:[#allocation44_spill] sm:$0xff] }
 0x412   :  { %12470 = vrot.lane.b32.xlu0 %v26879_v7, %s25448_s17  ;;  %6951 = vmatpush1.msra.mxu0 %v27057_v55 }
 0x413   :  { %7014 = vmatprep.mubr.f32.mxu0 %v30028_v59  ;;  %24749 = vmatmul.mubr.msk.f32.vlgmr.msra.gmra.mrb[34].mxu1 %vm163_vm1, %v51_v54 }
 0x414   :  { %7222 = vmatprep.subr.mxu1 %v7129_v27  ;;  %24327 = vmatmul.mubr.msk.f32.vlgmr.msra.gmra.mrb[10].mxu0 %vm163_vm1, %v51_v54  ;;  %v27076_v25 = vpop.permute.xlu1 %10065  ;;  %v27097_v54 = vld [vmem:[#allocation2 + $0x28] sm:$0xff]  ;;  %v7130_v27 = vsel %vm2548_vm7, %v30064_v31, %v30072_v63  ;;  %v30074_v31 = vld [vmem:[#allocation49_spill] sm:$0xff]  ;;  %v27146_v63 = vld [vmem:[#allocation2 + $0x40] sm:$0xff] }
 0x415   :  { %7151 = vmatprep.subr.mxu0 %v7127_v16  ;;  %7223 = vmatpush1.msra.mxu1 %v7128_v37  ;;  %v27084_v41 = vpop.permute.xlu0 %10555  ;;  %v30073_v16 = vld [vmem:[#allocation47_spill] sm:$0xff] }
 0x416   :  { %7152 = vmatpush1.msra.mxu0 %v7126_v57  ;;  %7364 = vmatprep.subr.mxu1 %v7133_v10  ;;  %v7135_v37 = vsel %vm2548_vm7, %v30073_v16, %v7123_v51  ;;  %v7136_v57 = vsel %vm2548_vm7, %v7123_v51, %v30074_v31  ;;  %v27135_v10 = vld [vmem:[#allocation2 + $0x38] sm:$0xff]  ;;  %v7134_v51 = vsel %vm2548_vm7, %v30069_v2, %v30073_v16  ;;  %v30077_v2 = vld [vmem:[#allocation7_spill] sm:$0xff]  ;;  %v30078_v16 = vld [vmem:[#allocation16_spill] sm:$0xff] }
 0x417   :  { %12448 = vrot.lane.b32.xlu1 %v27089_v53, %s25448_s17  ;;  %7286 = vmatprep.mubr.f32.mxu1 %v30028_v59  ;;  %vm30118_vm7 = vmmov %vm30105_vm0 }
 0x418   :  { %7293 = vmatprep.subr.mxu0 %v7131_v1  ;;  %12942 = vrot.lane.b32.xlu0 %v27097_v54, %s25449_s2  ;;  %v27101_v36 = vpop.permute.xlu1 %10081  ;;  %v30075_v1 = vld [vmem:[#allocation27_spill] sm:$0xff] }
 0x419   :  { %7215 = vmatprep.mubr.f32.mxu0 %v30028_v59  ;;  %24330 = vmatmul.mubr.msk.f32.vlgmr.msra.gmra.mrb[22].mxu1 %vm163_vm1, %v52_v17  ;;  %v27108_v48 = vpop.permute.xlu0 %10565 }
 0x41a   :  { %7365 = vmatpush1.msra.mxu1 %v7132_v32  ;;  %24329 = vmatmul.mubr.msk.f32.vlgmr.msra.gmra.mrb[6].mxu0 %vm163_vm1, %v52_v17  ;;  %v30076_v32 = vld [vmem:[#allocation26_spill] sm:$0xff] }
 0x41b   :  { %7294 = vmatpush1.msra.mxu0 %v7130_v27  ;;  %12464 = vrot.lane.b32.xlu1 %v27114_v61, %s25448_s17  ;;  %v7638_v27 = vsel %vm3058_vm8, %v30076_v32, %v30075_v1  ;;  %v7637_v31 = vsel %vm3058_vm8, %v30077_v2, %v30076_v32  ;;  %v53_v32 = vld [vmem:[%s29854_s4 + $0x18] sm:$0xf] }
 0x41c   :  { %7428 = vmatprep.mubr.f32.mxu1 %v30028_v59  ;;  %12938 = vrot.lane.b32.xlu0 %v27119_v38, %s25449_s2  ;;  %v27125_v13 = vpop.permute.xlu1 %10077 }
 0x41d   :  { %7357 = vmatprep.mubr.f32.mxu0 %v30028_v59  ;;  %24332 = vmatmul.mubr.msk.f32.vlgmr.msra.gmra.mrb[24].mxu1 %vm163_vm1, %v52_v17  ;;  %v27131_v5 = vpop.permute.xlu0 %8599 }
 0x41e   :  { %24331 = vmatmul.mubr.msk.f32.vlgmr.msra.gmra.mrb[8].mxu0 %vm163_vm1, %v52_v17  ;;  %24751 = vmatprep.subr.mxu1 %v30028_v59 }
 0x41f   :  { %12460 = vrot.lane.b32.xlu1 %v27135_v10, %s25448_s17  ;;  %7435 = vmatprep.subr.mxu0 %v7135_v37  ;;  %v7636_v37 = vsel %vm3058_vm8, %v30078_v16, %v30077_v2  ;;  %v30082_v2 = vld [vmem:[#allocation39_spill] sm:$0xff] }
 0x420   :  { %24752 = vmatpush3.msra.mxu1 %v7136_v57  ;;  %24753 = vmatprep.mubr.msk.f32.mxu1 %vm25436_vm2, %v30028_v59  ;;  %v27144_v30 = vpop.permute.xlu1 %10557 }
 0x421   :  { %12948 = vrot.lane.b32.xlu0 %v27146_v63, %s25449_s2  ;;  %7436 = vmatpush1.msra.mxu0 %v7134_v51  ;;  %v27162_v57 = vpop.permute.xlu0 %10561  ;;  %v30079_v51 = vld [vmem:[#allocation17_spill] sm:$0xff] }
 0x422   :  { %7499 = vmatprep.mubr.f32.mxu0 %v30028_v59  ;;  %24754 = vmatmul.mubr.msk.f32.vlgmr.msra.gmra.mrb[36].mxu1 %vm163_vm1, %v52_v17  ;;  %v7635_v55 = vsel %vm3058_vm8, %v30079_v51, %v30078_v16  ;;  %v30083_v16 = vld [vmem:[#allocation29_spill] sm:$0xff] }
 0x423   :  { %7731 = vmatprep.subr.mxu1 %v7638_v27  ;;  %24333 = vmatmul.mubr.msk.f32.vlgmr.msra.gmra.mrb[10].mxu0 %vm163_vm1, %v52_v17  ;;  %v30081_v27 = vld [vmem:[#allocation35_spill] sm:$0xff]  ;;  %v7639_v51 = vsel %vm3058_vm8, %v30075_v1, %v30083_v16 }
 0x424   :  { %7660 = vmatprep.subr.mxu0 %v7636_v37  ;;  %7732 = vmatpush1.msra.mxu1 %v7637_v31  ;;  %v7642_v17 = vsel %vm3058_vm8, %v30081_v27, %v30080_v44  ;;  %v27170_v15 = vpop.permute.xlu1 %10553  ;;  %v7640_v37 = vsel %vm3058_vm8, %v30083_v16, %v30082_v2  ;;  %v27181_v31 = vld [vmem:[#allocation2 + $0x30] sm:$0xff] }
 0x425   :  { %7661 = vmatpush1.msra.mxu0 %v7635_v55  ;;  %7873 = vmatprep.subr.mxu1 %v7642_v17  ;;  %v27196_v17 = vpop.permute.xlu0 %10569 }
 0x426   :  { %12468 = vrot.lane.b32.xlu1 %v26360_v22, %s25448_s17  ;;  %7795 = vmatprep.mubr.f32.mxu1 %v30028_v59  ;;  %v7641_v22 = vsel %vm3058_vm8, %v30082_v2, %v30081_v27  ;;  %v27207_v27 = vld [vmem:[#allocation2 + $0x50] sm:$0xff]  ;;  %v30085_v2 = vld [vmem:[#allocation3_spill] sm:$0xff]  ;;  %s25460_s17 = smov 100  }
 0x427   :  { %7802 = vmatprep.subr.mxu0 %v7640_v37  ;;  %12944 = vrot.lane.b32.xlu0 %v27181_v31, %s25449_s2  ;;  %v30084_v37 = vld [vmem:[#allocation46_spill] sm:$0xff] }
 0x428   :  { %7724 = vmatprep.mubr.f32.mxu0 %v30028_v59  ;;  %24336 = vmatmul.mubr.msk.f32.vlgmr.msra.gmra.mrb[22].mxu1 %vm163_vm1, %v53_v32  ;;  %v27190_v55 = vpop.permute.xlu1 %10551  ;;  %v7644_v21 = vsel %vm3058_vm8, %v26976_v62, %v30084_v37  ;;  %v7645_v16 = vsel %vm3058_vm8, %v30084_v37, %v30085_v2  ;;  %v30093_v2 = vld [vmem:[#allocation36_spill] sm:$0xff] }
 0x429   :  { %7874 = vmatpush1.msra.mxu1 %v7641_v22  ;;  %24335 = vmatmul.mubr.msk.f32.vlgmr.msra.gmra.mrb[6].mxu0 %vm163_vm1, %v53_v32  ;;  %v30086_v22 = vld [vmem:[#allocation31_spill] sm:$0xff]  ;;  %v27228_v18 = vpop.permute.xlu0 %10573 }
 0x42a   :  { %7803 = vmatpush1.msra.mxu0 %v7639_v51  ;;  %12940 = vrot.lane.b32.xlu1 %v27201_v56, %s25449_s2  ;;  %v30087_v51 = vld [vmem:[#allocation28_spill] sm:$0xff]  ;;  %30090 = vst [vmem:[#allocation12_spill] sm:$0xff] %v27228_v18 }
 0x42b   :  { %7944 = vmatprep.subr.mxu0 %v7644_v21  ;;  %7937 = vmatprep.mubr.f32.mxu1 %v30028_v59  ;;  %v7643_v21 = vsel %vm3058_vm8, %v30080_v44, %v26976_v62  ;;  %v8123_v58 = vsel %vm33_vm4, %v30087_v51, %v30086_v22  ;;  %v8122_v62 = vsel %vm33_vm4, %v30088_v60, %v30087_v51  ;;  %v30092_v44 = vld [vmem:[#allocation48_spill] sm:$0xff]  ;;  %vm30119_vm8 = vmmov %vm30105_vm0 }
 0x42c   :  { %24756 = vmatprep.subr.mxu1 %v30028_v59  ;;  %12952 = vrot.lane.b32.xlu0 %v27207_v27, %s25449_s2  ;;  %v27211_v1 = vpop.permute.xlu1 %10567 }
 0x42d   :  { %7866 = vmatprep.mubr.f32.mxu0 %v30028_v59  ;;  %24338 = vmatmul.mubr.msk.f32.vlgmr.msra.gmra.mrb[24].mxu1 %vm163_vm1, %v53_v32 }
 0x42e   :  { %24757 = vmatpush3.msra.mxu1 %v7645_v16  ;;  %24337 = vmatmul.mubr.msk.f32.vlgmr.msra.gmra.mrb[8].mxu0 %vm163_vm1, %v53_v32  ;;  %v8127_v16 = vsel %vm33_vm4, %v30093_v2, %v30092_v44 }
 0x42f   :  { %7945 = vmatpush1.msra.mxu0 %v7643_v21  ;;  %8216 = vmatprep.subr.mxu1 %v8123_v58  ;;  %v30094_v21 = vld [vmem:[#allocation40_spill] sm:$0xff] }
 0x430   :  { %8145 = vmatprep.subr.mxu0 %v8121_v6  ;;  %12936 = vrot.lane.b32.xlu1 %v27046_v14, %s25449_s2  ;;  %v27232_v37 = vpop.permute.xlu1 %10563  ;;  %v30091_v6 = vld [vmem:[#allocation19_spill] sm:$0xff]  ;;  %v8125_v60 = vsel %vm33_vm4, %v30095_v0, %v30094_v21 }
 0x431   :  { %24758 = vmatprep.mubr.msk.f32.mxu1 %vm25436_vm2, %v30028_v59  ;;  %12956 = vrot.lane.b32.xlu0 %v26879_v7, %s25449_s2  ;;  %v8120_v58 = vsel %vm33_vm4, %v30091_v6, %v30089_v8  ;;  %v83_v7 = vld [vmem:[%s29855_s5] sm:$0xf]  ;;  %v54_v8 = vld [vmem:[%s29854_s4 + $0x1c] sm:$0xf]  ;;  %v8124_v6 = vsel %vm33_vm4, %v30086_v22, %v30095_v0  ;;  %v30101_v22 = vld [vmem:[#allocation4_spill] sm:$0xff] }
 0x432   :  { %8008 = vmatprep.mubr.f32.mxu0 %v30028_v59  ;;  %24759 = vmatmul.mubr.msk.f32.vlgmr.msra.gmra.mrb[38].mxu1 %vm163_vm1, %v53_v32 }
 0x433   :  { %8217 = vmatpush1.msra.mxu1 %v8122_v62  ;;  %24339 = vmatmul.mubr.msk.f32.vlgmr.msra.gmra.mrb[10].mxu0 %vm163_vm1, %v53_v32  ;;  %v27263_v32 = vpop.permute.xlu0 %11484  ;;  %v8126_v62 = vsel %vm33_vm4, %v30094_v21, %v30093_v2 }
 0x434   :  { %8146 = vmatpush1.msra.mxu0 %v8120_v58  ;;  %8358 = vmatprep.subr.mxu1 %v8127_v16  ;;  %v27259_v51 = vpop.permute.xlu1 %11482  ;;  %30097 = vst [vmem:[#allocation6_spill] sm:$0xff] %v27263_v32  ;;  %v30099_v16 = vld [vmem:[#allocation50_spill] sm:$0xff] }
 0x435   :  { %30096 = vst [vmem:[#allocation14_spill] sm:$0xff] %v27259_v51  ;;  %8287 = vmatprep.subr.mxu0 %v8125_v60  ;;  %12934 = vrot.lane.b32.xlu1 %v27089_v53, %s25449_s2  ;;  %v8130_v2 = vsel %vm33_vm4, %v30099_v16, %v30101_v22  ;;  %v8128_v60 = vsel %vm33_vm4, %v30092_v44, %v27059_v29  ;;  %v30117_v32 = vld [vmem:[#allocation34_spill] sm:$0xff] }
 0x436   :  { %8280 = vmatprep.mubr.f32.mxu1 %v30028_v59  ;;  %9068 = vperm.xlu0 %25393, %v83_v7   ;;  %v8129_v7 = vsel %vm33_vm4, %v27059_v29, %v30099_v16  ;;  %vm30109_vm4 = vmmov %vm30105_vm0  ;;  %v30111_v16 = vld [vmem:[#allocation21_spill] sm:$0xff] }
 0x437   :  { %8209 = vmatprep.mubr.f32.mxu0 %v30028_v59  ;;  %24342 = vmatmul.mubr.msk.f32.vlgmr.msra.gmra.mrb[22].mxu1 %vm163_vm1, %v54_v8  ;;  %v27286_v0 = vpop.permute.xlu0 %11480 }
 0x438   :  { %8359 = vmatpush1.msra.mxu1 %v8126_v62  ;;  %24341 = vmatmul.mubr.msk.f32.vlgmr.msra.gmra.mrb[6].mxu0 %vm163_vm1, %v54_v8  ;;  %v27275_v58 = vpop.permute.xlu1 %11478  ;;  %30100 = vst [vmem:[#allocation9_spill] sm:$0xff] %v27286_v0  ;;  %v30103_v62 = vld [vmem:[#allocation33_spill] sm:$0xff]  ;;  %v30107_v0 = vld [vmem:[#allocation20_spill] sm:$0xff] }
 0x439   :  { %30098 = vst [vmem:[#allocation15_spill] sm:$0xff] %v27275_v58  ;;  %8288 = vmatpush1.msra.mxu0 %v8124_v6  ;;  %12950 = vrot.lane.b32.xlu1 %v27114_v61, %s25449_s2  ;;  %v30104_v6 = vld [vmem:[#allocation30_spill] sm:$0xff]  ;;  %v8605_v22 = vsel %vm30112_vm5, %v30111_v16, %v30107_v0  ;;  %vm11986_vm5 = vcmask 736256  }
 0x43a   :  { %8429 = vmatprep.subr.mxu0 %v8129_v7  ;;  %8422 = vmatprep.mubr.f32.mxu1 %v30028_v59  ;;  %v8608_v7 = vsel %vm30105_vm0, %v30104_v6, %v30103_v62  ;;  %v30106_v58 = vld [vmem:[#allocation10_spill] sm:$0xff]  ;;  %vm10089_vm0 = vcmask 441344  }
 0x43b   :  { %24761 = vmatprep.subr.mxu1 %v30028_v59  ;;  %14401 = vrot.lane.b32.xlu0 %v27201_v56, %s25450_s3  ;;  %v8606_v51 = vsel %vm30108_vm3, %v30107_v0, %v30106_v58  ;;  %v8607_v44 = vsel %vm30109_vm4, %v30106_v58, %v30104_v6  ;;  %v55_v58 = vld [vmem:[%s29854_s4 + $0x20] sm:$0xf]  ;;  %v27333_v6 = vld [vmem:[#allocation2 + $0x58] sm:$0xff]  ;;  %v84_v0 = vld [vmem:[%s29855_s5 + $0x4] sm:$0xf]  ;;  %vm10575_vm3 = vcmask 80896  }
 0x43c   :  { %8351 = vmatprep.mubr.f32.mxu0 %v30028_v59  ;;  %24344 = vmatmul.mubr.msk.f32.vlgmr.msra.gmra.mrb[24].mxu1 %vm163_vm1, %v54_v8  ;;  %v27293_v21 = vpop.permute.xlu1 %11476  ;;  %vm11500_vm4 = vcmask 48128  }
 0x43d   :  { %30102 = vst [vmem:[#allocation42_spill] sm:$0xff] %v27293_v21  ;;  %24762 = vmatpush3.msra.mxu1 %v8130_v2  ;;  %24343 = vmatmul.mubr.msk.f32.vlgmr.msra.gmra.mrb[8].mxu0 %vm163_vm1, %v54_v8  ;;  %v30113_v2 = vld [vmem:[#allocation52_spill] sm:$0xff]  ;;  %v30116_v21 = vld [vmem:[#allocation41_spill] sm:$0xff] }
 0x43e   :  { %8430 = vmatpush1.msra.mxu0 %v8128_v60  ;;  %8701 = vmatprep.subr.mxu1 %v8608_v7  ;;  %v30114_v60 = vld [vmem:[#allocation38_spill] sm:$0xff]  ;;  %v8610_v18 = vsel %vm30118_vm7, %v30117_v32, %v30116_v21  ;;  %vm12958_vm7 = vcmask 703488  }
 0x43f   :  { %8630 = vmatprep.subr.mxu0 %v8606_v51  ;;  %12946 = vrot.lane.b32.xlu1 %v27135_v10, %s25449_s2  ;;  %v27318_v51 = vpop.permute.xlu0 %11490  ;;  %v8612_v7 = vsel %vm30115_vm6, %v30114_v60, %v30113_v2  ;;  %vm12472_vm6 = vcmask 719872  }
 0x440   :  { %24763 = vmatprep.mubr.msk.f32.mxu1 %vm25436_vm2, %v30028_v59  ;;  %14397 = vrot.lane.b32.xlu0 %v27046_v14, %s25450_s3  ;;  %v27311_v29 = vpop.permute.xlu1 %9135  ;;  %30110 = vst [vmem:[#allocation23_spill] sm:$0xff] %v27318_v51 }
 0x441   :  { %8493 = vmatprep.mubr.f32.mxu0 %v30028_v59  ;;  %24764 = vmatmul.mubr.msk.f32.vlgmr.msra.gmra.mrb[40].mxu1 %vm163_vm1, %v54_v8 }
 0x442   :  { %8702 = vmatpush1.msra.mxu1 %v8607_v44  ;;  %24345 = vmatmul.mubr.msk.f32.vlgmr.msra.gmra.mrb[10].mxu0 %vm163_vm1, %v54_v8  ;;  %v8609_v44 = vsel %vm30120_vm9, %v30103_v62, %v30117_v32  ;;  %v30125_v32 = vld [vmem:[#allocation5_spill] sm:$0xff]  ;;  %vm13473_vm9 = vcmask 1043456  }
 0x443   :  { %8631 = vmatpush1.msra.mxu0 %v8605_v22  ;;  %8843 = vmatprep.subr.mxu1 %v8612_v7  ;;  %v27354_v16 = vpop.permute.xlu0 %11486  ;;  %v30122_v22 = vld [vmem:[#allocation54_spill] sm:$0xff] }
 0x444   :  { %8772 = vmatprep.subr.mxu0 %v8610_v18  ;;  %12954 = vrot.lane.b32.xlu1 %v27333_v6, %s25449_s2  ;;  %v27337_v8 = vpop.permute.xlu1 %11492  ;;  %v8611_v18 = vsel %vm30119_vm8, %v30116_v21, %v30114_v60  ;;  %30121 = vst [vmem:[#allocation37_spill] sm:$0xff] %v27354_v16  ;;  %v8614_v7 = vsel %vm30123_vm11, %v27131_v5, %v30122_v22  ;;  %v30131_v16 = vld [vmem:[#allocation24_spill] sm:$0xff] }
 0x445   :  { %8765 = vmatprep.mubr.f32.mxu1 %v30028_v59  ;;  %14407 = vrot.lane.b32.xlu0 %v27135_v10, %s25450_s3  ;;  %v8615_v62 = vsel %vm30126_vm15, %v30122_v22, %v30125_v32  ;;  %v8613_v60 = vsel %vm30127_vm12, %v30113_v2, %v27131_v5  ;;  %v9140_v22 = vsel %vm9139_vm14, %v26746_v4, %v30131_v16  ;;  %vm13469_vm12 = vcmask 31744  }
 0x446   :  { %8694 = vmatprep.mubr.f32.mxu0 %v30028_v59  ;;  %24348 = vmatmul.mubr.msk.f32.vlgmr.msra.gmra.mrb[22].mxu1 %vm163_vm1, %v55_v58 }
 0x447   :  { %8844 = vmatpush1.msra.mxu1 %v8611_v18  ;;  %24347 = vmatmul.mubr.msk.f32.vlgmr.msra.gmra.mrb[6].mxu0 %vm163_vm1, %v55_v58  ;;  %v30129_v18 = vld [vmem:[#allocation22_spill] sm:$0xff]  ;;  %v27380_v51 = vpop.permute.xlu0 %11494 }
 0x448   :  { %8773 = vmatpush1.msra.mxu0 %v8609_v44  ;;  %13422 = vperm.xlu1 %25394, %v84_v0   ;;  %v27360_v21 = vpop.permute.xlu1 %11488  ;;  %v30128_v0 = vld [vmem:[#allocation13_spill] sm:$0xff] }
 0x449   :  { %8914 = vmatprep.subr.mxu0 %v8614_v7  ;;  %8907 = vmatprep.mubr.f32.mxu1 %v30028_v59  ;;  %30124 = vst [vmem:[#allocation25_spill] sm:$0xff] %v27360_v21  ;;  %v9143_v44 = vsel %vm9139_vm14, %v30129_v18, %v30128_v0  ;;  %v30130_v7 = vld [vmem:[#allocation11_spill] sm:$0xff] }
 0x44a   :  { %24766 = vmatprep.subr.mxu1 %v30028_v59  ;;  %14403 = vrot.lane.b32.xlu0 %v27097_v54, %s25450_s3  ;;  %v9141_v21 = vsel %vm9139_vm14, %v30131_v16, %v30130_v7  ;;  %v9142_v2 = vsel %vm9139_vm14, %v30130_v7, %v30129_v18  ;;  %v57_v18 = vld [vmem:[%s29854_s4 + $0x28] sm:$0xf]  ;;  %v27426_v7 = vld [vmem:[#allocation2] sm:$0xff] }
 0x44b   :  { %8836 = vmatprep.mubr.f32.mxu0 %v30028_v59  ;;  %24350 = vmatmul.mubr.msk.f32.vlgmr.msra.gmra.mrb[24].mxu1 %vm163_vm1, %v55_v58  ;;  %v27410_v4 = vpop.permute.xlu0 %11498 }
 0x44c   :  { %24767 = vmatpush3.msra.mxu1 %v8615_v62  ;;  %24349 = vmatmul.mubr.msk.f32.vlgmr.msra.gmra.mrb[8].mxu0 %vm163_vm1, %v55_v58  ;;  %v30133_v62 = vld [vmem:[#allocation53_spill] sm:$0xff] }
 0x44d   :  { %8915 = vmatpush1.msra.mxu0 %v8613_v60  ;;  %9236 = vmatprep.subr.mxu1 %v9143_v44  ;;  %v27388_v5 = vpop.permute.xlu1 %9610  ;;  %v9145_v60 = vsel %vm9139_vm14, %v30133_v62, %v26805_v35  ;;  %v9144_v44 = vsel %vm9139_vm14, %v30128_v0, %v30133_v62  ;;  %v9150_v0 = vsel %vm9139_vm14, %v27311_v29, %v26731_v33 }
 0x44e   :  { %9165 = vmatprep.subr.mxu0 %v9141_v21  ;;  %14399 = vrot.lane.b32.xlu1 %v27119_v38, %s25450_s3  ;;  %v30132_v21 = vld [vmem:[#allocation51_spill] sm:$0xff] }
 0x44f   :  { %24768 = vmatprep.mubr.msk.f32.mxu1 %vm25436_vm2, %v30028_v59  ;;  %14411 = vrot.lane.b32.xlu0 %v27114_v61, %s25450_s3  ;;  %v9147_v32 = vsel %vm9139_vm14, %v30132_v21, %v26770_v11 }
 0x450   :  { %8978 = vmatprep.mubr.f32.mxu0 %v30028_v59  ;;  %24769 = vmatmul.mubr.msk.f32.vlgmr.msra.gmra.mrb[42].mxu1 %vm163_vm1, %v55_v58 }
 0x451   :  { %9237 = vmatpush1.msra.mxu1 %v9142_v2  ;;  %24351 = vmatmul.mubr.msk.f32.vlgmr.msra.gmra.mrb[10].mxu0 %vm163_vm1, %v55_v58  ;;  %v9146_v58 = vsel %vm9139_vm14, %v26805_v35, %v30132_v21  ;;  %v27420_v16 = vpop.permute.xlu1 %10085  ;;  %v30134_v35 = vld [vmem:[#allocation55_spill] sm:$0xff] }
 0x452   :  { %9166 = vmatpush1.msra.mxu0 %v9140_v22  ;;  %9378 = vmatprep.subr.mxu1 %v9147_v32  ;;  %v9149_v2 = vsel %vm9139_vm14, %v30134_v35, %v27311_v29  ;;  %v27441_v22 = vpop.permute.xlu0 %11970  ;;  %v9148_v33 = vsel %vm9139_vm14, %v26770_v11, %v30134_v35  ;;  %v9618_v29 = vsel %vm9614_vm13, %v26829_v9, %v26756_v40 }
 0x453   :  { %9307 = vmatprep.subr.mxu0 %v9145_v60  ;;  %14395 = vrot.lane.b32.xlu1 %v27089_v53, %s25450_s3  ;;  %v9616_v11 = vsel %vm9614_vm13, %v26866_v49, %v26777_v26  ;;  %v9617_v32 = vsel %vm9614_vm13, %v26777_v26, %v26829_v9  ;;  %v9615_v60 = vsel %vm9614_vm13, %v26883_v42, %v26866_v49 }
 0x454   :  { %9300 = vmatprep.mubr.f32.mxu1 %v30028_v59  ;;  %14415 = vrot.lane.b32.xlu0 %v27333_v6, %s25450_s3  ;;  %v9620_v26 = vsel %vm9614_vm13, %v26809_v23, %v26944_v50  ;;  %v9621_v9 = vsel %vm9614_vm13, %v26944_v50, %v26794_v45  ;;  %v9619_v49 = vsel %vm9614_vm13, %v26756_v40, %v26809_v23 }
 0x455   :  { %9229 = vmatprep.mubr.f32.mxu0 %v30028_v59  ;;  %24354 = vmatmul.mubr.msk.f32.vlgmr.msra.gmra.mrb[44].mxu1 %vm163_vm1, %v57_v18  ;;  %v27447_v21 = vpop.permute.xlu1 %10571  ;;  %v9625_v40 = vsel %vm9614_vm13, %v27388_v5, %v26853_v3  ;;  %v9623_v23 = vsel %vm9614_vm13, %v26927_v34, %v26834_v24  ;;  %v10093_v3 = vsel %vm10089_vm0, %v27003_v28, %v26870_v20 }
 0x456   :  { %9379 = vmatpush1.msra.mxu1 %v9146_v58  ;;  %24353 = vmatmul.mubr.msk.f32.vlgmr.msra.gmra.mrb[12].mxu0 %vm163_vm1, %v57_v18  ;;  %v27468_v62 = vpop.permute.xlu0 %11966  ;;  %v56_v58 = vld [vmem:[%s29854_s4 + $0x24] sm:$0xf] }
 0x457   :  { %9308 = vmatpush1.msra.mxu0 %v9144_v44  ;;  %14393 = vrot.lane.b32.xlu1 %v27426_v7, %s25450_s3 }
 0x458   :  { %9442 = vmatprep.mubr.f32.mxu1 %v30028_v59  ;;  %14876 = vrot.lane.b32.xlu0 %v27201_v56, %s25451_s23 }
 0x459   :  { %9371 = vmatprep.mubr.f32.mxu0 %v30028_v59  ;;  %24356 = vmatmul.mubr.msk.f32.vlgmr.msra.gmra.mrb[46].mxu1 %vm163_vm1, %v57_v18 }
 0x45a   :  { %24355 = vmatmul.mubr.msk.f32.vlgmr.msra.gmra.mrb[14].mxu0 %vm163_vm1, %v57_v18  ;;  %24771 = vmatprep.subr.mxu1 %v30028_v59  ;;  %v27498_v42 = vpop.permute.xlu0 %11976 }
 0x45b   :  { %14409 = vrot.lane.b32.xlu1 %v27146_v63, %s25450_s3  ;;  %9449 = vmatprep.subr.mxu0 %v9149_v2  ;;  %v10090_v2 = vsel %vm10089_vm0, %v27076_v25, %v27027_v47 }
 0x45c   :  { %24772 = vmatpush3.msra.mxu1 %v9150_v0  ;;  %24773 = vmatprep.mubr.msk.f32.mxu1 %vm25436_vm2, %v30028_v59  ;;  %v27479_v44 = vpop.permute.xlu1 %11496  ;;  %v10097_v0 = vsel %vm10089_vm0, %v26914_v12, %v27101_v36 }
 0x45d   :  { %14872 = vrot.lane.b32.xlu0 %v27046_v14, %s25451_s23  ;;  %9450 = vmatpush1.msra.mxu0 %v9148_v33  ;;  %v58_v33 = vld [vmem:[%s29854_s4 + $0x2c] sm:$0xf] }
 0x45e   :  { %9513 = vmatprep.mubr.f32.mxu0 %v30028_v59  ;;  %24774 = vmatmul.mubr.msk.f32.vlgmr.msra.gmra.mrb[48].mxu1 %vm163_vm1, %v57_v18  ;;  %v27524_v35 = vpop.permute.xlu0 %11972 }
 0x45f   :  { %9711 = vmatprep.subr.mxu1 %v9618_v29  ;;  %24357 = vmatmul.mubr.msk.f32.vlgmr.msra.gmra.mrb[16].mxu0 %vm163_vm1, %v57_v18  ;;  %v9622_v18 = vsel %vm9614_vm13, %v26794_v45, %v26927_v34  ;;  %v9624_v45 = vsel %vm9614_vm13, %v26834_v24, %v27388_v5  ;;  %v10091_v24 = vsel %vm10089_vm0, %v27027_v47, %v26890_v19 }
 0x460   :  { %9640 = vmatprep.subr.mxu0 %v9616_v11  ;;  %9712 = vmatpush1.msra.mxu1 %v9617_v32  ;;  %v27508_v50 = vpop.permute.xlu1 %11968  ;;  %v10092_v34 = vsel %vm10089_vm0, %v26890_v19, %v27003_v28  ;;  %v10095_v19 = vsel %vm10089_vm0, %v26931_v46, %v27125_v13  ;;  %v10096_v47 = vsel %vm10089_vm0, %v27125_v13, %v26914_v12 }
 0x461   :  { %9641 = vmatpush1.msra.mxu0 %v9615_v60  ;;  %9853 = vmatprep.subr.mxu1 %v9622_v18  ;;  %v10094_v29 = vsel %vm10089_vm0, %v26870_v20, %v26931_v46  ;;  %v10099_v11 = vsel %vm10089_vm0, %v26948_v43, %v27420_v16  ;;  %v10100_v20 = vsel %vm10089_vm0, %v27420_v16, %v27008_v39 }
 0x462   :  { %14405 = vrot.lane.b32.xlu1 %v27181_v31, %s25450_s3  ;;  %9775 = vmatprep.mubr.f32.mxu1 %v30028_v59  ;;  %v27557_v28 = vpop.permute.xlu0 %11980  ;;  %v10098_v46 = vsel %vm10089_vm0, %v27101_v36, %v26948_v43  ;;  %v10579_v13 = vsel %vm10575_vm3, %v27144_v30, %v27036_v52  ;;  %v10577_v60 = vsel %vm10575_vm3, %v27170_v15, %v27084_v41 }
 0x463   :  { %9782 = vmatprep.subr.mxu0 %v9620_v26  ;;  %14882 = vrot.lane.b32.xlu0 %v27135_v10, %s25451_s23  ;;  %v10578_v43 = vsel %vm10575_vm3, %v27084_v41, %v27144_v30  ;;  %v10576_v36 = vsel %vm10575_vm3, %v27190_v55, %v27170_v15  ;;  %v10583_v16 = vsel %vm10575_vm3, %v27108_v48, %v27211_v1  ;;  %v59_v41 = vld [vmem:[%s29854_s4 + $0x30] sm:$0xf] }
 0x464   :  { %9704 = vmatprep.mubr.f32.mxu0 %v30028_v59  ;;  %24360 = vmatmul.mubr.msk.f32.vlgmr.msra.gmra.mrb[44].mxu1 %vm163_vm1, %v56_v58  ;;  %v27533_v5 = vpop.permute.xlu1 %11964  ;;  %v10581_v18 = vsel %vm10575_vm3, %v27162_v57, %v27232_v37  ;;  %v10582_v15 = vsel %vm10575_vm3, %v27232_v37, %v27108_v48  ;;  %v10580_v55 = vsel %vm10575_vm3, %v27036_v52, %v27162_v57  ;;  %v30135_v52 = vld [vmem:[#allocation12_spill] sm:$0xff] }
 0x465   :  { %9854 = vmatpush1.msra.mxu1 %v9621_v9  ;;  %24359 = vmatmul.mubr.msk.f32.vlgmr.msra.gmra.mrb[12].mxu0 %vm163_vm1, %v56_v58  ;;  %v10585_v26 = vsel %vm10575_vm3, %v27196_v17, %v27447_v21  ;;  %v10586_v57 = vsel %vm10575_vm3, %v27447_v21, %v30135_v52  ;;  %v10584_v37 = vsel %vm10575_vm3, %v27211_v1, %v27196_v17  ;;  %v30136_v9 = vld [vmem:[#allocation56_spill] sm:$0xff]  ;;  %v30138_v17 = vld [vmem:[#allocation58_spill] sm:$0xff]  ;;  %v30139_v1 = vld [vmem:[#allocation59_spill] sm:$0xff] }
 0x466   :  { %9783 = vmatpush1.msra.mxu0 %v9619_v49  ;;  %14413 = vrot.lane.b32.xlu1 %v27207_v27, %s25450_s3  ;;  %v27581_v12 = vpop.permute.xlu0 %11984  ;;  %v30154_v52 = vld [vmem:[#allocation37_spill] sm:$0xff] }
 0x467   :  { %9917 = vmatprep.mubr.f32.mxu1 %v30028_v59  ;;  %14878 = vrot.lane.b32.xlu0 %v27097_v54, %s25451_s23 }
 0x468   :  { %9846 = vmatprep.mubr.f32.mxu0 %v30028_v59  ;;  %24362 = vmatmul.mubr.msk.f32.vlgmr.msra.gmra.mrb[46].mxu1 %vm163_vm1, %v56_v58 }
 0x469   :  { %24361 = vmatmul.mubr.msk.f32.vlgmr.msra.gmra.mrb[14].mxu0 %vm163_vm1, %v56_v58  ;;  %24776 = vmatprep.subr.mxu1 %v30028_v59 }
 0x46a   :  { %14874 = vrot.lane.b32.xlu1 %v27119_v38, %s25451_s23  ;;  %9924 = vmatprep.subr.mxu0 %v9624_v45  ;;  %v30137_v45 = vld [vmem:[#allocation57_spill] sm:$0xff] }
 0x46b   :  { %24777 = vmatpush3.msra.mxu1 %v9625_v40  ;;  %24778 = vmatprep.mubr.msk.f32.mxu1 %vm25436_vm2, %v30028_v59  ;;  %v27566_v25 = vpop.permute.xlu1 %11962  ;;  %v30140_v40 = vld [vmem:[#allocation60_spill] sm:$0xff] }
 0x46c   :  { %14886 = vrot.lane.b32.xlu0 %v27114_v61, %s25451_s23  ;;  %9925 = vmatpush1.msra.mxu0 %v9623_v23  ;;  %v27611_v39 = vpop.permute.xlu0 %12456  ;;  %v60_v23 = vld [vmem:[%s29854_s4 + $0x34] sm:$0xf] }
 0x46d   :  { %9988 = vmatprep.mubr.f32.mxu0 %v30028_v59  ;;  %24779 = vmatmul.mubr.msk.f32.vlgmr.msra.gmra.mrb[50].mxu1 %vm163_vm1, %v56_v58 }
 0x46e   :  { %10186 = vmatprep.subr.mxu1 %v10093_v3  ;;  %24363 = vmatmul.mubr.msk.f32.vlgmr.msra.gmra.mrb[16].mxu0 %vm163_vm1, %v56_v58  ;;  %v30141_v3 = vld [vmem:[#allocation61_spill] sm:$0xff] }
 0x46f   :  { %10115 = vmatprep.subr.mxu0 %v10091_v24  ;;  %10187 = vmatpush1.msra.mxu1 %v10092_v34  ;;  %v27595_v32 = vpop.permute.xlu1 %11978 }
 0x470   :  { %10116 = vmatpush1.msra.mxu0 %v10090_v2  ;;  %10328 = vmatprep.subr.mxu1 %v10097_v0  ;;  %v27642_v58 = vpop.permute.xlu0 %12452  ;;  %v30142_v2 = vld [vmem:[#allocation62_spill] sm:$0xff]  ;;  %v30143_v0 = vld [vmem:[#allocation63_spill] sm:$0xff] }
 0x471   :  { %14870 = vrot.lane.b32.xlu1 %v27089_v53, %s25451_s23  ;;  %10250 = vmatprep.mubr.f32.mxu1 %v30028_v59 }
 0x472   :  { %10257 = vmatprep.subr.mxu0 %v10095_v19  ;;  %14890 = vrot.lane.b32.xlu0 %v27333_v6, %s25451_s23 }
 0x473   :  { %10179 = vmatprep.mubr.f32.mxu0 %v30028_v59  ;;  %24366 = vmatmul.mubr.msk.f32.vlgmr.msra.gmra.mrb[44].mxu1 %vm163_vm1, %v58_v33  ;;  %v27626_v30 = vpop.permute.xlu1 %11974 }
 0x474   :  { %10329 = vmatpush1.msra.mxu1 %v10096_v47  ;;  %24365 = vmatmul.mubr.msk.f32.vlgmr.msra.gmra.mrb[12].mxu0 %vm163_vm1, %v58_v33  ;;  %v30145_v47 = vld [vmem:[#allocation45_spill] sm:$0xff] }
 0x475   :  { %10258 = vmatpush1.msra.mxu0 %v10094_v29  ;;  %14868 = vrot.lane.b32.xlu1 %v27426_v7, %s25451_s23  ;;  %v27665_v49 = vpop.permute.xlu0 %12462  ;;  %v30146_v29 = vld [vmem:[#allocation6_spill] sm:$0xff] }
 0x476   :  { %10399 = vmatprep.subr.mxu0 %v10099_v11  ;;  %10392 = vmatprep.mubr.f32.mxu1 %v30028_v59  ;;  %v30147_v11 = vld [vmem:[#allocation14_spill] sm:$0xff] }
 0x477   :  { %24781 = vmatprep.subr.mxu1 %v30028_v59  ;;  %15351 = vrot.lane.b32.xlu0 %v27201_v56, %s25452_s19 }
 0x478   :  { %10321 = vmatprep.mubr.f32.mxu0 %v30028_v59  ;;  %24368 = vmatmul.mubr.msk.f32.vlgmr.msra.gmra.mrb[46].mxu1 %vm163_vm1, %v58_v33 }
 0x479   :  { %24782 = vmatpush3.msra.mxu1 %v10100_v20  ;;  %24367 = vmatmul.mubr.msk.f32.vlgmr.msra.gmra.mrb[14].mxu0 %vm163_vm1, %v58_v33  ;;  %v11504_v20 = vsel %vm11500_vm4, %v30147_v11, %v30146_v29 }
 0x47a   :  { %10400 = vmatpush1.msra.mxu0 %v10098_v46  ;;  %10672 = vmatprep.subr.mxu1 %v10579_v13  ;;  %v27650_v48 = vpop.permute.xlu1 %11982  ;;  %v30148_v13 = vld [vmem:[#allocation64_spill] sm:$0xff] }
 0x47b   :  { %10601 = vmatprep.subr.mxu0 %v10577_v60  ;;  %14884 = vrot.lane.b32.xlu1 %v27146_v63, %s25451_s23  ;;  %v27688_v24 = vpop.permute.xlu0 %12458  ;;  %v30149_v60 = vld [vmem:[#allocation9_spill] sm:$0xff] }
 0x47c   :  { %24783 = vmatprep.mubr.msk.f32.mxu1 %vm25436_vm2, %v30028_v59  ;;  %15347 = vrot.lane.b32.xlu0 %v27046_v14, %s25452_s19 }
 0x47d   :  { %10463 = vmatprep.mubr.f32.mxu0 %v30028_v59  ;;  %24784 = vmatmul.mubr.msk.f32.vlgmr.msra.gmra.mrb[52].mxu1 %vm163_vm1, %v58_v33 }
 0x47e   :  { %10673 = vmatpush1.msra.mxu1 %v10578_v43  ;;  %24369 = vmatmul.mubr.msk.f32.vlgmr.msra.gmra.mrb[16].mxu0 %vm163_vm1, %v58_v33  ;;  %v27674_v21 = vpop.permute.xlu1 %12454  ;;  %v30144_v33 = vld [vmem:[#allocation43_spill] sm:$0xff] }
 0x47f   :  { %10602 = vmatpush1.msra.mxu0 %v10576_v36  ;;  %10814 = vmatprep.subr.mxu1 %v10583_v16  ;;  %v27707_v19 = vpop.permute.xlu0 %12466  ;;  %v30150_v43 = vld [vmem:[#allocation15_spill] sm:$0xff]  ;;  %v11503_v16 = vsel %vm11500_vm4, %v30149_v60, %v30147_v11 }
 0x480   :  { %10743 = vmatprep.subr.mxu0 %v10581_v18  ;;  %14880 = vrot.lane.b32.xlu1 %v27181_v31, %s25451_s23  ;;  %v11502_v36 = vsel %vm11500_vm4, %v30150_v43, %v30149_v60 }
 0x481   :  { %10736 = vmatprep.mubr.f32.mxu1 %v30028_v59  ;;  %15357 = vrot.lane.b32.xlu0 %v27135_v10, %s25452_s19 }
 0x482   :  { %10665 = vmatprep.mubr.f32.mxu0 %v30028_v59  ;;  %24372 = vmatmul.mubr.msk.f32.vlgmr.msra.gmra.mrb[44].mxu1 %vm163_vm1, %v59_v41  ;;  %v27695_v34 = vpop.permute.xlu1 %12450 }
 0x483   :  { %10815 = vmatpush1.msra.mxu1 %v10582_v15  ;;  %24371 = vmatmul.mubr.msk.f32.vlgmr.msra.gmra.mrb[12].mxu0 %vm163_vm1, %v59_v41 }
 0x484   :  { %10744 = vmatpush1.msra.mxu0 %v10580_v55  ;;  %14888 = vrot.lane.b32.xlu1 %v27207_v27, %s25451_s23  ;;  %v27733_v18 = vpop.permute.xlu0 %12470  ;;  %v30152_v55 = vld [vmem:[#allocation23_spill] sm:$0xff]  ;;  %s25458_s23 = smov 104  }
 0x485   :  { %10885 = vmatprep.subr.mxu0 %v10585_v26  ;;  %10878 = vmatprep.mubr.f32.mxu1 %v30028_v59  ;;  %v30153_v26 = vld [vmem:[#allocation25_spill] sm:$0xff] }
 0x486   :  { %24786 = vmatprep.subr.mxu1 %v30028_v59  ;;  %15353 = vrot.lane.b32.xlu0 %v27097_v54, %s25452_s19 }
 0x487   :  { %10807 = vmatprep.mubr.f32.mxu0 %v30028_v59  ;;  %24374 = vmatmul.mubr.msk.f32.vlgmr.msra.gmra.mrb[46].mxu1 %vm163_vm1, %v59_v41 }
 0x488   :  { %24787 = vmatpush3.msra.mxu1 %v10586_v57  ;;  %24373 = vmatmul.mubr.msk.f32.vlgmr.msra.gmra.mrb[14].mxu0 %vm163_vm1, %v59_v41  ;;  %v11506_v57 = vsel %vm11500_vm4, %v30154_v52, %v30153_v26 }
 0x489   :  { %10886 = vmatpush1.msra.mxu0 %v10584_v37  ;;  %11111 = vmatprep.subr.mxu1 %v30136_v9  ;;  %v27716_v46 = vpop.permute.xlu1 %12448  ;;  %v61_v37 = vld [vmem:[%s29854_s4 + $0x38] sm:$0xf]  ;;  %v28215_v9 = vld [vmem:[#allocation2] sm:$0xff] }
 0x48a   :  { %11040 = vmatprep.subr.mxu0 %v30137_v45  ;;  %15349 = vrot.lane.b32.xlu1 %v27119_v38, %s25452_s19  ;;  %v27764_v60 = vpop.permute.xlu0 %12942 }
 0x48b   :  { %24788 = vmatprep.mubr.msk.f32.mxu1 %vm25436_vm2, %v30028_v59  ;;  %15361 = vrot.lane.b32.xlu0 %v27114_v61, %s25452_s19 }
 0x48c   :  { %10949 = vmatprep.mubr.f32.mxu0 %v30028_v59  ;;  %24789 = vmatmul.mubr.msk.f32.vlgmr.msra.gmra.mrb[54].mxu1 %vm163_vm1, %v59_v41 }
 0x48d   :  { %11112 = vmatpush1.msra.mxu1 %v30138_v17  ;;  %24375 = vmatmul.mubr.msk.f32.vlgmr.msra.gmra.mrb[16].mxu0 %vm163_vm1, %v59_v41  ;;  %v30151_v41 = vld [vmem:[#allocation42_spill] sm:$0xff]  ;;  %v27748_v11 = vpop.permute.xlu1 %12464 }
 0x48e   :  { %11041 = vmatpush1.msra.mxu0 %v30139_v1  ;;  %11253 = vmatprep.subr.mxu1 %v30140_v40  ;;  %v11501_v15 = vsel %vm11500_vm4, %v30151_v41, %v30150_v43  ;;  %v11510_v43 = vsel %vm11500_vm4, %v27380_v51, %v27479_v44  ;;  %v11988_v41 = vsel %vm11986_vm5, %v27533_v5, %v27468_v62 }
 0x48f   :  { %11182 = vmatprep.subr.mxu0 %v30141_v3  ;;  %15345 = vrot.lane.b32.xlu1 %v27089_v53, %s25452_s19 }
 0x490   :  { %11175 = vmatprep.mubr.f32.mxu1 %v30028_v59  ;;  %15365 = vrot.lane.b32.xlu0 %v27333_v6, %s25452_s19 }
 0x491   :  { %11104 = vmatprep.mubr.f32.mxu0 %v30028_v59  ;;  %24378 = vmatmul.mubr.msk.f32.vlgmr.msra.gmra.mrb[44].mxu1 %vm163_vm1, %v60_v23 }
 0x492   :  { %11254 = vmatpush1.msra.mxu1 %v30142_v2  ;;  %24377 = vmatmul.mubr.msk.f32.vlgmr.msra.gmra.mrb[12].mxu0 %vm163_vm1, %v60_v23 }
 0x493   :  { %11183 = vmatpush1.msra.mxu0 %v30143_v0  ;;  %15343 = vrot.lane.b32.xlu1 %v27426_v7, %s25452_s19 }
 0x494   :  { %11324 = vmatprep.subr.mxu0 %v30144_v33  ;;  %11317 = vmatprep.mubr.f32.mxu1 %v30028_v59 }
 0x495   :  { %24791 = vmatprep.subr.mxu1 %v30028_v59  ;;  %15837 = vrot.lane.b32.xlu0 %v27201_v56, %s25453_s24 }
 0x496   :  { %11246 = vmatprep.mubr.f32.mxu0 %v30028_v59  ;;  %24380 = vmatmul.mubr.msk.f32.vlgmr.msra.gmra.mrb[46].mxu1 %vm163_vm1, %v60_v23 }
 0x497   :  { %24792 = vmatpush3.msra.mxu1 %v30145_v47  ;;  %24379 = vmatmul.mubr.msk.f32.vlgmr.msra.gmra.mrb[14].mxu0 %vm163_vm1, %v60_v23  ;;  %v85_v47 = vld [vmem:[%s29855_s5 + $0x8] sm:$0xf] }
 0x498   :  { %11325 = vmatpush1.msra.mxu0 %v30148_v13  ;;  %11597 = vmatprep.subr.mxu1 %v11504_v20  ;;  %v11505_v20 = vsel %vm11500_vm4, %v30146_v29, %v30154_v52  ;;  %v11511_v29 = vsel %vm11500_vm4, %v27479_v44, %v27410_v4  ;;  %v11992_v44 = vsel %vm11986_vm5, %v27524_v35, %v27626_v30 }
 0x499   :  { %11526 = vmatprep.subr.mxu0 %v11502_v36  ;;  %15359 = vrot.lane.b32.xlu1 %v27146_v63, %s25452_s19  ;;  %v27772_v36 = vpop.permute.xlu1 %12460  ;;  %v12480_v52 = vsel %vm12472_vm6, %v27665_v49, %v27748_v11 }
 0x49a   :  { %24793 = vmatprep.mubr.msk.f32.mxu1 %vm25436_vm2, %v30028_v59  ;;  %15833 = vrot.lane.b32.xlu0 %v27046_v14, %s25453_s24  ;;  %v11508_v14 = vsel %vm11500_vm4, %v30152_v55, %v27337_v8 }
 0x49b   :  { %11388 = vmatprep.mubr.f32.mxu0 %v30028_v59  ;;  %24794 = vmatmul.mubr.msk.f32.vlgmr.msra.gmra.mrb[56].mxu1 %vm163_vm1, %v60_v23 }
 0x49c   :  { %11598 = vmatpush1.msra.mxu1 %v11503_v16  ;;  %24381 = vmatmul.mubr.msk.f32.vlgmr.msra.gmra.mrb[16].mxu0 %vm163_vm1, %v60_v23  ;;  %v11507_v23 = vsel %vm11500_vm4, %v30153_v26, %v30152_v55  ;;  %v11509_v16 = vsel %vm11500_vm4, %v27337_v8, %v27380_v51  ;;  %v11989_v8 = vsel %vm11986_vm5, %v27468_v62, %v27508_v50  ;;  %v62_v62 = vld [vmem:[%s29854_s4 + $0x3c] sm:$0xf] }
 0x49d   :  { %11527 = vmatpush1.msra.mxu0 %v11501_v15  ;;  %11739 = vmatprep.subr.mxu1 %v11508_v14  ;;  %v27792_v15 = vpop.permute.xlu0 %12938  ;;  %v27800_v51 = vpop.permute.xlu1 %12468  ;;  %v11996_v14 = vsel %vm11986_vm5, %v27557_v28, %v27650_v48  ;;  %v12474_v26 = vsel %vm12472_vm6, %v27695_v34, %v27642_v58 }
 0x49e   :  { %11668 = vmatprep.subr.mxu0 %v11506_v57  ;;  %15355 = vrot.lane.b32.xlu1 %v27181_v31, %s25452_s19 }
 0x49f   :  { %11661 = vmatprep.mubr.f32.mxu1 %v30028_v59  ;;  %15843 = vrot.lane.b32.xlu0 %v27135_v10, %s25453_s24 }
 0x4a0   :  { %11590 = vmatprep.mubr.f32.mxu0 %v30028_v59  ;;  %24384 = vmatmul.mubr.msk.f32.vlgmr.msra.gmra.mrb[44].mxu1 %vm163_vm1, %v61_v37 }
 0x4a1   :  { %11740 = vmatpush1.msra.mxu1 %v11507_v23  ;;  %24383 = vmatmul.mubr.msk.f32.vlgmr.msra.gmra.mrb[12].mxu0 %vm163_vm1, %v61_v37  ;;  %v27832_v55 = vpop.permute.xlu1 %12940  ;;  %v12479_v23 = vsel %vm12472_vm6, %v27772_v36, %v27665_v49  ;;  %v27919_v49 = vld [vmem:[#allocation2 + $0x28] sm:$0xff] }
 0x4a2   :  { %11669 = vmatpush1.msra.mxu0 %v11505_v20  ;;  %15363 = vrot.lane.b32.xlu1 %v27207_v27, %s25452_s19  ;;  %s25461_s19 = smov 12  }
 0x4a3   :  { %11810 = vmatprep.subr.mxu0 %v11510_v43  ;;  %11803 = vmatprep.mubr.f32.mxu1 %v30028_v59  ;;  %v12962_v43 = vsel %vm12958_vm7, %v27832_v55, %v27764_v60 }
 0x4a4   :  { %24796 = vmatprep.subr.mxu1 %v30028_v59  ;;  %15839 = vrot.lane.b32.xlu0 %v27097_v54, %s25453_s24  ;;  %v11990_v54 = vsel %vm11986_vm5, %v27508_v50, %v27441_v22 }
 0x4a5   :  { %11732 = vmatprep.mubr.f32.mxu0 %v30028_v59  ;;  %24386 = vmatmul.mubr.msk.f32.vlgmr.msra.gmra.mrb[46].mxu1 %vm163_vm1, %v61_v37 }
 0x4a6   :  { %24797 = vmatpush3.msra.mxu1 %v11511_v29  ;;  %24385 = vmatmul.mubr.msk.f32.vlgmr.msra.gmra.mrb[14].mxu0 %vm163_vm1, %v61_v37  ;;  %v12961_v29 = vsel %vm12958_vm7, %v27792_v15, %v27832_v55 }
 0x4a7   :  { %11811 = vmatpush1.msra.mxu0 %v11509_v16  ;;  %12083 = vmatprep.subr.mxu1 %v11990_v54 }
 0x4a8   :  { %12012 = vmatprep.subr.mxu0 %v11988_v41  ;;  %15835 = vrot.lane.b32.xlu1 %v27119_v38, %s25453_s24  ;;  %v11987_v38 = vsel %vm11986_vm5, %v27566_v25, %v27533_v5  ;;  %v27822_v5 = vpop.permute.xlu0 %12948  ;;  %v11993_v25 = vsel %vm11986_vm5, %v27626_v30, %v27498_v42  ;;  %v27861_v30 = vpop.permute.xlu1 %12936 }
 0x4a9   :  { %24798 = vmatprep.mubr.msk.f32.mxu1 %vm25436_vm2, %v30028_v59  ;;  %15847 = vrot.lane.b32.xlu0 %v27114_v61, %s25453_s24  ;;  %v11994_v61 = vsel %vm11986_vm5, %v27498_v42, %v27595_v32 }
 0x4aa   :  { %11874 = vmatprep.mubr.f32.mxu0 %v30028_v59  ;;  %24799 = vmatmul.mubr.msk.f32.vlgmr.msra.gmra.mrb[58].mxu1 %vm163_vm1, %v61_v37 }
 0x4ab   :  { %12084 = vmatpush1.msra.mxu1 %v11989_v8  ;;  %24387 = vmatmul.mubr.msk.f32.vlgmr.msra.gmra.mrb[16].mxu0 %vm163_vm1, %v61_v37  ;;  %v5169_v4 = vpop.f32.mrb[26].mxu1 }
 0x4ac   :  { %12013 = vmatpush1.msra.mxu0 %v11987_v38  ;;  %12225 = vmatprep.subr.mxu1 %v11994_v61  ;;  %v24730_v50 = vpop.f32.mrb[27].mxu1  ;;  %v27847_v42 = vpop.permute.xlu0 %12944  ;;  %v27963_v61 = vld [vmem:[#allocation2 + $0x8] sm:$0xff] }
 0x4ad   :  { %12154 = vmatprep.subr.mxu0 %v11992_v44  ;;  %15831 = vrot.lane.b32.xlu1 %v27089_v53, %s25453_s24  ;;  %v11991_v53 = vsel %vm11986_vm5, %v27441_v22, %v27524_v35  ;;  %v11997_v22 = vsel %vm11986_vm5, %v27650_v48, %v27581_v12  ;;  %v11995_v35 = vsel %vm11986_vm5, %v27595_v32, %v27557_v28  ;;  %v27870_v28 = vld [vmem:[#allocation2 + $0x10] sm:$0xff] }
 0x4ae   :  { %12147 = vmatprep.mubr.f32.mxu1 %v30028_v59  ;;  %15851 = vrot.lane.b32.xlu0 %v27333_v6, %s25453_s24  ;;  %v12475_v12 = vsel %vm12472_vm6, %v27642_v58, %v27674_v21  ;;  %v12478_v58 = vsel %vm12472_vm6, %v27688_v24, %v27772_v36  ;;  %v27940_v36 = vld [vmem:[#allocation2 + $0x18] sm:$0xff]  ;;  %v12963_v50 = vsel %vm12958_vm7, %v27764_v60, %v27847_v42  ;;  %v27998_v60 = vld [vmem:[#allocation2 + $0x40] sm:$0xff] }
 0x4af   :  { %12076 = vmatprep.mubr.f32.mxu0 %v30028_v59  ;;  %24390 = vmatmul.mubr.msk.f32.vlgmr.msra.gmra.mrb[44].mxu1 %vm163_vm1, %v62_v62 }
 0x4b0   :  { %12226 = vmatpush1.msra.mxu1 %v11993_v25  ;;  %24389 = vmatmul.mubr.msk.f32.vlgmr.msra.gmra.mrb[12].mxu0 %vm163_vm1, %v62_v62  ;;  %v27879_v32 = vpop.permute.xlu0 %12952 }
 0x4b1   :  { %12155 = vmatpush1.msra.mxu0 %v11991_v53  ;;  %15829 = vrot.lane.b32.xlu1 %v27426_v7, %s25453_s24 }
 0x4b2   :  { %12296 = vmatprep.subr.mxu0 %v11996_v14  ;;  %12289 = vmatprep.mubr.f32.mxu1 %v30028_v59 }
 0x4b3   :  { %24801 = vmatprep.subr.mxu1 %v30028_v59  ;;  %16762 = vrot.lane.b32.xlu0 %v27201_v56, %s25454_s13  ;;  %v12476_v56 = vsel %vm12472_vm6, %v27674_v21, %v27611_v39  ;;  %v63_v21 = vld [vmem:[%s29854_s4 + $0x40] sm:$0xf] }
 0x4b4   :  { %12218 = vmatprep.mubr.f32.mxu0 %v30028_v59  ;;  %24392 = vmatmul.mubr.msk.f32.vlgmr.msra.gmra.mrb[46].mxu1 %vm163_vm1, %v62_v62 }
 0x4b5   :  { %24802 = vmatpush3.msra.mxu1 %v11997_v22  ;;  %24391 = vmatmul.mubr.msk.f32.vlgmr.msra.gmra.mrb[14].mxu0 %vm163_vm1, %v62_v62 }
 0x4b6   :  { %12297 = vmatpush1.msra.mxu0 %v11995_v35  ;;  %12569 = vmatprep.subr.mxu1 %v12476_v56 }
 0x4b7   :  { %12498 = vmatprep.subr.mxu0 %v12474_v26  ;;  %15845 = vrot.lane.b32.xlu1 %v27146_v63, %s25453_s24  ;;  %v12473_v63 = vsel %vm12472_vm6, %v27716_v46, %v27695_v34  ;;  %v12935_v34 = vpop.permute.xlu1 %12934  ;;  %v27899_v46 = vpop.permute.xlu0 %12956  ;;  %v28024_v26 = vld [vmem:[#allocation2 + $0x50] sm:$0xff] }
 0x4b8   :  { %24803 = vmatprep.mubr.msk.f32.mxu1 %vm25436_vm2, %v30028_v59  ;;  %16758 = vrot.lane.b32.xlu0 %v27870_v28, %s25454_s13  ;;  %v12959_v41 = vsel %vm12958_vm7, %v12935_v34, %v27861_v30 }
 0x4b9   :  { %12360 = vmatprep.mubr.f32.mxu0 %v30028_v59  ;;  %24804 = vmatmul.mubr.msk.f32.vlgmr.msra.gmra.mrb[60].mxu1 %vm163_vm1, %v62_v62  ;;  %v5643_v48 = vpop.f32.mrb[28].mxu1 }
 0x4ba   :  { %12570 = vmatpush1.msra.mxu1 %v12475_v12  ;;  %24393 = vmatmul.mubr.msk.f32.vlgmr.msra.gmra.mrb[16].mxu0 %vm163_vm1, %v62_v62  ;;  %v5644_v57 = vadd.f32 %v5643_v48, %v5169_v4  ;;  %v24735_v37 = vpop.f32.mrb[29].mxu1  ;;  %v28034_v48 = vld [vmem:[#allocation2 + $0x20] sm:$0xff] }
 0x4bb   :  { %12499 = vmatpush1.msra.mxu0 %v12473_v63  ;;  %12711 = vmatprep.subr.mxu1 %v12480_v52  ;;  %v27916_v20 = vpop.permute.xlu1 %12950 }
 0x4bc   :  { %12640 = vmatprep.subr.mxu0 %v12478_v58  ;;  %15841 = vrot.lane.b32.xlu1 %v27181_v31, %s25453_s24  ;;  %v12477_v31 = vsel %vm12472_vm6, %v27611_v39, %v27688_v24  ;;  %v27928_v39 = vpop.permute.xlu0 %9068  ;;  %v12481_v24 = vsel %vm12472_vm6, %v27748_v11, %v27707_v19  ;;  %v12966_v16 = vsel %vm12958_vm7, %v27822_v5, %v27916_v20 }
 0x4bd   :  { %12633 = vmatprep.mubr.f32.mxu1 %v30028_v59  ;;  %16768 = vrot.lane.b32.xlu0 %v27135_v10, %s25454_s13  ;;  %v12482_v10 = vsel %vm12472_vm6, %v27707_v19, %v27800_v51  ;;  %v27946_v19 = vld [vmem:[#allocation2 + $0x48] sm:$0xff]  ;;  %v12967_v53 = vsel %vm12958_vm7, %v27916_v20, %v27879_v32 }
 0x4be   :  { %12562 = vmatprep.mubr.f32.mxu0 %v30028_v59  ;;  %24396 = vmatmul.mubr.msk.f32.vlgmr.msra.gmra.mrb[44].mxu1 %vm163_vm1, %v63_v21 }
 0x4bf   :  { %12712 = vmatpush1.msra.mxu1 %v12479_v23  ;;  %24395 = vmatmul.mubr.msk.f32.vlgmr.msra.gmra.mrb[12].mxu0 %vm163_vm1, %v63_v21  ;;  %v12947_v11 = vpop.permute.xlu1 %12946 }
 0x4c0   :  { %12641 = vmatpush1.msra.mxu0 %v12477_v31  ;;  %15849 = vrot.lane.b32.xlu1 %v27207_v27, %s25453_s24  ;;  %v12483_v27 = vsel %vm12472_vm6, %v27800_v51, %v27733_v18  ;;  %v12960_v18 = vsel %vm12958_vm7, %v27861_v30, %v27792_v15  ;;  %v27961_v51 = vpop.permute.xlu0 %14401  ;;  %v64_v15 = vld [vmem:[%s29854_s4 + $0x44] sm:$0xf]  ;;  %v12964_v4 = vsel %vm12958_vm7, %v27847_v42, %v12947_v11  ;;  %v28014_v42 = vld [vmem:[#allocation2 + $0x30] sm:$0xff]  ;;  %v28064_v31 = vld [vmem:[#allocation2 + $0x38] sm:$0xff]  ;;  %s25464_s24 = smov 40  }
 0x4c1   :  { %12782 = vmatprep.subr.mxu0 %v12482_v10  ;;  %12775 = vmatprep.mubr.f32.mxu1 %v30028_v59  ;;  %v12965_v44 = vsel %vm12958_vm7, %v12947_v11, %v27822_v5 }
 0x4c2   :  { %24806 = vmatprep.subr.mxu1 %v30028_v59  ;;  %16764 = vrot.lane.b32.xlu0 %v27919_v49, %s25454_s13 }
 0x4c3   :  { %12704 = vmatprep.mubr.f32.mxu0 %v30028_v59  ;;  %24398 = vmatmul.mubr.msk.f32.vlgmr.msra.gmra.mrb[46].mxu1 %vm163_vm1, %v63_v21  ;;  %v12955_v62 = vpop.permute.xlu1 %12954 }
 0x4c4   :  { %24807 = vmatpush3.msra.mxu1 %v12483_v27  ;;  %24397 = vmatmul.mubr.msk.f32.vlgmr.msra.gmra.mrb[14].mxu0 %vm163_vm1, %v63_v21  ;;  %v27986_v25 = vpop.permute.xlu0 %14397  ;;  %v12968_v5 = vsel %vm12958_vm7, %v27879_v32, %v12955_v62  ;;  %v12969_v55 = vsel %vm12958_vm7, %v12955_v62, %v27899_v46 }
 0x4c5   :  { %12783 = vmatpush1.msra.mxu0 %v12481_v24  ;;  %13055 = vmatprep.subr.mxu1 %v12962_v43 }
 0x4c6   :  { %12984 = vmatprep.subr.mxu0 %v12960_v18  ;;  %16760 = vrot.lane.b32.xlu1 %v27940_v36, %s25454_s13 }
 0x4c7   :  { %24808 = vmatprep.mubr.msk.f32.mxu1 %vm25436_vm2, %v30028_v59  ;;  %16772 = vrot.lane.b32.xlu0 %v27946_v19, %s25454_s13  ;;  %v28018_v22 = vpop.permute.xlu1 %13422 }
 0x4c8   :  { %12846 = vmatprep.mubr.f32.mxu0 %v30028_v59  ;;  %24809 = vmatmul.mubr.msk.f32.vlgmr.msra.gmra.mrb[62].mxu1 %vm163_vm1, %v63_v21  ;;  %v6117_v54 = vpop.f32.mrb[30].mxu1  ;;  %v28009_v14 = vpop.permute.xlu0 %14407 }
 0x4c9   :  { %13056 = vmatpush1.msra.mxu1 %v12961_v29  ;;  %24399 = vmatmul.mubr.msk.f32.vlgmr.msra.gmra.mrb[16].mxu0 %vm163_vm1, %v63_v21  ;;  %v6131_v8 = vadd.f32 %v6117_v54, %v5644_v57  ;;  %v24740_v38 = vpop.f32.mrb[31].mxu1  ;;  %v28046_v57 = vld [vmem:[#allocation2 + $0x60] sm:$0xff] }
 0x4ca   :  { %12985 = vmatpush1.msra.mxu0 %v12959_v41  ;;  %16756 = vrot.lane.b32.xlu1 %v27963_v61, %s25454_s13 }
 0x4cb   :  { %13119 = vmatprep.mubr.f32.mxu1 %v30028_v59  ;;  %13197 = vmatprep.subr.mxu1 %v12966_v16  ;;  %v28032_v32 = vpop.permute.xlu1 %14399 }
 0x4cc   :  { %16776 = vrot.lane.b32.xlu0 %v27333_v6, %s25454_s13  ;;  %13048 = vmatprep.mubr.f32.mxu0 %v30028_v59  ;;  %v28028_v12 = vpop.permute.xlu0 %14403 }
 0x4cd   :  { %24402 = vmatmul.mubr.msk.f32.vlgmr.msra.gmra.mrb[44].mxu1 %vm163_vm1, %v64_v15  ;;  %24401 = vmatmul.mubr.msk.f32.vlgmr.msra.gmra.mrb[12].mxu0 %vm163_vm1, %v64_v15 }
 0x4ce   :  { %16754 = vrot.lane.b32.xlu1 %v27426_v7, %s25454_s13  ;;  %13126 = vmatprep.subr.mxu0 %v12964_v4 }
 0x4cf   :  { %13198 = vmatpush1.msra.mxu1 %v12965_v44  ;;  %13261 = vmatprep.mubr.f32.mxu1 %v30028_v59  ;;  %v28044_v52 = vpop.permute.xlu1 %14395  ;;  %v28114_v44 = vld [vmem:[#allocation2 + $0x58] sm:$0xff] }
 0x4d0   :  { %17248 = vrot.lane.b32.xlu0 %v27919_v49, %s25455_s11  ;;  %13127 = vmatpush1.msra.mxu0 %v12963_v50  ;;  %v28040_v63 = vpop.permute.xlu0 %14411 }
 0x4d1   :  { %13190 = vmatprep.mubr.f32.mxu0 %v30028_v59  ;;  %24404 = vmatmul.mubr.msk.f32.vlgmr.msra.gmra.mrb[46].mxu1 %vm163_vm1, %v64_v15 }
 0x4d2   :  { %24403 = vmatmul.mubr.msk.f32.vlgmr.msra.gmra.mrb[14].mxu0 %vm163_vm1, %v64_v15  ;;  %24811 = vmatprep.subr.mxu1 %v30028_v59 }
 0x4d3   :  { %16770 = vrot.lane.b32.xlu1 %v27998_v60, %s25454_s13  ;;  %13268 = vmatprep.subr.mxu0 %v12968_v5  ;;  %v28056_v46 = vpop.permute.xlu1 %14393 }
 0x4d4   :  { %24812 = vmatpush3.msra.mxu1 %v12969_v55  ;;  %24813 = vmatprep.mubr.msk.f32.mxu1 %vm25436_vm2, %v30028_v59  ;;  %v28052_v58 = vpop.permute.xlu0 %14415 }
 0x4d5   :  { %17244 = vrot.lane.b32.xlu0 %v27940_v36, %s25455_s11  ;;  %13269 = vmatpush1.msra.mxu0 %v12967_v53 }
 0x4d6   :  { %13332 = vmatprep.mubr.f32.mxu0 %v30028_v59  ;;  %24814 = vmatmul.mubr.msk.f32.vlgmr.msra.gmra.mrb[64].mxu1 %vm163_vm1, %v64_v15 }
 0x4d7   :  { %24405 = vmatmul.mubr.msk.f32.vlgmr.msra.gmra.mrb[16].mxu0 %vm163_vm1, %v64_v15  ;;  %16766 = vrot.lane.b32.xlu1 %v28014_v42, %s25454_s13  ;;  %v6602_v35 = vpop.f32.mrb[32].mxu1  ;;  %v28068_v10 = vpop.permute.xlu1 %14409 }
 0x4d8   :  { %v6616_v56 = vadd.f32 %v6602_v35, %v6131_v8  ;;  %v24745_v30 = vpop.f32.mrb[33].mxu1  ;;  %13642 = vmatprep.mubr.f32.mxu1 %v30028_v59  ;;  %13571 = vmatprep.mubr.f32.mxu0 %v30028_v59  ;;  %v28062_v23 = vpop.permute.xlu0 %14876 }
 0x4d9   :  { %17254 = vrot.lane.b32.xlu0 %v27998_v60, %s25455_s11 }
 0x4db   :  { %16774 = vrot.lane.b32.xlu1 %v28024_v26, %s25454_s13  ;;  %v28078_v27 = vpop.permute.xlu1 %14405  ;;  %s25465_s13 = smov 36  }
 0x4dc   :  { %v28072_v20 = vpop.permute.xlu0 %14872 }
 0x4dd   :  { %17250 = vrot.lane.b32.xlu0 %v28014_v42, %s25455_s11 }
 0x4df   :  { %17246 = vrot.lane.b32.xlu1 %v28034_v48, %s25455_s11  ;;  %v28086_v29 = vpop.permute.xlu1 %14413 }
 0x4e0   :  { %v28082_v11 = vpop.permute.xlu0 %14882 }
 0x4e1   :  { %17258 = vrot.lane.b32.xlu0 %v28024_v26, %s25455_s11  ;;  %30155 = vst [vmem:[#allocation47_spill] sm:$0xff] %v28082_v11 }
 0x4e3   :  { %17242 = vrot.lane.b32.xlu1 %v27870_v28, %s25455_s11  ;;  %v28096_v16 = vpop.permute.xlu1 %14874 }
 0x4e5   :  { %17262 = vrot.lane.b32.xlu0 %v28046_v57, %s25455_s11 }
 0x4e6   :  { %v7087_v37 = vpop.f32.mrb[34].mxu1 }
 0x4e7   :  { %17240 = vrot.lane.b32.xlu1 %v27963_v61, %s25455_s11  ;;  %v7101_v21 = vadd.f32 %v7087_v37, %v6616_v56  ;;  %v24750_v34 = vpop.f32.mrb[35].mxu1  ;;  %v28106_v15 = vpop.permute.xlu1 %14870 }
 0x4e9   :  { %17734 = vrot.lane.b32.xlu0 %v27919_v49, %s25456_s15 }
 0x4eb   :  { %17256 = vrot.lane.b32.xlu1 %v27946_v19, %s25455_s11  ;;  %v28118_v62 = vpop.permute.xlu1 %14868 }
 0x4ed   :  { %17730 = vrot.lane.b32.xlu0 %v27940_v36, %s25456_s15 }
 0x4ef   :  { %17252 = vrot.lane.b32.xlu1 %v28064_v31, %s25455_s11  ;;  %v28128_v5 = vpop.permute.xlu1 %14884 }
 0x4f1   :  { %17740 = vrot.lane.b32.xlu0 %v27998_v60, %s25456_s15 }
 0x4f3   :  { %17260 = vrot.lane.b32.xlu1 %v27333_v6, %s25455_s11  ;;  %v28092_v6 = vpop.permute.xlu0 %14878  ;;  %v28138_v30 = vpop.permute.xlu1 %14880 }
 0x4f4   :  { %30156 = vst [vmem:[#allocation49_spill] sm:$0xff] %v28092_v6  ;;  %30161 = vst [vmem:[#allocation17_spill] sm:$0xff] %v28138_v30 }
 0x4f5   :  { %17736 = vrot.lane.b32.xlu0 %v28014_v42, %s25456_s15  ;;  %v7572_v24 = vpop.f32.mrb[36].mxu1 }
 0x4f6   :  { %v7586_v43 = vadd.f32 %v7572_v24, %v7101_v21  ;;  %v24755_v18 = vpop.f32.mrb[37].mxu1 }
 0x4f7   :  { %17732 = vrot.lane.b32.xlu1 %v28034_v48, %s25456_s15  ;;  %v28102_v54 = vpop.permute.xlu0 %14886 }
 0x4f8   :  { %30157 = vst [vmem:[#allocation27_spill] sm:$0xff] %v28102_v54 }
 0x4f9   :  { %17744 = vrot.lane.b32.xlu0 %v28024_v26, %s25456_s15 }
 0x4fb   :  { %17728 = vrot.lane.b32.xlu1 %v27870_v28, %s25456_s15  ;;  %v28112_v4 = vpop.permute.xlu0 %14890 }
 0x4fc   :  { %30158 = vst [vmem:[#allocation26_spill] sm:$0xff] %v28112_v4 }
 0x4fd   :  { %17748 = vrot.lane.b32.xlu0 %v28046_v57, %s25456_s15 }
 0x4ff   :  { %17726 = vrot.lane.b32.xlu1 %v27963_v61, %s25456_s15  ;;  %v28124_v50 = vpop.permute.xlu0 %15351 }
 0x500   :  { %30159 = vst [vmem:[#allocation7_spill] sm:$0xff] %v28124_v50 }
 0x501   :  { %18220 = vrot.lane.b32.xlu0 %v27919_v49, %s25457_s18 }
 0x503   :  { %17742 = vrot.lane.b32.xlu1 %v27946_v19, %s25456_s15  ;;  %v28134_v56 = vpop.permute.xlu0 %15347 }
 0x504   :  { %30160 = vst [vmem:[#allocation16_spill] sm:$0xff] %v28134_v56 }
 0x505   :  { %18216 = vrot.lane.b32.xlu0 %v27940_v36, %s25457_s18  ;;  %v8081_v41 = vpop.f32.mrb[38].mxu1 }
 0x506   :  { %v8095_v8 = vadd.f32 %v8081_v41, %v7586_v43  ;;  %v24760_v38 = vpop.f32.mrb[39].mxu1  ;;  %v28158_v41 = vpop.permute.xlu1 %14888 }
 0x507   :  { %17738 = vrot.lane.b32.xlu1 %v28064_v31, %s25456_s15  ;;  %v28152_v43 = vpop.permute.xlu0 %15357  ;;  %30163 = vst [vmem:[#allocation35_spill] sm:$0xff] %v28158_v41 }
 0x508   :  { %30162 = vst [vmem:[#allocation44_spill] sm:$0xff] %v28152_v43 }
 0x509   :  { %18226 = vrot.lane.b32.xlu0 %v27998_v60, %s25457_s18 }
 0x50a   :  { %v28179_v2 = vpop.permute.xlu1 %15349 }
 0x50b   :  { %17746 = vrot.lane.b32.xlu1 %v28114_v44, %s25456_s15  ;;  %30165 = vst [vmem:[#allocation29_spill] sm:$0xff] %v28179_v2 }
 0x50d   :  { %18222 = vrot.lane.b32.xlu0 %v28014_v42, %s25457_s18 }
 0x50e   :  { %v28191_v1 = vpop.permute.xlu1 %15345 }
 0x50f   :  { %18218 = vrot.lane.b32.xlu1 %v28034_v48, %s25457_s18  ;;  %30167 = vst [vmem:[#allocation3_spill] sm:$0xff] %v28191_v1 }
 0x511   :  { %18230 = vrot.lane.b32.xlu0 %v28024_v26, %s25457_s18 }
 0x513   :  { %18214 = vrot.lane.b32.xlu1 %v27870_v28, %s25457_s18 }
 0x514   :  { %v8566_v55 = vpop.f32.mrb[40].mxu1 }
 0x515   :  { %18234 = vrot.lane.b32.xlu0 %v28046_v57, %s25457_s18  ;;  %v8580_v53 = vadd.f32 %v8566_v55, %v8095_v8  ;;  %v24765_v35 = vpop.f32.mrb[41].mxu1 }
 0x516   :  { %v28170_v35 = vpop.permute.xlu0 %15353 }
 0x517   :  { %18212 = vrot.lane.b32.xlu1 %v27963_v61, %s25457_s18  ;;  %30164 = vst [vmem:[#allocation39_spill] sm:$0xff] %v28170_v35 }
 0x519   :  { %19225 = vrot.lane.b32.xlu0 %v27940_v36, %s25458_s23  ;;  %v28142_v37 = vpop.f32.mrb[22].mxu1 }
 0x51a   :  { %v28144_v21 = vpop.f32.mrb[6].mxu0  ;;  %v28148_v34 = vpop.f32.mrb[23].mxu1 }
 0x51b   :  { %18228 = vrot.lane.b32.xlu1 %v27946_v19, %s25457_s18  ;;  %v28150_v24 = vpop.f32.mrb[7].mxu0  ;;  %v28189_v40 = vpop.permute.xlu0 %15361 }
 0x51c   :  { %30166 = vst [vmem:[#allocation46_spill] sm:$0xff] %v28189_v40 }
 0x51d   :  { %19221 = vrot.lane.b32.xlu0 %v27963_v61, %s25458_s23 }
 0x51e   :  { %v28156_v18 = vpop.f32.mrb[24].mxu1 }
 0x51f   :  { %18224 = vrot.lane.b32.xlu1 %v28064_v31, %s25457_s18  ;;  %v28162_v8 = vpop.f32.mrb[8].mxu0  ;;  %v28164_v38 = vpop.f32.mrb[25].mxu1 }
 0x520   :  { %v28168_v55 = vpop.f32.mrb[9].mxu0 }
 0x521   :  { %19219 = vrot.lane.b32.xlu0 %v27426_v7, %s25458_s23 }
 0x523   :  { %18232 = vrot.lane.b32.xlu1 %v28114_v44, %s25457_s18  ;;  %v9051_v13 = vpop.f32.mrb[42].mxu1 }
 0x524   :  { %v28177_v33 = vpop.f32.mrb[10].mxu0  ;;  %v24770_v0 = vpop.f32.mrb[43].mxu1  ;;  %v28183_v7 = vadd.f32 %v9051_v13, %v8580_v53 }
 0x525   :  { %19235 = vrot.lane.b32.xlu0 %v27998_v60, %s25458_s23  ;;  %v28185_v3 = vpop.f32.mrb[11].mxu0  ;;  %v28199_v0 = vpop.permute.xlu0 %15365 }
 0x526   :  { %30168 = vst [vmem:[#allocation31_spill] sm:$0xff] %v28199_v0  ;;  %v28201_v13 = vpop.permute.xlu1 %15343 }
 0x527   :  { %18700 = vperm.xlu1 %25394, %v85_v47   ;;  %30169 = vst [vmem:[#allocation28_spill] sm:$0xff] %v28201_v13 }
 0x529   :  { %19231 = vrot.lane.b32.xlu0 %v28014_v42, %s25458_s23  ;;  %v28209_v17 = vpop.permute.xlu0 %15837 }
 0x52a   :  { %30170 = vst [vmem:[#allocation8_spill] sm:$0xff] %v28209_v17  ;;  %v28211_v45 = vpop.permute.xlu1 %15359 }
 0x52b   :  { %19227 = vrot.lane.b32.xlu1 %v28034_v48, %s25458_s23  ;;  %30171 = vst [vmem:[#allocation18_spill] sm:$0xff] %v28211_v45 }
 0x52d   :  { %19239 = vrot.lane.b32.xlu0 %v28024_v26, %s25458_s23 }
 0x52e   :  { %v28223_v0 = vpop.permute.xlu1 %15355 }
 0x52f   :  { %19223 = vrot.lane.b32.xlu1 %v27870_v28, %s25458_s23  ;;  %30173 = vst [vmem:[#allocation48_spill] sm:$0xff] %v28223_v0 }
 0x531   :  { %19700 = vrot.lane.b32.xlu0 %v27940_v36, %s25459_s16  ;;  %v9586_v47 = vpop.f32.mrb[48].mxu1 }
 0x532   :  { %v24775_v53 = vpop.f32.mrb[49].mxu1  ;;  %v28233_v45 = vpop.permute.xlu1 %15363 }
 0x533   :  { %19233 = vrot.lane.b32.xlu1 %v28064_v31, %s25458_s23  ;;  %v28221_v53 = vpop.permute.xlu0 %15833  ;;  %30175 = vst [vmem:[#allocation40_spill] sm:$0xff] %v28233_v45 }
 0x534   :  { %30172 = vst [vmem:[#allocation19_spill] sm:$0xff] %v28221_v53 }
 0x535   :  { %19696 = vrot.lane.b32.xlu0 %v27963_v61, %s25459_s16 }
 0x536   :  { %v28243_v0 = vpop.permute.xlu1 %15835 }
 0x537   :  { %19229 = vrot.lane.b32.xlu1 %v27919_v49, %s25458_s23  ;;  %v28231_v43 = vpop.permute.xlu0 %15843  ;;  %30177 = vst [vmem:[#allocation50_spill] sm:$0xff] %v28243_v0 }
 0x538   :  { %30174 = vst [vmem:[#allocation36_spill] sm:$0xff] %v28231_v43 }
 0x539   :  { %19694 = vrot.lane.b32.xlu0 %v28215_v9, %s25459_s16 }
 0x53b   :  { %19237 = vrot.lane.b32.xlu1 %v27946_v19, %s25458_s23  ;;  %v28241_v53 = vpop.permute.xlu0 %15839 }
 0x53c   :  { %30176 = vst [vmem:[#allocation32_spill] sm:$0xff] %v28241_v53 }
 0x53d   :  { %19710 = vrot.lane.b32.xlu0 %v27998_v60, %s25459_s16 }
 0x53f   :  { %19241 = vrot.lane.b32.xlu1 %v28114_v44, %s25458_s23 }
 0x540   :  { %v10061_v17 = vpop.f32.mrb[50].mxu1 }
 0x541   :  { %19706 = vrot.lane.b32.xlu0 %v28014_v42, %s25459_s16  ;;  %v10062_v40 = vadd.f32 %v10061_v17, %v9586_v47  ;;  %v24780_v35 = vpop.f32.mrb[51].mxu1  ;;  %v28251_v17 = vpop.permute.xlu0 %15847 }
 0x542   :  { %30178 = vst [vmem:[#allocation4_spill] sm:$0xff] %v28251_v17  ;;  %v28253_v35 = vpop.permute.xlu1 %15831 }
 0x543   :  { %19702 = vrot.lane.b32.xlu1 %v28034_v48, %s25459_s16  ;;  %30179 = vst [vmem:[#allocation33_spill] sm:$0xff] %v28253_v35 }
 0x545   :  { %19714 = vrot.lane.b32.xlu0 %v28024_v26, %s25459_s16  ;;  %v28261_v0 = vpop.permute.xlu0 %15851 }
 0x546   :  { %30180 = vst [vmem:[#allocation30_spill] sm:$0xff] %v28261_v0  ;;  %v28263_v45 = vpop.permute.xlu1 %15829 }
 0x547   :  { %19698 = vrot.lane.b32.xlu1 %v27870_v28, %s25459_s16  ;;  %30181 = vst [vmem:[#allocation10_spill] sm:$0xff] %v28263_v45 }
 0x549   :  { %20175 = vrot.lane.b32.xlu0 %v27940_v36, %s25460_s17  ;;  %v28271_v17 = vpop.permute.xlu0 %16762 }
 0x54a   :  { %30182 = vst [vmem:[#allocation20_spill] sm:$0xff] %v28271_v17 }
 0x54b   :  { %19708 = vrot.lane.b32.xlu1 %v28064_v31, %s25459_s16 }
 0x54d   :  { %20171 = vrot.lane.b32.xlu0 %v27963_v61, %s25460_s17  ;;  %v28281_v45 = vpop.permute.xlu0 %16758 }
 0x54e   :  { %30184 = vst [vmem:[#allocation52_spill] sm:$0xff] %v28281_v45 }
 0x54f   :  { %19704 = vrot.lane.b32.xlu1 %v27919_v49, %s25459_s16 }
 0x550   :  { %v10536_v47 = vpop.f32.mrb[52].mxu1 }
 0x551   :  { %20169 = vrot.lane.b32.xlu0 %v28215_v9, %s25460_s17  ;;  %v10550_v53 = vadd.f32 %v10536_v47, %v10062_v40  ;;  %v24785_v43 = vpop.f32.mrb[53].mxu1  ;;  %v28273_v40 = vpop.permute.xlu1 %15845 }
 0x552   :  { %30183 = vst [vmem:[#allocation21_spill] sm:$0xff] %v28273_v40  ;;  %v28291_v17 = vpop.permute.xlu0 %16768 }
 0x553   :  { %19712 = vrot.lane.b32.xlu1 %v27946_v19, %s25459_s16  ;;  %30186 = vst [vmem:[#allocation41_spill] sm:$0xff] %v28291_v17 }
 0x555   :  { %20185 = vrot.lane.b32.xlu0 %v27998_v60, %s25460_s17  ;;  %v28283_v35 = vpop.permute.xlu1 %15841 }
 0x556   :  { %30185 = vst [vmem:[#allocation38_spill] sm:$0xff] %v28283_v35 }
 0x557   :  { %19716 = vrot.lane.b32.xlu1 %v28114_v44, %s25459_s16 }
 0x559   :  { %20181 = vrot.lane.b32.xlu0 %v28014_v42, %s25460_s17  ;;  %v28293_v40 = vpop.permute.xlu1 %15849 }
 0x55a   :  { %30187 = vst [vmem:[#allocation34_spill] sm:$0xff] %v28293_v40 }
 0x55b   :  { %20177 = vrot.lane.b32.xlu1 %v28034_v48, %s25460_s17 }
 0x55d   :  { %20189 = vrot.lane.b32.xlu0 %v28024_v26, %s25460_s17 }
 0x55f   :  { %20173 = vrot.lane.b32.xlu1 %v27870_v28, %s25460_s17  ;;  %v11022_v43 = vpop.f32.mrb[54].mxu1 }
 0x560   :  { %v11036_v47 = vadd.f32 %v11022_v43, %v10550_v53  ;;  %v24790_v0 = vpop.f32.mrb[55].mxu1  ;;  %v28303_v53 = vpop.permute.xlu1 %16760 }
 0x561   :  { %20661 = vrot.lane.b32.xlu0 %v27940_v36, %s25461_s19  ;;  %v28301_v0 = vpop.permute.xlu0 %16764  ;;  %30189 = vst [vmem:[#allocation5_spill] sm:$0xff] %v28303_v53 }
 0x562   :  { %30188 = vst [vmem:[#allocation54_spill] sm:$0xff] %v28301_v0 }
 0x563   :  { %20183 = vrot.lane.b32.xlu1 %v28064_v31, %s25460_s17 }
 0x564   :  { %v28313_v35 = vpop.permute.xlu1 %16756 }
 0x565   :  { %20657 = vrot.lane.b32.xlu0 %v27963_v61, %s25461_s19  ;;  %v28311_v40 = vpop.permute.xlu0 %16772  ;;  %30191 = vst [vmem:[#allocation22_spill] sm:$0xff] %v28313_v35 }
 0x566   :  { %30190 = vst [vmem:[#allocation13_spill] sm:$0xff] %v28311_v40 }
 0x567   :  { %20179 = vrot.lane.b32.xlu1 %v27919_v49, %s25460_s17 }
 0x569   :  { %20655 = vrot.lane.b32.xlu0 %v28215_v9, %s25461_s19  ;;  %v28321_v0 = vpop.permute.xlu0 %16776 }
 0x56a   :  { %30192 = vst [vmem:[#allocation11_spill] sm:$0xff] %v28321_v0 }
 0x56b   :  { %20187 = vrot.lane.b32.xlu1 %v27946_v19, %s25460_s17 }
 0x56d   :  { %20671 = vrot.lane.b32.xlu0 %v27998_v60, %s25461_s19  ;;  %v28331_v35 = vpop.permute.xlu0 %17248 }
 0x56e   :  { %v11461_v43 = vpop.f32.mrb[56].mxu1  ;;  %30194 = vst [vmem:[#allocation51_spill] sm:$0xff] %v28331_v35 }
 0x56f   :  { %20191 = vrot.lane.b32.xlu1 %v28114_v44, %s25460_s17  ;;  %v11475_v17 = vadd.f32 %v11461_v43, %v11036_v47  ;;  %v24795_v45 = vpop.f32.mrb[57].mxu1  ;;  %v28323_v47 = vpop.permute.xlu1 %16754 }
 0x570   :  { %30193 = vst [vmem:[#allocation24_spill] sm:$0xff] %v28323_v47 }
 0x571   :  { %20667 = vrot.lane.b32.xlu0 %v28014_v42, %s25461_s19  ;;  %v28341_v0 = vpop.permute.xlu0 %17244 }
 0x572   :  { %30196 = vst [vmem:[#allocation55_spill] sm:$0xff] %v28341_v0 }
 0x573   :  { %20663 = vrot.lane.b32.xlu1 %v28034_v48, %s25461_s19  ;;  %v28333_v53 = vpop.permute.xlu1 %16770 }
 0x574   :  { %30195 = vst [vmem:[#allocation53_spill] sm:$0xff] %v28333_v53 }
 0x575   :  { %20675 = vrot.lane.b32.xlu0 %v28024_v26, %s25461_s19 }
 0x577   :  { %20659 = vrot.lane.b32.xlu1 %v27870_v28, %s25461_s19  ;;  %v28343_v47 = vpop.permute.xlu1 %16766 }
 0x578   :  { %30197 = vst [vmem:[#allocation12_spill] sm:$0xff] %v28343_v47 }
 0x579   :  { %21586 = vrot.lane.b32.xlu0 %v27940_v36, %s25462_s20 }
 0x57b   :  { %20669 = vrot.lane.b32.xlu1 %v28064_v31, %s25461_s19 }
 0x57d   :  { %21582 = vrot.lane.b32.xlu0 %v27963_v61, %s25462_s20  ;;  %v11947_v45 = vpop.f32.mrb[58].mxu1 }
 0x57e   :  { %v11961_v43 = vadd.f32 %v11947_v45, %v11475_v17  ;;  %v24800_v40 = vpop.f32.mrb[59].mxu1  ;;  %v28351_v17 = vpop.permute.xlu0 %17254 }
 0x57f   :  { %20665 = vrot.lane.b32.xlu1 %v27919_v49, %s25461_s19  ;;  %30198 = vst [vmem:[#allocation6_spill] sm:$0xff] %v28351_v17  ;;  %v28353_v40 = vpop.permute.xlu1 %16774 }
 0x580   :  { %30199 = vst [vmem:[#allocation14_spill] sm:$0xff] %v28353_v40 }
 0x581   :  { %21580 = vrot.lane.b32.xlu0 %v28215_v9, %s25462_s20 }
 0x582   :  { %v28361_v35 = vpop.permute.xlu0 %17250 }
 0x583   :  { %20673 = vrot.lane.b32.xlu1 %v27946_v19, %s25461_s19  ;;  %30200 = vst [vmem:[#allocation9_spill] sm:$0xff] %v28361_v35  ;;  %v28363_v47 = vpop.permute.xlu1 %17246 }
 0x584   :  { %30201 = vst [vmem:[#allocation15_spill] sm:$0xff] %v28363_v47 }
 0x585   :  { %21596 = vrot.lane.b32.xlu0 %v27998_v60, %s25462_s20 }
 0x586   :  { %v28371_v17 = vpop.permute.xlu0 %17258 }
 0x587   :  { %20677 = vrot.lane.b32.xlu1 %v28114_v44, %s25461_s19  ;;  %30202 = vst [vmem:[#allocation42_spill] sm:$0xff] %v28371_v17 }
 0x589   :  { %21592 = vrot.lane.b32.xlu0 %v28014_v42, %s25462_s20 }
 0x58a   :  { %v28383_v47 = vpop.permute.xlu0 %17262 }
 0x58b   :  { %21588 = vrot.lane.b32.xlu1 %v28034_v48, %s25462_s20  ;;  %30204 = vst [vmem:[#allocation25_spill] sm:$0xff] %v28383_v47 }
 0x58c   :  { %v12433_v9 = vpop.f32.mrb[60].mxu1 }
 0x58d   :  { %21600 = vrot.lane.b32.xlu0 %v28024_v26, %s25462_s20  ;;  %v12447_v45 = vadd.f32 %v12433_v9, %v11961_v43  ;;  %v24805_v0 = vpop.f32.mrb[61].mxu1 }
 0x58e   :  { %v28373_v0 = vpop.permute.xlu1 %17242  ;;  %v28397_v13 = vpop.permute.xlu0 %17734 }
 0x58f   :  { %21584 = vrot.lane.b32.xlu1 %v27870_v28, %s25462_s20  ;;  %30203 = vst [vmem:[#allocation23_spill] sm:$0xff] %v28373_v0  ;;  %30206 = vst [vmem:[#allocation65_spill] sm:$0xff] %v28397_v13 }
 0x591   :  { %22071 = vrot.lane.b32.xlu0 %v28034_v48, %s25463_s21 }
 0x592   :  { %v28385_v40 = vpop.permute.xlu1 %17240 }
 0x593   :  { %21594 = vrot.lane.b32.xlu1 %v28064_v31, %s25462_s20  ;;  %30205 = vst [vmem:[#allocation37_spill] sm:$0xff] %v28385_v40 }
 0x595   :  { %22067 = vrot.lane.b32.xlu0 %v27870_v28, %s25463_s21 }
 0x596   :  { %v28399_v1 = vpop.permute.xlu1 %17256 }
 0x597   :  { %21590 = vrot.lane.b32.xlu1 %v27919_v49, %s25462_s20  ;;  %30207 = vst [vmem:[#allocation66_spill] sm:$0xff] %v28399_v1 }
 0x599   :  { %22065 = vrot.lane.b32.xlu0 %v27963_v61, %s25463_s21 }
 0x59b   :  { %v12919_v43 = vpop.f32.mrb[62].mxu1  ;;  %21598 = vrot.lane.b32.xlu1 %v27946_v19, %s25462_s20 }
 0x59c   :  { %v28381_v9 = vadd.f32 %v12919_v43, %v12447_v45  ;;  %v24810_v35 = vpop.f32.mrb[63].mxu1 }
 0x59d   :  { %22081 = vrot.lane.b32.xlu0 %v27946_v19, %s25463_s21 }
 0x59f   :  { %21602 = vrot.lane.b32.xlu1 %v28114_v44, %s25462_s20 }
 0x5a0   :  { %v13121_v17 = vpop.f32.mrb[44].mxu1  ;;  %v13050_v0 = vpop.f32.mrb[12].mxu0 }
 0x5a1   :  { %v13427_v53 = vadd.f32 %v28018_v22, %v13121_v17  ;;  %22077 = vrot.lane.b32.xlu0 %v28064_v31, %s25463_s21  ;;  %v13425_v45 = vadd.f32 %v28018_v22, %v13050_v0  ;;  %v13123_v35 = vpop.f32.mrb[45].mxu1  ;;  %v13052_v43 = vpop.f32.mrb[13].mxu0 }
 0x5a2   :  { %v13428_v47 = vadd.f32 %v28018_v22, %v13123_v35  ;;  %v13426_v40 = vadd.f32 %v28018_v22, %v13052_v43 }
 0x5a3   :  { %vm13438_vm8 = vcmp.ge.f32.partialorder %v13427_v53, 0.0  ;;  %v13449_v56 = vmul.f32 0.1, %v13427_v53  ;;  %v13447_v2 = vmul.f32 0.1, %v13425_v45  ;;  %22073 = vrot.lane.b32.xlu1 %v27919_v49, %s25463_s21  ;;  %vm13436_vm15 = vcmp.ge.f32.partialorder %v13425_v45, 0.0 }
 0x5a4   :  { %vm13439_vm11 = vcmp.ge.f32.partialorder %v13428_v47, 0.0  ;;  %v13450_v17 = vmul.f32 0.1, %v13428_v47  ;;  %vm13437_vm14 = vcmp.ge.f32.partialorder %v13426_v40, 0.0  ;;  %v13448_v0 = vmul.f32 0.1, %v13426_v40 }
 0x5a5   :  { %v13263_v50 = vpop.f32.mrb[46].mxu1  ;;  %22085 = vrot.lane.b32.xlu0 %v28114_v44, %s25463_s21  ;;  %v13192_v35 = vpop.f32.mrb[14].mxu0  ;;  %v13460_v6 = vsel %vm13438_vm8, %v13427_v53, %v13449_v56 }
 0x5a6   :  { %v13431_v43 = vadd.f32 %v28018_v22, %v13263_v50  ;;  %v13429_v13 = vadd.f32 %v28018_v22, %v13192_v35  ;;  %v13265_v1 = vpop.f32.mrb[47].mxu1  ;;  %v13194_v4 = vpop.f32.mrb[15].mxu0  ;;  %v13461_v54 = vsel %vm13439_vm11, %v13428_v47, %v13450_v17  ;;  %v13459_v41 = vsel %vm13437_vm14, %v13426_v40, %v13448_v0  ;;  %v28415_v50 = vld [vmem:[%s29856_s6 + $0x8] sm:$0xff] }
 0x5a7   :  { %v13432_v30 = vadd.f32 %v28018_v22, %v13265_v1  ;;  %v13430_v11 = vadd.f32 %v28018_v22, %v13194_v4  ;;  %24410 = vmatprep.subr.msk.mxu1 %vm13473_vm9, %v13461_v54  ;;  %24407 = vmatprep.subr.msk.mxu0 %vm13473_vm9, %v13459_v41  ;;  %v13458_v35 = vsel %vm13436_vm15, %v13425_v45, %v13447_v2  ;;  %v28421_v1 = vpop.permute.xlu0 %17730  ;;  %v28423_v54 = vpop.permute.xlu1 %17252 }
 0x5a8   :  { %vm13442_vm13 = vcmp.ge.f32.partialorder %v13431_v43, 0.0  ;;  %v13453_v47 = vmul.f32 0.1, %v13431_v43  ;;  %v13451_v40 = vmul.f32 0.1, %v13429_v13  ;;  %24411 = vmatpush1.msk.msra.mxu1 %vm13473_vm9, %v13460_v6  ;;  %22069 = vrot.lane.b32.xlu1 %v27940_v36, %s25463_s21  ;;  %30208 = vst [vmem:[#allocation67_spill] sm:$0xff] %v28421_v1  ;;  %v28430_v2 = vadd.f32 %v27928_v39, %v28142_v37 }
 0x5a9   :  { %30209 = vst [vmem:[#allocation68_spill] sm:$0xff] %v28423_v54  ;;  %vm13443_vm0 = vcmp.ge.f32.partialorder %v13432_v30, 0.0  ;;  %v13454_v4 = vmul.f32 0.1, %v13432_v30  ;;  %vm13441_vm3 = vcmp.ge.f32.partialorder %v13430_v11, 0.0  ;;  %22557 = vrot.lane.b32.xlu0 %v28034_v48, %s25464_s24  ;;  %24408 = vmatpush1.msk.msra.mxu0 %vm13473_vm9, %v13458_v35  ;;  %v28434_v6 = vadd.f32 %v27928_v39, %v28144_v21  ;;  %v13405_v41 = vpop.f32.mrb[64].mxu1 }
 0x5aa   :  { %v13452_v56 = vmul.f32 0.1, %v13430_v11  ;;  %vm13440_vm4 = vcmp.ge.f32.partialorder %v13429_v13, 0.0  ;;  %v13334_v53 = vpop.f32.mrb[16].mxu0  ;;  %24412 = vmatmul.mubr.msk.f32.vlgmr.msra.gmra.mrb[66].mxu1 %vm13469_vm12, %v28415_v50  ;;  %24409 = vmatmul.mubr.msk.f32.vlgmr.msra.gmra.mrb[18].mxu0 %vm13469_vm12, %v28415_v50  ;;  %v13419_v45 = vadd.f32 %v13405_v41, %v28381_v9  ;;  %v9074_v21 = vadd.f32 %v27928_v39, %v28148_v34  ;;  %v24815_v9 = vpop.f32.mrb[65].mxu1 }
 0x5ab   :  { %v13433_v17 = vadd.f32 %v28018_v22, %v13334_v53  ;;  %v13336_v0 = vpop.f32.mrb[17].mxu0  ;;  %v13465_v37 = vsel %vm13443_vm0, %v13432_v30, %v13454_v4  ;;  %13784 = vmatprep.mubr.f32.mxu1 %v30028_v59  ;;  %v13464_v1 = vsel %vm13442_vm13, %v13431_v43, %v13453_v47  ;;  %v9072_v41 = vadd.f32 %v27928_v39, %v28150_v24 }
 0x5ac   :  { %v13463_v35 = vsel %vm13441_vm3, %v13430_v11, %v13452_v56  ;;  %v13434_v54 = vadd.f32 %v28018_v22, %v13336_v0  ;;  %24416 = vmatprep.subr.msk.mxu1 %vm13473_vm9, %v13465_v37  ;;  %v13462_v30 = vsel %vm13440_vm4, %v13429_v13, %v13451_v40  ;;  %v13435_v11 = vadd.f32 %v28018_v22, %v13419_v45  ;;  %v28465_v22 = vpop.permute.xlu1 %17260  ;;  %v28472_v40 = vpop.permute.xlu0 %17740 }
 0x5ad   :  { %24413 = vmatprep.subr.msk.mxu0 %vm13473_vm9, %v13463_v35  ;;  %24417 = vmatpush1.msk.msra.mxu1 %vm13473_vm9, %v13464_v1  ;;  %v9078_v34 = vadd.f32 %v27928_v39, %v28164_v38  ;;  %v13455_v43 = vmul.f32 0.1, %v13433_v17  ;;  %v9076_v24 = vadd.f32 %v27928_v39, %v28168_v55  ;;  %vm13444_vm7 = vcmp.ge.f32.partialorder %v13433_v17, 0.0 }
 0x5ae   :  { %22079 = vrot.lane.b32.xlu1 %v27998_v60, %s25463_s21  ;;  %vm13445_vm5 = vcmp.ge.f32.partialorder %v13434_v54, 0.0  ;;  %v13456_v47 = vmul.f32 0.1, %v13434_v54  ;;  %22553 = vrot.lane.b32.xlu0 %v27870_v28, %s25464_s24  ;;  %vm13446_vm6 = vcmp.ge.f32.partialorder %v13435_v11, 0.0  ;;  %v13457_v13 = vmul.f32 0.1, %v13435_v11 }
 0x5af   :  { %24414 = vmatpush1.msk.msra.mxu0 %vm13473_vm9, %v13462_v30  ;;  %13713 = vmatprep.mubr.f32.mxu0 %v30028_v59  ;;  %vm9084_vm8 = vcmp.ge.f32.partialorder %v28430_v2, 0.0  ;;  %v9095_v38 = vmul.f32 0.1, %v28430_v2  ;;  %v9096_v28 = vmul.f32 0.1, %v9074_v21  ;;  %vm9085_vm11 = vcmp.ge.f32.partialorder %v9074_v21, 0.0 }
 0x5b0   :  { %24418 = vmatmul.mubr.msk.f32.vlgmr.msra.gmra.mrb[68].mxu1 %vm13469_vm12, %v28415_v50  ;;  %24415 = vmatmul.mubr.msk.f32.vlgmr.msra.gmra.mrb[20].mxu0 %vm13469_vm12, %v28415_v50  ;;  %v13467_v55 = vsel %vm13445_vm5, %v13434_v54, %v13456_v47  ;;  %v9093_v1 = vmul.f32 0.1, %v28434_v6  ;;  %v9094_v4 = vmul.f32 0.1, %v9072_v41  ;;  %v13468_v56 = vsel %vm13446_vm6, %v13435_v11, %v13457_v13  ;;  %v28504_v35 = vpop.permute.xlu1 %17732  ;;  %v28513_v11 = vpop.permute.xlu0 %17736 }
 0x5b1   :  { %24816 = vmatprep.subr.mxu1 %v30028_v59  ;;  %24419 = vmatprep.subr.msk.mxu0 %vm13473_vm9, %v13467_v55  ;;  %vm9083_vm14 = vcmp.ge.f32.partialorder %v9072_v41, 0.0  ;;  %v9077_v53 = vadd.f32 %v27928_v39, %v28156_v18  ;;  %v9100_v45 = vmul.f32 0.1, %v9078_v34  ;;  %v13466_v0 = vsel %vm13444_vm7, %v13433_v17, %v13455_v43 }
 0x5b2   :  { %24818 = vmatprep.mubr.msk.f32.mxu1 %vm25436_vm2, %v30028_v59  ;;  %24817 = vmatpush3.msk.msra.mxu1 %vm13473_vm9, %v13468_v56  ;;  %vm9082_vm15 = vcmp.ge.f32.partialorder %v28434_v6, 0.0  ;;  %v9075_v54 = vadd.f32 %v27928_v39, %v28162_v8  ;;  %vm9089_vm13 = vcmp.ge.f32.partialorder %v9078_v34, 0.0  ;;  %v9098_v37 = vmul.f32 0.1, %v9076_v24 }
 0x5b3   :  { %22075 = vrot.lane.b32.xlu1 %v28014_v42, %s25463_s21  ;;  %22551 = vrot.lane.b32.xlu0 %v27963_v61, %s25464_s24  ;;  %vm9087_vm0 = vcmp.ge.f32.partialorder %v9076_v24, 0.0  ;;  %v9080_v18 = vadd.f32 %v27928_v39, %v28185_v3  ;;  %v9107_v17 = vsel %vm9085_vm11, %v9074_v21, %v9096_v28  ;;  %v9106_v8 = vsel %vm9084_vm8, %v28430_v2, %v9095_v38 }
 0x5b4   :  { %24420 = vmatpush1.msk.msra.mxu0 %vm13473_vm9, %v13466_v0  ;;  %13855 = vmatprep.mubr.f32.mxu0 %v30028_v59  ;;  %v9105_v3 = vsel %vm9083_vm14, %v9072_v41, %v9094_v4  ;;  %v9104_v9 = vsel %vm9082_vm15, %v28434_v6, %v9093_v1  ;;  %v9099_v30 = vmul.f32 0.1, %v9077_v53  ;;  %v9111_v2 = vsel %vm9089_vm13, %v9078_v34, %v9100_v45  ;;  %v87_v41 = vld [vmem:[%s29856_s6] sm:$0xff]  ;;  %v28540_v13 = vpop.permute.xlu0 %17744 }
 0x5b5   :  { %24819 = vmatmul.mubr.msk.f32.vlgmr.msra.gmra.mrb[70].mxu1 %vm13469_vm12, %v28415_v50  ;;  %24427 = vmatprep.subr.msk.mxu1 %vm13473_vm9, %v9107_v17  ;;  %vm9088_vm3 = vcmp.ge.f32.partialorder %v9077_v53, 0.0  ;;  %v9097_v21 = vmul.f32 0.1, %v9075_v54  ;;  %v9109_v6 = vsel %vm9087_vm0, %v9076_v24, %v9098_v37  ;;  %vm9086_vm4 = vcmp.ge.f32.partialorder %v9075_v54, 0.0  ;;  %v30212_v17 = vld [vmem:[#allocation49_spill] sm:$0xff] }
 0x5b6   :  { %24421 = vmatmul.mubr.msk.f32.vlgmr.msra.gmra.mrb[22].mxu0 %vm13469_vm12, %v28415_v50  ;;  %24424 = vmatprep.subr.msk.mxu0 %vm13473_vm9, %v9105_v3  ;;  %v9081_v50 = vadd.f32 %v27928_v39, %v28183_v7  ;;  %v9079_v43 = vadd.f32 %v27928_v39, %v28177_v33  ;;  %v9102_v34 = vmul.f32 0.1, %v9080_v18  ;;  %vm9091_vm5 = vcmp.ge.f32.partialorder %v9080_v18, 0.0  ;;  %v28536_v33 = vpop.permute.xlu1 %17728 }
 0x5b7   :  { %24428 = vmatpush1.msk.msra.mxu1 %vm13473_vm9, %v9106_v8  ;;  %24425 = vmatpush1.msk.msra.mxu0 %vm13473_vm9, %v9104_v9  ;;  %v9110_v7 = vsel %vm9088_vm3, %v9077_v53, %v9099_v30  ;;  %v9108_v47 = vsel %vm9086_vm4, %v9075_v54, %v9097_v21  ;;  %vm14417_vm8 = vcmask 654336   ;;  %vm14892_vm11 = vcmask 678912   ;;  %v30213_v9 = vld [vmem:[#allocation35_spill] sm:$0xff] }
 0x5b8   :  { %24433 = vmatprep.subr.msk.mxu1 %vm13473_vm9, %v9111_v2  ;;  %14103 = vmatprep.mubr.f32.mxu1 %v30028_v59  ;;  %v9103_v24 = vmul.f32 0.1, %v9081_v50  ;;  %vm9092_vm6 = vcmp.ge.f32.partialorder %v9081_v50, 0.0  ;;  %v9101_v39 = vmul.f32 0.1, %v9079_v43  ;;  %vm9090_vm7 = vcmp.ge.f32.partialorder %v9079_v43, 0.0  ;;  %v28563_v56 = vpop.permute.xlu0 %17748 }
 0x5b9   :  { %24430 = vmatprep.subr.msk.mxu0 %vm13473_vm9, %v9109_v6  ;;  %22083 = vrot.lane.b32.xlu1 %v28024_v26, %s25463_s21  ;;  %v14421_v55 = vsel %vm14417_vm8, %v28032_v32, %v27961_v51  ;;  %v14419_v4 = vsel %vm14417_vm8, %v28044_v52, %v27986_v25  ;;  %v14420_v53 = vsel %vm14417_vm8, %v27986_v25, %v28032_v32  ;;  %v66_v25 = vld [vmem:[%s29854_s4 + $0x4c] sm:$0xf]  ;;  %vm15367_vm14 = vcmask 629760   ;;  %v30217_v6 = vld [vmem:[#allocation29_spill] sm:$0xff] }
 0x5ba   :  { %22567 = vrot.lane.b32.xlu0 %v27946_v19, %s25464_s24  ;;  %14032 = vmatprep.mubr.f32.mxu0 %v30028_v59  ;;  %v9113_v19 = vsel %vm9091_vm5, %v9080_v18, %v9102_v34  ;;  %v9114_v38 = vsel %vm9092_vm6, %v9081_v50, %v9103_v24  ;;  %v9112_v28 = vsel %vm9090_vm7, %v9079_v43, %v9101_v39  ;;  %v28557_v1 = vpop.permute.xlu1 %17726  ;;  %v30211_v18 = vld [vmem:[#allocation17_spill] sm:$0xff]  ;;  %v30214_v30 = vld [vmem:[#allocation27_spill] sm:$0xff]  ;;  %v30218_v43 = vld [vmem:[#allocation16_spill] sm:$0xff]  ;;  %vm15853_vm15 = vcmask 89088  }
 0x5bb   :  { %24429 = vmatmul.mubr.msk.f32.vlgmr.msra.gmra.mrb[66].mxu1 %vm13469_vm12, %v87_v41  ;;  %24426 = vmatmul.mubr.msk.f32.vlgmr.msra.gmra.mrb[18].mxu0 %vm13469_vm12, %v87_v41  ;;  %v14418_v45 = vsel %vm14417_vm8, %v28056_v46, %v28044_v52  ;;  %v14423_v0 = vsel %vm14417_vm8, %v28028_v12, %v28078_v27  ;;  %v14424_v46 = vsel %vm14417_vm8, %v28078_v27, %v28009_v14  ;;  %v30219_v34 = vld [vmem:[#allocation3_spill] sm:$0xff]  ;;  %v30220_v39 = vld [vmem:[#allocation28_spill] sm:$0xff]  ;;  %vm16778_vm13 = vcmask 39936  }
 0x5bc   :  { %24434 = vmatpush1.msk.msra.mxu1 %vm13473_vm9, %v9110_v7  ;;  %24431 = vmatpush1.msk.msra.mxu0 %vm13473_vm9, %v9108_v47  ;;  %v28592_v52 = vpop.permute.xlu0 %18220  ;;  %v14422_v54 = vsel %vm14417_vm8, %v27961_v51, %v28028_v12  ;;  %v14428_v12 = vsel %vm14417_vm8, %v28086_v29, %v28052_v58  ;;  %v14896_v27 = vsel %vm14892_vm11, %v28096_v16, %v28062_v23  ;;  %v25423_v24 = vld [vmem:[#allocation2 + $0x28] sm:$0xff]  ;;  %vm17264_vm0 = vcmask 547840  }
 0x5bd   :  { %14245 = vmatprep.mubr.f32.mxu1 %v30028_v59  ;;  %24436 = vmatprep.subr.msk.mxu0 %vm13473_vm9, %v9113_v19  ;;  %v14894_v37 = vsel %vm14892_vm11, %v28106_v15, %v28072_v20  ;;  %v14895_v58 = vsel %vm14892_vm11, %v28072_v20, %v28096_v16  ;;  %v14898_v8 = vsel %vm14892_vm11, %v30212_v17, %v30211_v18  ;;  %v65_v20 = vld [vmem:[%s29854_s4 + $0x48] sm:$0xf]  ;;  %vm17750_vm3 = vcmask 523264  }
 0x5be   :  { %24821 = vmatprep.subr.mxu1 %v30028_v59  ;;  %22087 = vrot.lane.b32.xlu1 %v28046_v57, %s25463_s21  ;;  %v28589_v32 = vpop.permute.xlu1 %17742  ;;  %v25422_v16 = vld [vmem:[#allocation2 + $0x48] sm:$0xff]  ;;  %v14902_v2 = vsel %vm14892_vm11, %v30214_v30, %v30213_v9  ;;  %v14901_v50 = vsel %vm14892_vm11, %v28128_v5, %v30214_v30  ;;  %v15369_v7 = vsel %vm15367_vm14, %v30219_v34, %v30218_v43  ;;  %vm18236_vm4 = vcmask 498688  }
 0x5bf   :  { %22563 = vrot.lane.b32.xlu0 %v28064_v31, %s25464_s24  ;;  %14174 = vmatprep.mubr.f32.mxu0 %v30028_v59  ;;  %v15368_v19 = vsel %vm15367_vm14, %v30220_v39, %v30219_v34  ;;  %v25427_v34 = vld [vmem:[#allocation2 + $0x50] sm:$0xff] }
 0x5c0   :  { %24435 = vmatmul.mubr.msk.f32.vlgmr.msra.gmra.mrb[68].mxu1 %vm13469_vm12, %v87_v41  ;;  %24432 = vmatmul.mubr.msk.f32.vlgmr.msra.gmra.mrb[20].mxu0 %vm13469_vm12, %v87_v41  ;;  %v28617_v51 = vpop.permute.xlu0 %18216  ;;  %v30238_v39 = vld [vmem:[#allocation4_spill] sm:$0xff] }
 0x5c1   :  { %24822 = vmatpush3.msk.msra.mxu1 %vm13473_vm9, %v9114_v38  ;;  %24437 = vmatpush1.msk.msra.mxu0 %vm13473_vm9, %v9112_v28  ;;  %v30221_v38 = vld [vmem:[#allocation18_spill] sm:$0xff]  ;;  %v30222_v28 = vld [vmem:[#allocation44_spill] sm:$0xff] }
 0x5c2   :  { %14514 = vmatprep.subr.mxu1 %v14421_v55  ;;  %14443 = vmatprep.subr.mxu0 %v14419_v4  ;;  %v15375_v55 = vsel %vm15367_vm14, %v30222_v28, %v30221_v38  ;;  %v30223_v4 = vld [vmem:[#allocation48_spill] sm:$0xff] }
 0x5c3   :  { %24823 = vmatprep.mubr.msk.f32.mxu1 %vm25436_vm2, %v30028_v59  ;;  %22559 = vrot.lane.b32.xlu1 %v27919_v49, %s25464_s24  ;;  %v14425_v49 = vsel %vm14417_vm8, %v28009_v14, %v28068_v10  ;;  %v25421_v14 = vld [vmem:[#allocation2 + $0x10] sm:$0xff] }
 0x5c4   :  { %22571 = vrot.lane.b32.xlu0 %v28114_v44, %s25464_s24  ;;  %14316 = vmatprep.mubr.f32.mxu0 %v30028_v59 }
 0x5c5   :  { %24824 = vmatmul.mubr.msk.f32.vlgmr.msra.gmra.mrb[72].mxu1 %vm13469_vm12, %v87_v41  ;;  %24438 = vmatmul.mubr.msk.f32.vlgmr.msra.gmra.mrb[22].mxu0 %vm13469_vm12, %v87_v41 }
 0x5c6   :  { %14515 = vmatpush1.msra.mxu1 %v14420_v53  ;;  %14444 = vmatpush1.msra.mxu0 %v14418_v45  ;;  %v30224_v53 = vld [vmem:[#allocation39_spill] sm:$0xff] }
 0x5c7   :  { %14656 = vmatprep.subr.mxu1 %v14425_v49  ;;  %14585 = vmatprep.subr.mxu0 %v14423_v0  ;;  %v15373_v45 = vsel %vm15367_vm14, %v30224_v53, %v30223_v4  ;;  %v67_v49 = vld [vmem:[%s29854_s4 + $0x50] sm:$0xf] }
 0x5c8   :  { %14578 = vmatprep.mubr.f32.mxu1 %v30028_v59  ;;  %22555 = vrot.lane.b32.xlu1 %v27940_v36, %s25464_s24  ;;  %v14427_v36 = vsel %vm14417_vm8, %v28040_v63, %v28086_v29  ;;  %v28650_v29 = vpop.permute.xlu0 %18226 }
 0x5c9   :  { %23043 = vrot.lane.b32.xlu0 %v28034_v48, %s25465_s13  ;;  %14507 = vmatprep.mubr.f32.mxu0 %v30028_v59  ;;  %v28612_v48 = vpop.permute.xlu1 %17738 }
 0x5ca   :  { %24442 = vmatmul.mubr.msk.f32.vlgmr.msra.gmra.mrb[74].mxu1 %vm163_vm1, %v66_v25  ;;  %24441 = vmatmul.mubr.msk.f32.vlgmr.msra.gmra.mrb[24].mxu0 %vm163_vm1, %v66_v25 }
 0x5cb   :  { %14657 = vmatpush1.msra.mxu1 %v14424_v46  ;;  %14586 = vmatpush1.msra.mxu0 %v14422_v54  ;;  %v25424_v46 = vld [vmem:[#allocation2 + $0x18] sm:$0xff]  ;;  %v15374_v54 = vsel %vm15367_vm14, %v30223_v4, %v30222_v28  ;;  %v25428_v28 = vld [vmem:[#allocation2 + $0x60] sm:$0xff] }
 0x5cc   :  { %14720 = vmatprep.mubr.f32.mxu1 %v30028_v59  ;;  %14727 = vmatprep.subr.mxu0 %v14427_v36  ;;  %v28677_v3 = vpop.permute.xlu0 %18222 }
 0x5cd   :  { %24826 = vmatprep.subr.mxu1 %v30028_v59  ;;  %22565 = vrot.lane.b32.xlu1 %v27998_v60, %s25464_s24  ;;  %v14426_v60 = vsel %vm14417_vm8, %v28068_v10, %v28040_v63  ;;  %v28640_v63 = vpop.permute.xlu1 %17746  ;;  %v14893_v10 = vsel %vm14892_vm11, %v28118_v62, %v28106_v15 }
 0x5ce   :  { %23039 = vrot.lane.b32.xlu0 %v25421_v14, %s25465_s13  ;;  %14649 = vmatprep.mubr.f32.mxu0 %v30028_v59  ;;  %v30225_v14 = vld [vmem:[#allocation40_spill] sm:$0xff] }
 0x5cf   :  { %24444 = vmatmul.mubr.msk.f32.vlgmr.msra.gmra.mrb[76].mxu1 %vm163_vm1, %v66_v25  ;;  %24443 = vmatmul.mubr.msk.f32.vlgmr.msra.gmra.mrb[26].mxu0 %vm163_vm1, %v66_v25 }
 0x5d0   :  { %24827 = vmatpush3.msra.mxu1 %v14428_v12  ;;  %14728 = vmatpush1.msra.mxu0 %v14426_v60  ;;  %v28705_v47 = vpop.permute.xlu0 %18230  ;;  %v30226_v12 = vld [vmem:[#allocation46_spill] sm:$0xff] }
 0x5d1   :  { %14989 = vmatprep.subr.mxu1 %v14896_v27  ;;  %14918 = vmatprep.subr.mxu0 %v14894_v37  ;;  %v28671_v62 = vpop.permute.xlu1 %18218  ;;  %v15377_v60 = vsel %vm15367_vm14, %v30226_v12, %v30225_v14  ;;  %v25425_v37 = vld [vmem:[#allocation2 + $0x40] sm:$0xff] }
 0x5d2   :  { %24828 = vmatprep.mubr.msk.f32.mxu1 %vm25436_vm2, %v30028_v59  ;;  %22561 = vrot.lane.b32.xlu1 %v28014_v42, %s25464_s24 }
 0x5d3   :  { %23037 = vrot.lane.b32.xlu0 %v27963_v61, %s25465_s13  ;;  %14791 = vmatprep.mubr.f32.mxu0 %v30028_v59  ;;  %v30210_v61 = vld [vmem:[#allocation47_spill] sm:$0xff] }
 0x5d4   :  { %24829 = vmatmul.mubr.msk.f32.vlgmr.msra.gmra.mrb[78].mxu1 %vm163_vm1, %v66_v25  ;;  %24445 = vmatmul.mubr.msk.f32.vlgmr.msra.gmra.mrb[28].mxu0 %vm163_vm1, %v66_v25  ;;  %v14900_v42 = vsel %vm14892_vm11, %v30210_v61, %v28128_v5  ;;  %v14899_v15 = vsel %vm14892_vm11, %v30211_v18, %v30210_v61  ;;  %v15370_v5 = vsel %vm15367_vm14, %v30218_v43, %v30217_v6  ;;  %v28736_v25 = vpop.permute.xlu0 %18234  ;;  %v30229_v18 = vld [vmem:[#allocation50_spill] sm:$0xff]  ;;  %v68_v43 = vld [vmem:[%s29854_s4 + $0x54] sm:$0xf] }
 0x5d5   :  { %14990 = vmatpush1.msra.mxu1 %v14895_v58  ;;  %14919 = vmatpush1.msra.mxu0 %v14893_v10  ;;  %v28700_v41 = vpop.permute.xlu1 %18214  ;;  %v30227_v58 = vld [vmem:[#allocation31_spill] sm:$0xff]  ;;  %v15376_v61 = vsel %vm15367_vm14, %v30221_v38, %v30226_v12  ;;  %v30244_v12 = vld [vmem:[#allocation60_spill] sm:$0xff] }
 0x5d6   :  { %15131 = vmatprep.subr.mxu1 %v14900_v42  ;;  %15060 = vmatprep.subr.mxu0 %v14898_v8  ;;  %v15378_v10 = vsel %vm15367_vm14, %v30225_v14, %v30227_v58  ;;  %v30228_v42 = vld [vmem:[#allocation8_spill] sm:$0xff]  ;;  %v30230_v8 = vld [vmem:[#allocation19_spill] sm:$0xff]  ;;  %v69_v14 = vld [vmem:[%s29854_s4 + $0x58] sm:$0xf] }
 0x5d7   :  { %15053 = vmatprep.mubr.f32.mxu1 %v30028_v59  ;;  %22569 = vrot.lane.b32.xlu1 %v28024_v26, %s25464_s24  ;;  %v14897_v26 = vsel %vm14892_vm11, %v28062_v23, %v30212_v17  ;;  %v30215_v23 = vld [vmem:[#allocation26_spill] sm:$0xff]  ;;  %v15857_v17 = vsel %vm15853_vm15, %v30229_v18, %v30228_v42  ;;  %v30247_v58 = vld [vmem:[#allocation63_spill] sm:$0xff] }
 0x5d8   :  { %23053 = vrot.lane.b32.xlu0 %v25422_v16, %s25465_s13  ;;  %14982 = vmatprep.mubr.f32.mxu0 %v30028_v59  ;;  %v14903_v21 = vsel %vm14892_vm11, %v30213_v9, %v30215_v23  ;;  %v30232_v9 = vld [vmem:[#allocation10_spill] sm:$0xff]  ;;  %v30233_v23 = vld [vmem:[#allocation21_spill] sm:$0xff] }
 0x5d9   :  { %24448 = vmatmul.mubr.msk.f32.vlgmr.msra.gmra.mrb[74].mxu1 %vm163_vm1, %v65_v20  ;;  %24447 = vmatmul.mubr.msk.f32.vlgmr.msra.gmra.mrb[24].mxu0 %vm163_vm1, %v65_v20  ;;  %v28733_v0 = vpop.permute.xlu1 %18212  ;;  %v15862_v4 = vsel %vm15853_vm15, %v30233_v23, %v30238_v39 }
 0x5da   :  { %15132 = vmatpush1.msra.mxu1 %v14899_v15  ;;  %15061 = vmatpush1.msra.mxu0 %v14897_v26  ;;  %v25426_v15 = vld [vmem:[#allocation2 + $0x30] sm:$0xff]  ;;  %v15856_v26 = vsel %vm15853_vm15, %v30230_v8, %v30229_v18 }
 0x5db   :  { %15195 = vmatprep.mubr.f32.mxu1 %v30028_v59  ;;  %15202 = vmatprep.subr.mxu0 %v14902_v2  ;;  %v30251_v18 = vld [vmem:[#allocation20_spill] sm:$0xff] }
 0x5dc   :  { %24831 = vmatprep.subr.mxu1 %v30028_v59  ;;  %22573 = vrot.lane.b32.xlu1 %v28046_v57, %s25464_s24  ;;  %v30216_v57 = vld [vmem:[#allocation7_spill] sm:$0xff] }
 0x5dd   :  { %23049 = vrot.lane.b32.xlu0 %v28064_v31, %s25465_s13  ;;  %15124 = vmatprep.mubr.f32.mxu0 %v30028_v59  ;;  %v15371_v31 = vsel %vm15367_vm14, %v30217_v6, %v30216_v57  ;;  %v15372_v36 = vsel %vm15367_vm14, %v30216_v57, %v30224_v53  ;;  %v28753_v27 = vpop.permute.xlu1 %18228  ;;  %v30235_v57 = vld [vmem:[#allocation38_spill] sm:$0xff]  ;;  %v30236_v6 = vld [vmem:[#allocation32_spill] sm:$0xff] }
 0x5de   :  { %24450 = vmatmul.mubr.msk.f32.vlgmr.msra.gmra.mrb[76].mxu1 %vm163_vm1, %v65_v20  ;;  %24449 = vmatmul.mubr.msk.f32.vlgmr.msra.gmra.mrb[26].mxu0 %vm163_vm1, %v65_v20  ;;  %v91_v53 = vld [vmem:[%s29857_s7] sm:$0xff] }
 0x5df   :  { %24832 = vmatpush3.msra.mxu1 %v14903_v21  ;;  %15203 = vmatpush1.msra.mxu0 %v14901_v50  ;;  %v30234_v21 = vld [vmem:[#allocation36_spill] sm:$0xff] }
 0x5e0   :  { %15464 = vmatprep.subr.mxu1 %v15371_v31  ;;  %15393 = vmatprep.subr.mxu0 %v15369_v7  ;;  %v15861_v50 = vsel %vm15853_vm15, %v30234_v21, %v30233_v23  ;;  %v15859_v31 = vsel %vm15853_vm15, %v30236_v6, %v30235_v57  ;;  %v15860_v7 = vsel %vm15853_vm15, %v30235_v57, %v30234_v21  ;;  %v30256_v23 = vld [vmem:[#allocation53_spill] sm:$0xff]  ;;  %v30258_v57 = vld [vmem:[#allocation12_spill] sm:$0xff] }
 0x5e1   :  { %24833 = vmatprep.mubr.msk.f32.mxu1 %vm25436_vm2, %v30028_v59  ;;  %23045 = vrot.lane.b32.xlu1 %v25423_v24, %s25465_s13  ;;  %v28782_v2 = vpop.permute.xlu1 %18224  ;;  %v15858_v24 = vsel %vm15853_vm15, %v30228_v42, %v30236_v6  ;;  %v30250_v42 = vld [vmem:[#allocation64_spill] sm:$0xff]  ;;  %v30257_v21 = vld [vmem:[#allocation41_spill] sm:$0xff]  ;;  %v30259_v6 = vld [vmem:[#allocation54_spill] sm:$0xff] }
 0x5e2   :  { %23057 = vrot.lane.b32.xlu0 %v28114_v44, %s25465_s13  ;;  %15266 = vmatprep.mubr.f32.mxu0 %v30028_v59  ;;  %v86_v44 = vld [vmem:[%s29855_s5 + $0xc] sm:$0xf] }
 0x5e3   :  { %24834 = vmatmul.mubr.msk.f32.vlgmr.msra.gmra.mrb[80].mxu1 %vm163_vm1, %v65_v20  ;;  %24451 = vmatmul.mubr.msk.f32.vlgmr.msra.gmra.mrb[28].mxu0 %vm163_vm1, %v65_v20  ;;  %v30231_v20 = vld [vmem:[#allocation33_spill] sm:$0xff] }
 0x5e4   :  { %15465 = vmatpush1.msra.mxu1 %v15370_v5  ;;  %15394 = vmatpush1.msra.mxu0 %v15368_v19  ;;  %v15855_v16 = vsel %vm15853_vm15, %v30231_v20, %v30230_v8  ;;  %v15854_v30 = vsel %vm15853_vm15, %v30232_v9, %v30231_v20  ;;  %v30237_v5 = vld [vmem:[#allocation34_spill] sm:$0xff]  ;;  %v30253_v20 = vld [vmem:[#allocation52_spill] sm:$0xff] }
 0x5e5   :  { %15606 = vmatprep.subr.mxu1 %v15375_v55  ;;  %15535 = vmatprep.subr.mxu0 %v15373_v45  ;;  %v15863_v19 = vsel %vm15853_vm15, %v30238_v39, %v30237_v5  ;;  %v28808_v38 = vpop.permute.xlu1 %18232  ;;  %v30239_v55 = vld [vmem:[#allocation30_spill] sm:$0xff]  ;;  %v30240_v45 = vld [vmem:[#allocation56_spill] sm:$0xff] }
 0x5e6   :  { %15528 = vmatprep.mubr.f32.mxu1 %v30028_v59  ;;  %23041 = vrot.lane.b32.xlu1 %v25424_v46, %s25465_s13 }
 0x5e7   :  { %23525 = vperm.xlu0 %25393, %v86_v44   ;;  %15457 = vmatprep.mubr.f32.mxu0 %v30028_v59  ;;  %v15864_v44 = vsel %vm15853_vm15, %v30237_v5, %v30239_v55  ;;  %v30261_v5 = vld [vmem:[#allocation13_spill] sm:$0xff] }
 0x5e8   :  { %24454 = vmatmul.mubr.msk.f32.vlgmr.msra.gmra.mrb[74].mxu1 %vm163_vm1, %v67_v49  ;;  %24453 = vmatmul.mubr.msk.f32.vlgmr.msra.gmra.mrb[24].mxu0 %vm163_vm1, %v67_v49  ;;  %v16787_v55 = vsel %vm16778_vm13, %v30256_v23, %v30261_v5 }
 0x5e9   :  { %15607 = vmatpush1.msra.mxu1 %v15374_v54  ;;  %15536 = vmatpush1.msra.mxu0 %v15372_v36  ;;  %v28829_v46 = vpop.permute.xlu1 %18700  ;;  %v30242_v54 = vld [vmem:[#allocation58_spill] sm:$0xff]  ;;  %v30243_v36 = vld [vmem:[#allocation59_spill] sm:$0xff] }
 0x5ea   :  { %15670 = vmatprep.mubr.f32.mxu1 %v30028_v59  ;;  %15677 = vmatprep.subr.mxu0 %v15377_v60  ;;  %v30245_v60 = vld [vmem:[#allocation61_spill] sm:$0xff] }
 0x5eb   :  { %24836 = vmatprep.subr.mxu1 %v30028_v59  ;;  %23051 = vrot.lane.b32.xlu1 %v25425_v37, %s25465_s13  ;;  %v30246_v37 = vld [vmem:[#allocation62_spill] sm:$0xff] }
 0x5ec   :  { %15599 = vmatprep.mubr.f32.mxu0 %v30028_v59  ;;  %24456 = vmatmul.mubr.msk.f32.vlgmr.msra.gmra.mrb[76].mxu1 %vm163_vm1, %v67_v49 }
 0x5ed   :  { %24455 = vmatmul.mubr.msk.f32.vlgmr.msra.gmra.mrb[26].mxu0 %vm163_vm1, %v67_v49  ;;  %24837 = vmatpush3.msra.mxu1 %v15378_v10  ;;  %v30248_v10 = vld [vmem:[#allocation43_spill] sm:$0xff] }
 0x5ee   :  { %15678 = vmatpush1.msra.mxu0 %v15376_v61  ;;  %15950 = vmatprep.subr.mxu1 %v15857_v17  ;;  %v30249_v61 = vld [vmem:[#allocation45_spill] sm:$0xff] }
 0x5ef   :  { %15879 = vmatprep.subr.mxu0 %v15855_v16  ;;  %24838 = vmatprep.mubr.msk.f32.mxu1 %vm25436_vm2, %v30028_v59  ;;  %v30252_v17 = vld [vmem:[#allocation5_spill] sm:$0xff]  ;;  %v30254_v16 = vld [vmem:[#allocation22_spill] sm:$0xff] }
 0x5f0   :  { %23047 = vrot.lane.b32.xlu1 %v25426_v15, %s25465_s13  ;;  %15741 = vmatprep.mubr.f32.mxu0 %v30028_v59  ;;  %v16782_v8 = vsel %vm16778_vm13, %v30252_v17, %v30251_v18  ;;  %v16780_v15 = vsel %vm16778_vm13, %v30254_v16, %v30253_v20 }
 0x5f1   :  { %24839 = vmatmul.mubr.msk.f32.vlgmr.msra.gmra.mrb[82].mxu1 %vm163_vm1, %v67_v49  ;;  %24457 = vmatmul.mubr.msk.f32.vlgmr.msra.gmra.mrb[28].mxu0 %vm163_vm1, %v67_v49  ;;  %v30241_v49 = vld [vmem:[#allocation57_spill] sm:$0xff] }
 0x5f2   :  { %15951 = vmatpush1.msra.mxu1 %v15856_v26  ;;  %15880 = vmatpush1.msra.mxu0 %v15854_v30  ;;  %v30255_v26 = vld [vmem:[#allocation24_spill] sm:$0xff]  ;;  %v16781_v30 = vsel %vm16778_vm13, %v30253_v20, %v30252_v17 }
 0x5f3   :  { %16092 = vmatprep.subr.mxu1 %v15861_v50  ;;  %16021 = vmatprep.subr.mxu0 %v15859_v31  ;;  %v16779_v9 = vsel %vm16778_vm13, %v30255_v26, %v30254_v16  ;;  %v16786_v50 = vsel %vm16778_vm13, %v30257_v21, %v30256_v23  ;;  %v16784_v31 = vsel %vm16778_vm13, %v30259_v6, %v30258_v57  ;;  %v30269_v26 = vld [vmem:[#allocation6_spill] sm:$0xff]  ;;  %v30271_v23 = vld [vmem:[#allocation9_spill] sm:$0xff] }
 0x5f4   :  { %16014 = vmatprep.mubr.f32.mxu1 %v30028_v59  ;;  %23055 = vrot.lane.b32.xlu1 %v25427_v34, %s25465_s13  ;;  %v16785_v34 = vsel %vm16778_vm13, %v30258_v57, %v30257_v21 }
 0x5f5   :  { %15943 = vmatprep.mubr.f32.mxu0 %v30028_v59  ;;  %24460 = vmatmul.mubr.msk.f32.vlgmr.msra.gmra.mrb[74].mxu1 %vm163_vm1, %v68_v43 }
 0x5f6   :  { %24459 = vmatmul.mubr.msk.f32.vlgmr.msra.gmra.mrb[24].mxu0 %vm163_vm1, %v68_v43  ;;  %16093 = vmatpush1.msra.mxu1 %v15860_v7  ;;  %v16783_v7 = vsel %vm16778_vm13, %v30251_v18, %v30259_v6  ;;  %v30266_v18 = vld [vmem:[#allocation23_spill] sm:$0xff] }
 0x5f7   :  { %16022 = vmatpush1.msra.mxu0 %v15858_v24  ;;  %16156 = vmatprep.mubr.f32.mxu1 %v30028_v59  ;;  %v30260_v24 = vld [vmem:[#allocation14_spill] sm:$0xff] }
 0x5f8   :  { %16163 = vmatprep.subr.mxu0 %v15863_v19  ;;  %24841 = vmatprep.subr.mxu1 %v30028_v59  ;;  %v16788_v39 = vsel %vm16778_vm13, %v30261_v5, %v30260_v24  ;;  %v30262_v19 = vld [vmem:[#allocation11_spill] sm:$0xff]  ;;  %v30274_v5 = vld [vmem:[#allocation65_spill] sm:$0xff] }
 0x5f9   :  { %23059 = vrot.lane.b32.xlu1 %v25428_v28, %s25465_s13  ;;  %16085 = vmatprep.mubr.f32.mxu0 %v30028_v59  ;;  %v16789_v28 = vsel %vm16778_vm13, %v30260_v24, %v30262_v19  ;;  %v30275_v19 = vld [vmem:[#allocation67_spill] sm:$0xff] }
 0x5fa   :  { %24462 = vmatmul.mubr.msk.f32.vlgmr.msra.gmra.mrb[76].mxu1 %vm163_vm1, %v68_v43  ;;  %24461 = vmatmul.mubr.msk.f32.vlgmr.msra.gmra.mrb[26].mxu0 %vm163_vm1, %v68_v43 }
 0x5fb   :  { %24842 = vmatpush3.msra.mxu1 %v15864_v44  ;;  %16164 = vmatpush1.msra.mxu0 %v15862_v4  ;;  %v30263_v44 = vld [vmem:[#allocation51_spill] sm:$0xff] }
 0x5fc   :  { %16389 = vmatprep.subr.mxu1 %v30240_v45  ;;  %16318 = vmatprep.subr.mxu0 %v30241_v49  ;;  %v30264_v4 = vld [vmem:[#allocation15_spill] sm:$0xff]  ;;  %v17269_v6 = vsel %vm17264_vm0, %v30263_v44, %v30271_v23 }
 0x5fd   :  { %24843 = vmatprep.mubr.msk.f32.mxu1 %vm25436_vm2, %v30028_v59  ;;  %24046 = vperm.xlu1 %25394, %v91_v53   ;;  %v17268_v53 = vsel %vm17264_vm0, %v30264_v4, %v30263_v44  ;;  %v17758_v44 = vsel %vm17750_vm3, %v28472_v40, %v28589_v32 }
 0x5fe   :  { %16227 = vmatprep.mubr.f32.mxu0 %v30028_v59  ;;  %24844 = vmatmul.mubr.msk.f32.vlgmr.msra.gmra.mrb[84].mxu1 %vm163_vm1, %v68_v43 }
 0x5ff   :  { %24463 = vmatmul.mubr.msk.f32.vlgmr.msra.gmra.mrb[28].mxu0 %vm163_vm1, %v68_v43  ;;  %16390 = vmatpush1.msra.mxu1 %v30242_v54  ;;  %v70_v43 = vld [vmem:[%s29854_s4 + $0x5c] sm:$0xf] }
 0x600   :  { %16319 = vmatpush1.msra.mxu0 %v30243_v36  ;;  %16531 = vmatprep.subr.mxu1 %v30244_v12 }
 0x601   :  { %16460 = vmatprep.subr.mxu0 %v30245_v60  ;;  %16453 = vmatprep.mubr.f32.mxu1 %v30028_v59 }
 0x602   :  { %16382 = vmatprep.mubr.f32.mxu0 %v30028_v59  ;;  %24466 = vmatmul.mubr.msk.f32.vlgmr.msra.gmra.mrb[74].mxu1 %vm163_vm1, %v69_v14 }
 0x603   :  { %24465 = vmatmul.mubr.msk.f32.vlgmr.msra.gmra.mrb[24].mxu0 %vm163_vm1, %v69_v14  ;;  %16532 = vmatpush1.msra.mxu1 %v30246_v37 }
 0x604   :  { %16461 = vmatpush1.msra.mxu0 %v30247_v58  ;;  %16595 = vmatprep.mubr.f32.mxu1 %v30028_v59 }
 0x605   :  { %16602 = vmatprep.subr.mxu0 %v30248_v10  ;;  %24846 = vmatprep.subr.mxu1 %v30028_v59 }
 0x606   :  { %16524 = vmatprep.mubr.f32.mxu0 %v30028_v59  ;;  %24468 = vmatmul.mubr.msk.f32.vlgmr.msra.gmra.mrb[76].mxu1 %vm163_vm1, %v69_v14 }
 0x607   :  { %24467 = vmatmul.mubr.msk.f32.vlgmr.msra.gmra.mrb[26].mxu0 %vm163_vm1, %v69_v14  ;;  %24847 = vmatpush3.msra.mxu1 %v30249_v61 }
 0x608   :  { %16603 = vmatpush1.msra.mxu0 %v30250_v42  ;;  %16875 = vmatprep.subr.mxu1 %v16782_v8  ;;  %v30267_v8 = vld [vmem:[#allocation37_spill] sm:$0xff] }
 0x609   :  { %16804 = vmatprep.subr.mxu0 %v16780_v15  ;;  %24848 = vmatprep.mubr.msk.f32.mxu1 %vm25436_vm2, %v30028_v59  ;;  %v17265_v20 = vsel %vm17264_vm0, %v30267_v8, %v30266_v18  ;;  %v30268_v15 = vld [vmem:[#allocation66_spill] sm:$0xff] }
 0x60a   :  { %16666 = vmatprep.mubr.f32.mxu0 %v30028_v59  ;;  %24849 = vmatmul.mubr.msk.f32.vlgmr.msra.gmra.mrb[86].mxu1 %vm163_vm1, %v69_v14 }
 0x60b   :  { %24469 = vmatmul.mubr.msk.f32.vlgmr.msra.gmra.mrb[28].mxu0 %vm163_vm1, %v69_v14  ;;  %16876 = vmatpush1.msra.mxu1 %v16781_v30  ;;  %v30265_v14 = vld [vmem:[#allocation55_spill] sm:$0xff]  ;;  %v30270_v30 = vld [vmem:[#allocation68_spill] sm:$0xff] }
 0x60c   :  { %16805 = vmatpush1.msra.mxu0 %v16779_v9  ;;  %17017 = vmatprep.subr.mxu1 %v16786_v50  ;;  %v17266_v17 = vsel %vm17264_vm0, %v30266_v18, %v30265_v14  ;;  %v17267_v16 = vsel %vm17264_vm0, %v30265_v14, %v30264_v4  ;;  %v17272_v9 = vsel %vm17264_vm0, %v30269_v26, %v30268_v15  ;;  %v71_v50 = vld [vmem:[%s29854_s4 + $0x60] sm:$0xf] }
 0x60d   :  { %16946 = vmatprep.subr.mxu0 %v16784_v31  ;;  %16939 = vmatprep.mubr.f32.mxu1 %v30028_v59  ;;  %v17270_v21 = vsel %vm17264_vm0, %v30271_v23, %v30270_v30  ;;  %v17271_v57 = vsel %vm17264_vm0, %v30270_v30, %v30269_v26  ;;  %v30272_v31 = vld [vmem:[#allocation42_spill] sm:$0xff]  ;;  %v17756_v4 = vsel %vm17750_vm3, %v28513_v11, %v28612_v48 }
 0x60e   :  { %16868 = vmatprep.mubr.f32.mxu0 %v30028_v59  ;;  %24472 = vmatmul.mubr.msk.f32.vlgmr.msra.gmra.mrb[74].mxu1 %vm163_vm1, %v70_v43  ;;  %v17273_v24 = vsel %vm17264_vm0, %v30268_v15, %v30272_v31  ;;  %v18238_v14 = vsel %vm18236_vm4, %v28700_v41, %v28617_v51 }
 0x60f   :  { %24471 = vmatmul.mubr.msk.f32.vlgmr.msra.gmra.mrb[24].mxu0 %vm163_vm1, %v70_v43  ;;  %17018 = vmatpush1.msra.mxu1 %v16785_v34  ;;  %v30273_v34 = vld [vmem:[#allocation25_spill] sm:$0xff] }
 0x610   :  { %16947 = vmatpush1.msra.mxu0 %v16783_v7  ;;  %17081 = vmatprep.mubr.f32.mxu1 %v30028_v59  ;;  %v17275_v7 = vsel %vm17264_vm0, %v28465_v22, %v30273_v34 }
 0x611   :  { %17088 = vmatprep.subr.mxu0 %v16788_v39  ;;  %24851 = vmatprep.subr.mxu1 %v30028_v59  ;;  %v17754_v39 = vsel %vm17750_vm3, %v28504_v35, %v30274_v5 }
 0x612   :  { %17010 = vmatprep.mubr.f32.mxu0 %v30028_v59  ;;  %24474 = vmatmul.mubr.msk.f32.vlgmr.msra.gmra.mrb[76].mxu1 %vm163_vm1, %v70_v43 }
 0x613   :  { %24473 = vmatmul.mubr.msk.f32.vlgmr.msra.gmra.mrb[26].mxu0 %vm163_vm1, %v70_v43  ;;  %24852 = vmatpush3.msra.mxu1 %v16789_v28  ;;  %v17752_v28 = vsel %vm17750_vm3, %v28536_v33, %v30275_v19 }
 0x614   :  { %17089 = vmatpush1.msra.mxu0 %v16787_v55  ;;  %17361 = vmatprep.subr.mxu1 %v17268_v53  ;;  %v17753_v55 = vsel %vm17750_vm3, %v30275_v19, %v28504_v35  ;;  %v17757_v35 = vsel %vm17750_vm3, %v28612_v48, %v28472_v40  ;;  %v17760_v53 = vsel %vm17750_vm3, %v28540_v13, %v28640_v63 }
 0x615   :  { %17290 = vmatprep.subr.mxu0 %v17266_v17  ;;  %24853 = vmatprep.mubr.msk.f32.mxu1 %vm25436_vm2, %v30028_v59  ;;  %v17761_v40 = vsel %vm17750_vm3, %v28640_v63, %v28563_v56  ;;  %v18240_v48 = vsel %vm18236_vm4, %v28671_v62, %v28592_v52  ;;  %v18239_v56 = vsel %vm18236_vm4, %v28617_v51, %v28671_v62 }
 0x616   :  { %17152 = vmatprep.mubr.f32.mxu0 %v30028_v59  ;;  %24854 = vmatmul.mubr.msk.f32.vlgmr.msra.gmra.mrb[88].mxu1 %vm163_vm1, %v70_v43  ;;  %v18242_v63 = vsel %vm18236_vm4, %v28677_v3, %v28782_v2  ;;  %v18243_v51 = vsel %vm18236_vm4, %v28782_v2, %v28650_v29  ;;  %v18241_v62 = vsel %vm18236_vm4, %v28592_v52, %v28677_v3  ;;  %v29062_v3 = vpop.permute.xlu0 %19225 }
 0x617   :  { %24475 = vmatmul.mubr.msk.f32.vlgmr.msra.gmra.mrb[28].mxu0 %vm163_vm1, %v70_v43  ;;  %17362 = vmatpush1.msra.mxu1 %v17267_v16  ;;  %v17274_v43 = vsel %vm17264_vm0, %v30272_v31, %v28465_v22  ;;  %v17751_v22 = vsel %vm17750_vm3, %v28557_v1, %v28536_v33  ;;  %v72_v33 = vld [vmem:[%s29854_s4 + $0x64] sm:$0xf]  ;;  %v17755_v1 = vsel %vm17750_vm3, %v30274_v5, %v28513_v11 }
 0x618   :  { %17291 = vmatpush1.msra.mxu0 %v17265_v20  ;;  %17503 = vmatprep.subr.mxu1 %v17272_v9  ;;  %v17759_v11 = vsel %vm17750_vm3, %v28589_v32, %v28540_v13  ;;  %v18237_v13 = vsel %vm18236_vm4, %v28733_v0, %v28700_v41  ;;  %v18244_v32 = vsel %vm18236_vm4, %v28650_v29, %v28753_v27  ;;  %v73_v41 = vld [vmem:[%s29854_s4 + $0x68] sm:$0xf] }
 0x619   :  { %17432 = vmatprep.subr.mxu0 %v17270_v21  ;;  %17425 = vmatprep.mubr.f32.mxu1 %v30028_v59  ;;  %v18246_v0 = vsel %vm18236_vm4, %v28705_v47, %v28808_v38  ;;  %v18247_v29 = vsel %vm18236_vm4, %v28808_v38, %v28736_v25  ;;  %v18245_v52 = vsel %vm18236_vm4, %v28753_v27, %v28705_v47  ;;  %v29064_v25 = vpop.permute.xlu1 %19227 }
 0x61a   :  { %17354 = vmatprep.mubr.f32.mxu0 %v30028_v59  ;;  %24478 = vmatmul.mubr.msk.f32.vlgmr.msra.gmra.mrb[74].mxu1 %vm163_vm1, %v71_v50  ;;  %v29066_v47 = vpop.permute.xlu0 %19221 }
 0x61b   :  { %24477 = vmatmul.mubr.msk.f32.vlgmr.msra.gmra.mrb[24].mxu0 %vm163_vm1, %v71_v50  ;;  %17504 = vmatpush1.msra.mxu1 %v17271_v57 }
 0x61c   :  { %17433 = vmatpush1.msra.mxu0 %v17269_v6  ;;  %17567 = vmatprep.mubr.f32.mxu1 %v30028_v59 }
 0x61d   :  { %17574 = vmatprep.subr.mxu0 %v17274_v43  ;;  %24856 = vmatprep.subr.mxu1 %v30028_v59  ;;  %v29068_v27 = vpop.permute.xlu1 %19223 }
 0x61e   :  { %17496 = vmatprep.mubr.f32.mxu0 %v30028_v59  ;;  %24480 = vmatmul.mubr.msk.f32.vlgmr.msra.gmra.mrb[76].mxu1 %vm163_vm1, %v71_v50  ;;  %v29070_v2 = vpop.permute.xlu0 %19219 }
 0x61f   :  { %24479 = vmatmul.mubr.msk.f32.vlgmr.msra.gmra.mrb[26].mxu0 %vm163_vm1, %v71_v50  ;;  %24857 = vmatpush3.msra.mxu1 %v17275_v7 }
 0x620   :  { %17575 = vmatpush1.msra.mxu0 %v17273_v24  ;;  %17847 = vmatprep.subr.mxu1 %v17754_v39 }
 0x621   :  { %17776 = vmatprep.subr.mxu0 %v17752_v28  ;;  %24858 = vmatprep.mubr.msk.f32.mxu1 %vm25436_vm2, %v30028_v59  ;;  %v29072_v38 = vpop.permute.xlu1 %19233 }
 0x622   :  { %17638 = vmatprep.mubr.f32.mxu0 %v30028_v59  ;;  %24859 = vmatmul.mubr.msk.f32.vlgmr.msra.gmra.mrb[90].mxu1 %vm163_vm1, %v71_v50  ;;  %v29074_v18 = vpop.permute.xlu0 %19235 }
 0x623   :  { %24481 = vmatmul.mubr.msk.f32.vlgmr.msra.gmra.mrb[28].mxu0 %vm163_vm1, %v71_v50  ;;  %17848 = vmatpush1.msra.mxu1 %v17753_v55 }
 0x624   :  { %17777 = vmatpush1.msra.mxu0 %v17751_v22  ;;  %17989 = vmatprep.subr.mxu1 %v17758_v44 }
 0x625   :  { %17918 = vmatprep.subr.mxu0 %v17756_v4  ;;  %17911 = vmatprep.mubr.f32.mxu1 %v30028_v59  ;;  %v29076_v17 = vpop.permute.xlu1 %19229 }
 0x626   :  { %17840 = vmatprep.mubr.f32.mxu0 %v30028_v59  ;;  %24484 = vmatmul.mubr.msk.f32.vlgmr.msra.gmra.mrb[74].mxu1 %vm163_vm1, %v72_v33  ;;  %v29078_v8 = vpop.permute.xlu0 %19231 }
 0x627   :  { %24483 = vmatmul.mubr.msk.f32.vlgmr.msra.gmra.mrb[24].mxu0 %vm163_vm1, %v72_v33  ;;  %17990 = vmatpush1.msra.mxu1 %v17757_v35 }
 0x628   :  { %17919 = vmatpush1.msra.mxu0 %v17755_v1  ;;  %18053 = vmatprep.mubr.f32.mxu1 %v30028_v59 }
 0x629   :  { %18060 = vmatprep.subr.mxu0 %v17760_v53  ;;  %24861 = vmatprep.subr.mxu1 %v30028_v59  ;;  %v29080_v20 = vpop.permute.xlu1 %19237 }
 0x62a   :  { %17982 = vmatprep.mubr.f32.mxu0 %v30028_v59  ;;  %24486 = vmatmul.mubr.msk.f32.vlgmr.msra.gmra.mrb[76].mxu1 %vm163_vm1, %v72_v33  ;;  %v29082_v16 = vpop.permute.xlu0 %19239 }
 0x62b   :  { %24485 = vmatmul.mubr.msk.f32.vlgmr.msra.gmra.mrb[26].mxu0 %vm163_vm1, %v72_v33  ;;  %24862 = vmatpush3.msra.mxu1 %v17761_v40 }
 0x62c   :  { %18061 = vmatpush1.msra.mxu0 %v17759_v11  ;;  %18333 = vmatprep.subr.mxu1 %v18240_v48 }
 0x62d   :  { %18262 = vmatprep.subr.mxu0 %v18238_v14  ;;  %24863 = vmatprep.mubr.msk.f32.mxu1 %vm25436_vm2, %v30028_v59  ;;  %v29084_v15 = vpop.permute.xlu1 %19241 }
 0x62e   :  { %18124 = vmatprep.mubr.f32.mxu0 %v30028_v59  ;;  %24864 = vmatmul.mubr.msk.f32.vlgmr.msra.gmra.mrb[92].mxu1 %vm163_vm1, %v72_v33  ;;  %v29086_v26 = vpop.permute.xlu0 %19700 }
 0x62f   :  { %24487 = vmatmul.mubr.msk.f32.vlgmr.msra.gmra.mrb[28].mxu0 %vm163_vm1, %v72_v33  ;;  %18334 = vmatpush1.msra.mxu1 %v18239_v56 }
 0x630   :  { %18263 = vmatpush1.msra.mxu0 %v18237_v13  ;;  %18475 = vmatprep.subr.mxu1 %v18244_v32 }
 0x631   :  { %18404 = vmatprep.subr.mxu0 %v18242_v63  ;;  %18397 = vmatprep.mubr.f32.mxu1 %v30028_v59  ;;  %v29088_v9 = vpop.permute.xlu1 %19702 }
 0x632   :  { %18326 = vmatprep.mubr.f32.mxu0 %v30028_v59  ;;  %24490 = vmatmul.mubr.msk.f32.vlgmr.msra.gmra.mrb[74].mxu1 %vm163_vm1, %v73_v41  ;;  %v29090_v21 = vpop.permute.xlu0 %19696 }
 0x633   :  { %24489 = vmatmul.mubr.msk.f32.vlgmr.msra.gmra.mrb[24].mxu0 %vm163_vm1, %v73_v41  ;;  %18476 = vmatpush1.msra.mxu1 %v18243_v51 }
 0x634   :  { %18405 = vmatpush1.msra.mxu0 %v18241_v62  ;;  %18539 = vmatprep.mubr.f32.mxu1 %v30028_v59 }
 0x635   :  { %18546 = vmatprep.subr.mxu0 %v18246_v0  ;;  %24866 = vmatprep.subr.mxu1 %v30028_v59  ;;  %v29092_v50 = vpop.permute.xlu1 %19698 }
 0x636   :  { %18468 = vmatprep.mubr.f32.mxu0 %v30028_v59  ;;  %24492 = vmatmul.mubr.msk.f32.vlgmr.msra.gmra.mrb[76].mxu1 %vm163_vm1, %v73_v41  ;;  %v29094_v57 = vpop.permute.xlu0 %19694 }
 0x637   :  { %24491 = vmatmul.mubr.msk.f32.vlgmr.msra.gmra.mrb[26].mxu0 %vm163_vm1, %v73_v41  ;;  %24867 = vmatpush3.msra.mxu1 %v18247_v29 }
 0x638   :  { %18547 = vmatpush1.msra.mxu0 %v18245_v52  ;;  %24868 = vmatprep.mubr.msk.f32.mxu1 %vm25436_vm2, %v30028_v59 }
 0x639   :  { %18610 = vmatprep.mubr.f32.mxu0 %v30028_v59  ;;  %v29096_v6 = vpop.permute.xlu1 %19708 }
 0x63a   :  { %24869 = vmatmul.mubr.msk.f32.vlgmr.msra.gmra.mrb[94].mxu1 %vm163_vm1, %v73_v41  ;;  %v29098_v31 = vpop.permute.xlu0 %19710 }
 0x63b   :  { %24493 = vmatmul.mubr.msk.f32.vlgmr.msra.gmra.mrb[28].mxu0 %vm163_vm1, %v73_v41  ;;  %18918 = vmatprep.mubr.f32.mxu1 %v30028_v59 }
 0x63c   :  { %18847 = vmatprep.mubr.f32.mxu0 %v30028_v59 }
 0x63d   :  { %v29100_v34 = vpop.permute.xlu1 %19704 }
 0x63e   :  { %v29104_v5 = vpop.permute.xlu0 %19706 }
 0x641   :  { %v29106_v39 = vpop.permute.xlu1 %19712 }
 0x642   :  { %v29108_v19 = vpop.permute.xlu0 %19714 }
 0x645   :  { %v29110_v28 = vpop.permute.xlu1 %19716 }
 0x646   :  { %v29112_v44 = vpop.permute.xlu0 %20175 }
 0x649   :  { %v29114_v4 = vpop.permute.xlu1 %20177 }
 0x64a   :  { %v29116_v33 = vpop.permute.xlu0 %20171 }
 0x64d   :  { %v29118_v35 = vpop.permute.xlu1 %20173 }
 0x64e   :  { %v29120_v1 = vpop.permute.xlu0 %20169 }
 0x651   :  { %v29122_v40 = vpop.permute.xlu1 %20183 }
 0x652   :  { %v29124_v14 = vpop.permute.xlu0 %20185 }
 0x655   :  { %v29126_v13 = vpop.permute.xlu1 %20179 }
 0x656   :  { %v29128_v56 = vpop.permute.xlu0 %20181 }
 0x659   :  { %v29130_v32 = vpop.permute.xlu1 %20187 }
 0x65a   :  { %v29132_v62 = vpop.permute.xlu0 %20189 }
 0x65d   :  { %v29134_v0 = vpop.permute.xlu1 %20191 }
 0x65e   :  { %v29136_v29 = vpop.permute.xlu0 %20661 }
 0x661   :  { %v29138_v52 = vpop.permute.xlu1 %20663 }
 0x688   :  { %v13928_v30 = vpop.f32.mrb[70].mxu1 }
 0x689   :  { %v24820_v23 = vpop.f32.mrb[71].mxu1 }
 0x698   :  { %v14389_v43 = vpop.f32.mrb[72].mxu1 }
 0x699   :  { %v29102_v7 = vadd.f32 %v14389_v43, %v13928_v30  ;;  %v24825_v24 = vpop.f32.mrb[73].mxu1 }
 0x69a   :  { %v29140_v24 = vpop.permute.xlu0 %20657 }
 0x69b   :  { %30276 = vst [vmem:[#allocation47_spill] sm:$0xff] %v29102_v7  ;;  %30277 = vst [vmem:[#allocation17_spill] sm:$0xff] %v29140_v24 }
 0x6a7   :  { %v14864_v22 = vpop.f32.mrb[78].mxu1 }
 0x6a8   :  { %v24830_v55 = vpop.f32.mrb[79].mxu1 }
 0x6a9   :  { %v29144_v55 = vpop.permute.xlu0 %20655 }
 0x6aa   :  { %30278 = vst [vmem:[#allocation49_spill] sm:$0xff] %v29144_v55 }
 0x6b6   :  { %v15339_v53 = vpop.f32.mrb[80].mxu1 }
 0x6b7   :  { %v15340_v11 = vadd.f32 %v15339_v53, %v14864_v22  ;;  %v24835_v48 = vpop.f32.mrb[81].mxu1  ;;  %v29142_v22 = vpop.permute.xlu1 %20659 }
 0x6bb   :  { %v29146_v53 = vpop.permute.xlu1 %20669 }
 0x6bc   :  { %30279 = vst [vmem:[#allocation35_spill] sm:$0xff] %v29146_v53  ;;  %v29187_v53 = vld [vmem:[%s29856_s6 + $0x10] sm:$0xff] }
 0x6bf   :  { %v29150_v7 = vpop.permute.xlu1 %20665 }
 0x6c0   :  { %30281 = vst [vmem:[#allocation26_spill] sm:$0xff] %v29150_v7 }
 0x6c3   :  { %v29154_v61 = vpop.permute.xlu1 %20673 }
 0x6c4   :  { %v15814_v63 = vpop.f32.mrb[82].mxu1  ;;  %30283 = vst [vmem:[#allocation29_spill] sm:$0xff] %v29154_v61 }
 0x6c5   :  { %v15828_v41 = vadd.f32 %v15814_v63, %v15340_v11  ;;  %v24840_v51 = vpop.f32.mrb[83].mxu1 }
 0x6c6   :  { %v29148_v51 = vpop.permute.xlu0 %20671 }
 0x6c7   :  { %30280 = vst [vmem:[#allocation27_spill] sm:$0xff] %v29148_v51  ;;  %v29158_v58 = vpop.permute.xlu1 %20677 }
 0x6c8   :  { %30285 = vst [vmem:[#allocation3_spill] sm:$0xff] %v29158_v58 }
 0x6ca   :  { %v29152_v42 = vpop.permute.xlu0 %20667 }
 0x6cb   :  { %30282 = vst [vmem:[#allocation7_spill] sm:$0xff] %v29152_v42  ;;  %v29162_v60 = vpop.permute.xlu1 %21588 }
 0x6cc   :  { %30287 = vst [vmem:[#allocation18_spill] sm:$0xff] %v29162_v60 }
 0x6ce   :  { %v29156_v10 = vpop.permute.xlu0 %20675 }
 0x6cf   :  { %30284 = vst [vmem:[#allocation16_spill] sm:$0xff] %v29156_v10  ;;  %v29166_v36 = vpop.permute.xlu1 %21584 }
 0x6d0   :  { %30289 = vst [vmem:[#allocation48_spill] sm:$0xff] %v29166_v36 }
 0x6d1   :  { %v16300_v30 = vpop.f32.mrb[84].mxu1 }
 0x6d2   :  { %v16314_v23 = vadd.f32 %v16300_v30, %v15828_v41  ;;  %v24845_v43 = vpop.f32.mrb[85].mxu1  ;;  %v29160_v37 = vpop.permute.xlu0 %21586 }
 0x6d3   :  { %30286 = vst [vmem:[#allocation28_spill] sm:$0xff] %v29160_v37  ;;  %v29170_v49 = vpop.permute.xlu1 %21594 }
 0x6d4   :  { %30291 = vst [vmem:[#allocation40_spill] sm:$0xff] %v29170_v49 }
 0x6d6   :  { %v29164_v12 = vpop.permute.xlu0 %21582 }
 0x6d7   :  { %30288 = vst [vmem:[#allocation44_spill] sm:$0xff] %v29164_v12  ;;  %v29174_v58 = vpop.permute.xlu1 %21590 }
 0x6d8   :  { %30293 = vst [vmem:[#allocation31_spill] sm:$0xff] %v29174_v58 }
 0x6da   :  { %v29168_v54 = vpop.permute.xlu0 %21580 }
 0x6db   :  { %30290 = vst [vmem:[#allocation39_spill] sm:$0xff] %v29168_v54 }
 0x6dd   :  { %v16739_v11 = vpop.f32.mrb[86].mxu1 }
 0x6de   :  { %v16753_v48 = vadd.f32 %v16739_v11, %v16314_v23  ;;  %v24850_v63 = vpop.f32.mrb[87].mxu1  ;;  %v29172_v45 = vpop.permute.xlu0 %21596 }
 0x6df   :  { %30292 = vst [vmem:[#allocation46_spill] sm:$0xff] %v29172_v45 }
 0x6e9   :  { %v17225_v41 = vpop.f32.mrb[88].mxu1 }
 0x6ea   :  { %v17239_v30 = vadd.f32 %v17225_v41, %v16753_v48  ;;  %v24855_v43 = vpop.f32.mrb[89].mxu1 }
 0x6f5   :  { %v17711_v23 = vpop.f32.mrb[90].mxu1 }
 0x6f6   :  { %v17725_v11 = vadd.f32 %v17711_v23, %v17239_v30  ;;  %v24860_v63 = vpop.f32.mrb[91].mxu1 }
 0x701   :  { %v18197_v48 = vpop.f32.mrb[92].mxu1 }
 0x702   :  { %v18211_v41 = vadd.f32 %v18197_v48, %v17725_v11  ;;  %v24865_v43 = vpop.f32.mrb[93].mxu1  ;;  %v29180_v48 = vpop.permute.xlu0 %21592 }
 0x703   :  { %30294 = vst [vmem:[#allocation8_spill] sm:$0xff] %v29180_v48  ;;  %v29189_v48 = vpop.permute.xlu1 %21598 }
 0x704   :  { %30295 = vst [vmem:[#allocation50_spill] sm:$0xff] %v29189_v48 }
 0x705   :  { %v18399_v37 = vpop.f32.mrb[74].mxu1 }
 0x706   :  { %v18328_v60 = vpop.f32.mrb[24].mxu0  ;;  %v18705_v30 = vadd.f32 %v28829_v46, %v18399_v37  ;;  %v18401_v63 = vpop.f32.mrb[75].mxu1 }
 0x707   :  { %v18703_v23 = vadd.f32 %v28829_v46, %v18328_v60  ;;  %v18330_v12 = vpop.f32.mrb[25].mxu0  ;;  %v18706_v36 = vadd.f32 %v28829_v46, %v18401_v63  ;;  %v29212_v24 = vpop.permute.xlu1 %21602 }
 0x708   :  { %v18704_v54 = vadd.f32 %v28829_v46, %v18330_v12  ;;  %vm18716_vm5 = vcmp.ge.f32.partialorder %v18705_v30, 0.0  ;;  %v18727_v49 = vmul.f32 0.1, %v18705_v30 }
 0x709   :  { %vm18714_vm6 = vcmp.ge.f32.partialorder %v18703_v23, 0.0  ;;  %v18725_v11 = vmul.f32 0.1, %v18703_v23  ;;  %vm18717_vm7 = vcmp.ge.f32.partialorder %v18706_v36, 0.0  ;;  %v18728_v43 = vmul.f32 0.1, %v18706_v36 }
 0x70a   :  { %vm18715_vm8 = vcmp.ge.f32.partialorder %v18704_v54, 0.0  ;;  %v18726_v58 = vmul.f32 0.1, %v18704_v54  ;;  %v18738_v45 = vsel %vm18716_vm5, %v18705_v30, %v18727_v49  ;;  %v18541_v37 = vpop.f32.mrb[76].mxu1  ;;  %v18470_v61 = vpop.f32.mrb[26].mxu0  ;;  %vm19243_vm5 = vcmask 850944  }
 0x70b   :  { %v18709_v60 = vadd.f32 %v28829_v46, %v18541_v37  ;;  %v18707_v10 = vadd.f32 %v28829_v46, %v18470_v61  ;;  %v18543_v63 = vpop.f32.mrb[77].mxu1  ;;  %v18472_v7 = vpop.f32.mrb[27].mxu0  ;;  %v18739_v12 = vsel %vm18717_vm7, %v18706_v36, %v18728_v43  ;;  %v18736_v51 = vsel %vm18714_vm6, %v18703_v23, %v18725_v11 }
 0x70c   :  { %v18737_v42 = vsel %vm18715_vm8, %v18704_v54, %v18726_v58  ;;  %v18710_v49 = vadd.f32 %v28829_v46, %v18543_v63  ;;  %v18708_v30 = vadd.f32 %v28829_v46, %v18472_v7  ;;  %24498 = vmatprep.subr.msk.mxu1 %vm13473_vm9, %v18739_v12  ;;  %v29205_v63 = vpop.permute.xlu0 %21600  ;;  %vm19718_vm6 = vcmask 883712  }
 0x70d   :  { %24495 = vmatprep.subr.msk.mxu0 %vm13473_vm9, %v18737_v42  ;;  %vm18720_vm11 = vcmp.ge.f32.partialorder %v18709_v60, 0.0  ;;  %v18731_v36 = vmul.f32 0.1, %v18709_v60  ;;  %vm18718_vm14 = vcmp.ge.f32.partialorder %v18707_v10, 0.0  ;;  %v18729_v54 = vmul.f32 0.1, %v18707_v10  ;;  %24499 = vmatpush1.msk.msra.mxu1 %vm13473_vm9, %v18738_v45 }
 0x70e   :  { %24496 = vmatpush1.msk.msra.mxu0 %vm13473_vm9, %v18736_v51  ;;  %vm18721_vm15 = vcmp.ge.f32.partialorder %v18710_v49, 0.0  ;;  %v18732_v58 = vmul.f32 0.1, %v18710_v49  ;;  %vm18719_vm13 = vcmp.ge.f32.partialorder %v18708_v30, 0.0  ;;  %v18730_v61 = vmul.f32 0.1, %v18708_v30  ;;  %24500 = vmatmul.mubr.msk.f32.vlgmr.msra.gmra.mrb[66].mxu1 %vm13469_vm12, %v29187_v53 }
 0x70f   :  { %24497 = vmatmul.mubr.msk.f32.vlgmr.msra.gmra.mrb[18].mxu0 %vm13469_vm12, %v29187_v53  ;;  %v18683_v7 = vpop.f32.mrb[94].mxu1  ;;  %v18612_v42 = vpop.f32.mrb[28].mxu0  ;;  %19060 = vmatprep.mubr.f32.mxu1 %v30028_v59  ;;  %v18742_v12 = vsel %vm18720_vm11, %v18709_v60, %v18731_v36  ;;  %v18740_v48 = vsel %vm18718_vm14, %v18707_v10, %v18729_v54  ;;  %v19247_v36 = vsel %vm19243_vm5, %v29062_v3, %v29064_v25  ;;  %vm20193_vm7 = vcmask 818176  }
 0x710   :  { %18989 = vmatprep.mubr.f32.mxu0 %v30028_v59  ;;  %v18697_v23 = vadd.f32 %v18683_v7, %v18211_v41  ;;  %v18711_v45 = vadd.f32 %v28829_v46, %v18612_v42  ;;  %v18614_v51 = vpop.f32.mrb[29].mxu0  ;;  %v18743_v11 = vsel %vm18721_vm15, %v18710_v49, %v18732_v58  ;;  %v18741_v43 = vsel %vm18719_vm13, %v18708_v30, %v18730_v61  ;;  %v24870_v37 = vpop.f32.mrb[95].mxu1 }
 0x711   :  { %v18712_v55 = vadd.f32 %v28829_v46, %v18614_v51  ;;  %24504 = vmatprep.subr.msk.mxu1 %vm13473_vm9, %v18743_v11  ;;  %24501 = vmatprep.subr.msk.mxu0 %vm13473_vm9, %v18741_v43  ;;  %v29226_v30 = vpop.permute.xlu0 %22071  ;;  %v29233_v54 = vpop.permute.xlu1 %22073  ;;  %v19244_v58 = vsel %vm19243_vm5, %v29070_v2, %v29066_v47  ;;  %v19246_v61 = vsel %vm19243_vm5, %v29068_v27, %v29062_v3  ;;  %vm20679_vm8 = vcmask 97280  }
 0x712   :  { %v18713_v41 = vadd.f32 %v28829_v46, %v18697_v23  ;;  %v18733_v7 = vmul.f32 0.1, %v18711_v45  ;;  %24505 = vmatpush1.msk.msra.mxu1 %vm13473_vm9, %v18742_v12  ;;  %24502 = vmatpush1.msk.msra.mxu0 %vm13473_vm9, %v18740_v48  ;;  %vm18722_vm0 = vcmp.ge.f32.partialorder %v18711_v45, 0.0  ;;  %v19251_v42 = vsel %vm19243_vm5, %v29072_v38, %v29074_v18  ;;  %v75_v23 = vld [vmem:[%s29854_s4 + $0x70] sm:$0xf] }
 0x713   :  { %vm18723_vm3 = vcmp.ge.f32.partialorder %v18712_v55, 0.0  ;;  %v18734_v60 = vmul.f32 0.1, %v18712_v55  ;;  %24506 = vmatmul.mubr.msk.f32.vlgmr.msra.gmra.mrb[68].mxu1 %vm13469_vm12, %v29187_v53  ;;  %24503 = vmatmul.mubr.msk.f32.vlgmr.msra.gmra.mrb[20].mxu0 %vm13469_vm12, %v29187_v53  ;;  %v19248_v2 = vsel %vm19243_vm5, %v29064_v25, %v29076_v17  ;;  %v19254_v25 = vsel %vm19243_vm5, %v29082_v16, %v29084_v15 }
 0x714   :  { %vm18724_vm4 = vcmp.ge.f32.partialorder %v18713_v41, 0.0  ;;  %v18735_v10 = vmul.f32 0.1, %v18713_v41  ;;  %24871 = vmatprep.subr.mxu1 %v30028_v59  ;;  %24873 = vmatprep.mubr.msk.f32.mxu1 %vm25436_vm2, %v30028_v59  ;;  %v18744_v48 = vsel %vm18722_vm0, %v18711_v45, %v18733_v7  ;;  %v19253_v45 = vsel %vm19243_vm5, %v29080_v20, %v29082_v16 }
 0x715   :  { %v18745_v46 = vsel %vm18723_vm3, %v18712_v55, %v18734_v60  ;;  %19131 = vmatprep.mubr.f32.mxu0 %v30028_v59  ;;  %v19245_v55 = vsel %vm19243_vm5, %v29066_v47, %v29068_v27  ;;  %v19249_v47 = vsel %vm19243_vm5, %v29076_v17, %v29078_v8  ;;  %v29259_v3 = vpop.permute.xlu0 %22067  ;;  %v19250_v27 = vsel %vm19243_vm5, %v29078_v8, %v29072_v38 }
 0x716   :  { %24507 = vmatprep.subr.msk.mxu0 %vm13473_vm9, %v18745_v46  ;;  %v18746_v49 = vsel %vm18724_vm4, %v18713_v41, %v18735_v10  ;;  %v19252_v38 = vsel %vm19243_vm5, %v29074_v18, %v29080_v20  ;;  %v19722_v17 = vsel %vm19718_vm6, %v29086_v26, %v29088_v9  ;;  %v19720_v8 = vsel %vm19718_vm6, %v29090_v21, %v29092_v50 }
 0x717   :  { %24872 = vmatpush3.msk.msra.mxu1 %vm13473_vm9, %v18746_v49  ;;  %24508 = vmatpush1.msk.msra.mxu0 %vm13473_vm9, %v18744_v48  ;;  %v19719_v18 = vsel %vm19718_vm6, %v29094_v57, %v29090_v21  ;;  %v19721_v20 = vsel %vm19718_vm6, %v29092_v50, %v29086_v26  ;;  %v19726_v15 = vsel %vm19718_vm6, %v29096_v6, %v29098_v31  ;;  %v74_v21 = vld [vmem:[%s29854_s4 + $0x6c] sm:$0xf]  ;;  %vm22089_vm11 = vcmask 359424  }
 0x718   :  { %24874 = vmatmul.mubr.msk.f32.vlgmr.msra.gmra.mrb[96].mxu1 %vm13469_vm12, %v29187_v53  ;;  %19340 = vmatprep.subr.mxu1 %v19247_v36  ;;  %v19724_v11 = vsel %vm19718_vm6, %v29100_v34, %v29104_v5  ;;  %v19725_v50 = vsel %vm19718_vm6, %v29104_v5, %v29096_v6  ;;  %v19723_v57 = vsel %vm19718_vm6, %v29088_v9, %v29100_v34  ;;  %v30298_v48 = vld [vmem:[#allocation27_spill] sm:$0xff]  ;;  %vm22575_vm14 = vcmask 326656  }
 0x719   :  { %24509 = vmatmul.mubr.msk.f32.vlgmr.msra.gmra.mrb[22].mxu0 %vm13469_vm12, %v29187_v53  ;;  %19269 = vmatprep.subr.mxu0 %v19245_v55  ;;  %v29269_v53 = vpop.permute.xlu1 %22069  ;;  %v29291_v51 = vpop.permute.xlu0 %22065  ;;  %v19728_v37 = vsel %vm19718_vm6, %v29106_v39, %v29108_v19  ;;  %v19729_v9 = vsel %vm19718_vm6, %v29108_v19, %v29110_v28  ;;  %v19727_v6 = vsel %vm19718_vm6, %v29098_v31, %v29106_v39  ;;  %v30299_v49 = vld [vmem:[#allocation35_spill] sm:$0xff]  ;;  %vm23061_vm15 = vcmask 293888  }
 0x71a   :  { %19341 = vmatpush1.msra.mxu1 %v19246_v61  ;;  %19270 = vmatpush1.msra.mxu0 %v19244_v58  ;;  %v20197_v34 = vsel %vm20193_vm7, %v29112_v44, %v29114_v4  ;;  %v20195_v5 = vsel %vm20193_vm7, %v29116_v33, %v29118_v35  ;;  %v20194_v31 = vsel %vm20193_vm7, %v29120_v1, %v29116_v33  ;;  %v76_v33 = vld [vmem:[%s29854_s4 + $0x74] sm:$0xf]  ;;  %v30300_v55 = vld [vmem:[#allocation7_spill] sm:$0xff]  ;;  %v30301_v58 = vld [vmem:[#allocation26_spill] sm:$0xff] }
 0x71b   :  { %19482 = vmatprep.subr.mxu1 %v19251_v42  ;;  %19404 = vmatprep.mubr.f32.mxu1 %v30028_v59  ;;  %v20196_v39 = vsel %vm20193_vm7, %v29118_v35, %v29112_v44  ;;  %v20201_v28 = vsel %vm20193_vm7, %v29122_v40, %v29124_v14  ;;  %v20199_v41 = vsel %vm20193_vm7, %v29126_v13, %v29128_v56  ;;  %v77_v42 = vld [vmem:[%s29854_s4 + $0x78] sm:$0xf] }
 0x71c   :  { %19411 = vmatprep.subr.mxu0 %v19249_v47  ;;  %19333 = vmatprep.mubr.f32.mxu0 %v30028_v59  ;;  %v20200_v44 = vsel %vm20193_vm7, %v29128_v56, %v29122_v40  ;;  %v20198_v35 = vsel %vm20193_vm7, %v29114_v4, %v29126_v13  ;;  %v20203_v60 = vsel %vm20193_vm7, %v29130_v32, %v29132_v62  ;;  %v30296_v56 = vld [vmem:[#allocation17_spill] sm:$0xff] }
 0x71d   :  { %24513 = vmatmul.mubr.msk.f32.vlgmr.msra.gmra.mrb[98].mxu1 %vm163_vm1, %v75_v23  ;;  %24512 = vmatmul.mubr.msk.f32.vlgmr.msra.gmra.mrb[30].mxu0 %vm163_vm1, %v75_v23  ;;  %v29293_v16 = vpop.permute.xlu1 %22079  ;;  %v29317_v26 = vpop.permute.xlu0 %22081  ;;  %v20202_v4 = vsel %vm20193_vm7, %v29124_v14, %v29130_v32  ;;  %v20204_v40 = vsel %vm20193_vm7, %v29132_v62, %v29134_v0  ;;  %v20683_v13 = vsel %vm20679_vm8, %v29136_v29, %v29138_v52  ;;  %v30297_v32 = vld [vmem:[#allocation49_spill] sm:$0xff] }
 0x71e   :  { %19483 = vmatpush1.msra.mxu1 %v19250_v27  ;;  %19412 = vmatpush1.msra.mxu0 %v19248_v2  ;;  %v20681_v10 = vsel %vm20679_vm8, %v30296_v56, %v29142_v22  ;;  %v20680_v62 = vsel %vm20679_vm8, %v30297_v32, %v30296_v56  ;;  %v20682_v0 = vsel %vm20679_vm8, %v29142_v22, %v29136_v29  ;;  %v30302_v27 = vld [vmem:[#allocation16_spill] sm:$0xff]  ;;  %v30303_v2 = vld [vmem:[#allocation29_spill] sm:$0xff]  ;;  %v30321_v32 = vld [vmem:[#allocation46_spill] sm:$0xff] }
 0x71f   :  { %19553 = vmatprep.subr.mxu0 %v19253_v45  ;;  %19546 = vmatprep.mubr.f32.mxu1 %v30028_v59  ;;  %v20687_v36 = vsel %vm20679_vm8, %v30299_v49, %v30298_v48  ;;  %v20685_v61 = vsel %vm20679_vm8, %v30301_v58, %v30300_v55  ;;  %v20686_v29 = vsel %vm20679_vm8, %v30300_v55, %v30299_v49  ;;  %v30324_v49 = vld [vmem:[#allocation31_spill] sm:$0xff]  ;;  %v79_v55 = vld [vmem:[%s29854_s4 + $0x80] sm:$0xf] }
 0x720   :  { %24876 = vmatprep.subr.mxu1 %v30028_v59  ;;  %19475 = vmatprep.mubr.f32.mxu0 %v30028_v59  ;;  %v20684_v22 = vsel %vm20679_vm8, %v29138_v52, %v30301_v58  ;;  %v20689_v45 = vsel %vm20679_vm8, %v30303_v2, %v30302_v27  ;;  %v20688_v52 = vsel %vm20679_vm8, %v30298_v48, %v30303_v2  ;;  %v30323_v48 = vld [vmem:[#allocation8_spill] sm:$0xff] }
 0x721   :  { %24515 = vmatmul.mubr.msk.f32.vlgmr.msra.gmra.mrb[100].mxu1 %vm163_vm1, %v75_v23  ;;  %24514 = vmatmul.mubr.msk.f32.vlgmr.msra.gmra.mrb[32].mxu0 %vm163_vm1, %v75_v23  ;;  %v29327_v43 = vpop.permute.xlu1 %22075  ;;  %v29349_v12 = vpop.permute.xlu0 %22077 }
 0x722   :  { %24877 = vmatpush3.msra.mxu1 %v19254_v25  ;;  %19554 = vmatpush1.msra.mxu0 %v19252_v38  ;;  %v30304_v25 = vld [vmem:[#allocation3_spill] sm:$0xff] }
 0x723   :  { %19815 = vmatprep.subr.mxu1 %v19722_v17  ;;  %19744 = vmatprep.subr.mxu0 %v19720_v8  ;;  %v20690_v38 = vsel %vm20679_vm8, %v30302_v27, %v30304_v25  ;;  %v30305_v8 = vld [vmem:[#allocation56_spill] sm:$0xff]  ;;  %v22091_v25 = vsel %vm22089_vm11, %v29259_v3, %v29269_v53 }
 0x724   :  { %24878 = vmatprep.mubr.msk.f32.mxu1 %vm25436_vm2, %v30028_v59  ;;  %19617 = vmatprep.mubr.f32.mxu0 %v30028_v59 }
 0x725   :  { %24879 = vmatmul.mubr.msk.f32.vlgmr.msra.gmra.mrb[102].mxu1 %vm163_vm1, %v75_v23  ;;  %24516 = vmatmul.mubr.msk.f32.vlgmr.msra.gmra.mrb[34].mxu0 %vm163_vm1, %v75_v23  ;;  %v29351_v19 = vpop.permute.xlu1 %22083  ;;  %v29381_v1 = vpop.permute.xlu0 %22085 }
 0x726   :  { %19816 = vmatpush1.msra.mxu1 %v19721_v20  ;;  %19745 = vmatpush1.msra.mxu0 %v19719_v18  ;;  %v30306_v18 = vld [vmem:[#allocation57_spill] sm:$0xff] }
 0x727   :  { %19957 = vmatprep.subr.mxu1 %v19726_v15  ;;  %19886 = vmatprep.subr.mxu0 %v19724_v11  ;;  %v30307_v15 = vld [vmem:[#allocation58_spill] sm:$0xff]  ;;  %v30308_v11 = vld [vmem:[#allocation59_spill] sm:$0xff] }
 0x728   :  { %19879 = vmatprep.mubr.f32.mxu1 %v30028_v59  ;;  %19808 = vmatprep.mubr.f32.mxu0 %v30028_v59 }
 0x729   :  { %24519 = vmatmul.mubr.msk.f32.vlgmr.msra.gmra.mrb[98].mxu1 %vm163_vm1, %v74_v21  ;;  %24518 = vmatmul.mubr.msk.f32.vlgmr.msra.gmra.mrb[30].mxu0 %vm163_vm1, %v74_v21  ;;  %v29385_v7 = vpop.permute.xlu1 %22087  ;;  %v29407_v46 = vpop.permute.xlu0 %22557 }
 0x72a   :  { %19958 = vmatpush1.msra.mxu1 %v19725_v50  ;;  %19887 = vmatpush1.msra.mxu0 %v19723_v57  ;;  %v30309_v50 = vld [vmem:[#allocation60_spill] sm:$0xff]  ;;  %v30310_v57 = vld [vmem:[#allocation61_spill] sm:$0xff] }
 0x72b   :  { %20028 = vmatprep.subr.mxu0 %v19728_v37  ;;  %20021 = vmatprep.mubr.f32.mxu1 %v30028_v59 }
 0x72c   :  { %24881 = vmatprep.subr.mxu1 %v30028_v59  ;;  %19950 = vmatprep.mubr.f32.mxu0 %v30028_v59 }
 0x72d   :  { %24521 = vmatmul.mubr.msk.f32.vlgmr.msra.gmra.mrb[100].mxu1 %vm163_vm1, %v74_v21  ;;  %24520 = vmatmul.mubr.msk.f32.vlgmr.msra.gmra.mrb[32].mxu0 %vm163_vm1, %v74_v21  ;;  %v29409_v14 = vpop.permute.xlu1 %22559  ;;  %v29439_v23 = vpop.permute.xlu0 %22553 }
 0x72e   :  { %24882 = vmatpush3.msra.mxu1 %v19729_v9  ;;  %20029 = vmatpush1.msra.mxu0 %v19727_v6  ;;  %v30311_v6 = vld [vmem:[#allocation62_spill] sm:$0xff] }
 0x72f   :  { %20290 = vmatprep.subr.mxu1 %v20197_v34  ;;  %20219 = vmatprep.subr.mxu0 %v20195_v5  ;;  %v30312_v34 = vld [vmem:[#allocation63_spill] sm:$0xff] }
 0x730   :  { %24883 = vmatprep.mubr.msk.f32.mxu1 %vm25436_vm2, %v30028_v59  ;;  %20092 = vmatprep.mubr.f32.mxu0 %v30028_v59  ;;  %v30313_v5 = vld [vmem:[#allocation43_spill] sm:$0xff] }
 0x731   :  { %24884 = vmatmul.mubr.msk.f32.vlgmr.msra.gmra.mrb[104].mxu1 %vm163_vm1, %v74_v21  ;;  %24522 = vmatmul.mubr.msk.f32.vlgmr.msra.gmra.mrb[34].mxu0 %vm163_vm1, %v74_v21  ;;  %v29443_v47 = vpop.permute.xlu1 %22555  ;;  %v29459_v17 = vpop.permute.xlu0 %22551  ;;  %v78_v21 = vld [vmem:[%s29854_s4 + $0x7c] sm:$0xf] }
 0x732   :  { %20291 = vmatpush1.msra.mxu1 %v20196_v39  ;;  %20220 = vmatpush1.msra.mxu0 %v20194_v31  ;;  %v30314_v31 = vld [vmem:[#allocation45_spill] sm:$0xff]  ;;  %v30315_v39 = vld [vmem:[#allocation64_spill] sm:$0xff] }
 0x733   :  { %20432 = vmatprep.subr.mxu1 %v20201_v28  ;;  %20361 = vmatprep.subr.mxu0 %v20199_v41  ;;  %v30316_v28 = vld [vmem:[#allocation18_spill] sm:$0xff]  ;;  %v30317_v41 = vld [vmem:[#allocation28_spill] sm:$0xff] }
 0x734   :  { %20354 = vmatprep.mubr.f32.mxu1 %v30028_v59  ;;  %20283 = vmatprep.mubr.f32.mxu0 %v30028_v59 }
 0x735   :  { %24525 = vmatmul.mubr.msk.f32.vlgmr.msra.gmra.mrb[98].mxu1 %vm163_vm1, %v76_v33  ;;  %24524 = vmatmul.mubr.msk.f32.vlgmr.msra.gmra.mrb[30].mxu0 %vm163_vm1, %v76_v33  ;;  %v29463_v20 = vpop.permute.xlu1 %22565  ;;  %v29479_v37 = vpop.permute.xlu0 %22567 }
 0x736   :  { %20433 = vmatpush1.msra.mxu1 %v20200_v44  ;;  %20362 = vmatpush1.msra.mxu0 %v20198_v35  ;;  %v30318_v44 = vld [vmem:[#allocation48_spill] sm:$0xff] }
 0x737   :  { %20503 = vmatprep.subr.mxu0 %v20203_v60  ;;  %20496 = vmatprep.mubr.f32.mxu1 %v30028_v59  ;;  %v30319_v35 = vld [vmem:[#allocation44_spill] sm:$0xff] }
 0x738   :  { %24886 = vmatprep.subr.mxu1 %v30028_v59  ;;  %20425 = vmatprep.mubr.f32.mxu0 %v30028_v59  ;;  %v21605_v60 = vsel %vm13469_vm12, %v30319_v35, %v30318_v44 }
 0x739   :  { %24527 = vmatmul.mubr.msk.f32.vlgmr.msra.gmra.mrb[100].mxu1 %vm163_vm1, %v76_v33  ;;  %24526 = vmatmul.mubr.msk.f32.vlgmr.msra.gmra.mrb[32].mxu0 %vm163_vm1, %v76_v33  ;;  %v29483_v9 = vpop.permute.xlu1 %22561 }
 0x73a   :  { %24887 = vmatpush3.msra.mxu1 %v20204_v40  ;;  %20504 = vmatpush1.msra.mxu0 %v20202_v4  ;;  %v29501_v4 = vpop.permute.xlu0 %22563 }
 0x73b   :  { %20776 = vmatprep.subr.mxu1 %v20683_v13  ;;  %20705 = vmatprep.subr.mxu0 %v20681_v10  ;;  %v30320_v13 = vld [vmem:[#allocation39_spill] sm:$0xff]  ;;  %v21606_v10 = vsel %vm13469_vm12, %v30318_v44, %v30317_v41 }
 0x73c   :  { %24888 = vmatprep.mubr.msk.f32.mxu1 %vm25436_vm2, %v30028_v59  ;;  %20567 = vmatprep.mubr.f32.mxu0 %v30028_v59  ;;  %v21604_v56 = vsel %vm13469_vm12, %v30320_v13, %v30319_v35  ;;  %v82_v44 = vld [vmem:[%s29854_s4 + $0x8c] sm:$0xf] }
 0x73d   :  { %24889 = vmatmul.mubr.msk.f32.vlgmr.msra.gmra.mrb[106].mxu1 %vm163_vm1, %v76_v33  ;;  %24528 = vmatmul.mubr.msk.f32.vlgmr.msra.gmra.mrb[34].mxu0 %vm163_vm1, %v76_v33  ;;  %v21607_v33 = vsel %vm13469_vm12, %v30317_v41, %v30316_v28  ;;  %v29503_v40 = vpop.permute.xlu1 %22569 }
 0x73e   :  { %20777 = vmatpush1.msra.mxu1 %v20682_v0  ;;  %20706 = vmatpush1.msra.mxu0 %v20680_v62  ;;  %v30322_v62 = vld [vmem:[#allocation40_spill] sm:$0xff] }
 0x73f   :  { %20918 = vmatprep.subr.mxu1 %v20687_v36  ;;  %20847 = vmatprep.subr.mxu0 %v20685_v61  ;;  %v21611_v0 = vsel %vm13469_vm12, %v30322_v62, %v30321_v32  ;;  %v21609_v36 = vsel %vm13469_vm12, %v30324_v49, %v30323_v48  ;;  %v21610_v58 = vsel %vm13469_vm12, %v30323_v48, %v30322_v62  ;;  %v30326_v62 = vld [vmem:[#allocation47_spill] sm:$0xff] }
 0x740   :  { %20840 = vmatprep.mubr.f32.mxu1 %v30028_v59  ;;  %20769 = vmatprep.mubr.f32.mxu0 %v30028_v59  ;;  %v21608_v61 = vsel %vm13469_vm12, %v30316_v28, %v30324_v49 }
 0x741   :  { %24531 = vmatmul.mubr.msk.f32.vlgmr.msra.gmra.mrb[98].mxu1 %vm163_vm1, %v77_v42  ;;  %24530 = vmatmul.mubr.msk.f32.vlgmr.msra.gmra.mrb[30].mxu0 %vm163_vm1, %v77_v42 }
 0x742   :  { %20919 = vmatpush1.msra.mxu1 %v20686_v29  ;;  %20848 = vmatpush1.msra.mxu0 %v20684_v22  ;;  %v29537_v29 = vpop.permute.xlu1 %22573  ;;  %v30325_v22 = vld [vmem:[#allocation50_spill] sm:$0xff] }
 0x743   :  { %20989 = vmatprep.subr.mxu0 %v20689_v45  ;;  %20982 = vmatprep.mubr.f32.mxu1 %v30028_v59  ;;  %v21613_v27 = vsel %vm13469_vm12, %v30325_v22, %v29205_v63  ;;  %v21612_v2 = vsel %vm13469_vm12, %v30321_v32, %v30325_v22  ;;  %v21614_v45 = vsel %vm13469_vm12, %v29205_v63, %v29212_v24 }
 0x744   :  { %24891 = vmatprep.subr.mxu1 %v30028_v59  ;;  %20911 = vmatprep.mubr.f32.mxu0 %v30028_v59  ;;  %v22090_v24 = vsel %vm22089_vm11, %v29291_v51, %v29259_v3  ;;  %v22092_v63 = vsel %vm22089_vm11, %v29269_v53, %v29226_v30  ;;  %v80_v3 = vld [vmem:[%s29854_s4 + $0x84] sm:$0xf]  ;;  %v22094_v53 = vsel %vm22089_vm11, %v29233_v54, %v29327_v43 }
 0x745   :  { %24533 = vmatmul.mubr.msk.f32.vlgmr.msra.gmra.mrb[100].mxu1 %vm163_vm1, %v77_v42  ;;  %24532 = vmatmul.mubr.msk.f32.vlgmr.msra.gmra.mrb[32].mxu0 %vm163_vm1, %v77_v42 }
 0x746   :  { %24892 = vmatpush3.msra.mxu1 %v20690_v38  ;;  %20990 = vmatpush1.msra.mxu0 %v20688_v52  ;;  %v22093_v52 = vsel %vm22089_vm11, %v29226_v30, %v29233_v54  ;;  %v22096_v30 = vsel %vm22089_vm11, %v29349_v12, %v29293_v16  ;;  %v22098_v54 = vsel %vm22089_vm11, %v29317_v26, %v29351_v19 }
 0x747   :  { %21215 = vmatprep.subr.mxu1 %v30305_v8  ;;  %21144 = vmatprep.subr.mxu0 %v30306_v18  ;;  %v29561_v8 = vpop.permute.xlu1 %23045  ;;  %v22097_v18 = vsel %vm22089_vm11, %v29293_v16, %v29317_v26  ;;  %v22100_v16 = vsel %vm22089_vm11, %v29381_v1, %v29385_v7  ;;  %v22583_v7 = vsel %vm22575_vm14, %v29463_v20, %v29479_v37 }
 0x748   :  { %24893 = vmatprep.mubr.msk.f32.mxu1 %vm25436_vm2, %v30028_v59  ;;  %21053 = vmatprep.mubr.f32.mxu0 %v30028_v59 }
 0x749   :  { %24894 = vmatmul.mubr.msk.f32.vlgmr.msra.gmra.mrb[108].mxu1 %vm163_vm1, %v77_v42  ;;  %24534 = vmatmul.mubr.msk.f32.vlgmr.msra.gmra.mrb[34].mxu0 %vm163_vm1, %v77_v42  ;;  %v29533_v42 = vpop.permute.xlu0 %22571 }
 0x74a   :  { %21216 = vmatpush1.msra.mxu1 %v30307_v15  ;;  %21145 = vmatpush1.msra.mxu0 %v30308_v11  ;;  %v22095_v15 = vsel %vm22089_vm11, %v29327_v43, %v29349_v12  ;;  %v22579_v43 = vsel %vm22575_vm14, %v29407_v46, %v29409_v14  ;;  %v22577_v12 = vsel %vm22575_vm14, %v29439_v23, %v29443_v47 }
 0x74b   :  { %21357 = vmatprep.subr.mxu1 %v30309_v50  ;;  %21286 = vmatprep.subr.mxu0 %v30310_v57  ;;  %v29595_v11 = vpop.permute.xlu1 %23041  ;;  %v22581_v57 = vsel %vm22575_vm14, %v29483_v9, %v29501_v4 }
 0x74c   :  { %21279 = vmatprep.mubr.f32.mxu1 %v30028_v59  ;;  %21208 = vmatprep.mubr.f32.mxu0 %v30028_v59 }
 0x74d   :  { %24537 = vmatmul.mubr.msk.f32.vlgmr.msra.gmra.mrb[98].mxu1 %vm163_vm1, %v78_v21  ;;  %24536 = vmatmul.mubr.msk.f32.vlgmr.msra.gmra.mrb[30].mxu0 %vm163_vm1, %v78_v21  ;;  %v29559_v38 = vpop.permute.xlu0 %23043 }
 0x74e   :  { %21358 = vmatpush1.msra.mxu1 %v30311_v6  ;;  %21287 = vmatpush1.msra.mxu0 %v30312_v34  ;;  %v22585_v34 = vsel %vm22575_vm14, %v29503_v40, %v29533_v42  ;;  %v23064_v28 = vsel %vm23061_vm15, %v29595_v11, %v29559_v38 }
 0x74f   :  { %21428 = vmatprep.subr.mxu0 %v30313_v5  ;;  %21421 = vmatprep.mubr.f32.mxu1 %v30028_v59  ;;  %v23052_v26 = vpop.permute.xlu1 %23051 }
 0x750   :  { %24896 = vmatprep.subr.mxu1 %v30028_v59  ;;  %21350 = vmatprep.mubr.f32.mxu0 %v30028_v59 }
 0x751   :  { %24539 = vmatmul.mubr.msk.f32.vlgmr.msra.gmra.mrb[100].mxu1 %vm163_vm1, %v78_v21  ;;  %24538 = vmatmul.mubr.msk.f32.vlgmr.msra.gmra.mrb[32].mxu0 %vm163_vm1, %v78_v21  ;;  %v29591_v51 = vpop.permute.xlu0 %23039 }
 0x752   :  { %24897 = vmatpush3.msra.mxu1 %v30314_v31  ;;  %21429 = vmatpush1.msra.mxu0 %v30315_v39  ;;  %v23063_v5 = vsel %vm23061_vm15, %v29591_v51, %v29595_v11 }
 0x753   :  { %21700 = vmatprep.subr.mxu1 %v21607_v33  ;;  %21629 = vmatprep.subr.mxu0 %v21605_v60  ;;  %v23048_v6 = vpop.permute.xlu1 %23047 }
 0x754   :  { %24898 = vmatprep.mubr.msk.f32.mxu1 %vm25436_vm2, %v30028_v59  ;;  %21492 = vmatprep.mubr.f32.mxu0 %v30028_v59 }
 0x755   :  { %24899 = vmatmul.mubr.msk.f32.vlgmr.msra.gmra.mrb[110].mxu1 %vm163_vm1, %v78_v21  ;;  %24540 = vmatmul.mubr.msk.f32.vlgmr.msra.gmra.mrb[34].mxu0 %vm163_vm1, %v78_v21  ;;  %v22099_v21 = vsel %vm22089_vm11, %v29351_v19, %v29381_v1  ;;  %v23038_v50 = vpop.permute.xlu0 %23037  ;;  %v22576_v19 = vsel %vm22575_vm14, %v29459_v17, %v29439_v23  ;;  %v22578_v1 = vsel %vm22575_vm14, %v29443_v47, %v29407_v46  ;;  %v81_v23 = vld [vmem:[%s29854_s4 + $0x88] sm:$0xf] }
 0x756   :  { %21701 = vmatpush1.msra.mxu1 %v21606_v10  ;;  %21630 = vmatpush1.msra.mxu0 %v21604_v56  ;;  %v22582_v46 = vsel %vm22575_vm14, %v29501_v4, %v29463_v20  ;;  %v22580_v47 = vsel %vm22575_vm14, %v29409_v14, %v29483_v9  ;;  %v22584_v14 = vsel %vm22575_vm14, %v29479_v37, %v29503_v40 }
 0x757   :  { %21842 = vmatprep.subr.mxu1 %v21611_v0  ;;  %21771 = vmatprep.subr.mxu0 %v21609_v36  ;;  %v22586_v20 = vsel %vm22575_vm14, %v29533_v42, %v29537_v29  ;;  %v23065_v9 = vsel %vm23061_vm15, %v29559_v38, %v29561_v8  ;;  %v23056_v37 = vpop.permute.xlu1 %23055  ;;  %v23062_v39 = vsel %vm23061_vm15, %v23038_v50, %v29591_v51 }
 0x758   :  { %21764 = vmatprep.mubr.f32.mxu1 %v30028_v59  ;;  %21693 = vmatprep.mubr.f32.mxu0 %v30028_v59  ;;  %v23066_v4 = vsel %vm23061_vm15, %v29561_v8, %v23048_v6 }
 0x759   :  { %24543 = vmatmul.mubr.msk.f32.vlgmr.msra.gmra.mrb[98].mxu1 %vm163_vm1, %v79_v55  ;;  %24542 = vmatmul.mubr.msk.f32.vlgmr.msra.gmra.mrb[30].mxu0 %vm163_vm1, %v79_v55  ;;  %v23054_v17 = vpop.permute.xlu0 %23053 }
 0x75a   :  { %21843 = vmatpush1.msra.mxu1 %v21610_v58  ;;  %21772 = vmatpush1.msra.mxu0 %v21608_v61  ;;  %v23069_v41 = vsel %vm23061_vm15, %v23052_v26, %v23054_v17  ;;  %v23070_v56 = vsel %vm23061_vm15, %v23054_v17, %v23056_v37 }
 0x75b   :  { %21913 = vmatprep.subr.mxu0 %v21613_v27  ;;  %21906 = vmatprep.mubr.f32.mxu1 %v30028_v59  ;;  %v23060_v40 = vpop.permute.xlu1 %23059 }
 0x75c   :  { %24901 = vmatprep.subr.mxu1 %v30028_v59  ;;  %21835 = vmatprep.mubr.f32.mxu0 %v30028_v59 }
 0x75d   :  { %24545 = vmatmul.mubr.msk.f32.vlgmr.msra.gmra.mrb[100].mxu1 %vm163_vm1, %v79_v55  ;;  %24544 = vmatmul.mubr.msk.f32.vlgmr.msra.gmra.mrb[32].mxu0 %vm163_vm1, %v79_v55  ;;  %v23050_v31 = vpop.permute.xlu0 %23049 }
 0x75e   :  { %24902 = vmatpush3.msra.mxu1 %v21614_v45  ;;  %21914 = vmatpush1.msra.mxu0 %v21612_v2  ;;  %v23067_v33 = vsel %vm23061_vm15, %v23048_v6, %v23050_v31  ;;  %v23068_v60 = vsel %vm23061_vm15, %v23050_v31, %v23052_v26  ;;  %v90_v31 = vld [vmem:[%s29856_s6 + $0x18] sm:$0xff] }
 0x75f   :  { %22186 = vmatprep.subr.mxu1 %v22093_v52  ;;  %22115 = vmatprep.subr.mxu0 %v22091_v25 }
 0x760   :  { %24903 = vmatprep.mubr.msk.f32.mxu1 %vm25436_vm2, %v30028_v59  ;;  %21977 = vmatprep.mubr.f32.mxu0 %v30028_v59 }
 0x761   :  { %24904 = vmatmul.mubr.msk.f32.vlgmr.msra.gmra.mrb[112].mxu1 %vm163_vm1, %v79_v55  ;;  %24546 = vmatmul.mubr.msk.f32.vlgmr.msra.gmra.mrb[34].mxu0 %vm163_vm1, %v79_v55  ;;  %v23058_v35 = vpop.permute.xlu0 %23057 }
 0x762   :  { %22187 = vmatpush1.msra.mxu1 %v22092_v63  ;;  %22116 = vmatpush1.msra.mxu0 %v22090_v24  ;;  %v23071_v13 = vsel %vm23061_vm15, %v23056_v37, %v23058_v35  ;;  %v23072_v10 = vsel %vm23061_vm15, %v23058_v35, %v23060_v40 }
 0x763   :  { %22328 = vmatprep.subr.mxu1 %v22097_v18  ;;  %22257 = vmatprep.subr.mxu0 %v22095_v15 }
 0x764   :  { %22250 = vmatprep.mubr.f32.mxu1 %v30028_v59  ;;  %22179 = vmatprep.mubr.f32.mxu0 %v30028_v59 }
 0x765   :  { %24549 = vmatmul.mubr.msk.f32.vlgmr.msra.gmra.mrb[98].mxu1 %vm163_vm1, %v80_v3  ;;  %24548 = vmatmul.mubr.msk.f32.vlgmr.msra.gmra.mrb[30].mxu0 %vm163_vm1, %v80_v3  ;;  %v23526_v11 = vpop.permute.xlu0 %23525 }
 0x766   :  { %22329 = vmatpush1.msra.mxu1 %v22096_v30  ;;  %22258 = vmatpush1.msra.mxu0 %v22094_v53 }
 0x767   :  { %22399 = vmatprep.subr.mxu0 %v22099_v21  ;;  %22392 = vmatprep.mubr.f32.mxu1 %v30028_v59 }
 0x768   :  { %24906 = vmatprep.subr.mxu1 %v30028_v59  ;;  %22321 = vmatprep.mubr.f32.mxu0 %v30028_v59 }
 0x769   :  { %24551 = vmatmul.mubr.msk.f32.vlgmr.msra.gmra.mrb[100].mxu1 %vm163_vm1, %v80_v3  ;;  %24550 = vmatmul.mubr.msk.f32.vlgmr.msra.gmra.mrb[32].mxu0 %vm163_vm1, %v80_v3 }
 0x76a   :  { %24907 = vmatpush3.msra.mxu1 %v22100_v16  ;;  %22400 = vmatpush1.msra.mxu0 %v22098_v54 }
 0x76b   :  { %22672 = vmatprep.subr.mxu1 %v22579_v43  ;;  %22601 = vmatprep.subr.mxu0 %v22577_v12 }
 0x76c   :  { %24908 = vmatprep.mubr.msk.f32.mxu1 %vm25436_vm2, %v30028_v59  ;;  %22463 = vmatprep.mubr.f32.mxu0 %v30028_v59 }
 0x76d   :  { %24909 = vmatmul.mubr.msk.f32.vlgmr.msra.gmra.mrb[114].mxu1 %vm163_vm1, %v80_v3  ;;  %24552 = vmatmul.mubr.msk.f32.vlgmr.msra.gmra.mrb[34].mxu0 %vm163_vm1, %v80_v3 }
 0x76e   :  { %22673 = vmatpush1.msra.mxu1 %v22578_v1  ;;  %22602 = vmatpush1.msra.mxu0 %v22576_v19 }
 0x76f   :  { %22814 = vmatprep.subr.mxu1 %v22583_v7  ;;  %22743 = vmatprep.subr.mxu0 %v22581_v57 }
 0x770   :  { %22736 = vmatprep.mubr.f32.mxu1 %v30028_v59  ;;  %22665 = vmatprep.mubr.f32.mxu0 %v30028_v59 }
 0x771   :  { %24555 = vmatmul.mubr.msk.f32.vlgmr.msra.gmra.mrb[98].mxu1 %vm163_vm1, %v81_v23  ;;  %24554 = vmatmul.mubr.msk.f32.vlgmr.msra.gmra.mrb[30].mxu0 %vm163_vm1, %v81_v23 }
 0x772   :  { %22815 = vmatpush1.msra.mxu1 %v22582_v46  ;;  %22744 = vmatpush1.msra.mxu0 %v22580_v47 }
 0x773   :  { %22885 = vmatprep.subr.mxu0 %v22585_v34  ;;  %22878 = vmatprep.mubr.f32.mxu1 %v30028_v59 }
 0x774   :  { %24911 = vmatprep.subr.mxu1 %v30028_v59  ;;  %22807 = vmatprep.mubr.f32.mxu0 %v30028_v59 }
 0x775   :  { %24557 = vmatmul.mubr.msk.f32.vlgmr.msra.gmra.mrb[100].mxu1 %vm163_vm1, %v81_v23  ;;  %24556 = vmatmul.mubr.msk.f32.vlgmr.msra.gmra.mrb[32].mxu0 %vm163_vm1, %v81_v23 }
 0x776   :  { %24912 = vmatpush3.msra.mxu1 %v22586_v20  ;;  %22886 = vmatpush1.msra.mxu0 %v22584_v14 }
 0x777   :  { %23158 = vmatprep.subr.mxu1 %v23065_v9  ;;  %23087 = vmatprep.subr.mxu0 %v23063_v5 }
 0x778   :  { %24913 = vmatprep.mubr.msk.f32.mxu1 %vm25436_vm2, %v30028_v59  ;;  %22949 = vmatprep.mubr.f32.mxu0 %v30028_v59 }
 0x779   :  { %24914 = vmatmul.mubr.msk.f32.vlgmr.msra.gmra.mrb[116].mxu1 %vm163_vm1, %v81_v23  ;;  %24558 = vmatmul.mubr.msk.f32.vlgmr.msra.gmra.mrb[34].mxu0 %vm163_vm1, %v81_v23 }
 0x77a   :  { %23159 = vmatpush1.msra.mxu1 %v23064_v28  ;;  %23088 = vmatpush1.msra.mxu0 %v23062_v39 }
 0x77b   :  { %23300 = vmatprep.subr.mxu1 %v23069_v41  ;;  %23229 = vmatprep.subr.mxu0 %v23067_v33 }
 0x77c   :  { %23222 = vmatprep.mubr.f32.mxu1 %v30028_v59  ;;  %23151 = vmatprep.mubr.f32.mxu0 %v30028_v59 }
 0x77d   :  { %24561 = vmatmul.mubr.msk.f32.vlgmr.msra.gmra.mrb[98].mxu1 %vm163_vm1, %v82_v44  ;;  %24560 = vmatmul.mubr.msk.f32.vlgmr.msra.gmra.mrb[30].mxu0 %vm163_vm1, %v82_v44 }
 0x77e   :  { %23301 = vmatpush1.msra.mxu1 %v23068_v60  ;;  %23230 = vmatpush1.msra.mxu0 %v23066_v4 }
 0x77f   :  { %23371 = vmatprep.subr.mxu0 %v23071_v13  ;;  %23364 = vmatprep.mubr.f32.mxu1 %v30028_v59 }
 0x780   :  { %24916 = vmatprep.subr.mxu1 %v30028_v59  ;;  %23293 = vmatprep.mubr.f32.mxu0 %v30028_v59 }
 0x781   :  { %24563 = vmatmul.mubr.msk.f32.vlgmr.msra.gmra.mrb[100].mxu1 %vm163_vm1, %v82_v44  ;;  %24562 = vmatmul.mubr.msk.f32.vlgmr.msra.gmra.mrb[32].mxu0 %vm163_vm1, %v82_v44 }
 0x782   :  { %24917 = vmatpush3.msra.mxu1 %v23072_v10  ;;  %23372 = vmatpush1.msra.mxu0 %v23070_v56 }
 0x783   :  { %24918 = vmatprep.mubr.msk.f32.mxu1 %vm25436_vm2, %v30028_v59  ;;  %23435 = vmatprep.mubr.f32.mxu0 %v30028_v59 }
 0x785   :  { %24919 = vmatmul.mubr.msk.f32.vlgmr.msra.gmra.mrb[118].mxu1 %vm163_vm1, %v82_v44  ;;  %24564 = vmatmul.mubr.msk.f32.vlgmr.msra.gmra.mrb[34].mxu0 %vm163_vm1, %v82_v44 }
 0x786   :  { %23743 = vmatprep.mubr.f32.mxu1 %v30028_v59  ;;  %23672 = vmatprep.mubr.f32.mxu0 %v30028_v59 }
 0x7eb   :  { %v19204_v32 = vpop.f32.mrb[96].mxu1 }
 0x7ec   :  { %v29705_v0 = vadd.f32 %v19204_v32, %v30326_v62  ;;  %v24875_v48 = vpop.f32.mrb[97].mxu1 }
 0x7f8   :  { %v19690_v49 = vpop.f32.mrb[102].mxu1 }
 0x7f9   :  { %v24880_v36 = vpop.f32.mrb[103].mxu1 }
 0x804   :  { %v20165_v55 = vpop.f32.mrb[104].mxu1 }
 0x805   :  { %v20166_v58 = vadd.f32 %v20165_v55, %v19690_v49  ;;  %v24885_v61 = vpop.f32.mrb[105].mxu1 }
 0x810   :  { %v20640_v42 = vpop.f32.mrb[106].mxu1 }
 0x811   :  { %v20654_v29 = vadd.f32 %v20640_v42, %v20166_v58  ;;  %v24890_v22 = vpop.f32.mrb[107].mxu1 }
 0x81c   :  { %v21126_v27 = vpop.f32.mrb[108].mxu1 }
 0x81d   :  { %v21140_v2 = vadd.f32 %v21126_v27, %v20654_v29  ;;  %v24895_v45 = vpop.f32.mrb[109].mxu1 }
 0x828   :  { %v21565_v52 = vpop.f32.mrb[110].mxu1 }
 0x829   :  { %v21579_v25 = vadd.f32 %v21565_v52, %v21140_v2  ;;  %v24900_v38 = vpop.f32.mrb[111].mxu1  ;;  %v24047_v2 = vpop.permute.xlu1 %24046 }
 0x834   :  { %v22050_v8 = vpop.f32.mrb[112].mxu1 }
 0x835   :  { %v22064_v24 = vadd.f32 %v22050_v8, %v21579_v25  ;;  %v24905_v63 = vpop.f32.mrb[113].mxu1 }
 0x840   :  { %v22536_v18 = vpop.f32.mrb[114].mxu1 }
 0x841   :  { %v22550_v15 = vadd.f32 %v22536_v18, %v22064_v24  ;;  %v24910_v3 = vpop.f32.mrb[115].mxu1 }
 0x84c   :  { %v23022_v30 = vpop.f32.mrb[116].mxu1 }
 0x84d   :  { %v23036_v53 = vadd.f32 %v23022_v30, %v22550_v15  ;;  %v24915_v51 = vpop.f32.mrb[117].mxu1 }
 0x850   :  { %v23224_v21 = vpop.f32.mrb[98].mxu1  ;;  %v23153_v54 = vpop.f32.mrb[30].mxu0 }
 0x851   :  { %v23530_v16 = vadd.f32 %v23526_v11, %v23224_v21  ;;  %v23528_v43 = vadd.f32 %v23526_v11, %v23153_v54  ;;  %v23226_v12 = vpop.f32.mrb[99].mxu1  ;;  %v23155_v50 = vpop.f32.mrb[31].mxu0 }
 0x852   :  { %v23531_v26 = vadd.f32 %v23526_v11, %v23226_v12  ;;  %v23529_v19 = vadd.f32 %v23526_v11, %v23155_v50 }
 0x853   :  { %vm23541_vm13 = vcmp.ge.f32.partialorder %v23530_v16, 0.0  ;;  %v23552_v1 = vmul.f32 0.1, %v23530_v16  ;;  %vm23539_vm0 = vcmp.ge.f32.partialorder %v23528_v43, 0.0  ;;  %v23550_v7 = vmul.f32 0.1, %v23528_v43 }
 0x854   :  { %vm23542_vm3 = vcmp.ge.f32.partialorder %v23531_v26, 0.0  ;;  %v23553_v57 = vmul.f32 0.1, %v23531_v26  ;;  %vm23540_vm4 = vcmp.ge.f32.partialorder %v23529_v19, 0.0  ;;  %v23551_v23 = vmul.f32 0.1, %v23529_v19 }
 0x855   :  { %v23563_v46 = vsel %vm23541_vm13, %v23530_v16, %v23552_v1  ;;  %v23366_v47 = vpop.f32.mrb[100].mxu1  ;;  %v23295_v17 = vpop.f32.mrb[32].mxu0  ;;  %v23561_v37 = vsel %vm23539_vm0, %v23528_v43, %v23550_v7 }
 0x856   :  { %v23534_v6 = vadd.f32 %v23526_v11, %v23366_v47  ;;  %v23532_v34 = vadd.f32 %v23526_v11, %v23295_v17  ;;  %v23368_v14 = vpop.f32.mrb[101].mxu1  ;;  %v23297_v20 = vpop.f32.mrb[33].mxu0  ;;  %v23564_v9 = vsel %vm23542_vm3, %v23531_v26, %v23553_v57  ;;  %v23562_v5 = vsel %vm23540_vm4, %v23529_v19, %v23551_v23 }
 0x857   :  { %v23535_v39 = vadd.f32 %v23526_v11, %v23368_v14  ;;  %v23533_v28 = vadd.f32 %v23526_v11, %v23297_v20  ;;  %24569 = vmatprep.subr.msk.mxu1 %vm13473_vm9, %v23564_v9  ;;  %24566 = vmatprep.subr.msk.mxu0 %vm13473_vm9, %v23562_v5 }
 0x858   :  { %vm23545_vm5 = vcmp.ge.f32.partialorder %v23534_v6, 0.0  ;;  %v23556_v41 = vmul.f32 0.1, %v23534_v6  ;;  %vm23543_vm6 = vcmp.ge.f32.partialorder %v23532_v34, 0.0  ;;  %v23554_v33 = vmul.f32 0.1, %v23532_v34  ;;  %24570 = vmatpush1.msk.msra.mxu1 %vm13473_vm9, %v23563_v46  ;;  %24567 = vmatpush1.msk.msra.mxu0 %vm13473_vm9, %v23561_v37 }
 0x859   :  { %vm23546_vm7 = vcmp.ge.f32.partialorder %v23535_v39, 0.0  ;;  %v23557_v44 = vmul.f32 0.1, %v23535_v39  ;;  %vm23544_vm8 = vcmp.ge.f32.partialorder %v23533_v28, 0.0  ;;  %v23555_v35 = vmul.f32 0.1, %v23533_v28  ;;  %24571 = vmatmul.mubr.msk.f32.vlgmr.msra.gmra.mrb[66].mxu1 %vm13469_vm12, %v90_v31  ;;  %24568 = vmatmul.mubr.msk.f32.vlgmr.msra.gmra.mrb[18].mxu0 %vm13469_vm12, %v90_v31 }
 0x85a   :  { %v23508_v60 = vpop.f32.mrb[118].mxu1  ;;  %v23437_v4 = vpop.f32.mrb[34].mxu0  ;;  %23885 = vmatprep.mubr.f32.mxu1 %v30028_v59  ;;  %23814 = vmatprep.mubr.f32.mxu0 %v30028_v59  ;;  %v23567_v48 = vsel %vm23545_vm5, %v23534_v6, %v23556_v41  ;;  %v23565_v49 = vsel %vm23543_vm6, %v23532_v34, %v23554_v33 }
 0x85b   :  { %v23522_v40 = vadd.f32 %v23508_v60, %v23036_v53  ;;  %v23536_v13 = vadd.f32 %v23526_v11, %v23437_v4  ;;  %v23439_v56 = vpop.f32.mrb[35].mxu0  ;;  %v23568_v10 = vsel %vm23546_vm7, %v23535_v39, %v23557_v44  ;;  %v23566_v32 = vsel %vm23544_vm8, %v23533_v28, %v23555_v35  ;;  %v24920_v62 = vpop.f32.mrb[119].mxu1  ;;  %v24093_v4 = vld [vmem:[%s29850_s0] sm:$0xff] }
 0x85c   :  { %v23537_v36 = vadd.f32 %v23526_v11, %v23439_v56  ;;  %24575 = vmatprep.subr.msk.mxu1 %vm13473_vm9, %v23568_v10  ;;  %24572 = vmatprep.subr.msk.mxu0 %vm13473_vm9, %v23566_v32 }
 0x85d   :  { %v23538_v55 = vadd.f32 %v23526_v11, %v23522_v40  ;;  %v23558_v58 = vmul.f32 0.1, %v23536_v13  ;;  %24576 = vmatpush1.msk.msra.mxu1 %vm13473_vm9, %v23567_v48  ;;  %24573 = vmatpush1.msk.msra.mxu0 %vm13473_vm9, %v23565_v49  ;;  %vm23547_vm11 = vcmp.ge.f32.partialorder %v23536_v13, 0.0  ;;  %v24095_v48 = vld [vmem:[%s29850_s0 + $0x10] sm:$0xff] }
 0x85e   :  { %vm23548_vm14 = vcmp.ge.f32.partialorder %v23537_v36, 0.0  ;;  %v23559_v61 = vmul.f32 0.1, %v23537_v36  ;;  %24577 = vmatmul.mubr.msk.f32.vlgmr.msra.gmra.mrb[68].mxu1 %vm13469_vm12, %v90_v31  ;;  %24574 = vmatmul.mubr.msk.f32.vlgmr.msra.gmra.mrb[20].mxu0 %vm13469_vm12, %v90_v31 }
 0x85f   :  { %vm23549_vm15 = vcmp.ge.f32.partialorder %v23538_v55, 0.0  ;;  %v23560_v42 = vmul.f32 0.1, %v23538_v55  ;;  %24921 = vmatprep.subr.mxu1 %v30028_v59  ;;  %24923 = vmatprep.mubr.msk.f32.mxu1 %vm25436_vm2, %v30028_v59  ;;  %v23569_v22 = vsel %vm23547_vm11, %v23536_v13, %v23558_v58  ;;  %v24094_v13 = vld [vmem:[%s29850_s0 + $0x8] sm:$0xff] }
 0x860   :  { %v23570_v29 = vsel %vm23548_vm14, %v23537_v36, %v23559_v61  ;;  %23956 = vmatprep.mubr.f32.mxu0 %v30028_v59  ;;  %v24096_v36 = vld [vmem:[%s29850_s0 + $0x18] sm:$0xff] }
 0x861   :  { %24578 = vmatprep.subr.msk.mxu0 %vm13473_vm9, %v23570_v29  ;;  %v23571_v27 = vsel %vm23549_vm15, %v23538_v55, %v23560_v42 }
 0x862   :  { %24922 = vmatpush3.msk.msra.mxu1 %vm13473_vm9, %v23571_v27  ;;  %24579 = vmatpush1.msk.msra.mxu0 %vm13473_vm9, %v23569_v22  ;;  %v24097_v22 = vld [vmem:[%s29850_s0 + $0x20] sm:$0xff] }
 0x863   :  { %24924 = vmatmul.mubr.msk.f32.vlgmr.msra.gmra.mrb[120].mxu1 %vm13469_vm12, %v90_v31  ;;  %24580 = vmatmul.mubr.msk.f32.vlgmr.msra.gmra.mrb[22].mxu0 %vm13469_vm12, %v90_v31 }
 0x92c   :  { %v23745_v45 = vpop.f32.mrb[66].mxu1  ;;  %v23674_v52 = vpop.f32.mrb[18].mxu0 }
 0x92d   :  { %v24051_v25 = vadd.f32 %v24047_v2, %v23745_v45  ;;  %v24049_v38 = vadd.f32 %v24047_v2, %v23674_v52  ;;  %v23747_v8 = vpop.f32.mrb[67].mxu1  ;;  %v23676_v24 = vpop.f32.mrb[19].mxu0 }
 0x92e   :  { %v24052_v59 = vadd.f32 %v24047_v2, %v23747_v8  ;;  %v24050_v63 = vadd.f32 %v24047_v2, %v23676_v24  ;;  %v24099_v24 = vld [vmem:[%s29850_s0 + $0x30] sm:$0xff] }
 0x92f   :  { %vm24060_vm2 = vcmp.ge.f32.partialorder %v24049_v38, 0.0  ;;  %v24071_v18 = vmul.f32 0.1, %v24049_v38  ;;  %v24073_v3 = vmul.f32 0.1, %v24051_v25  ;;  %vm24062_vm9 = vcmp.ge.f32.partialorder %v24051_v25, 0.0 }
 0x930   :  { %vm24061_vm13 = vcmp.ge.f32.partialorder %v24050_v63, 0.0  ;;  %v24072_v15 = vmul.f32 0.1, %v24050_v63  ;;  %v24074_v11 = vmul.f32 0.1, %v24052_v59  ;;  %vm24063_vm12 = vcmp.ge.f32.partialorder %v24052_v59, 0.0 }
 0x931   :  { %v23887_v30 = vpop.f32.mrb[68].mxu1  ;;  %v23816_v53 = vpop.f32.mrb[20].mxu0  ;;  %v24082_v51 = vsel %vm24060_vm2, %v24049_v38, %v24071_v18  ;;  %v24084_v19 = vsel %vm24062_vm9, %v24051_v25, %v24073_v3 }
 0x932   :  { %v24053_v21 = vadd.f32 %v24047_v2, %v23816_v53  ;;  %v23889_v54 = vpop.f32.mrb[69].mxu1  ;;  %v23818_v16 = vpop.f32.mrb[21].mxu0  ;;  %24116 = vrot.lane.b32.xlu0 %v24082_v51, %s25441_s25  ;;  %v24083_v43 = vsel %vm24061_vm13, %v24050_v63, %v24072_v15  ;;  %v24055_v50 = vadd.f32 %v24047_v2, %v23887_v30  ;;  %v24085_v46 = vsel %vm24063_vm12, %v24052_v59, %v24074_v11  ;;  %v24100_v63 = vld [vmem:[%s29850_s0 + $0x38] sm:$0xff]  ;;  %v24101_v51 = vld [vmem:[%s29850_s0 + $0x40] sm:$0xff] }
 0x933   :  { %v24054_v12 = vadd.f32 %v24047_v2, %v23818_v16  ;;  %24118 = vrot.lane.b32.xlu1 %v24083_v43, %s25441_s25  ;;  %v24056_v1 = vadd.f32 %v24047_v2, %v23889_v54 }
 0x934   :  { %v24075_v26 = vmul.f32 0.1, %v24053_v21  ;;  %vm24064_vm0 = vcmp.ge.f32.partialorder %v24053_v21, 0.0  ;;  %v24077_v34 = vmul.f32 0.1, %v24055_v50  ;;  %vm24066_vm4 = vcmp.ge.f32.partialorder %v24055_v50, 0.0 }
 0x935   :  { %v24076_v7 = vmul.f32 0.1, %v24054_v12  ;;  %vm24065_vm3 = vcmp.ge.f32.partialorder %v24054_v12, 0.0  ;;  %v24078_v9 = vmul.f32 0.1, %v24056_v1  ;;  %vm24067_vm5 = vcmp.ge.f32.partialorder %v24056_v1, 0.0 }
 0x936   :  { %v24029_v57 = vpop.f32.mrb[120].mxu1  ;;  %v23958_v23 = vpop.f32.mrb[22].mxu0  ;;  %24120 = vrot.lane.b32.xlu0 %v24084_v19, %s25441_s25  ;;  %v24086_v20 = vsel %vm24064_vm0, %v24053_v21, %v24075_v26  ;;  %v24088_v28 = vsel %vm24066_vm4, %v24055_v50, %v24077_v34  ;;  %v24102_v21 = vld [vmem:[%s29850_s0 + $0x48] sm:$0xff]  ;;  %v24103_v26 = vld [vmem:[%s29850_s0 + $0x50] sm:$0xff]  ;;  %v24104_v19 = vld [vmem:[%s29850_s0 + $0x58] sm:$0xff] }
 0x937   :  { %v24043_v47 = vadd.f32 %v24029_v57, %v29705_v0  ;;  %v23960_v17 = vpop.f32.mrb[23].mxu0  ;;  %24122 = vrot.lane.b32.xlu1 %v24085_v46, %s25441_s25  ;;  %v24925_v6 = vpop.f32.mrb[121].mxu1  ;;  %v24057_v14 = vadd.f32 %v24047_v2, %v23958_v23  ;;  %v24087_v31 = vsel %vm24065_vm3, %v24054_v12, %v24076_v7  ;;  %v24089_v41 = vsel %vm24067_vm5, %v24056_v1, %v24078_v9 }
 0x938   :  { %v24058_v5 = vadd.f32 %v24047_v2, %v23960_v17 }
 0x939   :  { %v24059_v37 = vadd.f32 %v24047_v2, %v24043_v47  ;;  %v24079_v39 = vmul.f32 0.1, %v24057_v14  ;;  %vm24068_vm6 = vcmp.ge.f32.partialorder %v24057_v14, 0.0  ;;  %v24098_v2 = vld [vmem:[%s29850_s0 + $0x28] sm:$0xff] }
 0x93a   :  { %24124 = vrot.lane.b32.xlu0 %v24086_v20, %s25441_s25  ;;  %v24080_v0 = vmul.f32 0.1, %v24058_v5  ;;  %vm24069_vm7 = vcmp.ge.f32.partialorder %v24058_v5, 0.0 }
 0x93b   :  { %24126 = vrot.lane.b32.xlu1 %v24087_v31, %s25441_s25  ;;  %v24081_v33 = vmul.f32 0.1, %v24059_v37  ;;  %v24090_v44 = vsel %vm24068_vm6, %v24057_v14, %v24079_v39  ;;  %vm24070_vm8 = vcmp.ge.f32.partialorder %v24059_v37, 0.0 }
 0x93c   :  { %v24091_v35 = vsel %vm24069_vm7, %v24058_v5, %v24080_v0 }
 0x93d   :  { %v24092_v60 = vsel %vm24070_vm8, %v24059_v37, %v24081_v33 }
 0x93e   :  { %24128 = vrot.lane.b32.xlu0 %v24088_v28, %s25441_s25 }
 0x93f   :  { %24130 = vrot.lane.b32.xlu1 %v24089_v41, %s25441_s25 }
 0x942   :  { %24132 = vrot.lane.b32.xlu0 %v24090_v44, %s25441_s25 }
 0x943   :  { %24134 = vrot.lane.b32.xlu1 %v24091_v35, %s25441_s25 }
 0x946   :  { %24136 = vrot.lane.b32.xlu0 %v24092_v60, %s25441_s25 }
 0x9a4   :  { %v24117_v40 = vpop.permute.xlu0 %24116 }
 0x9a5   :  { %v24160_v56 = vadd.f32 %v24117_v40, %v24093_v4  ;;  %v24119_v10 = vpop.permute.xlu1 %24118 }
 0x9a6   :  { %v24138_v32 = vsel %vm29_vm10, %v24117_v40, %v24119_v10 }
 0x9a7   :  { %v24161_v62 = vadd.f32 %v24138_v32, %v24094_v13  ;;  %24184 = vrot.lane.b32.xlu1 %v24160_v56, %s25434_s12 }
 0x9a8   :  { %v24121_v49 = vpop.permute.xlu0 %24120 }
 0x9a9   :  { %v24139_v55 = vsel %vm29_vm10, %v24119_v10, %v24121_v49  ;;  %v24123_v58 = vpop.permute.xlu1 %24122  ;;  %24186 = vrot.lane.b32.xlu0 %v24161_v62, %s25434_s12 }
 0x9aa   :  { %v24162_v61 = vadd.f32 %v24139_v55, %v24095_v48  ;;  %v24140_v42 = vsel %vm29_vm10, %v24121_v49, %v24123_v58 }
 0x9ab   :  { %v24163_v29 = vadd.f32 %v24140_v42, %v24096_v36 }
 0x9ac   :  { %24188 = vrot.lane.b32.xlu1 %v24162_v61, %s25434_s12  ;;  %v24125_v27 = vpop.permute.xlu0 %24124 }
 0x9ad   :  { %v24141_v45 = vsel %vm29_vm10, %v24123_v58, %v24125_v27  ;;  %v24127_v52 = vpop.permute.xlu1 %24126  ;;  %24190 = vrot.lane.b32.xlu0 %v24163_v29, %s25434_s12 }
 0x9ae   :  { %v24164_v25 = vadd.f32 %v24141_v45, %v24097_v22  ;;  %v24142_v38 = vsel %vm29_vm10, %v24125_v27, %v24127_v52 }
 0x9af   :  { %v24165_v8 = vadd.f32 %v24142_v38, %v24098_v2 }
 0x9b0   :  { %24192 = vrot.lane.b32.xlu1 %v24164_v25, %s25434_s12  ;;  %v24129_v59 = vpop.permute.xlu0 %24128 }
 0x9b1   :  { %v24143_v18 = vsel %vm29_vm10, %v24127_v52, %v24129_v59  ;;  %v24131_v15 = vpop.permute.xlu1 %24130  ;;  %24194 = vrot.lane.b32.xlu0 %v24165_v8, %s25434_s12 }
 0x9b2   :  { %v24166_v3 = vadd.f32 %v24143_v18, %v24099_v24  ;;  %v24144_v30 = vsel %vm29_vm10, %v24129_v59, %v24131_v15 }
 0x9b3   :  { %v24167_v53 = vadd.f32 %v24144_v30, %v24100_v63 }
 0x9b4   :  { %24196 = vrot.lane.b32.xlu1 %v24166_v3, %s25434_s12  ;;  %v24133_v11 = vpop.permute.xlu0 %24132 }
 0x9b5   :  { %v24145_v54 = vsel %vm29_vm10, %v24131_v15, %v24133_v11  ;;  %v24135_v16 = vpop.permute.xlu1 %24134  ;;  %24198 = vrot.lane.b32.xlu0 %v24167_v53, %s25434_s12 }
 0x9b6   :  { %v24168_v43 = vadd.f32 %v24145_v54, %v24101_v51  ;;  %v24146_v12 = vsel %vm29_vm10, %v24133_v11, %v24135_v16 }
 0x9b7   :  { %v24169_v50 = vadd.f32 %v24146_v12, %v24102_v21 }
 0x9b8   :  { %24200 = vrot.lane.b32.xlu1 %v24168_v43, %s25434_s12  ;;  %v24137_v1 = vpop.permute.xlu0 %24136 }
 0x9b9   :  { %v24147_v7 = vsel %vm29_vm10, %v24135_v16, %v24137_v1  ;;  %24202 = vrot.lane.b32.xlu0 %v24169_v50, %s25434_s12  ;;  %v24171_v23 = vadd.f32 %v24137_v1, %v24104_v19 }
 0x9ba   :  { %v24170_v57 = vadd.f32 %v24147_v7, %v24103_v26 }
 0x9bc   :  { %24204 = vrot.lane.b32.xlu1 %v24170_v57, %s25434_s12 }
 0x9bd   :  { %24206 = vrot.lane.b32.xlu0 %v24171_v23, %s25434_s12 }
 0xa19   :  { %v24185_v46 = vpop.permute.xlu1 %24184 }
 0xa1b   :  { %v24187_v47 = vpop.permute.xlu0 %24186 }
 0xa1c   :  { %v24208_v17 = vsel %vm163_vm1, %v24185_v46, %v24187_v47 }
 0xa1d   :  { %24230 = vst [vmem:[%s29858_s8] sm:$0xff] %v24208_v17 }
 0xa1e   :  { %v24189_v6 = vpop.permute.xlu1 %24188 }
 0xa1f   :  { %v24209_v34 = vsel %vm163_vm1, %v24187_v47, %v24189_v6  ;;  %v24191_v14 = vpop.permute.xlu0 %24190 }
 0xa20   :  { %24231 = vst [vmem:[%s29858_s8 + $0x8] sm:$0xff] %v24209_v34  ;;  %v24210_v20 = vsel %vm163_vm1, %v24189_v6, %v24191_v14 }
 0xa21   :  { %24232 = vst [vmem:[%s29858_s8 + $0x10] sm:$0xff] %v24210_v20 }
 0xa22   :  { %v24193_v9 = vpop.permute.xlu1 %24192 }
 0xa23   :  { %v24211_v5 = vsel %vm163_vm1, %v24191_v14, %v24193_v9  ;;  %v24195_v31 = vpop.permute.xlu0 %24194 }
 0xa24   :  { %24233 = vst [vmem:[%s29858_s8 + $0x18] sm:$0xff] %v24211_v5  ;;  %v24212_v37 = vsel %vm163_vm1, %v24193_v9, %v24195_v31 }
 0xa25   :  { %24234 = vst [vmem:[%s29858_s8 + $0x20] sm:$0xff] %v24212_v37 }
 0xa26   :  { %v24197_v39 = vpop.permute.xlu1 %24196 }
 0xa27   :  { %v24213_v28 = vsel %vm163_vm1, %v24195_v31, %v24197_v39  ;;  %v24199_v0 = vpop.permute.xlu0 %24198 }
 0xa28   :  { %24235 = vst [vmem:[%s29858_s8 + $0x28] sm:$0xff] %v24213_v28  ;;  %v24214_v41 = vsel %vm163_vm1, %v24197_v39, %v24199_v0 }
 0xa29   :  { %24236 = vst [vmem:[%s29858_s8 + $0x30] sm:$0xff] %v24214_v41 }
 0xa2a   :  { %v24201_v33 = vpop.permute.xlu1 %24200 }
 0xa2b   :  { %v24215_v44 = vsel %vm163_vm1, %v24199_v0, %v24201_v33  ;;  %v24203_v35 = vpop.permute.xlu0 %24202 }
 0xa2c   :  { %24237 = vst [vmem:[%s29858_s8 + $0x38] sm:$0xff] %v24215_v44  ;;  %v24216_v60 = vsel %vm163_vm1, %v24201_v33, %v24203_v35 }
 0xa2d   :  { %24238 = vst [vmem:[%s29858_s8 + $0x40] sm:$0xff] %v24216_v60 }
 0xa2e   :  { %v24205_v4 = vpop.permute.xlu1 %24204 }
 0xa2f   :  { %v24217_v40 = vsel %vm163_vm1, %v24203_v35, %v24205_v4  ;;  %v24207_v13 = vpop.permute.xlu0 %24206 }
 0xa30   :  { %24239 = vst [vmem:[%s29858_s8 + $0x48] sm:$0xff] %v24217_v40  ;;  %v24218_v56 = vsel %vm163_vm1, %v24205_v4, %v24207_v13 }
 0xa31   :  { %24240 = vst [vmem:[%s29858_s8 + $0x50] sm:$0xff] %v24218_v56 }

</bundles_post_ra>
